<compile_context>
chip_gen: v5e
topology: v5e:2x2
jax: 0.10.0
libtpu: 0.0.40
codegen_flags: <defaults>
</compile_context>

<pallas_src>
import functools

import jax
import jax.numpy as jnp
from jax.experimental import pallas as pl
from jax.experimental.pallas import tpu as pltpu


_MXU_DTYPE = jnp.bfloat16   # MXU inputs; accumulation is always float32.


# ----------------------------------------------------------------------------
# Padded-flat activation layout helpers
#
# A (N, H, W, C) activation is stored as (N, Lp, C) where row r = ip*(W+2)+jp of
# image n holds the zero-padded (pad=1) pixel (ip, jp); Lp is rounded up so the
# in-kernel tap slices never run out of bounds.  Border + tail rows are zero.
# ----------------------------------------------------------------------------
def _round_up(x, m):
    return (x + m - 1) // m * m


def _padded_flat_len(H, W):
    Hp, Wp = H + 2, W + 2
    return _round_up(Hp * Wp + Wp, 8)


def to_padded_flat(x):
    """(N, H, W, C) f32 -> (N, Lp, C) padded-flat (pad=1, zero borders/tail)."""
    N, H, W, C = x.shape
    Hp, Wp = H + 2, W + 2
    Lp = _padded_flat_len(H, W)
    xp = jnp.pad(x, ((0, 0), (1, 1), (1, 1), (0, 0))).reshape(N, Hp * Wp, C)
    return jnp.pad(xp, ((0, 0), (0, Lp - Hp * Wp), (0, 0)))


def from_padded_flat(xpf, H, W):
    """(N, Lp, C) padded-flat -> dense (N, H, W, C)."""
    N, _, C = xpf.shape
    Hp, Wp = H + 2, W + 2
    return xpf[:, :Hp * Wp, :].reshape(N, Hp, Wp, C)[:, 1:1 + H, 1:1 + W, :]


# ----------------------------------------------------------------------------
# Pallas kernels
# ----------------------------------------------------------------------------
def _matmul_bias_act_kernel(act, p_ref, w_ref, b_ref, o_ref):
    """o = act(p @ w + b).  p:(TM,K) bf16, w:(K,Cout) bf16, b:(1,Cout) f32."""
    acc = jnp.dot(p_ref[...], w_ref[...], preferred_element_type=jnp.float32)
    acc = acc + b_ref[...]
    if act == "relu":
        acc = jnp.maximum(acc, 0.0)
    o_ref[...] = acc.astype(o_ref.dtype)


def _conv3x3_kernel(H, W, act, x_ref, w_ref, b_ref, o_ref):
    """Fused 3x3 / stride-1 / pad-1 conv on one image in padded-flat layout.

    x_ref:(Lp,Cin) f32   w_ref:(3,3,Cin,Cout) bf16   b_ref:(1,Cout) f32
    o_ref:(Lp,Cout) f32 in the same padded-flat layout (borders/tail zeroed).
    im2col is done in-kernel: each tap is a single contiguous-slice matmul over
    a "wide" output of H*(W+2) rows; junk columns are masked to zero.
    """
    Wp = W + 2
    HWp = H * Wp
    off = Wp + 1                      # shift from wide-row index to padded row
    Cout = w_ref.shape[-1]

    row = jax.lax.broadcasted_iota(jnp.int32, (HWp, 1), 0)
    valid = (row % Wp) < W

    acc = jnp.zeros((HWp, Cout), jnp.float32)
    for kh in range(3):
        for kw in range(3):
            s = kh * Wp + kw
            acc = acc + jnp.dot(x_ref[s:s + HWp, :].astype(_MXU_DTYPE),
                                w_ref[kh, kw],
                                preferred_element_type=jnp.float32)
    acc = acc + b_ref[...]
    if act == "relu":
        acc = jnp.maximum(acc, 0.0)
    elif act == "sigmoid":
        acc = jax.nn.sigmoid(acc)
    elif act == "sigmoid_bin":
        # Binarizer(sigmoid(x)) = (sigmoid(x) > 0.5).float() = (x > 0).float()
        acc = (acc > 0.0).astype(jnp.float32)
    acc = jnp.where(valid, acc, 0.0)

    o_ref[...] = jnp.zeros_like(o_ref)
    o_ref[off:off + HWp, :] = acc.astype(o_ref.dtype)


def _resblock_kernel(H, W, final_relu,
                     x_ref, w1_ref, b1_ref, w2_ref, b2_ref, o_ref, hpad_ref):
    """Fully fused ResBlock (+ trailing ReLU) on one image in padded-flat layout.

    y = relu(x + conv2(relu(conv1(x))))  -- both 3x3/s1/p1 convs done in-kernel,
    intermediate activation stays in the bf16 VMEM scratch `hpad_ref`.
    """
    Wp = W + 2
    HWp = H * Wp
    off = Wp + 1
    Cin = x_ref.shape[-1]
    nh = w1_ref.shape[-1]

    row = jax.lax.broadcasted_iota(jnp.int32, (HWp, 1), 0)
    valid = (row % Wp) < W

    # conv1 + bias + ReLU
    acc = jnp.zeros((HWp, nh), jnp.float32)
    for kh in range(3):
        for kw in range(3):
            s = kh * Wp + kw
            acc = acc + jnp.dot(x_ref[s:s + HWp, :].astype(_MXU_DTYPE),
                                w1_ref[kh, kw],
                                preferred_element_type=jnp.float32)
    h = jnp.maximum(acc + b1_ref[...], 0.0)
    h = jnp.where(valid, h, 0.0).astype(hpad_ref.dtype)

    # re-pad the intermediate inside VMEM (never leaves the chip)
    hpad_ref[...] = jnp.zeros_like(hpad_ref)
    hpad_ref[off:off + HWp, :] = h

    # conv2 + bias + residual + fused trailing ReLU (from the Sequential)
    acc2 = jnp.zeros((HWp, Cin), jnp.float32)
    for kh in range(3):
        for kw in range(3):
            s = kh * Wp + kw
            acc2 = acc2 + jnp.dot(hpad_ref[s:s + HWp, :],
                                  w2_ref[kh, kw],
                                  preferred_element_type=jnp.float32)
    y = acc2 + b2_ref[...] + x_ref[off:off + HWp, :]
    if final_relu:
        y = jnp.maximum(y, 0.0)
    y = jnp.where(valid, y, 0.0)

    o_ref[...] = jnp.zeros_like(o_ref)
    o_ref[off:off + HWp, :] = y.astype(o_ref.dtype)


# ----------------------------------------------------------------------------
# pallas_call wrappers
# ----------------------------------------------------------------------------
def _choose_tm(M):
    """Bounded M-tile (VMEM-safe at large inputs); prefer >=2 tiles so both
    v7x TensorCores get work when the grid is marked parallel."""
    for tm in (256, 128, 64, 32, 16, 8):
        if M % tm == 0 and M // tm >= 2:
            return tm
    for tm in (256, 128, 64, 32, 16, 8):
        if M % tm == 0:
            return tm
    return M


def conv_im2col(xp, w2d, b, *, ksize, stride, out_hw, act):
    """Strided conv via (small) wrapper-side im2col + fused matmul kernel.

    xp: already spatially padded NHWC f32.  w2d: (K, Cout) bf16.  b: (1, Cout) f32.
    """
    N = xp.shape[0]
    Cin = xp.shape[-1]
    Ho, Wo = out_hw
    KH = KW = ksize

    cols = []
    for kh in range(KH):
        for kw in range(KW):
            cols.append(xp[:, kh:kh + (Ho - 1) * stride + 1:stride,
                              kw:kw + (Wo - 1) * stride + 1:stride, :])
    patches = jnp.stack(cols, axis=3).reshape(N * Ho * Wo, KH * KW * Cin)
    patches = patches.astype(_MXU_DTYPE)                     # halve DMA bytes

    M, K = patches.shape
    Cout = w2d.shape[-1]
    TM = _choose_tm(M)

    out = pl.pallas_call(
        functools.partial(_matmul_bias_act_kernel, act),
        out_shape=jax.ShapeDtypeStruct((M, Cout), jnp.float32),
        grid_spec=pltpu.PrefetchScalarGridSpec(
            num_scalar_prefetch=0,
            grid=(M // TM,),
            in_specs=[
                pl.BlockSpec((TM, K), lambda i: (i, 0)),
                pl.BlockSpec((K, Cout), lambda i: (0, 0)),    # weight stays resident
                pl.BlockSpec((1, Cout), lambda i: (0, 0)),
            ],
            out_specs=pl.BlockSpec((TM, Cout), lambda i: (i, 0)),
        ),
        compiler_params=pltpu.CompilerParams(dimension_semantics=("parallel",)),
    )(patches, w2d, b)
    return out.reshape(N, Ho, Wo, Cout)


def conv3x3_fused(xpf, w, b, *, H, W, act):
    """Fused 3x3/s1/p1 conv over a padded-flat activation; grid = batch (parallel)."""
    N, Lp, Cin = xpf.shape
    Cout = w.shape[-1]
    return pl.pallas_call(
        functools.partial(_conv3x3_kernel, H, W, act),
        out_shape=jax.ShapeDtypeStruct((N, Lp, Cout), jnp.float32),
        grid_spec=pltpu.PrefetchScalarGridSpec(
            num_scalar_prefetch=0,
            grid=(N,),
            in_specs=[
                pl.BlockSpec((None, Lp, Cin), lambda n: (n, 0, 0)),
                pl.BlockSpec((3, 3, Cin, Cout), lambda n: (0, 0, 0, 0)),
                pl.BlockSpec((1, Cout), lambda n: (0, 0)),
            ],
            out_specs=pl.BlockSpec((None, Lp, Cout), lambda n: (n, 0, 0)),
        ),
        compiler_params=pltpu.CompilerParams(dimension_semantics=("parallel",)),
    )(xpf, w, b)


def resblock_fused(xpf, p, *, H, W, final_relu=True):
    """One pallas_call per ResBlock (+ trailing ReLU); grid = batch (parallel)."""
    N, Lp, Cin = xpf.shape
    nh = p["w1"].shape[-1]
    return pl.pallas_call(
        functools.partial(_resblock_kernel, H, W, final_relu),
        out_shape=jax.ShapeDtypeStruct((N, Lp, Cin), jnp.float32),
        grid_spec=pltpu.PrefetchScalarGridSpec(
            num_scalar_prefetch=0,
            grid=(N,),
            in_specs=[
                pl.BlockSpec((None, Lp, Cin), lambda n: (n, 0, 0)),
                pl.BlockSpec((3, 3, Cin, nh), lambda n: (0, 0, 0, 0)),
                pl.BlockSpec((1, nh), lambda n: (0, 0)),
                pl.BlockSpec((3, 3, nh, Cin), lambda n: (0, 0, 0, 0)),
                pl.BlockSpec((1, Cin), lambda n: (0, 0)),
            ],
            out_specs=pl.BlockSpec((None, Lp, Cin), lambda n: (n, 0, 0)),
            scratch_shapes=[pltpu.VMEM((Lp, nh), _MXU_DTYPE)],
        ),
        compiler_params=pltpu.CompilerParams(dimension_semantics=("parallel",)),
    )(xpf, p["w1"], p["b1"], p["w2"], p["b2"])


# ----------------------------------------------------------------------------
# Parameters (same shapes / init statistics as the PyTorch module; weights are
# pre-cast to bf16 and, for the head / importance-map tail, lane-padded to 128).
# ----------------------------------------------------------------------------
def make_encoder_params(key):
    ks = jax.random.split(key, 9)

    def conv_w(k, cin, cout, ksz, mode="kaiming", zero=False):
        shape = (ksz, ksz, cin, cout)
        if zero:
            return jnp.zeros(shape, jnp.float32)
        fan_in = cin * ksz * ksz
        fan_out = cout * ksz * ksz
        std = (2.0 / fan_in) ** 0.5 if mode == "kaiming" else (2.0 / (fan_in + fan_out)) ** 0.5
        return std * jax.random.normal(k, shape, jnp.float32)

    def stem_entry(w):                       # pre-flatten + pre-cast for im2col matmul
        ksz, _, cin, cout = w.shape
        return {"w": w.reshape(ksz * ksz * cin, cout).astype(_MXU_DTYPE),
                "b": jnp.zeros((1, cout), jnp.float32)}

    def conv3_entry(w):
        return {"w": w.astype(_MXU_DTYPE),
                "b": jnp.zeros((1, w.shape[-1]), jnp.float32)}

    def conv3_entry_lanepad(w, to=128):      # pad Cout -> 128 lanes (sliced in wrapper)
        cout = w.shape[-1]
        wpad = jnp.pad(w, ((0, 0), (0, 0), (0, 0), (0, to - cout)))
        return {"w": wpad.astype(_MXU_DTYPE), "b": jnp.zeros((1, to), jnp.float32)}

    def res_entry(k, cin, nh=128):
        return {"w1": conv_w(k, cin, nh, 3).astype(_MXU_DTYPE),
                "b1": jnp.zeros((1, nh), jnp.float32),
                "w2": jnp.zeros((3, 3, nh, cin), _MXU_DTYPE),   # ResBlock conv2: zero init
                "b2": jnp.zeros((1, cin), jnp.float32)}

    p = {}
    p["stem0"] = stem_entry(conv_w(ks[0], 3, 128, 8))                     # conv(3,128,8,4,2)
    p["res1"] = res_entry(ks[1], 128)                                     # ResBlock(128)
    p["stem1"] = stem_entry(conv_w(ks[2], 128, 256, 4))                   # conv(128,256,4,2,1)
    p["res2"] = res_entry(ks[3], 256)                                     # ResBlock(256)
    p["res3"] = res_entry(ks[4], 256)                                     # ResBlock(256)
    p["head"] = conv3_entry_lanepad(conv_w(ks[5], 256, 64, 3, mode="xavier"))
    p["imp0"] = conv3_entry(conv_w(ks[6], 256, 128, 3))
    p["imp1"] = conv3_entry(conv_w(ks[7], 128, 128, 3))
    p["imp2"] = conv3_entry_lanepad(conv_w(ks[8], 128, 1, 3, mode="xavier"))
    return p


# ----------------------------------------------------------------------------
# Encoder forward (NCHW in / NCHW out, matching PyTorch)
# ----------------------------------------------------------------------------
def encoder_forward(x_nchw, params, return_imp_map=False):
    x = jnp.transpose(x_nchw.astype(jnp.float32), (0, 2, 3, 1))       # NCHW -> NHWC
    N, H0, W0, _ = x.shape

    # conv(3, 128, 8, 4, 2) + ReLU
    H1 = (H0 + 2 * 2 - 8) // 4 + 1
    W1 = (W0 + 2 * 2 - 8) // 4 + 1
    xp = jnp.pad(x, ((0, 0), (2, 2), (2, 2), (0, 0)))
    h = conv_im2col(xp, params["stem0"]["w"], params["stem0"]["b"],
                    ksize=8, stride=4, out_hw=(H1, W1), act="relu")

    # ResBlock(128) + ReLU  (single fused kernel)
    hpf = to_padded_flat(h)
    hpf = resblock_fused(hpf, params["res1"], H=H1, W=W1)

    # conv(128, 256, 4, 2, 1) + ReLU -- the padded-flat ResBlock output already
    # carries the pad=1 halo this conv needs (no extra jnp.pad).
    H2 = (H1 + 2 * 1 - 4) // 2 + 1
    W2 = (W1 + 2 * 1 - 4) // 2 + 1
    xp = hpf[:, :(H1 + 2) * (W1 + 2), :].reshape(N, H1 + 2, W1 + 2, hpf.shape[-1])
    h = conv_im2col(xp, params["stem1"]["w"], params["stem1"]["b"],
                    ksize=4, stride=2, out_hw=(H2, W2), act="relu")

    # ResBlock(256) + ReLU, twice  (single fused kernel each)
    spf = to_padded_flat(h)
    spf = resblock_fused(spf, params["res2"], H=H2, W=W2)
    spf = resblock_fused(spf, params["res3"], H=H2, W=W2)

    # head: conv(256, 64, 3, 1, 1) + Sigmoid + Binarizer fused (Cout lane-padded to 128)
    hd = conv3x3_fused(spf, params["head"]["w"], params["head"]["b"],
                       H=H2, W=W2, act="sigmoid_bin")
    head = from_padded_flat(hd, H2, W2)[..., :64]
    head = jnp.transpose(head, (0, 3, 1, 2))                          # NHWC -> NCHW

    if return_imp_map:
        m = conv3x3_fused(spf, params["imp0"]["w"], params["imp0"]["b"],
                          H=H2, W=W2, act="relu")
        m = conv3x3_fused(m, params["imp1"]["w"], params["imp1"]["b"],
                          H=H2, W=W2, act="relu")
        m = conv3x3_fused(m, params["imp2"]["w"], params["imp2"]["b"],
                          H=H2, W=W2, act="sigmoid")
        imp = from_padded_flat(m, H2, W2)[..., :1]
        return head, jnp.transpose(imp, (0, 3, 1, 2))
    return head


if __name__ == "__main__":
    key = jax.random.PRNGKey(0)
    k_x, k_p = jax.random.split(key)

    # small NCHW input: batch=2, channels=3 (fixed by the module), spatial=32
    x = jax.random.normal(k_x, (2, 3, 32, 32), jnp.float32)
    params = make_encoder_params(k_p)

    fwd = jax.jit(functools.partial(encoder_forward, return_imp_map=False))
    out = fwd(x, params)
    jax.block_until_ready(out)
    assert out.shape == (2, 64, 4, 4), out.shape
    assert out.dtype == jnp.float32
    # Binarizer output must be strictly {0, 1}
    assert bool(jnp.all((out == 0.0) | (out == 1.0)))

    # also exercise the importance-map branch
    fwd_imp = jax.jit(functools.partial(encoder_forward, return_imp_map=True))
    out2, imp = fwd_imp(x, params)
    jax.block_until_ready((out2, imp))
    assert imp.shape == (2, 1, 4, 4), imp.shape
    assert bool(jnp.all((imp >= 0.0) & (imp <= 1.0)))

    print("KERNEL_OK")
</pallas_src>

<mosaic_0001>
module attributes {stable_mosaic.version = 11 : i64} {
  func.func @_matmul_bias_act_kernel(%arg0: i32, %arg1: memref<64x192xbf16, #tpu.memory_space<vmem>>, %arg2: memref<192x128xbf16, #tpu.memory_space<vmem>>, %arg3: memref<1x128xf32, #tpu.memory_space<vmem>>, %arg4: memref<64x128xf32, #tpu.memory_space<vmem>>) attributes {dimension_semantics = [#tpu.dimension_semantics<parallel>], iteration_bounds = array<i64: 2>, scalar_prefetch = 0 : i64, scratch_operands = 0 : i64, tpu.core_type = #tpu.core_type<tc>, window_params = [{transform_indices = @transform_0, window_bounds = array<i64: 64, 192>}, {pipeline_mode = #tpu.pipeline_mode<synchronous>, transform_indices = @transform_1, window_bounds = array<i64: 192, 128>}, {pipeline_mode = #tpu.pipeline_mode<synchronous>, transform_indices = @transform_2, window_bounds = array<i64: 1, 128>}, {transform_indices = @transform_3, window_bounds = array<i64: 64, 128>}]} {
    %c0 = arith.constant 0 : index
    %c0_0 = arith.constant 0 : index
    %0 = vector.load %arg1[%c0, %c0_0] : memref<64x192xbf16, #tpu.memory_space<vmem>>, vector<64x192xbf16>
    %c0_1 = arith.constant 0 : index
    %c0_2 = arith.constant 0 : index
    %1 = vector.load %arg2[%c0_1, %c0_2] : memref<192x128xbf16, #tpu.memory_space<vmem>>, vector<192x128xbf16>
    %cst = arith.constant dense<0.000000e+00> : vector<64x128xf32>
    %2 = tpu.matmul %0, %1, %cst {dimension_numbers = #tpu.dot_dimension_numbers<[1], [0], [0], [1], [0, 0, 1, 1], [], []>} : vector<64x192xbf16>, vector<192x128xbf16>, vector<64x128xf32> -> vector<64x128xf32>
    %c0_3 = arith.constant 0 : index
    %c0_4 = arith.constant 0 : index
    %3 = vector.load %arg3[%c0_3, %c0_4] : memref<1x128xf32, #tpu.memory_space<vmem>>, vector<1x128xf32>
    %4 = vector.broadcast %3 : vector<1x128xf32> to vector<64x128xf32>
    %5 = arith.addf %2, %4 : vector<64x128xf32>
    %cst_5 = arith.constant 0.000000e+00 : f32
    %6 = vector.broadcast %cst_5 : f32 to vector<64x128xf32>
    %7 = arith.maximumf %5, %6 : vector<64x128xf32>
    %c0_6 = arith.constant 0 : index
    %c0_7 = arith.constant 0 : index
    %8 = vector.load %arg4[%c0_6, %c0_7] : memref<64x128xf32, #tpu.memory_space<vmem>>, vector<64x128xf32>
    tpu.vector_store %arg4[%c0_6, %c0_7], %7 {strides = array<i32>} : memref<64x128xf32, #tpu.memory_space<vmem>>, vector<64x128xf32>,
    return
  }
  func.func @transform_0(%arg0: i32) -> (i32, i32) {
    %c0_i32 = arith.constant 0 : i32
    %c0_i32_0 = arith.constant 0 : i32
    return %arg0, %c0_i32 : i32, i32
  }
  func.func @transform_1(%arg0: i32) -> (i32, i32) {
    %c0_i32 = arith.constant 0 : i32
    %c0_i32_0 = arith.constant 0 : i32
    %c0_i32_1 = arith.constant 0 : i32
    return %c0_i32, %c0_i32_0 : i32, i32
  }
  func.func @transform_2(%arg0: i32) -> (i32, i32) {
    %c0_i32 = arith.constant 0 : i32
    %c0_i32_0 = arith.constant 0 : i32
    %c0_i32_1 = arith.constant 0 : i32
    return %c0_i32, %c0_i32_0 : i32, i32
  }
  func.func @transform_3(%arg0: i32) -> (i32, i32) {
    %c0_i32 = arith.constant 0 : i32
    %c0_i32_0 = arith.constant 0 : i32
    return %arg0, %c0_i32 : i32, i32
  }
}

module attributes {stable_mosaic.version = 11 : i64} {
  func.func @_resblock_kernel(%arg0: i32, %arg1: memref<1x112x128xf32, #tpu.memory_space<vmem>>, %arg2: memref<3x3x128x128xbf16, #tpu.memory_space<vmem>>, %arg3: memref<1x128xf32, #tpu.memory_space<vmem>>, %arg4: memref<3x3x128x128xbf16, #tpu.memory_space<vmem>>, %arg5: memref<1x128xf32, #tpu.memory_space<vmem>>, %arg6: memref<1x112x128xf32, #tpu.memory_space<vmem>>, %arg7: memref<112x128xbf16, #tpu.memory_space<vmem>>) attributes {dimension_semantics = [#tpu.dimension_semantics<parallel>], iteration_bounds = array<i64: 2>, scalar_prefetch = 0 : i64, scratch_operands = 1 : i64, tpu.core_type = #tpu.core_type<tc>, window_params = [{transform_indices = @transform_0, window_bounds = array<i64: 1, 112, 128>}, {pipeline_mode = #tpu.pipeline_mode<synchronous>, transform_indices = @transform_1, window_bounds = array<i64: 3, 3, 128, 128>}, {pipeline_mode = #tpu.pipeline_mode<synchronous>, transform_indices = @transform_2, window_bounds = array<i64: 1, 128>}, {pipeline_mode = #tpu.pipeline_mode<synchronous>, transform_indices = @transform_3, window_bounds = array<i64: 3, 3, 128, 128>}, {pipeline_mode = #tpu.pipeline_mode<synchronous>, transform_indices = @transform_4, window_bounds = array<i64: 1, 128>}, {transform_indices = @transform_5, window_bounds = array<i64: 1, 112, 128>}]} {
    %0 = tpu.iota {dimensions = array<i32: 0>} : vector<80x1xi32>
    %c10_i32 = arith.constant 10 : i32
    %c0_i32 = arith.constant 0 : i32
    %1 = arith.cmpi eq, %c10_i32, %c0_i32 : i32
    %c1_i32 = arith.constant 1 : i32
    %2 = arith.select %1, %c1_i32, %c10_i32 : i32
    %3 = vector.broadcast %2 : i32 to vector<80x1xi32>
    %4 = arith.remsi %0, %3 : vector<80x1xi32>
    %c0_i32_0 = arith.constant 0 : i32
    %5 = vector.broadcast %c0_i32_0 : i32 to vector<80x1xi32>
    %6 = arith.cmpi ne, %4, %5 : vector<80x1xi32>
    %c0_i32_1 = arith.constant 0 : i32
    %7 = vector.broadcast %c0_i32_1 : i32 to vector<80x1xi32>
    %8 = arith.cmpi slt, %4, %7 : vector<80x1xi32>
    %c0_i32_2 = arith.constant 0 : i32
    %9 = arith.cmpi slt, %2, %c0_i32_2 : i32
    %10 = vector.broadcast %9 : i1 to vector<80x1xi1>
    %11 = vector.broadcast %10 : vector<80x1xi1> to vector<80x1xi1>
    %12 = arith.xori %8, %11 : vector<80x1xi1>
    %13 = arith.andi %12, %6 : vector<80x1xi1>
    %14 = vector.broadcast %2 : i32 to vector<80x1xi32>
    %15 = arith.addi %4, %14 : vector<80x1xi32>
    %16 = arith.select %13, %15, %4 : vector<80x1xi1>, vector<80x1xi32>
    %c8_i32 = arith.constant 8 : i32
    %17 = vector.broadcast %c8_i32 : i32 to vector<80x1xi32>
    %18 = arith.cmpi slt, %16, %17 : vector<80x1xi32>
    %cst = arith.constant 0.000000e+00 : f32
    %19 = vector.broadcast %cst : f32 to vector<80x128xf32>
    %c0 = arith.constant 0 : index
    %c0_3 = arith.constant 0 : index
    %c0_4 = arith.constant 0 : index
    %20 = vector.load %arg1[%c0, %c0_3, %c0_4] : memref<1x112x128xf32, #tpu.memory_space<vmem>>, vector<1x80x128xf32>
    %21 = vector.shape_cast %20 : vector<1x80x128xf32> to vector<80x128xf32>
    %22 = arith.truncf %21 : vector<80x128xf32> to vector<80x128xbf16>
    %c0_5 = arith.constant 0 : index
    %c0_6 = arith.constant 0 : index
    %c0_7 = arith.constant 0 : index
    %c0_8 = arith.constant 0 : index
    %23 = vector.load %arg2[%c0_5, %c0_6, %c0_7, %c0_8] : memref<3x3x128x128xbf16, #tpu.memory_space<vmem>>, vector<1x1x128x128xbf16>
    %24 = vector.shape_cast %23 : vector<1x1x128x128xbf16> to vector<128x128xbf16>
    %cst_9 = arith.constant dense<0.000000e+00> : vector<80x128xf32>
    %25 = tpu.matmul %22, %24, %cst_9 {dimension_numbers = #tpu.dot_dimension_numbers<[1], [0], [0], [1], [0, 0, 1, 1], [], []>} : vector<80x128xbf16>, vector<128x128xbf16>, vector<80x128xf32> -> vector<80x128xf32>
    %26 = arith.addf %19, %25 : vector<80x128xf32>
    %c0_10 = arith.constant 0 : index
    %c1 = arith.constant 1 : index
    %c0_11 = arith.constant 0 : index
    %27 = vector.load %arg1[%c0_10, %c1, %c0_11] : memref<1x112x128xf32, #tpu.memory_space<vmem>>, vector<1x80x128xf32>
    %28 = vector.shape_cast %27 : vector<1x80x128xf32> to vector<80x128xf32>
    %29 = arith.truncf %28 : vector<80x128xf32> to vector<80x128xbf16>
    %c0_12 = arith.constant 0 : index
    %c1_13 = arith.constant 1 : index
    %c0_14 = arith.constant 0 : index
    %c0_15 = arith.constant 0 : index
    %30 = vector.load %arg2[%c0_12, %c1_13, %c0_14, %c0_15] : memref<3x3x128x128xbf16, #tpu.memory_space<vmem>>, vector<1x1x128x128xbf16>
    %31 = vector.shape_cast %30 : vector<1x1x128x128xbf16> to vector<128x128xbf16>
    %cst_16 = arith.constant dense<0.000000e+00> : vector<80x128xf32>
    %32 = tpu.matmul %29, %31, %cst_16 {dimension_numbers = #tpu.dot_dimension_numbers<[1], [0], [0], [1], [0, 0, 1, 1], [], []>} : vector<80x128xbf16>, vector<128x128xbf16>, vector<80x128xf32> -> vector<80x128xf32>
    %33 = arith.addf %26, %32 : vector<80x128xf32>
    %c0_17 = arith.constant 0 : index
    %c2 = arith.constant 2 : index
    %c0_18 = arith.constant 0 : index
    %34 = vector.load %arg1[%c0_17, %c2, %c0_18] : memref<1x112x128xf32, #tpu.memory_space<vmem>>, vector<1x80x128xf32>
    %35 = vector.shape_cast %34 : vector<1x80x128xf32> to vector<80x128xf32>
    %36 = arith.truncf %35 : vector<80x128xf32> to vector<80x128xbf16>
    %c0_19 = arith.constant 0 : index
    %c2_20 = arith.constant 2 : index
    %c0_21 = arith.constant 0 : index
    %c0_22 = arith.constant 0 : index
    %37 = vector.load %arg2[%c0_19, %c2_20, %c0_21, %c0_22] : memref<3x3x128x128xbf16, #tpu.memory_space<vmem>>, vector<1x1x128x128xbf16>
    %38 = vector.shape_cast %37 : vector<1x1x128x128xbf16> to vector<128x128xbf16>
    %cst_23 = arith.constant dense<0.000000e+00> : vector<80x128xf32>
    %39 = tpu.matmul %36, %38, %cst_23 {dimension_numbers = #tpu.dot_dimension_numbers<[1], [0], [0], [1], [0, 0, 1, 1], [], []>} : vector<80x128xbf16>, vector<128x128xbf16>, vector<80x128xf32> -> vector<80x128xf32>
    %40 = arith.addf %33, %39 : vector<80x128xf32>
    %c0_24 = arith.constant 0 : index
    %c10 = arith.constant 10 : index
    %c0_25 = arith.constant 0 : index
    %41 = vector.load %arg1[%c0_24, %c10, %c0_25] : memref<1x112x128xf32, #tpu.memory_space<vmem>>, vector<1x80x128xf32>
    %42 = vector.shape_cast %41 : vector<1x80x128xf32> to vector<80x128xf32>
    %43 = arith.truncf %42 : vector<80x128xf32> to vector<80x128xbf16>
    %c1_26 = arith.constant 1 : index
    %c0_27 = arith.constant 0 : index
    %c0_28 = arith.constant 0 : index
    %c0_29 = arith.constant 0 : index
    %44 = vector.load %arg2[%c1_26, %c0_27, %c0_28, %c0_29] : memref<3x3x128x128xbf16, #tpu.memory_space<vmem>>, vector<1x1x128x128xbf16>
    %45 = vector.shape_cast %44 : vector<1x1x128x128xbf16> to vector<128x128xbf16>
    %cst_30 = arith.constant dense<0.000000e+00> : vector<80x128xf32>
    %46 = tpu.matmul %43, %45, %cst_30 {dimension_numbers = #tpu.dot_dimension_numbers<[1], [0], [0], [1], [0, 0, 1, 1], [], []>} : vector<80x128xbf16>, vector<128x128xbf16>, vector<80x128xf32> -> vector<80x128xf32>
    %47 = arith.addf %40, %46 : vector<80x128xf32>
    %c0_31 = arith.constant 0 : index
    %c11 = arith.constant 11 : index
    %c0_32 = arith.constant 0 : index
    %48 = vector.load %arg1[%c0_31, %c11, %c0_32] : memref<1x112x128xf32, #tpu.memory_space<vmem>>, vector<1x80x128xf32>
    %49 = vector.shape_cast %48 : vector<1x80x128xf32> to vector<80x128xf32>
    %50 = arith.truncf %49 : vector<80x128xf32> to vector<80x128xbf16>
    %c1_33 = arith.constant 1 : index
    %c1_34 = arith.constant 1 : index
    %c0_35 = arith.constant 0 : index
    %c0_36 = arith.constant 0 : index
    %51 = vector.load %arg2[%c1_33, %c1_34, %c0_35, %c0_36] : memref<3x3x128x128xbf16, #tpu.memory_space<vmem>>, vector<1x1x128x128xbf16>
    %52 = vector.shape_cast %51 : vector<1x1x128x128xbf16> to vector<128x128xbf16>
    %cst_37 = arith.constant dense<0.000000e+00> : vector<80x128xf32>
    %53 = tpu.matmul %50, %52, %cst_37 {dimension_numbers = #tpu.dot_dimension_numbers<[1], [0], [0], [1], [0, 0, 1, 1], [], []>} : vector<80x128xbf16>, vector<128x128xbf16>, vector<80x128xf32> -> vector<80x128xf32>
    %54 = arith.addf %47, %53 : vector<80x128xf32>
    %c0_38 = arith.constant 0 : index
    %c12 = arith.constant 12 : index
    %c0_39 = arith.constant 0 : index
    %55 = vector.load %arg1[%c0_38, %c12, %c0_39] : memref<1x112x128xf32, #tpu.memory_space<vmem>>, vector<1x80x128xf32>
    %56 = vector.shape_cast %55 : vector<1x80x128xf32> to vector<80x128xf32>
    %57 = arith.truncf %56 : vector<80x128xf32> to vector<80x128xbf16>
    %c1_40 = arith.constant 1 : index
    %c2_41 = arith.constant 2 : index
    %c0_42 = arith.constant 0 : index
    %c0_43 = arith.constant 0 : index
    %58 = vector.load %arg2[%c1_40, %c2_41, %c0_42, %c0_43] : memref<3x3x128x128xbf16, #tpu.memory_space<vmem>>, vector<1x1x128x128xbf16>
    %59 = vector.shape_cast %58 : vector<1x1x128x128xbf16> to vector<128x128xbf16>
    %cst_44 = arith.constant dense<0.000000e+00> : vector<80x128xf32>
    %60 = tpu.matmul %57, %59, %cst_44 {dimension_numbers = #tpu.dot_dimension_numbers<[1], [0], [0], [1], [0, 0, 1, 1], [], []>} : vector<80x128xbf16>, vector<128x128xbf16>, vector<80x128xf32> -> vector<80x128xf32>
    %61 = arith.addf %54, %60 : vector<80x128xf32>
    %c0_45 = arith.constant 0 : index
    %c20 = arith.constant 20 : index
    %c0_46 = arith.constant 0 : index
    %62 = vector.load %arg1[%c0_45, %c20, %c0_46] : memref<1x112x128xf32, #tpu.memory_space<vmem>>, vector<1x80x128xf32>
    %63 = vector.shape_cast %62 : vector<1x80x128xf32> to vector<80x128xf32>
    %64 = arith.truncf %63 : vector<80x128xf32> to vector<80x128xbf16>
    %c2_47 = arith.constant 2 : index
    %c0_48 = arith.constant 0 : index
    %c0_49 = arith.constant 0 : index
    %c0_50 = arith.constant 0 : index
    %65 = vector.load %arg2[%c2_47, %c0_48, %c0_49, %c0_50] : memref<3x3x128x128xbf16, #tpu.memory_space<vmem>>, vector<1x1x128x128xbf16>
    %66 = vector.shape_cast %65 : vector<1x1x128x128xbf16> to vector<128x128xbf16>
    %cst_51 = arith.constant dense<0.000000e+00> : vector<80x128xf32>
    %67 = tpu.matmul %64, %66, %cst_51 {dimension_numbers = #tpu.dot_dimension_numbers<[1], [0], [0], [1], [0, 0, 1, 1], [], []>} : vector<80x128xbf16>, vector<128x128xbf16>, vector<80x128xf32> -> vector<80x128xf32>
    %68 = arith.addf %61, %67 : vector<80x128xf32>
    %c0_52 = arith.constant 0 : index
    %c21 = arith.constant 21 : index
    %c0_53 = arith.constant 0 : index
    %69 = vector.load %arg1[%c0_52, %c21, %c0_53] : memref<1x112x128xf32, #tpu.memory_space<vmem>>, vector<1x80x128xf32>
    %70 = vector.shape_cast %69 : vector<1x80x128xf32> to vector<80x128xf32>
    %71 = arith.truncf %70 : vector<80x128xf32> to vector<80x128xbf16>
    %c2_54 = arith.constant 2 : index
    %c1_55 = arith.constant 1 : index
    %c0_56 = arith.constant 0 : index
    %c0_57 = arith.constant 0 : index
    %72 = vector.load %arg2[%c2_54, %c1_55, %c0_56, %c0_57] : memref<3x3x128x128xbf16, #tpu.memory_space<vmem>>, vector<1x1x128x128xbf16>
    %73 = vector.shape_cast %72 : vector<1x1x128x128xbf16> to vector<128x128xbf16>
    %cst_58 = arith.constant dense<0.000000e+00> : vector<80x128xf32>
    %74 = tpu.matmul %71, %73, %cst_58 {dimension_numbers = #tpu.dot_dimension_numbers<[1], [0], [0], [1], [0, 0, 1, 1], [], []>} : vector<80x128xbf16>, vector<128x128xbf16>, vector<80x128xf32> -> vector<80x128xf32>
    %75 = arith.addf %68, %74 : vector<80x128xf32>
    %c0_59 = arith.constant 0 : index
    %c22 = arith.constant 22 : index
    %c0_60 = arith.constant 0 : index
    %76 = vector.load %arg1[%c0_59, %c22, %c0_60] : memref<1x112x128xf32, #tpu.memory_space<vmem>>, vector<1x80x128xf32>
    %77 = vector.shape_cast %76 : vector<1x80x128xf32> to vector<80x128xf32>
    %78 = arith.truncf %77 : vector<80x128xf32> to vector<80x128xbf16>
    %c2_61 = arith.constant 2 : index
    %c2_62 = arith.constant 2 : index
    %c0_63 = arith.constant 0 : index
    %c0_64 = arith.constant 0 : index
    %79 = vector.load %arg2[%c2_61, %c2_62, %c0_63, %c0_64] : memref<3x3x128x128xbf16, #tpu.memory_space<vmem>>, vector<1x1x128x128xbf16>
    %80 = vector.shape_cast %79 : vector<1x1x128x128xbf16> to vector<128x128xbf16>
    %cst_65 = arith.constant dense<0.000000e+00> : vector<80x128xf32>
    %81 = tpu.matmul %78, %80, %cst_65 {dimension_numbers = #tpu.dot_dimension_numbers<[1], [0], [0], [1], [0, 0, 1, 1], [], []>} : vector<80x128xbf16>, vector<128x128xbf16>, vector<80x128xf32> -> vector<80x128xf32>
    %82 = arith.addf %75, %81 : vector<80x128xf32>
    %c0_66 = arith.constant 0 : index
    %c0_67 = arith.constant 0 : index
    %83 = vector.load %arg3[%c0_66, %c0_67] : memref<1x128xf32, #tpu.memory_space<vmem>>, vector<1x128xf32>
    %84 = vector.broadcast %83 : vector<1x128xf32> to vector<80x128xf32>
    %85 = arith.addf %82, %84 : vector<80x128xf32>
    %cst_68 = arith.constant 0.000000e+00 : f32
    %86 = vector.broadcast %cst_68 : f32 to vector<80x128xf32>
    %87 = arith.maximumf %85, %86 : vector<80x128xf32>
    %cst_69 = arith.constant 0.000000e+00 : f32
    %88 = vector.shape_cast %18 : vector<80x1xi1> to vector<80x1xi1>
    %89 = vector.broadcast %88 : vector<80x1xi1> to vector<80x128xi1>
    %90 = vector.broadcast %cst_69 : f32 to vector<80x128xf32>
    %91 = arith.select %89, %87, %90 : vector<80x128xi1>, vector<80x128xf32>
    %92 = arith.truncf %91 : vector<80x128xf32> to vector<80x128xbf16>
    %cst_70 = arith.constant 0.000000e+00 : bf16
    %93 = vector.broadcast %cst_70 : bf16 to vector<112x128xbf16>
    %c0_71 = arith.constant 0 : index
    %c0_72 = arith.constant 0 : index
    %94 = vector.load %arg7[%c0_71, %c0_72] : memref<112x128xbf16, #tpu.memory_space<vmem>>, vector<112x128xbf16>
    tpu.vector_store %arg7[%c0_71, %c0_72], %93 {strides = array<i32>} : memref<112x128xbf16, #tpu.memory_space<vmem>>, vector<112x128xbf16>,
    %c11_73 = arith.constant 11 : index
    %c0_74 = arith.constant 0 : index
    %95 = vector.load %arg7[%c11_73, %c0_74] : memref<112x128xbf16, #tpu.memory_space<vmem>>, vector<80x128xbf16>
    tpu.vector_store %arg7[%c11_73, %c0_74], %92 {strides = array<i32>} : memref<112x128xbf16, #tpu.memory_space<vmem>>, vector<80x128xbf16>,
    %cst_75 = arith.constant 0.000000e+00 : f32
    %96 = vector.broadcast %cst_75 : f32 to vector<80x128xf32>
    %c0_76 = arith.constant 0 : index
    %c0_77 = arith.constant 0 : index
    %97 = vector.load %arg7[%c0_76, %c0_77] : memref<112x128xbf16, #tpu.memory_space<vmem>>, vector<80x128xbf16>
    %c0_78 = arith.constant 0 : index
    %c0_79 = arith.constant 0 : index
    %c0_80 = arith.constant 0 : index
    %c0_81 = arith.constant 0 : index
    %98 = vector.load %arg4[%c0_78, %c0_79, %c0_80, %c0_81] : memref<3x3x128x128xbf16, #tpu.memory_space<vmem>>, vector<1x1x128x128xbf16>
    %99 = vector.shape_cast %98 : vector<1x1x128x128xbf16> to vector<128x128xbf16>
    %cst_82 = arith.constant dense<0.000000e+00> : vector<80x128xf32>
    %100 = tpu.matmul %97, %99, %cst_82 {dimension_numbers = #tpu.dot_dimension_numbers<[1], [0], [0], [1], [0, 0, 1, 1], [], []>} : vector<80x128xbf16>, vector<128x128xbf16>, vector<80x128xf32> -> vector<80x128xf32>
    %101 = arith.addf %96, %100 : vector<80x128xf32>
    %c1_83 = arith.constant 1 : index
    %c0_84 = arith.constant 0 : index
    %102 = vector.load %arg7[%c1_83, %c0_84] : memref<112x128xbf16, #tpu.memory_space<vmem>>, vector<80x128xbf16>
    %c0_85 = arith.constant 0 : index
    %c1_86 = arith.constant 1 : index
    %c0_87 = arith.constant 0 : index
    %c0_88 = arith.constant 0 : index
    %103 = vector.load %arg4[%c0_85, %c1_86, %c0_87, %c0_88] : memref<3x3x128x128xbf16, #tpu.memory_space<vmem>>, vector<1x1x128x128xbf16>
    %104 = vector.shape_cast %103 : vector<1x1x128x128xbf16> to vector<128x128xbf16>
    %cst_89 = arith.constant dense<0.000000e+00> : vector<80x128xf32>
    %105 = tpu.matmul %102, %104, %cst_89 {dimension_numbers = #tpu.dot_dimension_numbers<[1], [0], [0], [1], [0, 0, 1, 1], [], []>} : vector<80x128xbf16>, vector<128x128xbf16>, vector<80x128xf32> -> vector<80x128xf32>
    %106 = arith.addf %101, %105 : vector<80x128xf32>
    %c2_90 = arith.constant 2 : index
    %c0_91 = arith.constant 0 : index
    %107 = vector.load %arg7[%c2_90, %c0_91] : memref<112x128xbf16, #tpu.memory_space<vmem>>, vector<80x128xbf16>
    %c0_92 = arith.constant 0 : index
    %c2_93 = arith.constant 2 : index
    %c0_94 = arith.constant 0 : index
    %c0_95 = arith.constant 0 : index
    %108 = vector.load %arg4[%c0_92, %c2_93, %c0_94, %c0_95] : memref<3x3x128x128xbf16, #tpu.memory_space<vmem>>, vector<1x1x128x128xbf16>
    %109 = vector.shape_cast %108 : vector<1x1x128x128xbf16> to vector<128x128xbf16>
    %cst_96 = arith.constant dense<0.000000e+00> : vector<80x128xf32>
    %110 = tpu.matmul %107, %109, %cst_96 {dimension_numbers = #tpu.dot_dimension_numbers<[1], [0], [0], [1], [0, 0, 1, 1], [], []>} : vector<80x128xbf16>, vector<128x128xbf16>, vector<80x128xf32> -> vector<80x128xf32>
    %111 = arith.addf %106, %110 : vector<80x128xf32>
    %c10_97 = arith.constant 10 : index
    %c0_98 = arith.constant 0 : index
    %112 = vector.load %arg7[%c10_97, %c0_98] : memref<112x128xbf16, #tpu.memory_space<vmem>>, vector<80x128xbf16>
    %c1_99 = arith.constant 1 : index
    %c0_100 = arith.constant 0 : index
    %c0_101 = arith.constant 0 : index
    %c0_102 = arith.constant 0 : index
    %113 = vector.load %arg4[%c1_99, %c0_100, %c0_101, %c0_102] : memref<3x3x128x128xbf16, #tpu.memory_space<vmem>>, vector<1x1x128x128xbf16>
    %114 = vector.shape_cast %113 : vector<1x1x128x128xbf16> to vector<128x128xbf16>
    %cst_103 = arith.constant dense<0.000000e+00> : vector<80x128xf32>
    %115 = tpu.matmul %112, %114, %cst_103 {dimension_numbers = #tpu.dot_dimension_numbers<[1], [0], [0], [1], [0, 0, 1, 1], [], []>} : vector<80x128xbf16>, vector<128x128xbf16>, vector<80x128xf32> -> vector<80x128xf32>
    %116 = arith.addf %111, %115 : vector<80x128xf32>
    %c11_104 = arith.constant 11 : index
    %c0_105 = arith.constant 0 : index
    %117 = vector.load %arg7[%c11_104, %c0_105] : memref<112x128xbf16, #tpu.memory_space<vmem>>, vector<80x128xbf16>
    %c1_106 = arith.constant 1 : index
    %c1_107 = arith.constant 1 : index
    %c0_108 = arith.constant 0 : index
    %c0_109 = arith.constant 0 : index
    %118 = vector.load %arg4[%c1_106, %c1_107, %c0_108, %c0_109] : memref<3x3x128x128xbf16, #tpu.memory_space<vmem>>, vector<1x1x128x128xbf16>
    %119 = vector.shape_cast %118 : vector<1x1x128x128xbf16> to vector<128x128xbf16>
    %cst_110 = arith.constant dense<0.000000e+00> : vector<80x128xf32>
    %120 = tpu.matmul %117, %119, %cst_110 {dimension_numbers = #tpu.dot_dimension_numbers<[1], [0], [0], [1], [0, 0, 1, 1], [], []>} : vector<80x128xbf16>, vector<128x128xbf16>, vector<80x128xf32> -> vector<80x128xf32>
    %121 = arith.addf %116, %120 : vector<80x128xf32>
    %c12_111 = arith.constant 12 : index
    %c0_112 = arith.constant 0 : index
    %122 = vector.load %arg7[%c12_111, %c0_112] : memref<112x128xbf16, #tpu.memory_space<vmem>>, vector<80x128xbf16>
    %c1_113 = arith.constant 1 : index
    %c2_114 = arith.constant 2 : index
    %c0_115 = arith.constant 0 : index
    %c0_116 = arith.constant 0 : index
    %123 = vector.load %arg4[%c1_113, %c2_114, %c0_115, %c0_116] : memref<3x3x128x128xbf16, #tpu.memory_space<vmem>>, vector<1x1x128x128xbf16>
    %124 = vector.shape_cast %123 : vector<1x1x128x128xbf16> to vector<128x128xbf16>
    %cst_117 = arith.constant dense<0.000000e+00> : vector<80x128xf32>
    %125 = tpu.matmul %122, %124, %cst_117 {dimension_numbers = #tpu.dot_dimension_numbers<[1], [0], [0], [1], [0, 0, 1, 1], [], []>} : vector<80x128xbf16>, vector<128x128xbf16>, vector<80x128xf32> -> vector<80x128xf32>
    %126 = arith.addf %121, %125 : vector<80x128xf32>
    %c20_118 = arith.constant 20 : index
    %c0_119 = arith.constant 0 : index
    %127 = vector.load %arg7[%c20_118, %c0_119] : memref<112x128xbf16, #tpu.memory_space<vmem>>, vector<80x128xbf16>
    %c2_120 = arith.constant 2 : index
    %c0_121 = arith.constant 0 : index
    %c0_122 = arith.constant 0 : index
    %c0_123 = arith.constant 0 : index
    %128 = vector.load %arg4[%c2_120, %c0_121, %c0_122, %c0_123] : memref<3x3x128x128xbf16, #tpu.memory_space<vmem>>, vector<1x1x128x128xbf16>
    %129 = vector.shape_cast %128 : vector<1x1x128x128xbf16> to vector<128x128xbf16>
    %cst_124 = arith.constant dense<0.000000e+00> : vector<80x128xf32>
    %130 = tpu.matmul %127, %129, %cst_124 {dimension_numbers = #tpu.dot_dimension_numbers<[1], [0], [0], [1], [0, 0, 1, 1], [], []>} : vector<80x128xbf16>, vector<128x128xbf16>, vector<80x128xf32> -> vector<80x128xf32>
    %131 = arith.addf %126, %130 : vector<80x128xf32>
    %c21_125 = arith.constant 21 : index
    %c0_126 = arith.constant 0 : index
    %132 = vector.load %arg7[%c21_125, %c0_126] : memref<112x128xbf16, #tpu.memory_space<vmem>>, vector<80x128xbf16>
    %c2_127 = arith.constant 2 : index
    %c1_128 = arith.constant 1 : index
    %c0_129 = arith.constant 0 : index
    %c0_130 = arith.constant 0 : index
    %133 = vector.load %arg4[%c2_127, %c1_128, %c0_129, %c0_130] : memref<3x3x128x128xbf16, #tpu.memory_space<vmem>>, vector<1x1x128x128xbf16>
    %134 = vector.shape_cast %133 : vector<1x1x128x128xbf16> to vector<128x128xbf16>
    %cst_131 = arith.constant dense<0.000000e+00> : vector<80x128xf32>
    %135 = tpu.matmul %132, %134, %cst_131 {dimension_numbers = #tpu.dot_dimension_numbers<[1], [0], [0], [1], [0, 0, 1, 1], [], []>} : vector<80x128xbf16>, vector<128x128xbf16>, vector<80x128xf32> -> vector<80x128xf32>
    %136 = arith.addf %131, %135 : vector<80x128xf32>
    %c22_132 = arith.constant 22 : index
    %c0_133 = arith.constant 0 : index
    %137 = vector.load %arg7[%c22_132, %c0_133] : memref<112x128xbf16, #tpu.memory_space<vmem>>, vector<80x128xbf16>
    %c2_134 = arith.constant 2 : index
    %c2_135 = arith.constant 2 : index
    %c0_136 = arith.constant 0 : index
    %c0_137 = arith.constant 0 : index
    %138 = vector.load %arg4[%c2_134, %c2_135, %c0_136, %c0_137] : memref<3x3x128x128xbf16, #tpu.memory_space<vmem>>, vector<1x1x128x128xbf16>
    %139 = vector.shape_cast %138 : vector<1x1x128x128xbf16> to vector<128x128xbf16>
    %cst_138 = arith.constant dense<0.000000e+00> : vector<80x128xf32>
    %140 = tpu.matmul %137, %139, %cst_138 {dimension_numbers = #tpu.dot_dimension_numbers<[1], [0], [0], [1], [0, 0, 1, 1], [], []>} : vector<80x128xbf16>, vector<128x128xbf16>, vector<80x128xf32> -> vector<80x128xf32>
    %141 = arith.addf %136, %140 : vector<80x128xf32>
    %c0_139 = arith.constant 0 : index
    %c0_140 = arith.constant 0 : index
    %142 = vector.load %arg5[%c0_139, %c0_140] : memref<1x128xf32, #tpu.memory_space<vmem>>, vector<1x128xf32>
    %143 = vector.broadcast %142 : vector<1x128xf32> to vector<80x128xf32>
    %144 = arith.addf %141, %143 : vector<80x128xf32>
    %c0_141 = arith.constant 0 : index
    %c11_142 = arith.constant 11 : index
    %c0_143 = arith.constant 0 : index
    %145 = vector.load %arg1[%c0_141, %c11_142, %c0_143] : memref<1x112x128xf32, #tpu.memory_space<vmem>>, vector<1x80x128xf32>
    %146 = vector.shape_cast %145 : vector<1x80x128xf32> to vector<80x128xf32>
    %147 = arith.addf %144, %146 : vector<80x128xf32>
    %cst_144 = arith.constant 0.000000e+00 : f32
    %148 = vector.broadcast %cst_144 : f32 to vector<80x128xf32>
    %149 = arith.maximumf %147, %148 : vector<80x128xf32>
    %cst_145 = arith.constant 0.000000e+00 : f32
    %150 = vector.shape_cast %18 : vector<80x1xi1> to vector<80x1xi1>
    %151 = vector.broadcast %150 : vector<80x1xi1> to vector<80x128xi1>
    %152 = vector.broadcast %cst_145 : f32 to vector<80x128xf32>
    %153 = arith.select %151, %149, %152 : vector<80x128xi1>, vector<80x128xf32>
    %cst_146 = arith.constant 0.000000e+00 : f32
    %154 = vector.broadcast %cst_146 : f32 to vector<112x128xf32>
    %c0_147 = arith.constant 0 : index
    %c0_148 = arith.constant 0 : index
    %c0_149 = arith.constant 0 : index
    %155 = vector.load %arg6[%c0_147, %c0_148, %c0_149] : memref<1x112x128xf32, #tpu.memory_space<vmem>>, vector<1x112x128xf32>
    %156 = vector.shape_cast %155 : vector<1x112x128xf32> to vector<112x128xf32>
    %157 = vector.shape_cast %154 : vector<112x128xf32> to vector<1x112x128xf32>
    tpu.vector_store %arg6[%c0_147, %c0_148, %c0_149], %157 {strides = array<i32>} : memref<1x112x128xf32, #tpu.memory_space<vmem>>, vector<1x112x128xf32>,
    %c0_150 = arith.constant 0 : index
    %c11_151 = arith.constant 11 : index
    %c0_152 = arith.constant 0 : index
    %158 = vector.load %arg6[%c0_150, %c11_151, %c0_152] : memref<1x112x128xf32, #tpu.memory_space<vmem>>, vector<1x80x128xf32>
    %159 = vector.shape_cast %158 : vector<1x80x128xf32> to vector<80x128xf32>
    %160 = vector.shape_cast %153 : vector<80x128xf32> to vector<1x80x128xf32>
    tpu.vector_store %arg6[%c0_150, %c11_151, %c0_152], %160 {strides = array<i32>} : memref<1x112x128xf32, #tpu.memory_space<vmem>>, vector<1x80x128xf32>,
    return
  }
  func.func @transform_0(%arg0: i32) -> (i32, i32, i32) {
    %c0_i32 = arith.constant 0 : i32
    %c0_i32_0 = arith.constant 0 : i32
    %c0_i32_1 = arith.constant 0 : i32
    return %arg0, %c0_i32, %c0_i32_0 : i32, i32, i32
  }
  func.func @transform_1(%arg0: i32) -> (i32, i32, i32, i32) {
    %c0_i32 = arith.constant 0 : i32
    %c0_i32_0 = arith.constant 0 : i32
    %c0_i32_1 = arith.constant 0 : i32
    %c0_i32_2 = arith.constant 0 : i32
    %c0_i32_3 = arith.constant 0 : i32
    return %c0_i32, %c0_i32_0, %c0_i32_1, %c0_i32_2 : i32, i32, i32, i32
  }
  func.func @transform_2(%arg0: i32) -> (i32, i32) {
    %c0_i32 = arith.constant 0 : i32
    %c0_i32_0 = arith.constant 0 : i32
    %c0_i32_1 = arith.constant 0 : i32
    return %c0_i32, %c0_i32_0 : i32, i32
  }
  func.func @transform_3(%arg0: i32) -> (i32, i32, i32, i32) {
    %c0_i32 = arith.constant 0 : i32
    %c0_i32_0 = arith.constant 0 : i32
    %c0_i32_1 = arith.constant 0 : i32
    %c0_i32_2 = arith.constant 0 : i32
    %c0_i32_3 = arith.constant 0 : i32
    return %c0_i32, %c0_i32_0, %c0_i32_1, %c0_i32_2 : i32, i32, i32, i32
  }
  func.func @transform_4(%arg0: i32) -> (i32, i32) {
    %c0_i32 = arith.constant 0 : i32
    %c0_i32_0 = arith.constant 0 : i32
    %c0_i32_1 = arith.constant 0 : i32
    return %c0_i32, %c0_i32_0 : i32, i32
  }
  func.func @transform_5(%arg0: i32) -> (i32, i32, i32) {
    %c0_i32 = arith.constant 0 : i32
    %c0_i32_0 = arith.constant 0 : i32
    %c0_i32_1 = arith.constant 0 : i32
    return %arg0, %c0_i32, %c0_i32_0 : i32, i32, i32
  }
}

module attributes {stable_mosaic.version = 11 : i64} {
  func.func @_matmul_bias_act_kernel(%arg0: i32, %arg1: memref<16x2048xbf16, #tpu.memory_space<vmem>>, %arg2: memref<2048x256xbf16, #tpu.memory_space<vmem>>, %arg3: memref<1x256xf32, #tpu.memory_space<vmem>>, %arg4: memref<16x256xf32, #tpu.memory_space<vmem>>) attributes {dimension_semantics = [#tpu.dimension_semantics<parallel>], iteration_bounds = array<i64: 2>, scalar_prefetch = 0 : i64, scratch_operands = 0 : i64, tpu.core_type = #tpu.core_type<tc>, window_params = [{transform_indices = @transform_0, window_bounds = array<i64: 16, 2048>}, {pipeline_mode = #tpu.pipeline_mode<synchronous>, transform_indices = @transform_1, window_bounds = array<i64: 2048, 256>}, {pipeline_mode = #tpu.pipeline_mode<synchronous>, transform_indices = @transform_2, window_bounds = array<i64: 1, 256>}, {transform_indices = @transform_3, window_bounds = array<i64: 16, 256>}]} {
    %c0 = arith.constant 0 : index
    %c0_0 = arith.constant 0 : index
    %0 = vector.load %arg1[%c0, %c0_0] : memref<16x2048xbf16, #tpu.memory_space<vmem>>, vector<16x2048xbf16>
    %c0_1 = arith.constant 0 : index
    %c0_2 = arith.constant 0 : index
    %1 = vector.load %arg2[%c0_1, %c0_2] : memref<2048x256xbf16, #tpu.memory_space<vmem>>, vector<2048x256xbf16>
    %cst = arith.constant dense<0.000000e+00> : vector<16x256xf32>
    %2 = tpu.matmul %0, %1, %cst {dimension_numbers = #tpu.dot_dimension_numbers<[1], [0], [0], [1], [0, 0, 1, 1], [], []>} : vector<16x2048xbf16>, vector<2048x256xbf16>, vector<16x256xf32> -> vector<16x256xf32>
    %c0_3 = arith.constant 0 : index
    %c0_4 = arith.constant 0 : index
    %3 = vector.load %arg3[%c0_3, %c0_4] : memref<1x256xf32, #tpu.memory_space<vmem>>, vector<1x256xf32>
    %4 = vector.broadcast %3 : vector<1x256xf32> to vector<16x256xf32>
    %5 = arith.addf %2, %4 : vector<16x256xf32>
    %cst_5 = arith.constant 0.000000e+00 : f32
    %6 = vector.broadcast %cst_5 : f32 to vector<16x256xf32>
    %7 = arith.maximumf %5, %6 : vector<16x256xf32>
    %c0_6 = arith.constant 0 : index
    %c0_7 = arith.constant 0 : index
    %8 = vector.load %arg4[%c0_6, %c0_7] : memref<16x256xf32, #tpu.memory_space<vmem>>, vector<16x256xf32>
    tpu.vector_store %arg4[%c0_6, %c0_7], %7 {strides = array<i32>} : memref<16x256xf32, #tpu.memory_space<vmem>>, vector<16x256xf32>,
    return
  }
  func.func @transform_0(%arg0: i32) -> (i32, i32) {
    %c0_i32 = arith.constant 0 : i32
    %c0_i32_0 = arith.constant 0 : i32
    return %arg0, %c0_i32 : i32, i32
  }
  func.func @transform_1(%arg0: i32) -> (i32, i32) {
    %c0_i32 = arith.constant 0 : i32
    %c0_i32_0 = arith.constant 0 : i32
    %c0_i32_1 = arith.constant 0 : i32
    return %c0_i32, %c0_i32_0 : i32, i32
  }
  func.func @transform_2(%arg0: i32) -> (i32, i32) {
    %c0_i32 = arith.constant 0 : i32
    %c0_i32_0 = arith.constant 0 : i32
    %c0_i32_1 = arith.constant 0 : i32
    return %c0_i32, %c0_i32_0 : i32, i32
  }
  func.func @transform_3(%arg0: i32) -> (i32, i32) {
    %c0_i32 = arith.constant 0 : i32
    %c0_i32_0 = arith.constant 0 : i32
    return %arg0, %c0_i32 : i32, i32
  }
}

module attributes {stable_mosaic.version = 11 : i64} {
  func.func @_resblock_kernel(%arg0: i32, %arg1: memref<1x48x256xf32, #tpu.memory_space<vmem>>, %arg2: memref<3x3x256x128xbf16, #tpu.memory_space<vmem>>, %arg3: memref<1x128xf32, #tpu.memory_space<vmem>>, %arg4: memref<3x3x128x256xbf16, #tpu.memory_space<vmem>>, %arg5: memref<1x256xf32, #tpu.memory_space<vmem>>, %arg6: memref<1x48x256xf32, #tpu.memory_space<vmem>>, %arg7: memref<48x128xbf16, #tpu.memory_space<vmem>>) attributes {dimension_semantics = [#tpu.dimension_semantics<parallel>], iteration_bounds = array<i64: 2>, scalar_prefetch = 0 : i64, scratch_operands = 1 : i64, tpu.core_type = #tpu.core_type<tc>, window_params = [{transform_indices = @transform_0, window_bounds = array<i64: 1, 48, 256>}, {pipeline_mode = #tpu.pipeline_mode<synchronous>, transform_indices = @transform_1, window_bounds = array<i64: 3, 3, 256, 128>}, {pipeline_mode = #tpu.pipeline_mode<synchronous>, transform_indices = @transform_2, window_bounds = array<i64: 1, 128>}, {pipeline_mode = #tpu.pipeline_mode<synchronous>, transform_indices = @transform_3, window_bounds = array<i64: 3, 3, 128, 256>}, {pipeline_mode = #tpu.pipeline_mode<synchronous>, transform_indices = @transform_4, window_bounds = array<i64: 1, 256>}, {transform_indices = @transform_5, window_bounds = array<i64: 1, 48, 256>}]} {
    %0 = tpu.iota {dimensions = array<i32: 0>} : vector<24x1xi32>
    %c6_i32 = arith.constant 6 : i32
    %c0_i32 = arith.constant 0 : i32
    %1 = arith.cmpi eq, %c6_i32, %c0_i32 : i32
    %c1_i32 = arith.constant 1 : i32
    %2 = arith.select %1, %c1_i32, %c6_i32 : i32
    %3 = vector.broadcast %2 : i32 to vector<24x1xi32>
    %4 = arith.remsi %0, %3 : vector<24x1xi32>
    %c0_i32_0 = arith.constant 0 : i32
    %5 = vector.broadcast %c0_i32_0 : i32 to vector<24x1xi32>
    %6 = arith.cmpi ne, %4, %5 : vector<24x1xi32>
    %c0_i32_1 = arith.constant 0 : i32
    %7 = vector.broadcast %c0_i32_1 : i32 to vector<24x1xi32>
    %8 = arith.cmpi slt, %4, %7 : vector<24x1xi32>
    %c0_i32_2 = arith.constant 0 : i32
    %9 = arith.cmpi slt, %2, %c0_i32_2 : i32
    %10 = vector.broadcast %9 : i1 to vector<24x1xi1>
    %11 = vector.broadcast %10 : vector<24x1xi1> to vector<24x1xi1>
    %12 = arith.xori %8, %11 : vector<24x1xi1>
    %13 = arith.andi %12, %6 : vector<24x1xi1>
    %14 = vector.broadcast %2 : i32 to vector<24x1xi32>
    %15 = arith.addi %4, %14 : vector<24x1xi32>
    %16 = arith.select %13, %15, %4 : vector<24x1xi1>, vector<24x1xi32>
    %c4_i32 = arith.constant 4 : i32
    %17 = vector.broadcast %c4_i32 : i32 to vector<24x1xi32>
    %18 = arith.cmpi slt, %16, %17 : vector<24x1xi32>
    %cst = arith.constant 0.000000e+00 : f32
    %19 = vector.broadcast %cst : f32 to vector<24x128xf32>
    %c0 = arith.constant 0 : index
    %c0_3 = arith.constant 0 : index
    %c0_4 = arith.constant 0 : index
    %20 = vector.load %arg1[%c0, %c0_3, %c0_4] : memref<1x48x256xf32, #tpu.memory_space<vmem>>, vector<1x24x256xf32>
    %21 = vector.shape_cast %20 : vector<1x24x256xf32> to vector<24x256xf32>
    %22 = arith.truncf %21 : vector<24x256xf32> to vector<24x256xbf16>
    %c0_5 = arith.constant 0 : index
    %c0_6 = arith.constant 0 : index
    %c0_7 = arith.constant 0 : index
    %c0_8 = arith.constant 0 : index
    %23 = vector.load %arg2[%c0_5, %c0_6, %c0_7, %c0_8] : memref<3x3x256x128xbf16, #tpu.memory_space<vmem>>, vector<1x1x256x128xbf16>
    %24 = vector.shape_cast %23 : vector<1x1x256x128xbf16> to vector<256x128xbf16>
    %cst_9 = arith.constant dense<0.000000e+00> : vector<24x128xf32>
    %25 = tpu.matmul %22, %24, %cst_9 {dimension_numbers = #tpu.dot_dimension_numbers<[1], [0], [0], [1], [0, 0, 1, 1], [], []>} : vector<24x256xbf16>, vector<256x128xbf16>, vector<24x128xf32> -> vector<24x128xf32>
    %26 = arith.addf %19, %25 : vector<24x128xf32>
    %c0_10 = arith.constant 0 : index
    %c1 = arith.constant 1 : index
    %c0_11 = arith.constant 0 : index
    %27 = vector.load %arg1[%c0_10, %c1, %c0_11] : memref<1x48x256xf32, #tpu.memory_space<vmem>>, vector<1x24x256xf32>
    %28 = vector.shape_cast %27 : vector<1x24x256xf32> to vector<24x256xf32>
    %29 = arith.truncf %28 : vector<24x256xf32> to vector<24x256xbf16>
    %c0_12 = arith.constant 0 : index
    %c1_13 = arith.constant 1 : index
    %c0_14 = arith.constant 0 : index
    %c0_15 = arith.constant 0 : index
    %30 = vector.load %arg2[%c0_12, %c1_13, %c0_14, %c0_15] : memref<3x3x256x128xbf16, #tpu.memory_space<vmem>>, vector<1x1x256x128xbf16>
    %31 = vector.shape_cast %30 : vector<1x1x256x128xbf16> to vector<256x128xbf16>
    %cst_16 = arith.constant dense<0.000000e+00> : vector<24x128xf32>
    %32 = tpu.matmul %29, %31, %cst_16 {dimension_numbers = #tpu.dot_dimension_numbers<[1], [0], [0], [1], [0, 0, 1, 1], [], []>} : vector<24x256xbf16>, vector<256x128xbf16>, vector<24x128xf32> -> vector<24x128xf32>
    %33 = arith.addf %26, %32 : vector<24x128xf32>
    %c0_17 = arith.constant 0 : index
    %c2 = arith.constant 2 : index
    %c0_18 = arith.constant 0 : index
    %34 = vector.load %arg1[%c0_17, %c2, %c0_18] : memref<1x48x256xf32, #tpu.memory_space<vmem>>, vector<1x24x256xf32>
    %35 = vector.shape_cast %34 : vector<1x24x256xf32> to vector<24x256xf32>
    %36 = arith.truncf %35 : vector<24x256xf32> to vector<24x256xbf16>
    %c0_19 = arith.constant 0 : index
    %c2_20 = arith.constant 2 : index
    %c0_21 = arith.constant 0 : index
    %c0_22 = arith.constant 0 : index
    %37 = vector.load %arg2[%c0_19, %c2_20, %c0_21, %c0_22] : memref<3x3x256x128xbf16, #tpu.memory_space<vmem>>, vector<1x1x256x128xbf16>
    %38 = vector.shape_cast %37 : vector<1x1x256x128xbf16> to vector<256x128xbf16>
    %cst_23 = arith.constant dense<0.000000e+00> : vector<24x128xf32>
    %39 = tpu.matmul %36, %38, %cst_23 {dimension_numbers = #tpu.dot_dimension_numbers<[1], [0], [0], [1], [0, 0, 1, 1], [], []>} : vector<24x256xbf16>, vector<256x128xbf16>, vector<24x128xf32> -> vector<24x128xf32>
    %40 = arith.addf %33, %39 : vector<24x128xf32>
    %c0_24 = arith.constant 0 : index
    %c6 = arith.constant 6 : index
    %c0_25 = arith.constant 0 : index
    %41 = vector.load %arg1[%c0_24, %c6, %c0_25] : memref<1x48x256xf32, #tpu.memory_space<vmem>>, vector<1x24x256xf32>
    %42 = vector.shape_cast %41 : vector<1x24x256xf32> to vector<24x256xf32>
    %43 = arith.truncf %42 : vector<24x256xf32> to vector<24x256xbf16>
    %c1_26 = arith.constant 1 : index
    %c0_27 = arith.constant 0 : index
    %c0_28 = arith.constant 0 : index
    %c0_29 = arith.constant 0 : index
    %44 = vector.load %arg2[%c1_26, %c0_27, %c0_28, %c0_29] : memref<3x3x256x128xbf16, #tpu.memory_space<vmem>>, vector<1x1x256x128xbf16>
    %45 = vector.shape_cast %44 : vector<1x1x256x128xbf16> to vector<256x128xbf16>
    %cst_30 = arith.constant dense<0.000000e+00> : vector<24x128xf32>
    %46 = tpu.matmul %43, %45, %cst_30 {dimension_numbers = #tpu.dot_dimension_numbers<[1], [0], [0], [1], [0, 0, 1, 1], [], []>} : vector<24x256xbf16>, vector<256x128xbf16>, vector<24x128xf32> -> vector<24x128xf32>
    %47 = arith.addf %40, %46 : vector<24x128xf32>
    %c0_31 = arith.constant 0 : index
    %c7 = arith.constant 7 : index
    %c0_32 = arith.constant 0 : index
    %48 = vector.load %arg1[%c0_31, %c7, %c0_32] : memref<1x48x256xf32, #tpu.memory_space<vmem>>, vector<1x24x256xf32>
    %49 = vector.shape_cast %48 : vector<1x24x256xf32> to vector<24x256xf32>
    %50 = arith.truncf %49 : vector<24x256xf32> to vector<24x256xbf16>
    %c1_33 = arith.constant 1 : index
    %c1_34 = arith.constant 1 : index
    %c0_35 = arith.constant 0 : index
    %c0_36 = arith.constant 0 : index
    %51 = vector.load %arg2[%c1_33, %c1_34, %c0_35, %c0_36] : memref<3x3x256x128xbf16, #tpu.memory_space<vmem>>, vector<1x1x256x128xbf16>
    %52 = vector.shape_cast %51 : vector<1x1x256x128xbf16> to vector<256x128xbf16>
    %cst_37 = arith.constant dense<0.000000e+00> : vector<24x128xf32>
    %53 = tpu.matmul %50, %52, %cst_37 {dimension_numbers = #tpu.dot_dimension_numbers<[1], [0], [0], [1], [0, 0, 1, 1], [], []>} : vector<24x256xbf16>, vector<256x128xbf16>, vector<24x128xf32> -> vector<24x128xf32>
    %54 = arith.addf %47, %53 : vector<24x128xf32>
    %c0_38 = arith.constant 0 : index
    %c8 = arith.constant 8 : index
    %c0_39 = arith.constant 0 : index
    %55 = vector.load %arg1[%c0_38, %c8, %c0_39] : memref<1x48x256xf32, #tpu.memory_space<vmem>>, vector<1x24x256xf32>
    %56 = vector.shape_cast %55 : vector<1x24x256xf32> to vector<24x256xf32>
    %57 = arith.truncf %56 : vector<24x256xf32> to vector<24x256xbf16>
    %c1_40 = arith.constant 1 : index
    %c2_41 = arith.constant 2 : index
    %c0_42 = arith.constant 0 : index
    %c0_43 = arith.constant 0 : index
    %58 = vector.load %arg2[%c1_40, %c2_41, %c0_42, %c0_43] : memref<3x3x256x128xbf16, #tpu.memory_space<vmem>>, vector<1x1x256x128xbf16>
    %59 = vector.shape_cast %58 : vector<1x1x256x128xbf16> to vector<256x128xbf16>
    %cst_44 = arith.constant dense<0.000000e+00> : vector<24x128xf32>
    %60 = tpu.matmul %57, %59, %cst_44 {dimension_numbers = #tpu.dot_dimension_numbers<[1], [0], [0], [1], [0, 0, 1, 1], [], []>} : vector<24x256xbf16>, vector<256x128xbf16>, vector<24x128xf32> -> vector<24x128xf32>
    %61 = arith.addf %54, %60 : vector<24x128xf32>
    %c0_45 = arith.constant 0 : index
    %c12 = arith.constant 12 : index
    %c0_46 = arith.constant 0 : index
    %62 = vector.load %arg1[%c0_45, %c12, %c0_46] : memref<1x48x256xf32, #tpu.memory_space<vmem>>, vector<1x24x256xf32>
    %63 = vector.shape_cast %62 : vector<1x24x256xf32> to vector<24x256xf32>
    %64 = arith.truncf %63 : vector<24x256xf32> to vector<24x256xbf16>
    %c2_47 = arith.constant 2 : index
    %c0_48 = arith.constant 0 : index
    %c0_49 = arith.constant 0 : index
    %c0_50 = arith.constant 0 : index
    %65 = vector.load %arg2[%c2_47, %c0_48, %c0_49, %c0_50] : memref<3x3x256x128xbf16, #tpu.memory_space<vmem>>, vector<1x1x256x128xbf16>
    %66 = vector.shape_cast %65 : vector<1x1x256x128xbf16> to vector<256x128xbf16>
    %cst_51 = arith.constant dense<0.000000e+00> : vector<24x128xf32>
    %67 = tpu.matmul %64, %66, %cst_51 {dimension_numbers = #tpu.dot_dimension_numbers<[1], [0], [0], [1], [0, 0, 1, 1], [], []>} : vector<24x256xbf16>, vector<256x128xbf16>, vector<24x128xf32> -> vector<24x128xf32>
    %68 = arith.addf %61, %67 : vector<24x128xf32>
    %c0_52 = arith.constant 0 : index
    %c13 = arith.constant 13 : index
    %c0_53 = arith.constant 0 : index
    %69 = vector.load %arg1[%c0_52, %c13, %c0_53] : memref<1x48x256xf32, #tpu.memory_space<vmem>>, vector<1x24x256xf32>
    %70 = vector.shape_cast %69 : vector<1x24x256xf32> to vector<24x256xf32>
    %71 = arith.truncf %70 : vector<24x256xf32> to vector<24x256xbf16>
    %c2_54 = arith.constant 2 : index
    %c1_55 = arith.constant 1 : index
    %c0_56 = arith.constant 0 : index
    %c0_57 = arith.constant 0 : index
    %72 = vector.load %arg2[%c2_54, %c1_55, %c0_56, %c0_57] : memref<3x3x256x128xbf16, #tpu.memory_space<vmem>>, vector<1x1x256x128xbf16>
    %73 = vector.shape_cast %72 : vector<1x1x256x128xbf16> to vector<256x128xbf16>
    %cst_58 = arith.constant dense<0.000000e+00> : vector<24x128xf32>
    %74 = tpu.matmul %71, %73, %cst_58 {dimension_numbers = #tpu.dot_dimension_numbers<[1], [0], [0], [1], [0, 0, 1, 1], [], []>} : vector<24x256xbf16>, vector<256x128xbf16>, vector<24x128xf32> -> vector<24x128xf32>
    %75 = arith.addf %68, %74 : vector<24x128xf32>
    %c0_59 = arith.constant 0 : index
    %c14 = arith.constant 14 : index
    %c0_60 = arith.constant 0 : index
    %76 = vector.load %arg1[%c0_59, %c14, %c0_60] : memref<1x48x256xf32, #tpu.memory_space<vmem>>, vector<1x24x256xf32>
    %77 = vector.shape_cast %76 : vector<1x24x256xf32> to vector<24x256xf32>
    %78 = arith.truncf %77 : vector<24x256xf32> to vector<24x256xbf16>
    %c2_61 = arith.constant 2 : index
    %c2_62 = arith.constant 2 : index
    %c0_63 = arith.constant 0 : index
    %c0_64 = arith.constant 0 : index
    %79 = vector.load %arg2[%c2_61, %c2_62, %c0_63, %c0_64] : memref<3x3x256x128xbf16, #tpu.memory_space<vmem>>, vector<1x1x256x128xbf16>
    %80 = vector.shape_cast %79 : vector<1x1x256x128xbf16> to vector<256x128xbf16>
    %cst_65 = arith.constant dense<0.000000e+00> : vector<24x128xf32>
    %81 = tpu.matmul %78, %80, %cst_65 {dimension_numbers = #tpu.dot_dimension_numbers<[1], [0], [0], [1], [0, 0, 1, 1], [], []>} : vector<24x256xbf16>, vector<256x128xbf16>, vector<24x128xf32> -> vector<24x128xf32>
    %82 = arith.addf %75, %81 : vector<24x128xf32>
    %c0_66 = arith.constant 0 : index
    %c0_67 = arith.constant 0 : index
    %83 = vector.load %arg3[%c0_66, %c0_67] : memref<1x128xf32, #tpu.memory_space<vmem>>, vector<1x128xf32>
    %84 = vector.broadcast %83 : vector<1x128xf32> to vector<24x128xf32>
    %85 = arith.addf %82, %84 : vector<24x128xf32>
    %cst_68 = arith.constant 0.000000e+00 : f32
    %86 = vector.broadcast %cst_68 : f32 to vector<24x128xf32>
    %87 = arith.maximumf %85, %86 : vector<24x128xf32>
    %cst_69 = arith.constant 0.000000e+00 : f32
    %88 = vector.shape_cast %18 : vector<24x1xi1> to vector<24x1xi1>
    %89 = vector.broadcast %88 : vector<24x1xi1> to vector<24x128xi1>
    %90 = vector.broadcast %cst_69 : f32 to vector<24x128xf32>
    %91 = arith.select %89, %87, %90 : vector<24x128xi1>, vector<24x128xf32>
    %92 = arith.truncf %91 : vector<24x128xf32> to vector<24x128xbf16>
    %cst_70 = arith.constant 0.000000e+00 : bf16
    %93 = vector.broadcast %cst_70 : bf16 to vector<48x128xbf16>
    %c0_71 = arith.constant 0 : index
    %c0_72 = arith.constant 0 : index
    %94 = vector.load %arg7[%c0_71, %c0_72] : memref<48x128xbf16, #tpu.memory_space<vmem>>, vector<48x128xbf16>
    tpu.vector_store %arg7[%c0_71, %c0_72], %93 {strides = array<i32>} : memref<48x128xbf16, #tpu.memory_space<vmem>>, vector<48x128xbf16>,
    %c7_73 = arith.constant 7 : index
    %c0_74 = arith.constant 0 : index
    %95 = vector.load %arg7[%c7_73, %c0_74] : memref<48x128xbf16, #tpu.memory_space<vmem>>, vector<24x128xbf16>
    tpu.vector_store %arg7[%c7_73, %c0_74], %92 {strides = array<i32>} : memref<48x128xbf16, #tpu.memory_space<vmem>>, vector<24x128xbf16>,
    %cst_75 = arith.constant 0.000000e+00 : f32
    %96 = vector.broadcast %cst_75 : f32 to vector<24x256xf32>
    %c0_76 = arith.constant 0 : index
    %c0_77 = arith.constant 0 : index
    %97 = vector.load %arg7[%c0_76, %c0_77] : memref<48x128xbf16, #tpu.memory_space<vmem>>, vector<24x128xbf16>
    %c0_78 = arith.constant 0 : index
    %c0_79 = arith.constant 0 : index
    %c0_80 = arith.constant 0 : index
    %c0_81 = arith.constant 0 : index
    %98 = vector.load %arg4[%c0_78, %c0_79, %c0_80, %c0_81] : memref<3x3x128x256xbf16, #tpu.memory_space<vmem>>, vector<1x1x128x256xbf16>
    %99 = vector.shape_cast %98 : vector<1x1x128x256xbf16> to vector<128x256xbf16>
    %cst_82 = arith.constant dense<0.000000e+00> : vector<24x256xf32>
    %100 = tpu.matmul %97, %99, %cst_82 {dimension_numbers = #tpu.dot_dimension_numbers<[1], [0], [0], [1], [0, 0, 1, 1], [], []>} : vector<24x128xbf16>, vector<128x256xbf16>, vector<24x256xf32> -> vector<24x256xf32>
    %101 = arith.addf %96, %100 : vector<24x256xf32>
    %c1_83 = arith.constant 1 : index
    %c0_84 = arith.constant 0 : index
    %102 = vector.load %arg7[%c1_83, %c0_84] : memref<48x128xbf16, #tpu.memory_space<vmem>>, vector<24x128xbf16>
    %c0_85 = arith.constant 0 : index
    %c1_86 = arith.constant 1 : index
    %c0_87 = arith.constant 0 : index
    %c0_88 = arith.constant 0 : index
    %103 = vector.load %arg4[%c0_85, %c1_86, %c0_87, %c0_88] : memref<3x3x128x256xbf16, #tpu.memory_space<vmem>>, vector<1x1x128x256xbf16>
    %104 = vector.shape_cast %103 : vector<1x1x128x256xbf16> to vector<128x256xbf16>
    %cst_89 = arith.constant dense<0.000000e+00> : vector<24x256xf32>
    %105 = tpu.matmul %102, %104, %cst_89 {dimension_numbers = #tpu.dot_dimension_numbers<[1], [0], [0], [1], [0, 0, 1, 1], [], []>} : vector<24x128xbf16>, vector<128x256xbf16>, vector<24x256xf32> -> vector<24x256xf32>
    %106 = arith.addf %101, %105 : vector<24x256xf32>
    %c2_90 = arith.constant 2 : index
    %c0_91 = arith.constant 0 : index
    %107 = vector.load %arg7[%c2_90, %c0_91] : memref<48x128xbf16, #tpu.memory_space<vmem>>, vector<24x128xbf16>
    %c0_92 = arith.constant 0 : index
    %c2_93 = arith.constant 2 : index
    %c0_94 = arith.constant 0 : index
    %c0_95 = arith.constant 0 : index
    %108 = vector.load %arg4[%c0_92, %c2_93, %c0_94, %c0_95] : memref<3x3x128x256xbf16, #tpu.memory_space<vmem>>, vector<1x1x128x256xbf16>
    %109 = vector.shape_cast %108 : vector<1x1x128x256xbf16> to vector<128x256xbf16>
    %cst_96 = arith.constant dense<0.000000e+00> : vector<24x256xf32>
    %110 = tpu.matmul %107, %109, %cst_96 {dimension_numbers = #tpu.dot_dimension_numbers<[1], [0], [0], [1], [0, 0, 1, 1], [], []>} : vector<24x128xbf16>, vector<128x256xbf16>, vector<24x256xf32> -> vector<24x256xf32>
    %111 = arith.addf %106, %110 : vector<24x256xf32>
    %c6_97 = arith.constant 6 : index
    %c0_98 = arith.constant 0 : index
    %112 = vector.load %arg7[%c6_97, %c0_98] : memref<48x128xbf16, #tpu.memory_space<vmem>>, vector<24x128xbf16>
    %c1_99 = arith.constant 1 : index
    %c0_100 = arith.constant 0 : index
    %c0_101 = arith.constant 0 : index
    %c0_102 = arith.constant 0 : index
    %113 = vector.load %arg4[%c1_99, %c0_100, %c0_101, %c0_102] : memref<3x3x128x256xbf16, #tpu.memory_space<vmem>>, vector<1x1x128x256xbf16>
    %114 = vector.shape_cast %113 : vector<1x1x128x256xbf16> to vector<128x256xbf16>
    %cst_103 = arith.constant dense<0.000000e+00> : vector<24x256xf32>
    %115 = tpu.matmul %112, %114, %cst_103 {dimension_numbers = #tpu.dot_dimension_numbers<[1], [0], [0], [1], [0, 0, 1, 1], [], []>} : vector<24x128xbf16>, vector<128x256xbf16>, vector<24x256xf32> -> vector<24x256xf32>
    %116 = arith.addf %111, %115 : vector<24x256xf32>
    %c7_104 = arith.constant 7 : index
    %c0_105 = arith.constant 0 : index
    %117 = vector.load %arg7[%c7_104, %c0_105] : memref<48x128xbf16, #tpu.memory_space<vmem>>, vector<24x128xbf16>
    %c1_106 = arith.constant 1 : index
    %c1_107 = arith.constant 1 : index
    %c0_108 = arith.constant 0 : index
    %c0_109 = arith.constant 0 : index
    %118 = vector.load %arg4[%c1_106, %c1_107, %c0_108, %c0_109] : memref<3x3x128x256xbf16, #tpu.memory_space<vmem>>, vector<1x1x128x256xbf16>
    %119 = vector.shape_cast %118 : vector<1x1x128x256xbf16> to vector<128x256xbf16>
    %cst_110 = arith.constant dense<0.000000e+00> : vector<24x256xf32>
    %120 = tpu.matmul %117, %119, %cst_110 {dimension_numbers = #tpu.dot_dimension_numbers<[1], [0], [0], [1], [0, 0, 1, 1], [], []>} : vector<24x128xbf16>, vector<128x256xbf16>, vector<24x256xf32> -> vector<24x256xf32>
    %121 = arith.addf %116, %120 : vector<24x256xf32>
    %c8_111 = arith.constant 8 : index
    %c0_112 = arith.constant 0 : index
    %122 = vector.load %arg7[%c8_111, %c0_112] : memref<48x128xbf16, #tpu.memory_space<vmem>>, vector<24x128xbf16>
    %c1_113 = arith.constant 1 : index
    %c2_114 = arith.constant 2 : index
    %c0_115 = arith.constant 0 : index
    %c0_116 = arith.constant 0 : index
    %123 = vector.load %arg4[%c1_113, %c2_114, %c0_115, %c0_116] : memref<3x3x128x256xbf16, #tpu.memory_space<vmem>>, vector<1x1x128x256xbf16>
    %124 = vector.shape_cast %123 : vector<1x1x128x256xbf16> to vector<128x256xbf16>
    %cst_117 = arith.constant dense<0.000000e+00> : vector<24x256xf32>
    %125 = tpu.matmul %122, %124, %cst_117 {dimension_numbers = #tpu.dot_dimension_numbers<[1], [0], [0], [1], [0, 0, 1, 1], [], []>} : vector<24x128xbf16>, vector<128x256xbf16>, vector<24x256xf32> -> vector<24x256xf32>
    %126 = arith.addf %121, %125 : vector<24x256xf32>
    %c12_118 = arith.constant 12 : index
    %c0_119 = arith.constant 0 : index
    %127 = vector.load %arg7[%c12_118, %c0_119] : memref<48x128xbf16, #tpu.memory_space<vmem>>, vector<24x128xbf16>
    %c2_120 = arith.constant 2 : index
    %c0_121 = arith.constant 0 : index
    %c0_122 = arith.constant 0 : index
    %c0_123 = arith.constant 0 : index
    %128 = vector.load %arg4[%c2_120, %c0_121, %c0_122, %c0_123] : memref<3x3x128x256xbf16, #tpu.memory_space<vmem>>, vector<1x1x128x256xbf16>
    %129 = vector.shape_cast %128 : vector<1x1x128x256xbf16> to vector<128x256xbf16>
    %cst_124 = arith.constant dense<0.000000e+00> : vector<24x256xf32>
    %130 = tpu.matmul %127, %129, %cst_124 {dimension_numbers = #tpu.dot_dimension_numbers<[1], [0], [0], [1], [0, 0, 1, 1], [], []>} : vector<24x128xbf16>, vector<128x256xbf16>, vector<24x256xf32> -> vector<24x256xf32>
    %131 = arith.addf %126, %130 : vector<24x256xf32>
    %c13_125 = arith.constant 13 : index
    %c0_126 = arith.constant 0 : index
    %132 = vector.load %arg7[%c13_125, %c0_126] : memref<48x128xbf16, #tpu.memory_space<vmem>>, vector<24x128xbf16>
    %c2_127 = arith.constant 2 : index
    %c1_128 = arith.constant 1 : index
    %c0_129 = arith.constant 0 : index
    %c0_130 = arith.constant 0 : index
    %133 = vector.load %arg4[%c2_127, %c1_128, %c0_129, %c0_130] : memref<3x3x128x256xbf16, #tpu.memory_space<vmem>>, vector<1x1x128x256xbf16>
    %134 = vector.shape_cast %133 : vector<1x1x128x256xbf16> to vector<128x256xbf16>
    %cst_131 = arith.constant dense<0.000000e+00> : vector<24x256xf32>
    %135 = tpu.matmul %132, %134, %cst_131 {dimension_numbers = #tpu.dot_dimension_numbers<[1], [0], [0], [1], [0, 0, 1, 1], [], []>} : vector<24x128xbf16>, vector<128x256xbf16>, vector<24x256xf32> -> vector<24x256xf32>
    %136 = arith.addf %131, %135 : vector<24x256xf32>
    %c14_132 = arith.constant 14 : index
    %c0_133 = arith.constant 0 : index
    %137 = vector.load %arg7[%c14_132, %c0_133] : memref<48x128xbf16, #tpu.memory_space<vmem>>, vector<24x128xbf16>
    %c2_134 = arith.constant 2 : index
    %c2_135 = arith.constant 2 : index
    %c0_136 = arith.constant 0 : index
    %c0_137 = arith.constant 0 : index
    %138 = vector.load %arg4[%c2_134, %c2_135, %c0_136, %c0_137] : memref<3x3x128x256xbf16, #tpu.memory_space<vmem>>, vector<1x1x128x256xbf16>
    %139 = vector.shape_cast %138 : vector<1x1x128x256xbf16> to vector<128x256xbf16>
    %cst_138 = arith.constant dense<0.000000e+00> : vector<24x256xf32>
    %140 = tpu.matmul %137, %139, %cst_138 {dimension_numbers = #tpu.dot_dimension_numbers<[1], [0], [0], [1], [0, 0, 1, 1], [], []>} : vector<24x128xbf16>, vector<128x256xbf16>, vector<24x256xf32> -> vector<24x256xf32>
    %141 = arith.addf %136, %140 : vector<24x256xf32>
    %c0_139 = arith.constant 0 : index
    %c0_140 = arith.constant 0 : index
    %142 = vector.load %arg5[%c0_139, %c0_140] : memref<1x256xf32, #tpu.memory_space<vmem>>, vector<1x256xf32>
    %143 = vector.broadcast %142 : vector<1x256xf32> to vector<24x256xf32>
    %144 = arith.addf %141, %143 : vector<24x256xf32>
    %c0_141 = arith.constant 0 : index
    %c7_142 = arith.constant 7 : index
    %c0_143 = arith.constant 0 : index
    %145 = vector.load %arg1[%c0_141, %c7_142, %c0_143] : memref<1x48x256xf32, #tpu.memory_space<vmem>>, vector<1x24x256xf32>
    %146 = vector.shape_cast %145 : vector<1x24x256xf32> to vector<24x256xf32>
    %147 = arith.addf %144, %146 : vector<24x256xf32>
    %cst_144 = arith.constant 0.000000e+00 : f32
    %148 = vector.broadcast %cst_144 : f32 to vector<24x256xf32>
    %149 = arith.maximumf %147, %148 : vector<24x256xf32>
    %cst_145 = arith.constant 0.000000e+00 : f32
    %150 = vector.shape_cast %18 : vector<24x1xi1> to vector<24x1xi1>
    %151 = vector.broadcast %150 : vector<24x1xi1> to vector<24x256xi1>
    %152 = vector.broadcast %cst_145 : f32 to vector<24x256xf32>
    %153 = arith.select %151, %149, %152 : vector<24x256xi1>, vector<24x256xf32>
    %cst_146 = arith.constant 0.000000e+00 : f32
    %154 = vector.broadcast %cst_146 : f32 to vector<48x256xf32>
    %c0_147 = arith.constant 0 : index
    %c0_148 = arith.constant 0 : index
    %c0_149 = arith.constant 0 : index
    %155 = vector.load %arg6[%c0_147, %c0_148, %c0_149] : memref<1x48x256xf32, #tpu.memory_space<vmem>>, vector<1x48x256xf32>
    %156 = vector.shape_cast %155 : vector<1x48x256xf32> to vector<48x256xf32>
    %157 = vector.shape_cast %154 : vector<48x256xf32> to vector<1x48x256xf32>
    tpu.vector_store %arg6[%c0_147, %c0_148, %c0_149], %157 {strides = array<i32>} : memref<1x48x256xf32, #tpu.memory_space<vmem>>, vector<1x48x256xf32>,
    %c0_150 = arith.constant 0 : index
    %c7_151 = arith.constant 7 : index
    %c0_152 = arith.constant 0 : index
    %158 = vector.load %arg6[%c0_150, %c7_151, %c0_152] : memref<1x48x256xf32, #tpu.memory_space<vmem>>, vector<1x24x256xf32>
    %159 = vector.shape_cast %158 : vector<1x24x256xf32> to vector<24x256xf32>
    %160 = vector.shape_cast %153 : vector<24x256xf32> to vector<1x24x256xf32>
    tpu.vector_store %arg6[%c0_150, %c7_151, %c0_152], %160 {strides = array<i32>} : memref<1x48x256xf32, #tpu.memory_space<vmem>>, vector<1x24x256xf32>,
    return
  }
  func.func @transform_0(%arg0: i32) -> (i32, i32, i32) {
    %c0_i32 = arith.constant 0 : i32
    %c0_i32_0 = arith.constant 0 : i32
    %c0_i32_1 = arith.constant 0 : i32
    return %arg0, %c0_i32, %c0_i32_0 : i32, i32, i32
  }
  func.func @transform_1(%arg0: i32) -> (i32, i32, i32, i32) {
    %c0_i32 = arith.constant 0 : i32
    %c0_i32_0 = arith.constant 0 : i32
    %c0_i32_1 = arith.constant 0 : i32
    %c0_i32_2 = arith.constant 0 : i32
    %c0_i32_3 = arith.constant 0 : i32
    return %c0_i32, %c0_i32_0, %c0_i32_1, %c0_i32_2 : i32, i32, i32, i32
  }
  func.func @transform_2(%arg0: i32) -> (i32, i32) {
    %c0_i32 = arith.constant 0 : i32
    %c0_i32_0 = arith.constant 0 : i32
    %c0_i32_1 = arith.constant 0 : i32
    return %c0_i32, %c0_i32_0 : i32, i32
  }
  func.func @transform_3(%arg0: i32) -> (i32, i32, i32, i32) {
    %c0_i32 = arith.constant 0 : i32
    %c0_i32_0 = arith.constant 0 : i32
    %c0_i32_1 = arith.constant 0 : i32
    %c0_i32_2 = arith.constant 0 : i32
    %c0_i32_3 = arith.constant 0 : i32
    return %c0_i32, %c0_i32_0, %c0_i32_1, %c0_i32_2 : i32, i32, i32, i32
  }
  func.func @transform_4(%arg0: i32) -> (i32, i32) {
    %c0_i32 = arith.constant 0 : i32
    %c0_i32_0 = arith.constant 0 : i32
    %c0_i32_1 = arith.constant 0 : i32
    return %c0_i32, %c0_i32_0 : i32, i32
  }
  func.func @transform_5(%arg0: i32) -> (i32, i32, i32) {
    %c0_i32 = arith.constant 0 : i32
    %c0_i32_0 = arith.constant 0 : i32
    %c0_i32_1 = arith.constant 0 : i32
    return %arg0, %c0_i32, %c0_i32_0 : i32, i32, i32
  }
}

module attributes {stable_mosaic.version = 11 : i64} {
  func.func @_conv3x3_kernel(%arg0: i32, %arg1: memref<1x48x256xf32, #tpu.memory_space<vmem>>, %arg2: memref<3x3x256x128xbf16, #tpu.memory_space<vmem>>, %arg3: memref<1x128xf32, #tpu.memory_space<vmem>>, %arg4: memref<1x48x128xf32, #tpu.memory_space<vmem>>) attributes {dimension_semantics = [#tpu.dimension_semantics<parallel>], iteration_bounds = array<i64: 2>, scalar_prefetch = 0 : i64, scratch_operands = 0 : i64, tpu.core_type = #tpu.core_type<tc>, window_params = [{transform_indices = @transform_0, window_bounds = array<i64: 1, 48, 256>}, {pipeline_mode = #tpu.pipeline_mode<synchronous>, transform_indices = @transform_1, window_bounds = array<i64: 3, 3, 256, 128>}, {pipeline_mode = #tpu.pipeline_mode<synchronous>, transform_indices = @transform_2, window_bounds = array<i64: 1, 128>}, {transform_indices = @transform_3, window_bounds = array<i64: 1, 48, 128>}]} {
    %0 = tpu.iota {dimensions = array<i32: 0>} : vector<24x1xi32>
    %c6_i32 = arith.constant 6 : i32
    %c0_i32 = arith.constant 0 : i32
    %1 = arith.cmpi eq, %c6_i32, %c0_i32 : i32
    %c1_i32 = arith.constant 1 : i32
    %2 = arith.select %1, %c1_i32, %c6_i32 : i32
    %3 = vector.broadcast %2 : i32 to vector<24x1xi32>
    %4 = arith.remsi %0, %3 : vector<24x1xi32>
    %c0_i32_0 = arith.constant 0 : i32
    %5 = vector.broadcast %c0_i32_0 : i32 to vector<24x1xi32>
    %6 = arith.cmpi ne, %4, %5 : vector<24x1xi32>
    %c0_i32_1 = arith.constant 0 : i32
    %7 = vector.broadcast %c0_i32_1 : i32 to vector<24x1xi32>
    %8 = arith.cmpi slt, %4, %7 : vector<24x1xi32>
    %c0_i32_2 = arith.constant 0 : i32
    %9 = arith.cmpi slt, %2, %c0_i32_2 : i32
    %10 = vector.broadcast %9 : i1 to vector<24x1xi1>
    %11 = vector.broadcast %10 : vector<24x1xi1> to vector<24x1xi1>
    %12 = arith.xori %8, %11 : vector<24x1xi1>
    %13 = arith.andi %12, %6 : vector<24x1xi1>
    %14 = vector.broadcast %2 : i32 to vector<24x1xi32>
    %15 = arith.addi %4, %14 : vector<24x1xi32>
    %16 = arith.select %13, %15, %4 : vector<24x1xi1>, vector<24x1xi32>
    %c4_i32 = arith.constant 4 : i32
    %17 = vector.broadcast %c4_i32 : i32 to vector<24x1xi32>
    %18 = arith.cmpi slt, %16, %17 : vector<24x1xi32>
    %cst = arith.constant 0.000000e+00 : f32
    %19 = vector.broadcast %cst : f32 to vector<24x128xf32>
    %c0 = arith.constant 0 : index
    %c0_3 = arith.constant 0 : index
    %c0_4 = arith.constant 0 : index
    %20 = vector.load %arg1[%c0, %c0_3, %c0_4] : memref<1x48x256xf32, #tpu.memory_space<vmem>>, vector<1x24x256xf32>
    %21 = vector.shape_cast %20 : vector<1x24x256xf32> to vector<24x256xf32>
    %22 = arith.truncf %21 : vector<24x256xf32> to vector<24x256xbf16>
    %c0_5 = arith.constant 0 : index
    %c0_6 = arith.constant 0 : index
    %c0_7 = arith.constant 0 : index
    %c0_8 = arith.constant 0 : index
    %23 = vector.load %arg2[%c0_5, %c0_6, %c0_7, %c0_8] : memref<3x3x256x128xbf16, #tpu.memory_space<vmem>>, vector<1x1x256x128xbf16>
    %24 = vector.shape_cast %23 : vector<1x1x256x128xbf16> to vector<256x128xbf16>
    %cst_9 = arith.constant dense<0.000000e+00> : vector<24x128xf32>
    %25 = tpu.matmul %22, %24, %cst_9 {dimension_numbers = #tpu.dot_dimension_numbers<[1], [0], [0], [1], [0, 0, 1, 1], [], []>} : vector<24x256xbf16>, vector<256x128xbf16>, vector<24x128xf32> -> vector<24x128xf32>
    %26 = arith.addf %19, %25 : vector<24x128xf32>
    %c0_10 = arith.constant 0 : index
    %c1 = arith.constant 1 : index
    %c0_11 = arith.constant 0 : index
    %27 = vector.load %arg1[%c0_10, %c1, %c0_11] : memref<1x48x256xf32, #tpu.memory_space<vmem>>, vector<1x24x256xf32>
    %28 = vector.shape_cast %27 : vector<1x24x256xf32> to vector<24x256xf32>
    %29 = arith.truncf %28 : vector<24x256xf32> to vector<24x256xbf16>
    %c0_12 = arith.constant 0 : index
    %c1_13 = arith.constant 1 : index
    %c0_14 = arith.constant 0 : index
    %c0_15 = arith.constant 0 : index
    %30 = vector.load %arg2[%c0_12, %c1_13, %c0_14, %c0_15] : memref<3x3x256x128xbf16, #tpu.memory_space<vmem>>, vector<1x1x256x128xbf16>
    %31 = vector.shape_cast %30 : vector<1x1x256x128xbf16> to vector<256x128xbf16>
    %cst_16 = arith.constant dense<0.000000e+00> : vector<24x128xf32>
    %32 = tpu.matmul %29, %31, %cst_16 {dimension_numbers = #tpu.dot_dimension_numbers<[1], [0], [0], [1], [0, 0, 1, 1], [], []>} : vector<24x256xbf16>, vector<256x128xbf16>, vector<24x128xf32> -> vector<24x128xf32>
    %33 = arith.addf %26, %32 : vector<24x128xf32>
    %c0_17 = arith.constant 0 : index
    %c2 = arith.constant 2 : index
    %c0_18 = arith.constant 0 : index
    %34 = vector.load %arg1[%c0_17, %c2, %c0_18] : memref<1x48x256xf32, #tpu.memory_space<vmem>>, vector<1x24x256xf32>
    %35 = vector.shape_cast %34 : vector<1x24x256xf32> to vector<24x256xf32>
    %36 = arith.truncf %35 : vector<24x256xf32> to vector<24x256xbf16>
    %c0_19 = arith.constant 0 : index
    %c2_20 = arith.constant 2 : index
    %c0_21 = arith.constant 0 : index
    %c0_22 = arith.constant 0 : index
    %37 = vector.load %arg2[%c0_19, %c2_20, %c0_21, %c0_22] : memref<3x3x256x128xbf16, #tpu.memory_space<vmem>>, vector<1x1x256x128xbf16>
    %38 = vector.shape_cast %37 : vector<1x1x256x128xbf16> to vector<256x128xbf16>
    %cst_23 = arith.constant dense<0.000000e+00> : vector<24x128xf32>
    %39 = tpu.matmul %36, %38, %cst_23 {dimension_numbers = #tpu.dot_dimension_numbers<[1], [0], [0], [1], [0, 0, 1, 1], [], []>} : vector<24x256xbf16>, vector<256x128xbf16>, vector<24x128xf32> -> vector<24x128xf32>
    %40 = arith.addf %33, %39 : vector<24x128xf32>
    %c0_24 = arith.constant 0 : index
    %c6 = arith.constant 6 : index
    %c0_25 = arith.constant 0 : index
    %41 = vector.load %arg1[%c0_24, %c6, %c0_25] : memref<1x48x256xf32, #tpu.memory_space<vmem>>, vector<1x24x256xf32>
    %42 = vector.shape_cast %41 : vector<1x24x256xf32> to vector<24x256xf32>
    %43 = arith.truncf %42 : vector<24x256xf32> to vector<24x256xbf16>
    %c1_26 = arith.constant 1 : index
    %c0_27 = arith.constant 0 : index
    %c0_28 = arith.constant 0 : index
    %c0_29 = arith.constant 0 : index
    %44 = vector.load %arg2[%c1_26, %c0_27, %c0_28, %c0_29] : memref<3x3x256x128xbf16, #tpu.memory_space<vmem>>, vector<1x1x256x128xbf16>
    %45 = vector.shape_cast %44 : vector<1x1x256x128xbf16> to vector<256x128xbf16>
    %cst_30 = arith.constant dense<0.000000e+00> : vector<24x128xf32>
    %46 = tpu.matmul %43, %45, %cst_30 {dimension_numbers = #tpu.dot_dimension_numbers<[1], [0], [0], [1], [0, 0, 1, 1], [], []>} : vector<24x256xbf16>, vector<256x128xbf16>, vector<24x128xf32> -> vector<24x128xf32>
    %47 = arith.addf %40, %46 : vector<24x128xf32>
    %c0_31 = arith.constant 0 : index
    %c7 = arith.constant 7 : index
    %c0_32 = arith.constant 0 : index
    %48 = vector.load %arg1[%c0_31, %c7, %c0_32] : memref<1x48x256xf32, #tpu.memory_space<vmem>>, vector<1x24x256xf32>
    %49 = vector.shape_cast %48 : vector<1x24x256xf32> to vector<24x256xf32>
    %50 = arith.truncf %49 : vector<24x256xf32> to vector<24x256xbf16>
    %c1_33 = arith.constant 1 : index
    %c1_34 = arith.constant 1 : index
    %c0_35 = arith.constant 0 : index
    %c0_36 = arith.constant 0 : index
    %51 = vector.load %arg2[%c1_33, %c1_34, %c0_35, %c0_36] : memref<3x3x256x128xbf16, #tpu.memory_space<vmem>>, vector<1x1x256x128xbf16>
    %52 = vector.shape_cast %51 : vector<1x1x256x128xbf16> to vector<256x128xbf16>
    %cst_37 = arith.constant dense<0.000000e+00> : vector<24x128xf32>
    %53 = tpu.matmul %50, %52, %cst_37 {dimension_numbers = #tpu.dot_dimension_numbers<[1], [0], [0], [1], [0, 0, 1, 1], [], []>} : vector<24x256xbf16>, vector<256x128xbf16>, vector<24x128xf32> -> vector<24x128xf32>
    %54 = arith.addf %47, %53 : vector<24x128xf32>
    %c0_38 = arith.constant 0 : index
    %c8 = arith.constant 8 : index
    %c0_39 = arith.constant 0 : index
    %55 = vector.load %arg1[%c0_38, %c8, %c0_39] : memref<1x48x256xf32, #tpu.memory_space<vmem>>, vector<1x24x256xf32>
    %56 = vector.shape_cast %55 : vector<1x24x256xf32> to vector<24x256xf32>
    %57 = arith.truncf %56 : vector<24x256xf32> to vector<24x256xbf16>
    %c1_40 = arith.constant 1 : index
    %c2_41 = arith.constant 2 : index
    %c0_42 = arith.constant 0 : index
    %c0_43 = arith.constant 0 : index
    %58 = vector.load %arg2[%c1_40, %c2_41, %c0_42, %c0_43] : memref<3x3x256x128xbf16, #tpu.memory_space<vmem>>, vector<1x1x256x128xbf16>
    %59 = vector.shape_cast %58 : vector<1x1x256x128xbf16> to vector<256x128xbf16>
    %cst_44 = arith.constant dense<0.000000e+00> : vector<24x128xf32>
    %60 = tpu.matmul %57, %59, %cst_44 {dimension_numbers = #tpu.dot_dimension_numbers<[1], [0], [0], [1], [0, 0, 1, 1], [], []>} : vector<24x256xbf16>, vector<256x128xbf16>, vector<24x128xf32> -> vector<24x128xf32>
    %61 = arith.addf %54, %60 : vector<24x128xf32>
    %c0_45 = arith.constant 0 : index
    %c12 = arith.constant 12 : index
    %c0_46 = arith.constant 0 : index
    %62 = vector.load %arg1[%c0_45, %c12, %c0_46] : memref<1x48x256xf32, #tpu.memory_space<vmem>>, vector<1x24x256xf32>
    %63 = vector.shape_cast %62 : vector<1x24x256xf32> to vector<24x256xf32>
    %64 = arith.truncf %63 : vector<24x256xf32> to vector<24x256xbf16>
    %c2_47 = arith.constant 2 : index
    %c0_48 = arith.constant 0 : index
    %c0_49 = arith.constant 0 : index
    %c0_50 = arith.constant 0 : index
    %65 = vector.load %arg2[%c2_47, %c0_48, %c0_49, %c0_50] : memref<3x3x256x128xbf16, #tpu.memory_space<vmem>>, vector<1x1x256x128xbf16>
    %66 = vector.shape_cast %65 : vector<1x1x256x128xbf16> to vector<256x128xbf16>
    %cst_51 = arith.constant dense<0.000000e+00> : vector<24x128xf32>
    %67 = tpu.matmul %64, %66, %cst_51 {dimension_numbers = #tpu.dot_dimension_numbers<[1], [0], [0], [1], [0, 0, 1, 1], [], []>} : vector<24x256xbf16>, vector<256x128xbf16>, vector<24x128xf32> -> vector<24x128xf32>
    %68 = arith.addf %61, %67 : vector<24x128xf32>
    %c0_52 = arith.constant 0 : index
    %c13 = arith.constant 13 : index
    %c0_53 = arith.constant 0 : index
    %69 = vector.load %arg1[%c0_52, %c13, %c0_53] : memref<1x48x256xf32, #tpu.memory_space<vmem>>, vector<1x24x256xf32>
    %70 = vector.shape_cast %69 : vector<1x24x256xf32> to vector<24x256xf32>
    %71 = arith.truncf %70 : vector<24x256xf32> to vector<24x256xbf16>
    %c2_54 = arith.constant 2 : index
    %c1_55 = arith.constant 1 : index
    %c0_56 = arith.constant 0 : index
    %c0_57 = arith.constant 0 : index
    %72 = vector.load %arg2[%c2_54, %c1_55, %c0_56, %c0_57] : memref<3x3x256x128xbf16, #tpu.memory_space<vmem>>, vector<1x1x256x128xbf16>
    %73 = vector.shape_cast %72 : vector<1x1x256x128xbf16> to vector<256x128xbf16>
    %cst_58 = arith.constant dense<0.000000e+00> : vector<24x128xf32>
    %74 = tpu.matmul %71, %73, %cst_58 {dimension_numbers = #tpu.dot_dimension_numbers<[1], [0], [0], [1], [0, 0, 1, 1], [], []>} : vector<24x256xbf16>, vector<256x128xbf16>, vector<24x128xf32> -> vector<24x128xf32>
    %75 = arith.addf %68, %74 : vector<24x128xf32>
    %c0_59 = arith.constant 0 : index
    %c14 = arith.constant 14 : index
    %c0_60 = arith.constant 0 : index
    %76 = vector.load %arg1[%c0_59, %c14, %c0_60] : memref<1x48x256xf32, #tpu.memory_space<vmem>>, vector<1x24x256xf32>
    %77 = vector.shape_cast %76 : vector<1x24x256xf32> to vector<24x256xf32>
    %78 = arith.truncf %77 : vector<24x256xf32> to vector<24x256xbf16>
    %c2_61 = arith.constant 2 : index
    %c2_62 = arith.constant 2 : index
    %c0_63 = arith.constant 0 : index
    %c0_64 = arith.constant 0 : index
    %79 = vector.load %arg2[%c2_61, %c2_62, %c0_63, %c0_64] : memref<3x3x256x128xbf16, #tpu.memory_space<vmem>>, vector<1x1x256x128xbf16>
    %80 = vector.shape_cast %79 : vector<1x1x256x128xbf16> to vector<256x128xbf16>
    %cst_65 = arith.constant dense<0.000000e+00> : vector<24x128xf32>
    %81 = tpu.matmul %78, %80, %cst_65 {dimension_numbers = #tpu.dot_dimension_numbers<[1], [0], [0], [1], [0, 0, 1, 1], [], []>} : vector<24x256xbf16>, vector<256x128xbf16>, vector<24x128xf32> -> vector<24x128xf32>
    %82 = arith.addf %75, %81 : vector<24x128xf32>
    %c0_66 = arith.constant 0 : index
    %c0_67 = arith.constant 0 : index
    %83 = vector.load %arg3[%c0_66, %c0_67] : memref<1x128xf32, #tpu.memory_space<vmem>>, vector<1x128xf32>
    %84 = vector.broadcast %83 : vector<1x128xf32> to vector<24x128xf32>
    %85 = arith.addf %82, %84 : vector<24x128xf32>
    %cst_68 = arith.constant 0.000000e+00 : f32
    %86 = vector.broadcast %cst_68 : f32 to vector<24x128xf32>
    %87 = arith.cmpf ogt, %85, %86 : vector<24x128xf32>
    %88 = arith.extui %87 : vector<24x128xi1> to vector<24x128xi32>
    %89 = arith.sitofp %88 : vector<24x128xi32> to vector<24x128xf32>
    %cst_69 = arith.constant 0.000000e+00 : f32
    %90 = vector.shape_cast %18 : vector<24x1xi1> to vector<24x1xi1>
    %91 = vector.broadcast %90 : vector<24x1xi1> to vector<24x128xi1>
    %92 = vector.broadcast %cst_69 : f32 to vector<24x128xf32>
    %93 = arith.select %91, %89, %92 : vector<24x128xi1>, vector<24x128xf32>
    %cst_70 = arith.constant 0.000000e+00 : f32
    %94 = vector.broadcast %cst_70 : f32 to vector<48x128xf32>
    %c0_71 = arith.constant 0 : index
    %c0_72 = arith.constant 0 : index
    %c0_73 = arith.constant 0 : index
    %95 = vector.load %arg4[%c0_71, %c0_72, %c0_73] : memref<1x48x128xf32, #tpu.memory_space<vmem>>, vector<1x48x128xf32>
    %96 = vector.shape_cast %95 : vector<1x48x128xf32> to vector<48x128xf32>
    %97 = vector.shape_cast %94 : vector<48x128xf32> to vector<1x48x128xf32>
    tpu.vector_store %arg4[%c0_71, %c0_72, %c0_73], %97 {strides = array<i32>} : memref<1x48x128xf32, #tpu.memory_space<vmem>>, vector<1x48x128xf32>,
    %c0_74 = arith.constant 0 : index
    %c7_75 = arith.constant 7 : index
    %c0_76 = arith.constant 0 : index
    %98 = vector.load %arg4[%c0_74, %c7_75, %c0_76] : memref<1x48x128xf32, #tpu.memory_space<vmem>>, vector<1x24x128xf32>
    %99 = vector.shape_cast %98 : vector<1x24x128xf32> to vector<24x128xf32>
    %100 = vector.shape_cast %93 : vector<24x128xf32> to vector<1x24x128xf32>
    tpu.vector_store %arg4[%c0_74, %c7_75, %c0_76], %100 {strides = array<i32>} : memref<1x48x128xf32, #tpu.memory_space<vmem>>, vector<1x24x128xf32>,
    return
  }
  func.func @transform_0(%arg0: i32) -> (i32, i32, i32) {
    %c0_i32 = arith.constant 0 : i32
    %c0_i32_0 = arith.constant 0 : i32
    %c0_i32_1 = arith.constant 0 : i32
    return %arg0, %c0_i32, %c0_i32_0 : i32, i32, i32
  }
  func.func @transform_1(%arg0: i32) -> (i32, i32, i32, i32) {
    %c0_i32 = arith.constant 0 : i32
    %c0_i32_0 = arith.constant 0 : i32
    %c0_i32_1 = arith.constant 0 : i32
    %c0_i32_2 = arith.constant 0 : i32
    %c0_i32_3 = arith.constant 0 : i32
    return %c0_i32, %c0_i32_0, %c0_i32_1, %c0_i32_2 : i32, i32, i32, i32
  }
  func.func @transform_2(%arg0: i32) -> (i32, i32) {
    %c0_i32 = arith.constant 0 : i32
    %c0_i32_0 = arith.constant 0 : i32
    %c0_i32_1 = arith.constant 0 : i32
    return %c0_i32, %c0_i32_0 : i32, i32
  }
  func.func @transform_3(%arg0: i32) -> (i32, i32, i32) {
    %c0_i32 = arith.constant 0 : i32
    %c0_i32_0 = arith.constant 0 : i32
    %c0_i32_1 = arith.constant 0 : i32
    return %arg0, %c0_i32, %c0_i32_0 : i32, i32, i32
  }
}

</mosaic_0001>

<bundles_post_ra>
// kernel: encoder_forward.6
= control target key start
LH: loop header
LB: loop body
LE: loop exit
PB: predicated region body
PF: predicated region fallthrough
CT: control target
= control target key end

     0   :  { %s631_s12 = smov 0   ;;  %s726_s0 = inlined_call_operand.vmem [shape: bf16[128,192], index: 0, kind: input, shape index: {}]   ;;  %s727_s1 = inlined_call_operand.vmem [shape: bf16[192,128], index: 1, kind: input, shape index: {}]   ;;  %s728_s2 = inlined_call_operand.vmem [shape: f32[1,128], index: 2, kind: input, shape index: {}]   ;;  %s729_s3 = inlined_call_operand.vmem [shape: f32[128,128], index: 3, kind: output, shape index: {}]  }
   0x1 LB: > { %s465_s13 = sadd.s32 4294967295, %s609_s12   ;;  %p469_p0 = scmp.ge.s32.totalorder %s609_s12, 1  ;;  %s609_s12 = sphi %s631_s12, %s13_s12  }
   0x2   : > { %p139_p1 = scmp.lt.s32.totalorder %s609_s12, 3 }
   0x4   : > { %p140_p2 = pnand %p469_p0, %p139_p1 }
   0x5   : > { %s470_s18 = sshll.u32 (!%p140_p2), %s465_s13, 3 }
   0x6   : > { %143 = sbr.rel (%p140_p2) target bundleno = 207 (0xcf), region = 32  ;;  %p165_p3 = scmp.lt.s32.totalorder (!%p140_p2), %s470_s18, 15 }
   0xb   : > { %v577_v0 = vld [vmem:[%s727_s1 + $0x38] sm:$0xff]  ;;  %v576_v2 = vld [vmem:[%s727_s1 + $0x30] sm:$0xff]  ;;  %s731_s18 = smov (!%p165_p3, %s470_s18), 15  ;;  %v575_v4 = vld [vmem:[%s727_s1 + $0x28] sm:$0xff]  ;;  %vm322_vm0 = vcmask 523264  }
   0xc   : > { %v581_v1 = vld [vmem:[%s727_s1 + $0x58] sm:$0xff]  ;;  %335 = vmatpush.bf16.msra.mxu0 %v577_v0  ;;  %582 = vmatpush.bf16.msra.mxu2 %v577_v0  ;;  %v580_v3 = vld [vmem:[%s727_s1 + $0x50] sm:$0xff]  ;;  %s561_s23 = sshll.u32 %s731_s18, 3  ;;  %v579_v5 = vld [vmem:[%s727_s1 + $0x48] sm:$0xff] }
   0xd   : > { %590 = vmatpush.bf16.msra.mxu3 %v581_v1  ;;  %368 = vmatpush.bf16.msra.mxu1 %v581_v1  ;;  %s665_s30 = scalar_lea.vmem %s726_s0, %s561_s23  ;;  %v574_v6 = vld [vmem:[%s727_s1 + $0x20] sm:$0xff]  ;;  %v573_v13 = vld [vmem:[%s727_s1 + $0x18] sm:$0xff]  ;;  %v572_v15 = vld [vmem:[%s727_s1 + $0x10] sm:$0xff]  ;;  %s713_s22 = scalar_lea.vmem %s729_s3, %s561_s23 }
   0xe   : > { %v578_v7 = vld [vmem:[%s727_s1 + $0x40] sm:$0xff]  ;;  %v564_v8 = vld [vmem:[%s665_s30 + $0x14] sm:$0xf]  ;;  %v487_v9 = vld [vmem:[%s665_s30 + $0x18] sm:$0xf0] }
   0xf   : > { %v562_v10 = vld [vmem:[%s665_s30 + $0x4] sm:$0xf]  ;;  %v479_v11 = vld [vmem:[%s665_s30 + $0x8] sm:$0xf0]  ;;  %v490_v12 = vor.u32 %v564_v8, %v487_v9  ;;  %v477_v18 = vld [vmem:[%s665_s30] sm:$0xf] }
  0x10   : > { %336 = vmatpush.bf16.msra.mxu0 %v576_v2  ;;  %583 = vmatpush.bf16.msra.mxu2 %v576_v2  ;;  %v482_v14 = vor.u32 %v562_v10, %v479_v11  ;;  %v571_v16 = vld [vmem:[%s727_s1 + $0x8] sm:$0xff]  ;;  %v570_v17 = vld [vmem:[%s727_s1] sm:$0xff]  ;;  %v485_v27 = vld [vmem:[%s665_s30 + $0x10] sm:$0xf] }
  0x11   : > { %591 = vmatpush.bf16.msra.mxu3 %v580_v3  ;;  %369 = vmatpush.bf16.msra.mxu1 %v580_v3  ;;  %v563_v19 = vld [vmem:[%s665_s30 + $0x4] sm:$0xf0]  ;;  %v493_v20 = vld [vmem:[%s665_s30 + $0x20] sm:$0xf]  ;;  %v566_v22 = vld [vmem:[%s665_s30 + $0x24] sm:$0xf] }
  0x12   : > { %v567_v21 = vld [vmem:[%s665_s30 + $0x24] sm:$0xf0]  ;;  %v495_v23 = vld [vmem:[%s665_s30 + $0x28] sm:$0xf0]  ;;  %v478_v24 = vor.u32 %v563_v19, %v477_v18  ;;  %v565_v28 = vld [vmem:[%s665_s30 + $0x14] sm:$0xf0] }
  0x13   : > { %v494_v25 = vor.u32 %v567_v21, %v493_v20  ;;  %v498_v26 = vor.u32 %v566_v22, %v495_v23  ;;  %v501_v29 = vld [vmem:[%s665_s30 + $0x30] sm:$0xf]  ;;  %v569_v30 = vld [vmem:[%s665_s30 + $0x34] sm:$0xf0]  ;;  %v568_v31 = vld [vmem:[%s665_s30 + $0x34] sm:$0xf]  ;;  %v486_v33 = vor.u32 %v565_v28, %v485_v27 }
  0x14   : > { %337 = vmatpush.bf16.msra.mxu0 %v575_v4  ;;  %584 = vmatpush.bf16.msra.mxu2 %v575_v4  ;;  %v503_v32 = vld [vmem:[%s665_s30 + $0x38] sm:$0xf0]  ;;  %v502_v34 = vor.u32 %v569_v30, %v501_v29  ;;  %v602_v37 = vld [vmem:[%s728_s2] ss:$0 sm:$0xff] }
  0x15   : > { %592 = vmatpush.bf16.msra.mxu3 %v579_v5  ;;  %370 = vmatpush.bf16.msra.mxu1 %v579_v5  ;;  %v506_v35 = vor.u32 %v568_v31, %v503_v32 }
  0x18   : > { %338 = vmatpush.bf16.msra.mxu0 %v574_v6  ;;  %585 = vmatpush.bf16.msra.mxu2 %v574_v6 }
  0x19   : > { %593 = vmatpush.bf16.msra.mxu3 %v578_v7  ;;  %371 = vmatpush.bf16.msra.mxu1 %v578_v7 }
  0x1c   : > { %556 = vmatmul.msk.bf16.vlgmr.msra.gmra.mxu3 %vm322_vm0, %v490_v12  ;;  %339 = vmatpush.bf16.msra.mxu0 %v573_v13 }
  0x1d   : > { %586 = vmatpush.bf16.msra.mxu2 %v573_v13  ;;  %555 = vmatmul.msk.bf16.vlgmr.msra.gmra.mxu1 %vm322_vm0, %v482_v14 }
  0x20   : > { %340 = vmatpush.bf16.msra.mxu0 %v572_v15 }
  0x21   : > { %587 = vmatpush.bf16.msra.mxu2 %v572_v15 }
  0x24   : > { %341 = vmatpush.bf16.msra.mxu0 %v571_v16 }
  0x25   : > { %588 = vmatpush.bf16.msra.mxu2 %v571_v16 }
  0x28   : > { %342 = vmatpush.bf16.msra.mxu0 %v570_v17 }
  0x29   : > { %589 = vmatpush.bf16.msra.mxu2 %v570_v17 }
  0x2b   : > { %343 = vmatmul.bf16.vlgmr.msra.gmra.mxu0 %v478_v24 }
  0x2c   : > { %353 = vmatmul.bf16.vlgmr.msra.gmra.mxu2 %v494_v25  ;;  %557 = vmatmul.msk.bf16.gmra.mxu3 %vm322_vm0, %v498_v26 }
  0x3b   : > { %348 = vmatmul.bf16.gmra.mxu0 %v486_v33 }
  0x3c   : > { %358 = vmatmul.bf16.gmra.mxu2 %v502_v34  ;;  %558 = vmatmul.msk.bf16.gmra.mxu3 %vm322_vm0, %v506_v35 }
  0x9a   : > { %v373_v38 = vpop.f32.mrf.mxu1 }
  0x9f   : > { %v378_v36 = vpop.f32.mrf.mxu3 }
  0xa2   : > { %v375_v48 = vpop.f32.mrf.mxu1 }
  0xa7   : > { %v380_v39 = vpop.f32.mrf.mxu3 }
  0xa8   : > { %v344_v40 = vpop.f32.mrf.mxu0 }
  0xa9   : > { %v345_v41 = vadd.f32 %v602_v37, %v344_v40 }
  0xab   : > { %v374_v42 = vadd.f32 %v373_v38, %v345_v41 }
  0xad   : > { %v393_v43 = vmax.f32 %v374_v42, 0.0 }
  0xaf   : > { %401 = vst [vmem:[%s713_s22] sm:$0xff] %v393_v43  ;;  %v354_v44 = vpop.f32.mrf.mxu2  ;;  %v383_v45 = vpop.f32.mrf.mxu3 }
  0xb0   : > { %v355_v46 = vadd.f32 %v602_v37, %v354_v44  ;;  %v346_v47 = vpop.f32.mrf.mxu0 }
  0xb1   : > { %v347_v49 = vadd.f32 %v602_v37, %v346_v47 }
  0xb2   : > { %v384_v50 = vadd.f32 %v383_v45, %v355_v46 }
  0xb3   : > { %v376_v51 = vadd.f32 %v375_v48, %v347_v49 }
  0xb4   : > { %v397_v52 = vmax.f32 %v384_v50, 0.0 }
  0xb5   : > { %v394_v53 = vmax.f32 %v376_v51, 0.0 }
  0xb6   : > { %405 = vst [vmem:[%s713_s22 + $0x20] sm:$0xff] %v397_v52 }
  0xb7   : > { %402 = vst [vmem:[%s713_s22 + $0x8] sm:$0xff] %v394_v53  ;;  %v356_v54 = vpop.f32.mrf.mxu2  ;;  %v385_v55 = vpop.f32.mrf.mxu3 }
  0xb8   : > { %v357_v56 = vadd.f32 %v602_v37, %v356_v54  ;;  %v349_v57 = vpop.f32.mrf.mxu0 }
  0xb9   : > { %v350_v58 = vadd.f32 %v602_v37, %v349_v57 }
  0xba   : > { %v386_v59 = vadd.f32 %v385_v55, %v357_v56 }
  0xbb   : > { %v379_v60 = vadd.f32 %v378_v36, %v350_v58 }
  0xbc   : > { %v398_v61 = vmax.f32 %v386_v59, 0.0 }
  0xbd   : > { %v395_v62 = vmax.f32 %v379_v60, 0.0 }
  0xbe   : > { %406 = vst [vmem:[%s713_s22 + $0x28] sm:$0xff] %v398_v61 }
  0xbf   : > { %403 = vst [vmem:[%s713_s22 + $0x10] sm:$0xff] %v395_v62  ;;  %v359_v63 = vpop.f32.mrf.mxu2  ;;  %v388_v0 = vpop.f32.mrf.mxu3 }
  0xc0   : > { %v360_v1 = vadd.f32 %v602_v37, %v359_v63  ;;  %v351_v2 = vpop.f32.mrf.mxu0 }
  0xc1   : > { %v352_v3 = vadd.f32 %v602_v37, %v351_v2 }
  0xc2   : > { %v389_v4 = vadd.f32 %v388_v0, %v360_v1 }
  0xc3   : > { %v381_v5 = vadd.f32 %v380_v39, %v352_v3 }
  0xc4   : > { %v399_v6 = vmax.f32 %v389_v4, 0.0 }
  0xc5   : > { %v396_v7 = vmax.f32 %v381_v5, 0.0 }
  0xc6   : > { %407 = vst [vmem:[%s713_s22 + $0x30] sm:$0xff] %v399_v6 }
  0xc7   : > { %404 = vst [vmem:[%s713_s22 + $0x18] sm:$0xff] %v396_v7  ;;  %v361_v8 = vpop.f32.mrf.mxu2  ;;  %v390_v10 = vpop.f32.mrf.mxu3 }
  0xc8   : > { %v362_v9 = vadd.f32 %v602_v37, %v361_v8 }
  0xca   : > { %v391_v11 = vadd.f32 %v390_v10, %v362_v9 }
  0xcc   : > { %v400_v12 = vmax.f32 %v391_v11, 0.0 }
  0xce   : > { %408 = vst [vmem:[%s713_s22 + $0x38] sm:$0xff] %v400_v12 }
  0xcf PF: > { %s13_s12 = sadd.s32 1, %s609_s12  }
  0xd0   : > { %p10_p4 = scmp.ge.s32.totalorder %s13_s12, 4  }
  0xd2   :  { %12 = sbr.rel (!%p10_p4) target bundleno = 1 (0x1), region = 62 }

// kernel: encoder_forward.7
= control target key start
LH: loop header
LB: loop body
LE: loop exit
PB: predicated region body
PF: predicated region fallthrough
CT: control target
= control target key end

     0   :  { %s4500_s18 = smov 0   ;;  %s5988_s0 = inlined_call_operand.vmem [shape: f32[2,112,128], index: 0, kind: input, shape index: {}]   ;;  %s5989_s1 = inlined_call_operand.vmem [shape: bf16[3,3,128,128], index: 1, kind: input, shape index: {}]   ;;  %s5990_s2 = inlined_call_operand.vmem [shape: f32[1,128], index: 2, kind: input, shape index: {}]   ;;  %s5991_s3 = inlined_call_operand.vmem [shape: bf16[3,3,128,128], index: 3, kind: input, shape index: {}]   ;;  %s5992_s4 = inlined_call_operand.vmem [shape: f32[1,128], index: 4, kind: input, shape index: {}]   ;;  %s5993_s5 = inlined_call_operand.vmem [shape: f32[2,112,128], index: 5, kind: output, shape index: {}]  }
   0x1 LB: > { %s3379_s19 = sadd.s32 4294967295, %s4466_s18   ;;  %p3383_p0 = scmp.ge.s32.totalorder %s4466_s18, 1  ;;  %s4466_s18 = sphi %s4500_s18, %s15_s18  }
   0x2   : > { %p187_p1 = scmp.lt.s32.totalorder %s4466_s18, 3 }
   0x4   : > { %p188_p2 = pnand %p3383_p0, %p187_p1 }
   0x5   : > { %p215_p3 = scmp.lt.s32.totalorder (!%p188_p2), %s3379_s19, 1 }
   0x6   : > { %191 = sbr.rel (%p188_p2) target bundleno = 722 (0x2d2), region = 40 }
   0xb   : > { %v4283_v0 = vld [vmem:[%s5989_s1 + $0x78] sm:$0xff]  ;;  %v4282_v2 = vld [vmem:[%s5989_s1 + $0x70] sm:$0xff]  ;;  %v4281_v4 = vld [vmem:[%s5989_s1 + $0x68] sm:$0xff]  ;;  %s6044_s19 = smov (!%p215_p3, %s3379_s19), 1 }
   0xc   : > { %v4275_v1 = vld [vmem:[%s5989_s1 + $0x38] sm:$0xff]  ;;  %4431 = vmatpush.bf16.msra.mxu2 %v4283_v0  ;;  %v4274_v3 = vld [vmem:[%s5989_s1 + $0x30] sm:$0xff]  ;;  %698 = vmatpush.bf16.msra.mxu0 %v4283_v0  ;;  %v4273_v5 = vld [vmem:[%s5989_s1 + $0x28] sm:$0xff]  ;;  %s4447_s21 = smul.u32 112, %s6044_s19 }
   0xd   : > { %4439 = vmatpush.bf16.msra.mxu3 %v4275_v1  ;;  %780 = vmatpush.bf16.msra.mxu1 %v4275_v1  ;;  %v4280_v6 = vld [vmem:[%s5989_s1 + $0x60] sm:$0xff]  ;;  %v4279_v8 = vld [vmem:[%s5989_s1 + $0x58] sm:$0xff]  ;;  %v4278_v10 = vld [vmem:[%s5989_s1 + $0x50] sm:$0xff] }
   0xe   : > { %v4272_v7 = vld [vmem:[%s5989_s1 + $0x20] sm:$0xff]  ;;  %v4271_v9 = vld [vmem:[%s5989_s1 + $0x18] sm:$0xff]  ;;  %v4270_v11 = vld [vmem:[%s5989_s1 + $0x10] sm:$0xff]  ;;  %s4562_s28 = scalar_lea.vmem %s5988_s0, %s4447_s21  ;;  %s5901_s16 = scalar_lea.vmem %s5993_s5, %s4447_s21 }
   0xf   : > { %v4277_v12 = vld [vmem:[%s5989_s1 + $0x48] sm:$0xff]  ;;  %v4276_v14 = vld [vmem:[%s5989_s1 + $0x40] sm:$0xff]  ;;  %v4291_v20 = vld [vmem:[%s5989_s1 + $0xb8] sm:$0xff] }
  0x10   : > { %4432 = vmatpush.bf16.msra.mxu2 %v4282_v2  ;;  %699 = vmatpush.bf16.msra.mxu0 %v4282_v2  ;;  %v4269_v13 = vld [vmem:[%s5989_s1 + $0x8] sm:$0xff]  ;;  %v4268_v15 = vld [vmem:[%s5989_s1] sm:$0xff]  ;;  %v4299_v21 = vld [vmem:[%s5989_s1 + $0xf8] sm:$0xff] }
  0x11   : > { %4440 = vmatpush.bf16.msra.mxu3 %v4274_v3  ;;  %781 = vmatpush.bf16.msra.mxu1 %v4274_v3  ;;  %v622_v16 = vld [vmem:[%s4562_s28 + $0x21] sm:$0xff]  ;;  %v623_v17 = vld [vmem:[%s4562_s28 + $0x29] sm:$0xff]  ;;  %v4307_v28 = vld [vmem:[%s5989_s1 + $0x138] sm:$0xff] }
  0x12   : > { %v591_v18 = vld [vmem:[%s4562_s28 + $0x20] sm:$0xff]  ;;  %v592_v19 = vld [vmem:[%s4562_s28 + $0x28] sm:$0xff]  ;;  %v630_v23 = vpack.c.bf16 %v623_v17, %v622_v16  ;;  %v4315_v29 = vld [vmem:[%s5989_s1 + $0x178] sm:$0xff] }
  0x13   : > { %v618_v22 = vld [vmem:[%s4562_s28 + $0x1] sm:$0xff]  ;;  %v599_v24 = vpack.c.bf16 %v592_v19, %v591_v18  ;;  %v619_v25 = vld [vmem:[%s4562_s28 + $0x9] sm:$0xff]  ;;  %v624_v42 = vld [vmem:[%s4562_s28 + $0x31] sm:$0xff] }
  0x14   : > { %4433 = vmatpush.bf16.msra.mxu2 %v4281_v4  ;;  %700 = vmatpush.bf16.msra.mxu0 %v4281_v4  ;;  %v587_v26 = vld [vmem:[%s4562_s28] sm:$0xff]  ;;  %v588_v27 = vld [vmem:[%s4562_s28 + $0x8] sm:$0xff]  ;;  %v4290_v30 = vld [vmem:[%s5989_s1 + $0xb0] sm:$0xff]  ;;  %v628_v32 = vpack.c.bf16 %v619_v25, %v618_v22 }
  0x15   : > { %4441 = vmatpush.bf16.msra.mxu3 %v4273_v5  ;;  %782 = vmatpush.bf16.msra.mxu1 %v4273_v5  ;;  %v4298_v31 = vld [vmem:[%s5989_s1 + $0xf0] sm:$0xff]  ;;  %v597_v33 = vpack.c.bf16 %v588_v27, %v587_v26  ;;  %v4289_v36 = vld [vmem:[%s5989_s1 + $0xa8] sm:$0xff]  ;;  %v4288_v40 = vld [vmem:[%s5989_s1 + $0xa0] sm:$0xff] }
  0x16   : > { %v4306_v34 = vld [vmem:[%s5989_s1 + $0x130] sm:$0xff]  ;;  %v4297_v37 = vld [vmem:[%s5989_s1 + $0xe8] sm:$0xff]  ;;  %v4296_v41 = vld [vmem:[%s5989_s1 + $0xe0] sm:$0xff] }
  0x17   : > { %v4314_v35 = vld [vmem:[%s5989_s1 + $0x170] sm:$0xff]  ;;  %v4305_v38 = vld [vmem:[%s5989_s1 + $0x128] sm:$0xff]  ;;  %v625_v43 = vld [vmem:[%s4562_s28 + $0x39] sm:$0xff] }
  0x18   : > { %4434 = vmatpush.bf16.msra.mxu2 %v4280_v6  ;;  %701 = vmatpush.bf16.msra.mxu0 %v4280_v6  ;;  %v4313_v39 = vld [vmem:[%s5989_s1 + $0x168] sm:$0xff]  ;;  %v593_v44 = vld [vmem:[%s4562_s28 + $0x30] sm:$0xff]  ;;  %v594_v45 = vld [vmem:[%s4562_s28 + $0x38] sm:$0xff]  ;;  %v631_v51 = vpack.c.bf16 %v625_v43, %v624_v42 }
  0x19   : > { %4442 = vmatpush.bf16.msra.mxu3 %v4272_v7  ;;  %783 = vmatpush.bf16.msra.mxu1 %v4272_v7  ;;  %v4304_v46 = vld [vmem:[%s5989_s1 + $0x120] sm:$0xff]  ;;  %v4287_v48 = vld [vmem:[%s5989_s1 + $0x98] sm:$0xff]  ;;  %v600_v52 = vpack.c.bf16 %v594_v45, %v593_v44  ;;  %v589_v54 = vld [vmem:[%s4562_s28 + $0x10] sm:$0xff] }
  0x1a   : > { %v4312_v47 = vld [vmem:[%s5989_s1 + $0x160] sm:$0xff]  ;;  %v4295_v49 = vld [vmem:[%s5989_s1 + $0xd8] sm:$0xff]  ;;  %v4286_v58 = vld [vmem:[%s5989_s1 + $0x90] sm:$0xff] }
  0x1b   : > { %v620_v50 = vld [vmem:[%s4562_s28 + $0x11] sm:$0xff]  ;;  %v621_v53 = vld [vmem:[%s4562_s28 + $0x19] sm:$0xff]  ;;  %v4285_v0 = vld [vmem:[%s5989_s1 + $0x88] sm:$0xff] }
  0x1c   : > { %4435 = vmatpush.bf16.msra.mxu2 %v4279_v8  ;;  %702 = vmatpush.bf16.msra.mxu0 %v4279_v8  ;;  %v590_v55 = vld [vmem:[%s4562_s28 + $0x18] sm:$0xff]  ;;  %v4294_v59 = vld [vmem:[%s5989_s1 + $0xd0] sm:$0xff]  ;;  %v629_v60 = vpack.c.bf16 %v621_v53, %v620_v50  ;;  %v4293_v1 = vld [vmem:[%s5989_s1 + $0xc8] sm:$0xff] }
  0x1d   : > { %4443 = vmatpush.bf16.msra.mxu3 %v4271_v9  ;;  %784 = vmatpush.bf16.msra.mxu1 %v4271_v9  ;;  %v4303_v56 = vld [vmem:[%s5989_s1 + $0x118] sm:$0xff]  ;;  %v598_v61 = vpack.c.bf16 %v590_v55, %v589_v54  ;;  %v4302_v62 = vld [vmem:[%s5989_s1 + $0x110] sm:$0xff]  ;;  %v4301_v2 = vld [vmem:[%s5989_s1 + $0x108] sm:$0xff] }
  0x1e   : > { %v4311_v57 = vld [vmem:[%s5989_s1 + $0x158] sm:$0xff]  ;;  %v4310_v63 = vld [vmem:[%s5989_s1 + $0x150] sm:$0xff]  ;;  %v4309_v3 = vld [vmem:[%s5989_s1 + $0x148] sm:$0xff] }
  0x1f   : > { %v4284_v4 = vld [vmem:[%s5989_s1 + $0x80] sm:$0xff]  ;;  %v4323_v6 = vld [vmem:[%s5989_s1 + $0x1b8] sm:$0xff]  ;;  %v627_v9 = vld [vmem:[%s4562_s28 + $0x49] sm:$0xff] }
  0x20   : > { %4436 = vmatpush.bf16.msra.mxu2 %v4278_v10  ;;  %703 = vmatpush.bf16.msra.mxu0 %v4278_v10  ;;  %v4292_v5 = vld [vmem:[%s5989_s1 + $0xc0] sm:$0xff]  ;;  %v4331_v7 = vld [vmem:[%s5989_s1 + $0x1f8] sm:$0xff]  ;;  %v4322_v16 = vld [vmem:[%s5989_s1 + $0x1b0] sm:$0xff] }
  0x21   : > { %4444 = vmatpush.bf16.msra.mxu3 %v4270_v11  ;;  %785 = vmatpush.bf16.msra.mxu1 %v4270_v11  ;;  %v626_v8 = vld [vmem:[%s4562_s28 + $0x41] sm:$0xff]  ;;  %v4330_v17 = vld [vmem:[%s5989_s1 + $0x1f0] sm:$0xff]  ;;  %v4319_v42 = vld [vmem:[%s5989_s1 + $0x198] sm:$0xff] }
  0x22   : > { %v595_v10 = vld [vmem:[%s4562_s28 + $0x40] sm:$0xff]  ;;  %v596_v11 = vld [vmem:[%s4562_s28 + $0x48] sm:$0xff]  ;;  %v632_v18 = vpack.c.bf16 %v627_v9, %v626_v8  ;;  %v4705_v22 = vld [vmem:[%s4562_s28 + $0x14] sm:$0xff] }
  0x23   : > { %v601_v19 = vpack.c.bf16 %v596_v11, %v595_v10  ;;  %v4321_v25 = vld [vmem:[%s5989_s1 + $0x1a8] sm:$0xff]  ;;  %v4338_v26 = vld [vmem:[%s5989_s1 + $0x230] sm:$0xff]  ;;  %v4336_v43 = vld [vmem:[%s5989_s1 + $0x220] sm:$0xff] }
  0x24   : > { %4437 = vmatpush.bf16.msra.mxu2 %v4277_v12  ;;  %704 = vmatpush.bf16.msra.mxu0 %v4277_v12  ;;  %v4300_v12 = vld [vmem:[%s5989_s1 + $0x100] sm:$0xff]  ;;  %v4329_v27 = vld [vmem:[%s5989_s1 + $0x1e8] sm:$0xff]  ;;  %v4327_v44 = vld [vmem:[%s5989_s1 + $0x1d8] sm:$0xff] }
  0x25   : > { %4445 = vmatpush.bf16.msra.mxu3 %v4269_v13  ;;  %786 = vmatpush.bf16.msra.mxu1 %v4269_v13  ;;  %v4308_v13 = vld [vmem:[%s5989_s1 + $0x140] sm:$0xff]  ;;  %v1067_v50 = vld [vmem:[%s4562_s28 + $0x33] sm:$0xff]  ;;  %v4333_v8 = vld [vmem:[%s5989_s1 + $0x208] sm:$0xff] }
  0x26   : > { %v817_v45 = vld [vmem:[%s4562_s28 + $0x1a] sm:$0xff]  ;;  %v4318_v55 = vld [vmem:[%s5989_s1 + $0x190] sm:$0xff] }
  0x27   : > { %v4324_v9 = vld [vmem:[%s5989_s1 + $0x1c0] sm:$0xff] }
  0x28   : > { %4438 = vmatpush.bf16.msra.mxu2 %v4276_v14  ;;  %705 = vmatpush.bf16.msra.mxu0 %v4276_v14  ;;  %v4339_v14 = vld [vmem:[%s5989_s1 + $0x238] sm:$0xff]  ;;  %v4332_v11 = vld [vmem:[%s5989_s1 + $0x200] sm:$0xff] }
  0x29   : > { %4446 = vmatpush.bf16.msra.mxu3 %v4268_v15  ;;  %787 = vmatpush.bf16.msra.mxu1 %v4268_v15  ;;  %v1062_v15 = vld [vmem:[%s4562_s28 + $0xb] sm:$0xff] }
  0x2b   : > { %716 = vmatmul.bf16.vlgmr.msra.gmra.mxu2 %v630_v23  ;;  %706 = vmatmul.bf16.vlgmr.msra.gmra.mxu0 %v628_v32  ;;  %v939_v32 = vld [vmem:[%s4562_s28 + $0x12] sm:$0xff] }
  0x2c   : > { %894 = vmatpush.bf16.msrb.mxu2 %v4291_v20  ;;  %798 = vmatmul.bf16.vlgmr.msra.gmra.mxu3 %v599_v24  ;;  %v1063_v20 = vld [vmem:[%s4562_s28 + $0x13] sm:$0xff] }
  0x2d   : > { %1018 = vmatpush.bf16.msrb.mxu3 %v4299_v21  ;;  %1142 = vmatpush.bf16.msrb.mxu0 %v4307_v28  ;;  %v1186_v21 = vld [vmem:[%s4562_s28 + $0xc] sm:$0xff]  ;;  %v1072_v23 = vpack.c.bf16 %v1063_v20, %v1062_v15 }
  0x2e   : > { %1266 = vmatpush.bf16.msrb.mxu1 %v4315_v29  ;;  %v1196_v24 = vpack.c.bf16 %v4705_v22, %v1186_v21  ;;  %v4337_v28 = vld [vmem:[%s5989_s1 + $0x228] sm:$0xff]  ;;  %v4320_v29 = vld [vmem:[%s5989_s1 + $0x1a0] sm:$0xff] }
  0x2f   : > { %788 = vmatmul.bf16.vlgmr.msra.gmra.mxu1 %v597_v33  ;;  %v1064_v33 = vld [vmem:[%s4562_s28 + $0x1b] sm:$0xff] }
  0x30   : > { %895 = vmatpush.bf16.msrb.mxu2 %v4290_v30  ;;  %v814_v30 = vld [vmem:[%s4562_s28 + $0x2] sm:$0xff] }
  0x31   : > { %1019 = vmatpush.bf16.msrb.mxu3 %v4298_v31  ;;  %1143 = vmatpush.bf16.msrb.mxu0 %v4306_v34  ;;  %v815_v31 = vld [vmem:[%s4562_s28 + $0xa] sm:$0xff] }
  0x32   : > { %1267 = vmatpush.bf16.msrb.mxu1 %v4314_v35  ;;  %v824_v34 = vpack.c.bf16 %v815_v31, %v814_v30  ;;  %v948_v35 = vpack.c.bf16 %v939_v32, %v815_v31  ;;  %v1435_v30 = vld [vmem:[%s4562_s28 + $0x1d] sm:$0xff] }
  0x34   : > { %896 = vmatpush.bf16.msrb.mxu2 %v4289_v36  ;;  %v1065_v36 = vld [vmem:[%s4562_s28 + $0x23] sm:$0xff] }
  0x35   : > { %1020 = vmatpush.bf16.msrb.mxu3 %v4297_v37  ;;  %1144 = vmatpush.bf16.msrb.mxu0 %v4305_v38  ;;  %v4729_v37 = vld [vmem:[%s4562_s28 + $0x1c] sm:$0xff]  ;;  %v4732_v38 = vld [vmem:[%s4562_s28 + $0x24] sm:$0xff] }
  0x36   : > { %1268 = vmatpush.bf16.msrb.mxu1 %v4313_v39  ;;  %v1073_v39 = vpack.c.bf16 %v1065_v36, %v1064_v33  ;;  %v1320_v10 = vpack.c.bf16 %v4729_v37, %v4705_v22  ;;  %v823_v22 = vld [vmem:[%s4562_s28 + $0x4a] sm:$0xff] }
  0x37   : > { %v1561_v33 = vld [vmem:[%s4562_s28 + $0x2e] sm:$0xff] }
  0x38   : > { %897 = vmatpush.bf16.msrb.mxu2 %v4288_v40  ;;  %v1197_v40 = vpack.c.bf16 %v4732_v38, %v4729_v37 }
  0x39   : > { %1021 = vmatpush.bf16.msrb.mxu3 %v4296_v41  ;;  %1145 = vmatpush.bf16.msrb.mxu0 %v4304_v46  ;;  %v4328_v41 = vld [vmem:[%s5989_s1 + $0x1e0] sm:$0xff] }
  0x3a   : > { %1269 = vmatpush.bf16.msrb.mxu1 %v4312_v47  ;;  %v941_v46 = vld [vmem:[%s4562_s28 + $0x22] sm:$0xff]  ;;  %v1066_v47 = vld [vmem:[%s4562_s28 + $0x2b] sm:$0xff] }
  0x3b   : > { %721 = vmatmul.bf16.gmra.mxu2 %v631_v51  ;;  %711 = vmatmul.bf16.gmra.mxu0 %v629_v60  ;;  %v4753_v51 = vld [vmem:[%s4562_s28 + $0x2c] sm:$0xff]  ;;  %v1074_v53 = vpack.c.bf16 %v1067_v50, %v1066_v47 }
  0x3c   : > { %898 = vmatpush.bf16.msrb.mxu2 %v4287_v48  ;;  %803 = vmatmul.bf16.gmra.mxu3 %v600_v52  ;;  %v825_v48 = vpack.c.bf16 %v817_v45, %v939_v32  ;;  %v4756_v52 = vld [vmem:[%s4562_s28 + $0x34] sm:$0xff]  ;;  %v4325_v60 = vld [vmem:[%s5989_s1 + $0x1c8] sm:$0xff] }
  0x3d   : > { %1022 = vmatpush.bf16.msrb.mxu3 %v4295_v49  ;;  %1146 = vmatpush.bf16.msrb.mxu0 %v4303_v56  ;;  %v949_v49 = vpack.c.bf16 %v941_v46, %v817_v45  ;;  %v1198_v54 = vpack.c.bf16 %v4756_v52, %v4753_v51  ;;  %v4335_v56 = vld [vmem:[%s5989_s1 + $0x218] sm:$0xff]  ;;  %v1560_v32 = vld [vmem:[%s4562_s28 + $0x26] sm:$0xff] }
  0x3e   : > { %1270 = vmatpush.bf16.msrb.mxu1 %v4311_v57  ;;  %v4326_v57 = vld [vmem:[%s5989_s1 + $0x1d0] sm:$0xff] }
  0x3f   : > { %793 = vmatmul.bf16.gmra.mxu1 %v598_v61  ;;  %v819_v61 = vld [vmem:[%s4562_s28 + $0x2a] sm:$0xff] }
  0x40   : > { %899 = vmatpush.bf16.msrb.mxu2 %v4286_v58  ;;  %v4317_v58 = vld [vmem:[%s5989_s1 + $0x188] sm:$0xff] }
  0x41   : > { %1023 = vmatpush.bf16.msrb.mxu3 %v4294_v59  ;;  %1147 = vmatpush.bf16.msrb.mxu0 %v4302_v62  ;;  %v4334_v59 = vld [vmem:[%s5989_s1 + $0x210] sm:$0xff] }
  0x42   : > { %1271 = vmatpush.bf16.msrb.mxu1 %v4310_v63  ;;  %v943_v62 = vld [vmem:[%s4562_s28 + $0x32] sm:$0xff]  ;;  %v1068_v63 = vld [vmem:[%s4562_s28 + $0x3b] sm:$0xff] }
  0x44   : > { %900 = vmatpush.bf16.msrb.mxu2 %v4285_v0  ;;  %v826_v0 = vpack.c.bf16 %v819_v61, %v941_v46  ;;  %v1321_v46 = vpack.c.bf16 %v4753_v51, %v4732_v38 }
  0x45   : > { %1024 = vmatpush.bf16.msrb.mxu3 %v4293_v1  ;;  %1148 = vmatpush.bf16.msrb.mxu0 %v4301_v2  ;;  %v950_v1 = vpack.c.bf16 %v943_v62, %v819_v61  ;;  %v1069_v2 = vld [vmem:[%s4562_s28 + $0x43] sm:$0xff] }
  0x46   : > { %1272 = vmatpush.bf16.msrb.mxu1 %v4309_v3  ;;  %v4783_v3 = vld [vmem:[%s4562_s28 + $0x3c] sm:$0xff] }
  0x47   : > { %v1322_v61 = vpack.c.bf16 %v4783_v3, %v4756_v52  ;;  %v1440_v52 = vld [vmem:[%s4562_s28 + $0x45] sm:$0xff] }
  0x48   : > { %901 = vmatpush.bf16.msrb.mxu2 %v4284_v4  ;;  %v4786_v4 = vld [vmem:[%s4562_s28 + $0x44] sm:$0xff] }
  0x49   : > { %1025 = vmatpush.bf16.msrb.mxu3 %v4292_v5  ;;  %1149 = vmatpush.bf16.msrb.mxu0 %v4300_v12  ;;  %v1075_v5 = vpack.c.bf16 %v1069_v2, %v1068_v63  ;;  %v821_v12 = vld [vmem:[%s4562_s28 + $0x3a] sm:$0xff]  ;;  %v1564_v63 = vld [vmem:[%s4562_s28 + $0x46] sm:$0xff] }
  0x4a   : > { %1273 = vmatpush.bf16.msrb.mxu1 %v4308_v13  ;;  %v945_v13 = vld [vmem:[%s4562_s28 + $0x42] sm:$0xff]  ;;  %v827_v15 = vpack.c.bf16 %v821_v12, %v943_v62 }
  0x4b   : > { %726 = vmatmul.bf16.gmra.mxu2 %v632_v18  ;;  %v4809_v18 = vld [vmem:[%s4562_s28 + $0x4c] sm:$0xff] }
  0x4c   : > { %1390 = vmatpush.bf16.msra.mxu2 %v4323_v6  ;;  %808 = vmatmul.bf16.gmra.mxu3 %v601_v19  ;;  %v1199_v6 = vpack.c.bf16 %v4786_v4, %v4783_v3  ;;  %v4812_v19 = vld [vmem:[%s4562_s28 + $0x54] sm:$0xff] }
  0x4d   : > { %1514 = vmatpush.bf16.msra.mxu3 %v4331_v7  ;;  %1638 = vmatpush.bf16.msra.mxu0 %v4339_v14  ;;  %v4316_v7 = vld [vmem:[%s5989_s1 + $0x180] sm:$0xff]  ;;  %v1070_v14 = vld [vmem:[%s4562_s28 + $0x4b] sm:$0xff]  ;;  %v1200_v21 = vpack.c.bf16 %v4812_v19, %v4809_v18 }
  0x4e   : > { %1150 = vmatmul.bf16.vlgmr.msrb.gmra.mxu0 %v1072_v23  ;;  %v947_v23 = vld [vmem:[%s4562_s28 + $0x52] sm:$0xff] }
  0x4f   : > { %1274 = vmatmul.bf16.vlgmr.msrb.gmra.mxu1 %v1196_v24  ;;  %v828_v24 = vpack.c.bf16 %v823_v22, %v945_v13  ;;  %v1441_v3 = vld [vmem:[%s4562_s28 + $0x4d] sm:$0xff] }
  0x50   : > { %1391 = vmatpush.bf16.msra.mxu2 %v4322_v16  ;;  %v951_v16 = vpack.c.bf16 %v945_v13, %v821_v12  ;;  %v1323_v13 = vpack.c.bf16 %v4809_v18, %v4786_v4  ;;  %v1319_v18 = vld [vmem:[%s4562_s28 + $0x5c] sm:$0xff] }
  0x51   : > { %1515 = vmatpush.bf16.msra.mxu3 %v4330_v17  ;;  %1639 = vmatpush.bf16.msra.mxu0 %v4338_v26  ;;  %v1071_v17 = vld [vmem:[%s4562_s28 + $0x53] sm:$0xff] }
  0x52   : > { %v1076_v20 = vpack.c.bf16 %v1071_v17, %v1070_v14  ;;  %v1558_v26 = vld [vmem:[%s4562_s28 + $0x16] sm:$0xff]  ;;  %v1447_v14 = vpack.c.bf16 %v1441_v3, %v1440_v52 }
  0x54   : > { %1392 = vmatpush.bf16.msra.mxu2 %v4321_v25  ;;  %v952_v25 = vpack.c.bf16 %v947_v23, %v823_v22 }
  0x55   : > { %1516 = vmatpush.bf16.msra.mxu3 %v4329_v27  ;;  %1640 = vmatpush.bf16.msra.mxu0 %v4337_v28  ;;  %v1559_v27 = vld [vmem:[%s4562_s28 + $0x1e] sm:$0xff] }
  0x56   : > { %v1568_v28 = vpack.c.bf16 %v1559_v27, %v1558_v26 }
  0x58   : > { %1393 = vmatpush.bf16.msra.mxu2 %v4320_v29  ;;  %v1434_v29 = vld [vmem:[%s4562_s28 + $0x15] sm:$0xff] }
  0x59   : > { %1517 = vmatpush.bf16.msra.mxu3 %v4328_v41  ;;  %1641 = vmatpush.bf16.msra.mxu0 %v4336_v43  ;;  %v1444_v31 = vpack.c.bf16 %v1435_v30, %v1434_v29  ;;  %v1436_v41 = vld [vmem:[%s4562_s28 + $0x25] sm:$0xff]  ;;  %v1443_v29 = vld [vmem:[%s4562_s28 + $0x5d] sm:$0xff] }
  0x5b   : > { %902 = vmatmul.bf16.vlgmr.msrb.gmra.mxu2 %v824_v34  ;;  %v1569_v34 = vpack.c.bf16 %v1561_v33, %v1560_v32  ;;  %v1324_v33 = vpack.c.bf16 %v1319_v18, %v4812_v19 }
  0x5c   : > { %1026 = vmatmul.bf16.vlgmr.msrb.gmra.mxu3 %v948_v35  ;;  %1394 = vmatpush.bf16.msra.mxu2 %v4319_v42  ;;  %v1437_v42 = vld [vmem:[%s4562_s28 + $0x2d] sm:$0xff] }
  0x5d   : > { %1518 = vmatpush.bf16.msra.mxu3 %v4327_v44  ;;  %1642 = vmatpush.bf16.msra.mxu0 %v4335_v56  ;;  %v1445_v47 = vpack.c.bf16 %v1437_v42, %v1436_v41 }
  0x5e   : > { %1155 = vmatmul.bf16.gmra.mxu0 %v1073_v39 }
  0x5f   : > { %1279 = vmatmul.bf16.gmra.mxu1 %v1197_v40 }
  0x60   : > { %1395 = vmatpush.bf16.msra.mxu2 %v4318_v55 }
  0x61   : > { %1519 = vmatpush.bf16.msra.mxu3 %v4326_v57  ;;  %1643 = vmatpush.bf16.msra.mxu0 %v4334_v59  ;;  %v1438_v59 = vld [vmem:[%s4562_s28 + $0x35] sm:$0xff] }
  0x64   : > { %1396 = vmatpush.bf16.msra.mxu2 %v4317_v58 }
  0x65   : > { %1520 = vmatpush.bf16.msra.mxu3 %v4325_v60  ;;  %1644 = vmatpush.bf16.msra.mxu0 %v4333_v8  ;;  %v1439_v60 = vld [vmem:[%s4562_s28 + $0x3d] sm:$0xff] }
  0x66   : > { %v1446_v62 = vpack.c.bf16 %v1439_v60, %v1438_v59 }
  0x68   : > { %1397 = vmatpush.bf16.msra.mxu2 %v4316_v7 }
  0x69   : > { %1521 = vmatpush.bf16.msra.mxu3 %v4324_v9  ;;  %1645 = vmatpush.bf16.msra.mxu0 %v4332_v11 }
  0x6b   : > { %907 = vmatmul.bf16.gmra.mxu2 %v825_v48  ;;  %v1562_v48 = vld [vmem:[%s4562_s28 + $0x36] sm:$0xff] }
  0x6c   : > { %1031 = vmatmul.bf16.gmra.mxu3 %v949_v49  ;;  %v1563_v49 = vld [vmem:[%s4562_s28 + $0x3e] sm:$0xff] }
  0x6d   : > { %v1570_v50 = vpack.c.bf16 %v1563_v49, %v1562_v48 }
  0x6e   : > { %1160 = vmatmul.bf16.gmra.mxu0 %v1074_v53 }
  0x6f   : > { %1284 = vmatmul.bf16.gmra.mxu1 %v1198_v54 }
  0x7b   : > { %912 = vmatmul.bf16.gmra.mxu2 %v826_v0  ;;  %v1565_v0 = vld [vmem:[%s4562_s28 + $0x4e] sm:$0xff] }
  0x7c   : > { %1036 = vmatmul.bf16.gmra.mxu3 %v950_v1  ;;  %v1571_v2 = vpack.c.bf16 %v1565_v0, %v1564_v63 }
  0x7e   : > { %1165 = vmatmul.bf16.gmra.mxu0 %v1075_v5 }
  0x7f   : > { %1289 = vmatmul.bf16.gmra.mxu1 %v1199_v6 }
  0x8b   : > { %917 = vmatmul.bf16.gmra.mxu2 %v827_v15  ;;  %v1566_v15 = vld [vmem:[%s4562_s28 + $0x56] sm:$0xff] }
  0x8c   : > { %1041 = vmatmul.bf16.gmra.mxu3 %v951_v16  ;;  %v1567_v16 = vld [vmem:[%s4562_s28 + $0x5e] sm:$0xff] }
  0x8d   : > { %v1572_v17 = vpack.c.bf16 %v1567_v16, %v1566_v15 }
  0x8e   : > { %1170 = vmatmul.bf16.gmra.mxu0 %v1076_v20 }
  0x8f   : > { %1294 = vmatmul.bf16.gmra.mxu1 %v1200_v21 }
  0x9b   : > { %922 = vmatmul.bf16.gmra.mxu2 %v828_v24 }
  0x9c   : > { %1046 = vmatmul.bf16.gmra.mxu3 %v952_v25 }
  0x9e   : > { %1646 = vmatmul.bf16.vlgmr.msra.gmra.mxu0 %v1568_v28  ;;  %v1442_v28 = vld [vmem:[%s4562_s28 + $0x55] sm:$0xff] }
  0xa8   : > { %v707_v35 = vpop.f32.mrf.mxu0 }
  0xab   : > { %1398 = vmatmul.bf16.vlgmr.msra.gmra.mxu2 %v1320_v10 }
  0xac   : > { %1522 = vmatmul.bf16.vlgmr.msra.gmra.mxu3 %v1444_v31  ;;  %v789_v56 = vpop.f32.mrf.mxu1 }
  0xad   : > { %v790_v21 = vadd.f32 %v789_v56, %v707_v35 }
  0xae   : > { %v717_v36 = vpop.f32.mrf.mxu2  ;;  %1651 = vmatmul.bf16.gmra.mxu0 %v1569_v34  ;;  %v1448_v34 = vpack.c.bf16 %v1443_v29, %v1442_v28  ;;  %v4351_v29 = vld [vmem:[%s5991_s3 + $0x38] sm:$0xff] }
  0xaf   : > { %v799_v37 = vpop.f32.mrf.mxu3  ;;  %2150 = vmatpush.bf16.msrb.mxu2 %v4351_v29 }
  0xb0   : > { %v4824_v39 = vadd.f32 %v799_v37, %v717_v36  ;;  %v4826_v40 = vpop.f32.mrf.mxu0 }
  0xb4   : > { %v4850_v1 = vpop.f32.mrf.mxu1 }
  0xb6   : > { %v719_v43 = vpop.f32.mrf.mxu2 }
  0xb7   : > { %v801_v44 = vpop.f32.mrf.mxu3 }
  0xb8   : > { %v4830_v45 = vadd.f32 %v801_v44, %v719_v43  ;;  %v712_v53 = vpop.f32.mrf.mxu0 }
  0xbb   : > { %1403 = vmatmul.bf16.gmra.mxu2 %v1321_v46  ;;  %v4359_v46 = vld [vmem:[%s5991_s3 + $0x78] sm:$0xff] }
  0xbc   : > { %1527 = vmatmul.bf16.gmra.mxu3 %v1445_v47  ;;  %v794_v9 = vpop.f32.mrf.mxu1  ;;  %2063 = vmatpush.bf16.msra.mxu1 %v4359_v46  ;;  %v792_v46 = vadd.f32 %v4850_v1, %v4826_v40 }
  0xbd   : > { %v795_v36 = vadd.f32 %v794_v9, %v712_v53 }
  0xbe   : > { %v722_v54 = vpop.f32.mrf.mxu2  ;;  %1656 = vmatmul.bf16.gmra.mxu0 %v1570_v50 }
  0xbf   : > { %v804_v55 = vpop.f32.mrf.mxu3 }
  0xc0   : > { %v4836_v57 = vadd.f32 %v804_v55, %v722_v54  ;;  %v4838_v58 = vpop.f32.mrf.mxu0  ;;  %v226_v54 = vlaneseq  ;;  %v4358_v55 = vld [vmem:[%s5991_s3 + $0x70] sm:$0xff] }
  0xc1   : > { %2064 = vmatpush.bf16.msra.mxu1 %v4358_v55 }
  0xc2   : > { %v4902_v56 = vshrl.u32 %v226_v54, 7 }
  0xc4   : > { %v4866_v22 = vpop.f32.mrf.mxu1  ;;  %v241_v0 = vshrl.u32 %v4902_v56, 16 }
  0xc6   : > { %v4842_v38 = vpop.f32.mrf.mxu2  ;;  %v245_v52 = vmul.u32 52429, %v241_v0 }
  0xc7   : > { %v4844_v51 = vpop.f32.mrf.mxu3 }
  0xcb   : > { %1408 = vmatmul.bf16.gmra.mxu2 %v1322_v61  ;;  %v1151_v5 = vpop.f32.mrf.mxu0 }
  0xcc   : > { %1532 = vmatmul.bf16.gmra.mxu3 %v1446_v62  ;;  %v4875_v30 = vpop.f32.mrf.mxu1  ;;  %v240_v62 = vand.u32 65535, %v4902_v56 }
  0xce   : > { %v727_v6 = vpop.f32.mrf.mxu2  ;;  %1661 = vmatmul.bf16.gmra.mxu0 %v1571_v2  ;;  %v244_v2 = vmul.u32 52428, %v240_v62  ;;  %v243_v9 = vmul.u32 52429, %v240_v62 }
  0xcf   : > { %v809_v7 = vpop.f32.mrf.mxu3 }
  0xd0   : > { %v4852_v8 = vadd.f32 %v809_v7, %v727_v6  ;;  %v247_v3 = vshll.u32 %v244_v2, 16 }
  0xd2   : > { %vm251_vm0 = vc.u32 %v243_v9, %v247_v3  ;;  %v253_v16 = vadd.s32 %v247_v3, %v243_v9 }
  0xd3   : > { %v4854_v10 = vpop.f32.mrf.mxu0 }
  0xd4   : > { %v4882_v42 = vpop.f32.mrf.mxu1 }
  0xd6   : > { %v4858_v11 = vpop.f32.mrf.mxu2 }
  0xd7   : > { %v4860_v12 = vpop.f32.mrf.mxu3 }
  0xdb   : > { %1413 = vmatmul.bf16.gmra.mxu2 %v1323_v13  ;;  %v1156_v20 = vpop.f32.mrf.mxu0  ;;  %v246_v13 = vmul.u32 52428, %v241_v0 }
  0xdc   : > { %1537 = vmatmul.bf16.gmra.mxu3 %v1447_v14  ;;  %v4895_v50 = vpop.f32.mrf.mxu1  ;;  %v249_v14 = vshll.u32 %v245_v52, 16 }
  0xde   : > { %v903_v23 = vpop.f32.mrf.mxu2  ;;  %1666 = vmatmul.bf16.gmra.mxu0 %v1572_v17  ;;  %v4918_v17 = vadd.s32 8, %v4902_v56  ;;  %vm255_vm1 = vc.u32 %v253_v16, %v249_v14  ;;  %v4349_v16 = vld [vmem:[%s5991_s3 + $0x28] sm:$0xff] }
  0xdf   : > { %v1027_v24 = vpop.f32.mrf.mxu3  ;;  %v928_v25 = vadd.f32 %v903_v23, %v790_v21 }
  0xe0   : > { %v270_v28 = vshrl.u32 %v4918_v17, 16 }
  0xe1   : > { %v1052_v26 = vadd.f32 %v1027_v24, %v928_v25  ;;  %v269_v24 = vand.u32 65535, %v4918_v17  ;;  %v4357_v25 = vld [vmem:[%s5991_s3 + $0x68] sm:$0xff] }
  0xe2   : > { %2065 = vmatpush.bf16.msra.mxu1 %v4357_v25  ;;  %v275_v55 = vmul.u32 52428, %v270_v28 }
  0xe3   : > { %v4868_v27 = vadd.f32 %v1151_v5, %v1052_v26  ;;  %v4870_v4 = vpop.f32.mrf.mxu0  ;;  %v248_v26 = vshrl.u32 %v244_v2, 16 }
  0xe4   : > { %v4907_v5 = vpop.f32.mrf.mxu1 }
  0xe6   : > { %v4877_v31 = vpop.f32.mrf.mxu2 }
  0xe7   : > { %v4879_v32 = vpop.f32.mrf.mxu3  ;;  %v929_v40 = vadd.f32 %v4877_v31, %v792_v46 }
  0xeb   : > { %1418 = vmatmul.bf16.gmra.mxu2 %v1324_v33  ;;  %v1161_v35 = vpop.f32.mrf.mxu0 }
  0xec   : > { %1542 = vmatmul.bf16.gmra.mxu3 %v1448_v34  ;;  %v273_v34 = vmul.u32 52428, %v269_v24  ;;  %v4940_v54 = vpop.f32.mrf.mxu1 }
  0xee   : > { %v908_v37 = vpop.f32.mrf.mxu2  ;;  %v277_v14 = vshrl.u32 %v273_v34, 16 }
  0xef   : > { %v1032_v41 = vpop.f32.mrf.mxu3  ;;  %v930_v43 = vadd.f32 %v908_v37, %v795_v36  ;;  %v272_v36 = vmul.u32 52429, %v269_v24  ;;  %v274_v37 = vmul.u32 52429, %v270_v28 }
  0xf1   : > { %v1054_v44 = vadd.f32 %v1032_v41, %v930_v43  ;;  %v250_v41 = vshrl.u32 %v245_v52, 16  ;;  %v279_v25 = vshrl.u32 %v274_v37, 16 }
  0xf3   : > { %v4887_v47 = vadd.f32 %v1156_v20, %v1054_v44  ;;  %v4889_v48 = vpop.f32.mrf.mxu0  ;;  %v4468_v20 = vmov 0   ;;  %v276_v44 = vshll.u32 %v273_v34, 16  ;;  %v1053_v34 = vadd.f32 %v4879_v32, %v929_v40 }
  0xf4   : > { %v252_v21 = vsel %vm251_vm0, 1, %v4468_v20  ;;  %1747 = vst [vmem:[#allocation2 + $0x4] sm:$0xf] %v4468_v20  ;;  %v256_v18 = vsel %vm255_vm1, 1, %v4468_v20 }
  0xf5   : > { %v254_v23 = vadd.s32 %v252_v21, %v246_v13  ;;  %1746 = vst [vmem:[#allocation2] sm:$0xf] %v4468_v20  ;;  %vm280_vm2 = vc.u32 %v272_v36, %v276_v44  ;;  %v282_v0 = vadd.s32 %v276_v44, %v272_v36  ;;  %v1177_v40 = vadd.f32 %v4854_v10, %v1053_v34 }
  0xf6   : > { %v4891_v19 = vpop.f32.mrf.mxu2  ;;  %1748 = vst [vmem:[#allocation2 + $0x8] sm:$0xf] %v4468_v20  ;;  %v281_v2 = vsel %vm280_vm2, 1, %v4468_v20 }
  0xf7   : > { %v4893_v49 = vpop.f32.mrf.mxu3  ;;  %v258_v33 = vadd.s32 %v256_v18, %v254_v23  ;;  %1749 = vst [vmem:[#allocation2 + $0xc] sm:$0xf] %v4468_v20  ;;  %v283_v3 = vadd.s32 %v281_v2, %v275_v55  ;;  %v797_v18 = vadd.f32 %v4866_v22, %v4838_v58  ;;  %v4348_v22 = vld [vmem:[%s5991_s3 + $0x20] sm:$0xff]  ;;  %v4985_v55 = vpop.f32.mrf.mxu1  ;;  %v4347_v2 = vld [vmem:[%s5991_s3 + $0x18] sm:$0xff] }
  0xf8   : > { %1750 = vst [vmem:[#allocation2 + $0x10] sm:$0xf] %v4468_v20 }
  0xf9   : > { %v259_v43 = vadd.s32 %v258_v33, %v248_v26  ;;  %1751 = vst [vmem:[#allocation2 + $0x14] sm:$0xf] %v4468_v20  ;;  %v931_v44 = vadd.f32 %v4891_v19, %v797_v18  ;;  %v807_v19 = vadd.f32 %v4844_v51, %v4842_v38  ;;  %v4346_v18 = vld [vmem:[%s5991_s3 + $0x10] sm:$0xff] }
  0xfa   : > { %1752 = vst [vmem:[#allocation2 + $0x18] sm:$0xf] %v4468_v20 }
  0xfb   : > { %v4897_v53 = vpop.f32.mrf.mxu0  ;;  %1753 = vst [vmem:[#allocation2 + $0x1c] sm:$0xf] %v4468_v20  ;;  %v260_v52 = vadd.s32 %v259_v43, %v250_v41 }
  0xfc   : > { %1754 = vst [vmem:[#allocation2 + $0x20] sm:$0xf] %v4468_v20 }
  0xfd   : > { %1755 = vst [vmem:[#allocation2 + $0x24] sm:$0xf] %v4468_v20  ;;  %v261_v41 = vshrl.u32 %v260_v52, 3 }
  0xfe   : > { %v913_v59 = vpop.f32.mrf.mxu2  ;;  %1756 = vst [vmem:[#allocation2 + $0x28] sm:$0xf] %v4468_v20 }
  0xff   : > { %v1037_v60 = vpop.f32.mrf.mxu3  ;;  %v932_v61 = vadd.f32 %v913_v59, %v4824_v39  ;;  %v278_v59 = vshll.u32 %v274_v37, 16  ;;  %1757 = vst [vmem:[#allocation2 + $0x2c] sm:$0xf] %v4468_v20 }
 0x100   : > { %1758 = vst [vmem:[#allocation2 + $0x30] sm:$0xf] %v4468_v20 }
 0x101   : > { %v1056_v63 = vadd.f32 %v1037_v60, %v932_v61  ;;  %v4944_v60 = vadd.s32 16, %v4902_v56  ;;  %vm284_vm3 = vc.u32 %v282_v0, %v278_v59 }
 0x102   : > { %v285_v31 = vsel %vm284_vm3, 1, %v4468_v20 }
 0x103   : > { %v4909_v6 = vadd.f32 %v1161_v35, %v1056_v63  ;;  %v4911_v7 = vpop.f32.mrf.mxu0  ;;  %v4350_v63 = vld [vmem:[%s5991_s3 + $0x30] sm:$0xff]  ;;  %v298_v9 = vand.u32 65535, %v4944_v60  ;;  %v287_v21 = vadd.s32 %v285_v31, %v283_v3 }
 0x104   : > { %2151 = vmatpush.bf16.msrb.mxu2 %v4350_v63 }
 0x105   : > { %v302_v23 = vmul.u32 52428, %v298_v9  ;;  %v301_v26 = vmul.u32 52429, %v298_v9  ;;  %v288_v28 = vadd.s32 %v287_v21, %v277_v14 }
 0x106   : > { %v4913_v39 = vpop.f32.mrf.mxu2 }
 0x107   : > { %v4915_v15 = vpop.f32.mrf.mxu3  ;;  %v305_v33 = vshll.u32 %v302_v23, 16  ;;  %v289_v58 = vadd.s32 %v288_v28, %v279_v25  ;;  %v933_v32 = vadd.f32 %v4913_v39, %v4830_v45  ;;  %v262_v45 = vmul.u32 10, %v261_v41 }
 0x108   : > { %2152 = vmatpush.bf16.msrb.mxu2 %v4349_v16  ;;  %v306_v9 = vshrl.u32 %v302_v23, 16  ;;  %v5013_v16 = vadd.f32 %v4882_v42, %v1177_v40  ;;  %v5029_v42 = vadd.s32 32, %v4902_v56 }
 0x109   : > { %vm309_vm4 = vc.u32 %v301_v26, %v305_v33  ;;  %v290_v39 = vshrl.u32 %v289_v58, 3 }
 0x10a   : > { %v310_v63 = vsel %vm309_vm4, 1, %v4468_v20 }
 0x10b   : > { %v4934_v35 = vpop.f32.mrf.mxu0  ;;  %v291_v25 = vmul.u32 10, %v290_v39 }
 0x10c   : > { %2153 = vmatpush.bf16.msrb.mxu2 %v4348_v22 }
 0x10e   : > { %v918_v61 = vpop.f32.mrf.mxu2 }
 0x10f   : > { %v1042_v62 = vpop.f32.mrf.mxu3  ;;  %v934_v1 = vadd.f32 %v918_v61, %v4836_v57  ;;  %v299_v57 = vshrl.u32 %v4944_v60, 16  ;;  %v311_v61 = vadd.s32 %v305_v33, %v301_v26 }
 0x110   : > { %2154 = vmatpush.bf16.msrb.mxu2 %v4347_v2 }
 0x111   : > { %v1058_v13 = vadd.f32 %v1042_v62, %v934_v1  ;;  %v303_v29 = vmul.u32 52429, %v299_v57  ;;  %v304_v43 = vmul.u32 52428, %v299_v57  ;;  %v4991_v62 = vadd.f32 %v4860_v12, %v4858_v11 }
 0x112   : > { %v1055_v11 = vadd.f32 %v4893_v49, %v931_v44  ;;  %v1057_v12 = vadd.f32 %v4915_v15, %v933_v32  ;;  %v5010_v57 = vadd.f32 %v4875_v30, %v4868_v27  ;;  %v5017_v49 = vadd.f32 %v4895_v50, %v4887_v47  ;;  %v4367_v27 = vld [vmem:[%s5991_s3 + $0xb8] sm:$0xff] }
 0x113   : > { %v4964_v24 = vadd.f32 %v4897_v53, %v1058_v13  ;;  %v4970_v36 = vpop.f32.mrf.mxu0  ;;  %v4973_v53 = vadd.s32 24, %v4902_v56  ;;  %v307_v59 = vshll.u32 %v303_v29, 16  ;;  %v312_v1 = vadd.s32 %v310_v63, %v304_v43  ;;  %2270 = vmatpush.bf16.msrb.mxu3 %v4367_v27  ;;  %v1290_v43 = vpop.f32.mrf.mxu1  ;;  %v4356_v63 = vld [vmem:[%s5991_s3 + $0x60] sm:$0xff] }
 0x114   : > { %v308_v3 = vshrl.u32 %v303_v29, 16  ;;  %v5020_v15 = vsub.s32 %v4902_v56, %v262_v45  ;;  %v1179_v33 = vadd.f32 %v4870_v4, %v1055_v11  ;;  %v1181_v34 = vadd.f32 %v4889_v48, %v1057_v12  ;;  %2155 = vmatpush.bf16.msrb.mxu2 %v4346_v18  ;;  %v4345_v4 = vld [vmem:[%s5991_s3 + $0x8] sm:$0xff]  ;;  %v4366_v48 = vld [vmem:[%s5991_s3 + $0xb0] sm:$0xff]  ;;  %2066 = vmatpush.bf16.msra.mxu1 %v4356_v63 }
 0x115   : > { %v327_v0 = vand.u32 65535, %v4973_v53  ;;  %vm313_vm5 = vc.u32 %v311_v61, %v307_v59  ;;  %v328_v38 = vshrl.u32 %v4973_v53, 16  ;;  %v356_v32 = vand.u32 65535, %v5029_v42  ;;  %v4378_v18 = vld [vmem:[%s5991_s3 + $0xf0] sm:$0xff] }
 0x116   : > { %v4976_v37 = vpop.f32.mrf.mxu2  ;;  %v314_v52 = vsel %vm313_vm5, 1, %v4468_v20  ;;  %vm527_vm7 = vcmp.ne.s32.totalorder %v5020_v15, 0  ;;  %vm537_vm8 = vcmp.lt.s32.totalorder %v5020_v15, 0  ;;  %v5041_v58 = vadd.s32 10, %v5020_v15 }
 0x117   : > { %v4978_v46 = vpop.f32.mrf.mxu3  ;;  %v5000_v51 = vmul.u32 52428, %v327_v0  ;;  %v330_v10 = vmul.u32 52429, %v327_v0  ;;  %v316_v13 = vadd.s32 %v314_v52, %v312_v1  ;;  %v5005_v14 = vmul.u32 52429, %v328_v38  ;;  %2271 = vmatpush.bf16.msrb.mxu3 %v4366_v48  ;;  %vm5068_vm10 = vmand %vm537_vm8, %vm527_vm7 }
 0x118   : > { %v333_v30 = vmul.u32 52428, %v328_v38  ;;  %v935_v59 = vadd.f32 %v4976_v37, %v807_v19  ;;  %v5058_v0 = vsub.s32 %v4918_v17, %v291_v25  ;;  %2156 = vmatpush.bf16.msrb.mxu2 %v4345_v4  ;;  %v357_v37 = vshrl.u32 %v5029_v42, 16 }
 0x119   : > { %v334_v31 = vshll.u32 %v5000_v51, 16  ;;  %v317_v26 = vadd.s32 %v316_v13, %v306_v9  ;;  %v336_v28 = vshll.u32 %v5005_v14, 16  ;;  %v335_v40 = vshrl.u32 %v5000_v51, 16 }
 0x11a   : > { %v337_v39 = vshrl.u32 %v5005_v14, 16  ;;  %v359_v19 = vmul.u32 52429, %v356_v32  ;;  %v5072_v2 = vmul.u32 52428, %v356_v32  ;;  %v5075_v9 = vadd.s32 40, %v4902_v56 }
 0x11b   : > { %v5032_v50 = vpop.f32.mrf.mxu0  ;;  %vm338_vm6 = vc.u32 %v330_v10, %v334_v31  ;;  %v340_v29 = vadd.s32 %v334_v31, %v330_v10  ;;  %v318_v41 = vadd.s32 %v317_v26, %v308_v3  ;;  %v5078_v38 = vadd.f32 %v4907_v5, %v1179_v33  ;;  %v4344_v10 = vld [vmem:[%s5991_s3] sm:$0xff]  ;;  %v4365_v5 = vld [vmem:[%s5991_s3 + $0xa8] sm:$0xff] }
 0x11c   : > { %v5082_v51 = vadd.f32 %v4940_v54, %v4909_v6  ;;  %v5085_v11 = vadd.f32 %v4985_v55, %v1181_v34  ;;  %v4379_v6 = vld [vmem:[%s5991_s3 + $0xf8] sm:$0xff]  ;;  %v5100_v54 = vmul.u32 52429, %v357_v37  ;;  %v5103_v55 = vadd.f32 %v1290_v43, %v4964_v24  ;;  %2157 = vmatpush.bf16.msrb.mxu2 %v4344_v10  ;;  %2272 = vmatpush.bf16.msrb.mxu3 %v4365_v5 }
 0x11d   : > { %vm342_vm9 = vc.u32 %v340_v29, %v336_v28  ;;  %v319_v45 = vshrl.u32 %v318_v41, 3  ;;  %v1059_v3 = vadd.f32 %v4978_v46, %v935_v59  ;;  %v363_v14 = vshll.u32 %v5072_v2, 16  ;;  %2434 = vmatpush.bf16.msrb.mxu0 %v4379_v6  ;;  %v1292_v29 = vpop.f32.mrf.mxu1  ;;  %v4355_v34 = vld [vmem:[%s5991_s3 + $0x58] sm:$0xff] }
 0x11e   : > { %v923_v21 = vpop.f32.mrf.mxu2  ;;  %v343_v1 = vsel %vm342_vm9, 1, %v4468_v20  ;;  %v567_v31 = vsel %vm5068_vm10, %v5041_v58, %v5020_v15  ;;  %v385_v25 = vand.u32 65535, %v5075_v9  ;;  %vm528_vm11 = vcmp.ne.s32.totalorder %v5058_v0, 0  ;;  %v4364_v15 = vld [vmem:[%s5991_s3 + $0xa0] sm:$0xff]  ;;  %2067 = vmatpush.bf16.msra.mxu1 %v4355_v34 }
 0x11f   : > { %v1047_v23 = vpop.f32.mrf.mxu3  ;;  %v936_v47 = vadd.f32 %v923_v21, %v4852_v8  ;;  %v339_v8 = vsel %vm338_vm6, 1, %v4468_v20  ;;  %v362_v21 = vmul.u32 52428, %v357_v37  ;;  %v320_v24 = vmul.u32 10, %v319_v45 }
 0x120   : > { %v341_v22 = vadd.s32 %v339_v8, %v333_v30  ;;  %vm367_vm12 = vc.u32 %v359_v19, %v363_v14  ;;  %vm538_vm13 = vcmp.lt.s32.totalorder %v5058_v0, 0  ;;  %v369_v30 = vadd.s32 %v363_v14, %v359_v19  ;;  %2273 = vmatpush.bf16.msrb.mxu3 %v4364_v15 }
 0x121   : > { %v1060_v44 = vadd.f32 %v1047_v23, %v936_v47  ;;  %v365_v23 = vshll.u32 %v5100_v54, 16  ;;  %v368_v27 = vsel %vm367_vm12, 1, %v4468_v20  ;;  %v386_v47 = vshrl.u32 %v5075_v9, 16  ;;  %vm5139_vm15 = vmand %vm538_vm13, %vm528_vm11  ;;  %2435 = vmatpush.bf16.msrb.mxu0 %v4378_v18 }
 0x122   : > { %v345_v17 = vadd.s32 %v343_v1, %v341_v22  ;;  %v1183_v28 = vadd.f32 %v4911_v7, %v1059_v3  ;;  %v5127_v33 = vadd.s32 10, %v5058_v0  ;;  %v364_v43 = vshrl.u32 %v5072_v2, 16  ;;  %v4377_v1 = vld [vmem:[%s5991_s3 + $0xe8] sm:$0xff] }
 0x123   : > { %v5052_v61 = vadd.f32 %v4934_v35, %v1060_v44  ;;  %v5113_v26 = vpop.f32.mrf.mxu0  ;;  %v370_v44 = vadd.s32 %v368_v27, %v362_v21  ;;  %vm371_vm14 = vc.u32 %v369_v30, %v365_v23  ;;  %v388_v8 = vmul.u32 52429, %v385_v25  ;;  %v4362_v21 = vld [vmem:[%s5991_s3 + $0x90] sm:$0xff] }
 0x124   : > { %v346_v13 = vadd.s32 %v345_v17, %v335_v40  ;;  %v5133_v58 = vmul.u32 52428, %v385_v25  ;;  %v5144_v4 = vsub.s32 %v4944_v60, %v320_v24  ;;  %v366_v48 = vshrl.u32 %v5100_v54, 16  ;;  %v4363_v60 = vld [vmem:[%s5991_s3 + $0x98] sm:$0xff] }
 0x125   : > { %v372_v22 = vsel %vm371_vm14, 1, %v4468_v20  ;;  %v5148_v32 = vmul.u32 52429, %v386_v47  ;;  %vm5150_vm0 = vcmp.lt.s32.totalorder %v567_v31, 8  ;;  %v5162_v35 = vadd.s32 48, %v4902_v56  ;;  %2274 = vmatpush.bf16.msrb.mxu3 %v4363_v60  ;;  %2436 = vmatpush.bf16.msrb.mxu0 %v4377_v1  ;;  %v1295_v30 = vpop.f32.mrf.mxu1  ;;  %v4353_v60 = vld [vmem:[%s5991_s3 + $0x48] sm:$0xff] }
 0x126   : > { %v5087_v12 = vpop.f32.mrf.mxu2  ;;  %v347_v46 = vadd.s32 %v346_v13, %v337_v39  ;;  %v374_v39 = vadd.s32 %v372_v22, %v370_v44  ;;  %v392_v37 = vshll.u32 %v5133_v58, 16  ;;  %v5164_v17 = vadd.f32 %v1292_v29, %v1183_v28  ;;  %v4375_v44 = vld [vmem:[%s5991_s3 + $0xd8] sm:$0xff] }
 0x127   : > { %v5089_v52 = vpop.f32.mrf.mxu3  ;;  %v391_v2 = vmul.u32 52428, %v386_v47  ;;  %v394_v10 = vshll.u32 %v5148_v32, 16  ;;  %v568_v5 = vsel %vm5139_vm15, %v5127_v33, %v5058_v0  ;;  %v937_v3 = vadd.f32 %v5087_v12, %v4991_v62  ;;  %v4376_v62 = vld [vmem:[%s5991_s3 + $0xe0] sm:$0xff] }
 0x128   : > { %v348_v41 = vshrl.u32 %v347_v46, 3  ;;  %v375_v6 = vadd.s32 %v374_v39, %v364_v43  ;;  %vm396_vm1 = vc.u32 %v388_v8, %v392_v37  ;;  %v398_v54 = vadd.s32 %v392_v37, %v388_v8  ;;  %v4361_v43 = vld [vmem:[%s5991_s3 + $0x88] sm:$0xff] }
 0x129   : > { %vm529_vm2 = vcmp.ne.s32.totalorder %v5144_v4, 0  ;;  %v414_v14 = vand.u32 65535, %v5162_v35  ;;  %v397_v12 = vsel %vm396_vm1, 1, %v4468_v20  ;;  %vm539_vm4 = vcmp.lt.s32.totalorder %v5144_v4, 0  ;;  %2275 = vmatpush.bf16.msrb.mxu3 %v4362_v21  ;;  %2437 = vmatpush.bf16.msrb.mxu0 %v4376_v62 }
 0x12a   : > { %v349_v45 = vmul.u32 10, %v348_v41  ;;  %v376_v31 = vadd.s32 %v375_v6, %v366_v48  ;;  %vm400_vm3 = vc.u32 %v398_v54, %v394_v10  ;;  %v393_v24 = vshrl.u32 %v5133_v58, 16  ;;  %vm5223_vm9 = vmand %vm539_vm4, %vm529_vm2  ;;  %v4374_v6 = vld [vmem:[%s5991_s3 + $0xd0] sm:$0xff] }
 0x12b   : > { %v5192_v25 = vpop.f32.mrf.mxu0  ;;  %v399_v46 = vadd.s32 %v397_v12, %v391_v2  ;;  %vm1873_vm5 = vcmask 1043457   ;;  %vm1874_vm6 = vsmask.f32 7942  ;;  %v5200_v15 = vadd.s32 10, %v5144_v4  ;;  %v4352_v12 = vld [vmem:[%s5991_s3 + $0x40] sm:$0xff] }
 0x12c   : > { %v5182_v0 = vsub.s32 %v4973_v53, %v349_v45  ;;  %v4354_v53 = vld [vmem:[%s5991_s3 + $0x50] sm:$0xff]  ;;  %v395_v18 = vshrl.u32 %v5148_v32, 16  ;;  %v415_v27 = vshrl.u32 %v5162_v35, 16  ;;  %v377_v28 = vshrl.u32 %v376_v31, 3  ;;  %vm5290_vm1 = vmand %vm1873_vm5, %vm1874_vm6 }
 0x12d   : > { %2068 = vmatpush.bf16.msra.mxu1 %v4354_v53  ;;  %v5206_v33 = vmul.u32 52428, %v414_v14  ;;  %v417_v8 = vmul.u32 52429, %v414_v14  ;;  %v5232_v45 = vadd.f32 %v5089_v52, %v937_v3  ;;  %vm5234_vm10 = vcmp.lt.s32.totalorder %v568_v5, 8  ;;  %2276 = vmatpush.bf16.msrb.mxu3 %v4361_v43  ;;  %v4360_v5 = vld [vmem:[%s5991_s3 + $0x80] sm:$0xff] }
 0x12e   : > { %v1399_v59 = vpop.f32.mrf.mxu2  ;;  %vm530_vm7 = vcmp.ne.s32.totalorder %v5182_v0, 0  ;;  %vm540_vm8 = vcmp.lt.s32.totalorder %v5182_v0, 0  ;;  %v5216_v58 = vmul.u32 52429, %v415_v27  ;;  %v378_v37 = vmul.u32 10, %v377_v28  ;;  %2438 = vmatpush.bf16.msrb.mxu0 %v4375_v44  ;;  %v4373_v44 = vld [vmem:[%s5991_s3 + $0xc8] sm:$0xff] }
 0x12f   : > { %v1523_v40 = vpop.f32.mrf.mxu3  ;;  %v1424_v19 = vadd.f32 %v1399_v59, %v5010_v57  ;;  %v5177_v57 = vld [vmem:[%s5990_s2] ss:$0 sm:$0xff]  ;;  %v421_v59 = vshll.u32 %v5206_v33, 16  ;;  %vm5250_vm11 = vmand %vm540_vm8, %vm530_vm7  ;;  %v569_v10 = vsel %vm5223_vm9, %v5200_v15, %v5144_v4  ;;  %v420_v54 = vmul.u32 52428, %v415_v27 }
 0x130   : > { %v5265_v3 = vadd.s32 56, %v4902_v56  ;;  %vm1760_vm12 = vsmask.f32 1280  ;;  %vm1761_vm13 = vsmask.f32 5392  ;;  %v423_v4 = vshll.u32 %v5216_v58, 16 }
 0x131   : > { %v1548_v13 = vadd.f32 %v1523_v40, %v1424_v19  ;;  %v5229_v40 = vadd.f32 %v1295_v30, %v5052_v61  ;;  %2069 = vmatpush.bf16.msra.mxu1 %v4353_v60  ;;  %vm425_vm14 = vc.u32 %v417_v8, %v421_v59  ;;  %2277 = vmatpush.bf16.msrb.mxu3 %v4360_v5  ;;  %vm5283_vm15 = vcmp.lt.s32.totalorder %v569_v10, 8  ;;  %vm5327_vm7 = vmor %vm1760_vm12, %vm1761_vm13 }
 0x132   : > { %2439 = vmatpush.bf16.msrb.mxu0 %v4374_v6  ;;  %v427_v15 = vadd.s32 %v421_v59, %v417_v8  ;;  %v443_v28 = vand.u32 65535, %v5265_v3  ;;  %v444_v22 = vshrl.u32 %v5265_v3, 16 }
 0x133   : > { %v1672_v23 = vadd.f32 %v5032_v50, %v1548_v13  ;;  %v401_v50 = vsel %vm400_vm3, 1, %v4468_v20  ;;  %v5278_v53 = vpop.f32.mrf.mxu0 }
 0x134   : > { %v403_v29 = vadd.s32 %v401_v50, %v399_v46  ;;  %vm429_vm2 = vc.u32 %v427_v15, %v423_v4  ;;  %v5319_v52 = vmul.u32 52428, %v443_v28  ;;  %v5321_v10 = vmul.u32 52429, %v444_v22 }
 0x135   : > { %v1686_v47 = vadd.f32 %v5177_v57, %v1672_v23  ;;  %2070 = vmatpush.bf16.msra.mxu1 %v4352_v12 }
 0x136   : > { %v1401_v34 = vpop.f32.mrf.mxu2  ;;  %v404_v32 = vadd.s32 %v403_v29, %v393_v24  ;;  %v5281_v24 = vsub.s32 %v5029_v42, %v378_v37  ;;  %v1876_v29 = vld [vmem:[#allocation2 + $0x4] sm:$0xe]  ;;  %2440 = vmatpush.bf16.msrb.mxu0 %v4373_v44  ;;  %v450_v12 = vshll.u32 %v5319_v52, 16  ;;  %v4429_v42 = vld [vmem:[#allocation2] sm:$0xe] }
 0x137   : > { %v1525_v41 = vpop.f32.mrf.mxu3  ;;  %v1696_v7 = vmax.f32 %v1686_v47, 0.0  ;;  %v1425_v48 = vadd.f32 %v1401_v34, %v5013_v16  ;;  %v5239_v16 = vadd.s32 10, %v5182_v0 }
 0x138   : > { %v405_v19 = vadd.s32 %v404_v32, %v395_v18  ;;  %vm531_vm3 = vcmp.ne.s32.totalorder %v5281_v24, 0  ;;  %vm541_vm4 = vcmp.lt.s32.totalorder %v5281_v24, 0 }
 0x139   : > { %v1726_v1 = vsel %vm5150_vm0, %v1696_v7, 0.0  ;;  %v1549_v61 = vadd.f32 %v1525_v41, %v1425_v48  ;;  %v570_v62 = vsel %vm5250_vm11, %v5239_v16, %v5182_v0  ;;  %v422_v7 = vshrl.u32 %v5206_v33, 16  ;;  %vm5341_vm9 = vmand %vm541_vm4, %vm531_vm3 }
 0x13a   : > { %v1736_v2 = vpack.c.bf16 %v1726_v1, %v1726_v1  ;;  %v406_v14 = vshrl.u32 %v405_v19, 3  ;;  %v430_v48 = vsel %vm429_vm2, 1, %v4468_v20  ;;  %v5311_v16 = vadd.s32 10, %v5281_v24 }
 0x13b   : > { %v1673_v13 = vadd.f32 %v5113_v26, %v1549_v61  ;;  %v426_v26 = vsel %vm425_vm14, 1, %v4468_v20  ;;  %v424_v33 = vshrl.u32 %v5216_v58, 16  ;;  %v4372_v61 = vld [vmem:[%s5991_s3 + $0xc0] sm:$0xff]  ;;  %vm5331_vm8 = vcmp.lt.s32.totalorder %v570_v62, 8 }
 0x13c   : > { %v1764_v31 = vshrl.u32 %v1736_v2, 16  ;;  %v1767_v21 = vshll.u32 %v1736_v2, 16  ;;  %v407_v46 = vmul.u32 10, %v406_v14  ;;  %v428_v47 = vadd.s32 %v426_v26, %v420_v54  ;;  %2441 = vmatpush.bf16.msrb.mxu0 %v4372_v61 }
 0x13d   : > { %v1687_v23 = vadd.f32 %v5177_v57, %v1673_v13  ;;  %v446_v2 = vmul.u32 52429, %v443_v28  ;;  %vm2205_vm4 = vcmask 1046528  }
 0x13e   : > { %v1766_v18 = vrot.slane %v1764_v31, 6  ;;  %v1769_v50 = vrot.slane %v1767_v21, 7  ;;  %v1404_v0 = vpop.f32.mrf.mxu2  ;;  %v5296_v43 = vsub.s32 %v5075_v9, %v407_v46  ;;  %v432_v1 = vadd.s32 %v430_v48, %v428_v47  ;;  %v1657_v46 = vpop.f32.mrf.mxu0 }
 0x13f   : > { %v1528_v30 = vpop.f32.mrf.mxu3  ;;  %v1697_v34 = vmax.f32 %v1687_v23, 0.0  ;;  %v1426_v41 = vadd.f32 %v1404_v0, %v5017_v49  ;;  %v449_v21 = vmul.u32 52428, %v444_v22  ;;  %v452_v0 = vshll.u32 %v5321_v10, 16 }
 0x140   : > { %v1770_v8 = vor.u32 %v1769_v50, %v1766_v18  ;;  %vm532_vm5 = vcmp.ne.s32.totalorder %v5296_v43, 0  ;;  %vm542_vm6 = vcmp.lt.s32.totalorder %v5296_v43, 0  ;;  %v5346_v62 = vadd.s32 10, %v5296_v43 }
 0x141   : > { %v1727_v32 = vsel %vm5234_vm10, %v1697_v34, 0.0  ;;  %v1550_v59 = vadd.f32 %v1528_v30, %v1426_v41  ;;  %vm454_vm11 = vc.u32 %v446_v2, %v450_v12  ;;  %v456_v30 = vadd.s32 %v450_v12, %v446_v2  ;;  %vm5362_vm13 = vmand %vm542_vm6, %vm532_vm5 }
 0x142   : > { %v1877_v49 = vsel %vm5290_vm1, %v1770_v8, %v1876_v29  ;;  %v1737_v9 = vpack.c.bf16 %v1727_v32, %v1727_v32  ;;  %v1771_v5 = vrot.slane %v1770_v8, 4  ;;  %v455_v29 = vsel %vm454_vm11, 1, %v4468_v20 }
 0x143   : > { %1878 = vst [vmem:[#allocation2 + $0x4] sm:$0xe] %v1877_v49  ;;  %v1674_v60 = vadd.f32 %v5192_v25, %v1550_v59  ;;  %v433_v25 = vadd.s32 %v432_v1, %v422_v7  ;;  %v571_v8 = vsel %vm5341_vm9, %v5311_v16, %v5281_v24  ;;  %v457_v22 = vadd.s32 %v455_v29, %v449_v21 }
 0x144   : > { %v1773_v37 = vshrl.u32 %v1737_v9, 16  ;;  %v1776_v19 = vshll.u32 %v1737_v9, 16  ;;  %v451_v9 = vshrl.u32 %v5319_v52, 16  ;;  %vm458_vm14 = vc.u32 %v456_v30, %v452_v0 }
 0x145   : > { %v1688_v58 = vadd.f32 %v5177_v57, %v1674_v60  ;;  %v434_v18 = vadd.s32 %v433_v25, %v424_v33  ;;  %v572_v1 = vsel %vm5362_vm13, %v5346_v62, %v5296_v43  ;;  %vm5377_vm1 = vcmp.lt.s32.totalorder %v571_v8, 8 }
 0x146   : > { %v1775_v54 = vrot.slane %v1773_v37, 6  ;;  %v1778_v13 = vrot.slane %v1776_v19, 7  ;;  %v1406_v14 = vpop.f32.mrf.mxu2  ;;  %v1659_v15 = vpop.f32.mrf.mxu0  ;;  %vm5994_vm6 = vsmask.f32 7424  ;;  %vm5416_vm9 = vcmp.lt.s32.totalorder %v572_v1, 8 }
 0x147   : > { %v1530_v31 = vpop.f32.mrf.mxu3  ;;  %v1698_v26 = vmax.f32 %v1688_v58, 0.0  ;;  %v1427_v23 = vadd.f32 %v1406_v14, %v5078_v38  ;;  %v435_v28 = vshrl.u32 %v434_v18, 3  ;;  %v453_v58 = vshrl.u32 %v5321_v10, 16 }
 0x148   : > { %v1779_v50 = vor.u32 %v1778_v13, %v1775_v54  ;;  %v5391_v10 = vadd.s32 64, %v4902_v56  ;;  %v5429_v1 = vadd.s32 72, %v4902_v56 }
 0x149   : > { %v1728_v38 = vsel %vm5283_vm15, %v1698_v26, 0.0  ;;  %v1551_v47 = vadd.f32 %v1530_v31, %v1427_v23  ;;  %v436_v49 = vmul.u32 10, %v435_v28 }
 0x14a   : > { %v1780_v34 = vsel %vm5327_vm7, %v1771_v5, %v1779_v50  ;;  %v1738_v41 = vpack.c.bf16 %v1728_v38, %v1728_v38  ;;  %v4425_v44 = vld [vmem:[#allocation2] sm:$0xff]   ;;  %v1781_v54 = vrot.slane %v1779_v50, 4  ;;  %v4387_v38 = vld [vmem:[%s5991_s3 + $0x138] sm:$0xff]  ;;  %v472_v28 = vand.u32 65535, %v5391_v10 }
 0x14b   : > { %v4428_v48 = vld [vmem:[#allocation2] sm:$0xf0]  ;;  %1879 = vst [vmem:[#allocation2 + $0x8] sm:$0xf] %v1780_v34  ;;  %v1675_v32 = vadd.f32 %v5278_v53, %v1551_v47  ;;  %v1969_v59 = vshll.u32 %v4425_v44, 16  ;;  %2158 = vmatmul.bf16.vlgmr.msrb.gmra.mxu2 %v4425_v44  ;;  %v5374_v61 = vsub.s32 %v5162_v35, %v436_v49  ;;  %v459_v53 = vsel %vm458_vm14, 1, %v4468_v20  ;;  %2606 = vmatpush.bf16.msrb.mxu1 %v4387_v38 }
 0x14c   : > { %v1783_v33 = vshrl.u32 %v1738_v41, 16  ;;  %v1786_v24 = vshll.u32 %v1738_v41, 16  ;;  %v4430_v16 = vor.u32 %v4429_v42, %v4428_v48  ;;  %v461_v25 = vadd.s32 %v459_v53, %v457_v22  ;;  %v5388_v62 = vld [vmem:[#allocation2 + $0x4] sm:$0xe] }
 0x14d   : > { %v1689_v60 = vadd.f32 %v5177_v57, %v1675_v32  ;;  %v1971_v14 = vrot.slane %v1969_v59, 1  ;;  %v1967_v31 = vshrl.u32 %v4425_v44, 16  ;;  %vm533_vm2 = vcmp.ne.s32.totalorder %v5374_v61, 0 }
 0x14e   : > { %v1785_v37 = vrot.slane %v1783_v33, 6  ;;  %v1788_v19 = vrot.slane %v1786_v24, 7  ;;  %v1409_v2 = vpop.f32.mrf.mxu2  ;;  %v5383_v21 = vrot.slane %v4430_v16, 1  ;;  %v462_v12 = vadd.s32 %v461_v25, %v451_v9 }
 0x14f   : > { %v1533_v5 = vpop.f32.mrf.mxu3  ;;  %v1699_v13 = vmax.f32 %v1689_v60, 0.0  ;;  %v1428_v43 = vadd.f32 %v1409_v2, %v5082_v51  ;;  %vm543_vm3 = vcmp.lt.s32.totalorder %v5374_v61, 0  ;;  %v5397_v50 = vadd.s32 10, %v5374_v61 }
 0x150   : > { %v1789_v35 = vor.u32 %v1788_v19, %v1785_v37  ;;  %v5399_v30 = vor.u32 %v1971_v14, %v1967_v31  ;;  %v463_v47 = vadd.s32 %v462_v12, %v453_v58  ;;  %v2353_v34 = vunpack.c.l.b16 %v5388_v62  ;;  %vm5410_vm5 = vmand %vm543_vm3, %vm533_vm2  ;;  %v1662_v12 = vpop.f32.mrf.mxu0 }
 0x151   : > { %v1729_v26 = vsel %vm5331_vm8, %v1699_v13, 0.0  ;;  %v1552_v23 = vadd.f32 %v1533_v5, %v1428_v43  ;;  %v473_v41 = vshrl.u32 %v5391_v10, 16  ;;  %v475_v7 = vmul.u32 52429, %v472_v28 }
 0x152   : > { %v1790_v51 = vsel %vm5327_vm7, %v1781_v54, %v1789_v35  ;;  %v1739_v18 = vpack.c.bf16 %v1729_v26, %v1729_v26  ;;  %v464_v8 = vshrl.u32 %v463_v47, 3  ;;  %v5414_v48 = vmul.u32 52428, %v472_v28 }
 0x153   : > { %1880 = vst [vmem:[#allocation2 + $0xc] sm:$0xf] %v1790_v51  ;;  %v1676_v0 = vadd.f32 %v1657_v46, %v1552_v23  ;;  %v1791_v22 = vrot.slane %v1789_v35, 4  ;;  %v5420_v24 = vmul.u32 52429, %v473_v41  ;;  %v573_v2 = vsel %vm5410_vm5, %v5397_v50, %v5374_v61  ;;  %v4394_v46 = vld [vmem:[%s5991_s3 + $0x170] sm:$0xff] }
 0x154   : > { %v1793_v42 = vshrl.u32 %v1739_v18, 16  ;;  %v1796_v29 = vshll.u32 %v1739_v18, 16  ;;  %v465_v53 = vmul.u32 10, %v464_v8  ;;  %v479_v37 = vshll.u32 %v5414_v48, 16 }
 0x155   : > { %v1690_v44 = vadd.f32 %v5177_v57, %v1676_v0  ;;  %v478_v5 = vmul.u32 52428, %v473_v41  ;;  %v480_v35 = vshrl.u32 %v5414_v48, 16  ;;  %v481_v56 = vshll.u32 %v5420_v24, 16 }
 0x156   : > { %v1795_v32 = vrot.slane %v1793_v42, 6  ;;  %v1798_v59 = vrot.slane %v1796_v29, 7  ;;  %v1411_v49 = vpop.f32.mrf.mxu2  ;;  %v5434_v54 = vsub.s32 %v5265_v3, %v465_v53  ;;  %vm483_vm11 = vc.u32 %v475_v7, %v479_v37  ;;  %v4386_v3 = vld [vmem:[%s5991_s3 + $0x130] sm:$0xff] }
 0x157   : > { %v1535_v33 = vpop.f32.mrf.mxu3  ;;  %v1700_v16 = vmax.f32 %v1690_v44, 0.0  ;;  %v1429_v60 = vadd.f32 %v1411_v49, %v5085_v11  ;;  %v484_v26 = vsel %vm483_vm11, 1, %v4468_v20  ;;  %2607 = vmatpush.bf16.msrb.mxu1 %v4386_v3  ;;  %v485_v47 = vadd.s32 %v479_v37, %v475_v7 }
 0x158   : > { %v1799_v19 = vor.u32 %v1798_v59, %v1795_v32  ;;  %vm534_vm13 = vcmp.ne.s32.totalorder %v5434_v54, 0  ;;  %vm544_vm14 = vcmp.lt.s32.totalorder %v5434_v54, 0  ;;  %v564_v0 = vadd.s32 10, %v5434_v54 }
 0x159   : > { %v1730_v58 = vsel %vm5377_vm1, %v1700_v16, 0.0  ;;  %v1553_v25 = vadd.f32 %v1535_v33, %v1429_v60  ;;  %vm5467_vm2 = vmand %vm544_vm14, %vm534_vm13  ;;  %v486_v33 = vadd.s32 %v484_v26, %v478_v5  ;;  %vm487_vm3 = vc.u32 %v485_v47, %v481_v56 }
 0x15a   : > { %v1800_v11 = vsel %vm5327_vm7, %v1791_v22, %v1799_v19  ;;  %v1740_v13 = vpack.c.bf16 %v1730_v58, %v1730_v58  ;;  %v5438_v14 = vld [vmem:[#allocation2 + $0x8] sm:$0xff]  ;;  %v1801_v48 = vrot.slane %v1799_v19, 4  ;;  %v482_v60 = vshrl.u32 %v5420_v24, 16  ;;  %v4395_v58 = vld [vmem:[%s5991_s3 + $0x178] sm:$0xff] }
 0x15b   : > { %v5440_v43 = vld [vmem:[#allocation2 + $0x8] sm:$0xff]   ;;  %1881 = vst [vmem:[#allocation2 + $0x10] sm:$0xf] %v1800_v11  ;;  %v1677_v31 = vadd.f32 %v1659_v15, %v1553_v25  ;;  %2163 = vmatmul.bf16.gmra.mxu2 %v5438_v14  ;;  %v2207_v51 = vrot.slane %v5438_v14, 1  ;;  %v1974_v18 = vshll.u32 %v5438_v14, 16  ;;  %v488_v53 = vsel %vm487_vm3, 1, %v4468_v20 }
 0x15c   : > { %v1803_v23 = vshrl.u32 %v1740_v13, 16  ;;  %v1806_v62 = vshll.u32 %v1740_v13, 16  ;;  %v2354_v38 = vunpack.c.l.b16 %v5440_v43  ;;  %v574_v19 = vsel %vm5467_vm2, %v564_v0, %v5434_v54  ;;  %2736 = vmatpush.bf16.msra.mxu2 %v4395_v58 }
 0x15d   : > { %v1691_v15 = vadd.f32 %v5177_v57, %v1677_v31  ;;  %v2208_v44 = vsel %vm2205_vm4, %v5383_v21, %v2207_v51  ;;  %v5460_v8 = vrot.slane %v1974_v18, 1  ;;  %v490_v5 = vadd.s32 %v488_v53, %v486_v33 }
 0x15e   : > { %v1805_v28 = vrot.slane %v1803_v23, 6  ;;  %v1808_v42 = vrot.slane %v1806_v62, 7  ;;  %v1414_v29 = vpop.f32.mrf.mxu2  ;;  %2278 = vmatmul.bf16.vlgmr.msrb.gmra.mxu3 %v2208_v44  ;;  %v5473_v59 = vpack.c.b16 %v2354_v38, %v2353_v34  ;;  %v501_v11 = vand.u32 65535, %v5429_v1  ;;  %v1664_v62 = vpop.f32.mrf.mxu0 }
 0x15f   : > { %v1538_v41 = vpop.f32.mrf.mxu3  ;;  %v1701_v22 = vmax.f32 %v1691_v15, 0.0  ;;  %v1430_v32 = vadd.f32 %v1414_v29, %v5103_v55  ;;  %v1977_v49 = vsel %vm5994_vm6, %v5399_v30, %v5460_v8  ;;  %v502_v13 = vshrl.u32 %v5429_v1, 16 }
 0x160   : > { %v1809_v21 = vor.u32 %v1808_v42, %v1805_v28  ;;  %2071 = vmatmul.bf16.vlgmr.msra.gmra.mxu1 %v1977_v49  ;;  %v2370_v24 = vrot.slane %v5473_v59, 1  ;;  %v491_v54 = vadd.s32 %v490_v5, %v480_v35  ;;  %v5498_v26 = vadd.f32 %v4970_v36, %v5232_v45  ;;  %2737 = vmatpush.bf16.msra.mxu2 %v4394_v46 }
 0x161   : > { %v1731_v55 = vsel %vm5416_vm9, %v1701_v22, 0.0  ;;  %v1554_v16 = vadd.f32 %v1538_v41, %v1430_v32  ;;  %vm5505_vm11 = vcmp.lt.s32.totalorder %v573_v2, 8  ;;  %v5510_v18 = vmul.u32 52428, %v501_v11 }
 0x162   : > { %v1810_v34 = vsel %vm5327_vm7, %v1801_v48, %v1809_v21  ;;  %v1741_v37 = vpack.c.bf16 %v1731_v55, %v1731_v55  ;;  %v5487_v30 = vld [vmem:[#allocation2 + $0xc] sm:$0xff]  ;;  %vm5512_vm13 = vcmp.lt.s32.totalorder %v574_v19, 8  ;;  %v492_v50 = vadd.s32 %v491_v54, %v482_v60 }
 0x163   : > { %1882 = vst [vmem:[#allocation2 + $0x14] sm:$0xf] %v1810_v34  ;;  %v1678_v25 = vadd.f32 %v1662_v12, %v1554_v16  ;;  %v2371_v3 = vrot.slane %v5487_v30, 1  ;;  %v504_v28 = vmul.u32 52429, %v501_v11  ;;  %v5523_v42 = vmul.u32 52429, %v502_v13  ;;  %v4393_v60 = vld [vmem:[%s5991_s3 + $0x168] sm:$0xff] }
 0x164   : > { %v1813_v56 = vshrl.u32 %v1741_v37, 16  ;;  %v1816_v31 = vshll.u32 %v1741_v37, 16  ;;  %v1811_v29 = vrot.slane %v1809_v21, 4  ;;  %v493_v44 = vshrl.u32 %v492_v50, 3  ;;  %2738 = vmatpush.bf16.msra.mxu2 %v4393_v60 }
 0x165   : > { %v1692_v23 = vadd.f32 %v5177_v57, %v1678_v25  ;;  %v2372_v61 = vsel %vm2205_vm4, %v2370_v24, %v2371_v3  ;;  %v508_v48 = vshll.u32 %v5510_v18, 16  ;;  %v1978_v7 = vshrl.u32 %v5438_v14, 16 }
 0x166   : > { %v1815_v35 = vrot.slane %v1813_v56, 6  ;;  %v1818_v15 = vrot.slane %v1816_v31, 7  ;;  %v1416_v0 = vpop.f32.mrf.mxu2  ;;  %2442 = vmatmul.bf16.vlgmr.msrb.gmra.mxu0 %v2372_v61  ;;  %v510_v49 = vshll.u32 %v5523_v42, 16  ;;  %v494_v21 = vmul.u32 10, %v493_v44  ;;  %v4385_v61 = vld [vmem:[%s5991_s3 + $0x128] sm:$0xff]  ;;  %v1667_v46 = vpop.f32.mrf.mxu0 }
 0x167   : > { %v1540_v45 = vpop.f32.mrf.mxu3  ;;  %v1702_v2 = vmax.f32 %v1692_v23, 0.0  ;;  %v1431_v47 = vadd.f32 %v1416_v0, %v5164_v17  ;;  %v507_v16 = vmul.u32 52428, %v502_v13  ;;  %vm512_vm5 = vc.u32 %v504_v28, %v508_v48  ;;  %2608 = vmatpush.bf16.msrb.mxu1 %v4385_v61 }
 0x168   : > { %v1819_v41 = vor.u32 %v1818_v15, %v1815_v35  ;;  %v514_v37 = vadd.s32 %v508_v48, %v504_v28  ;;  %v495_v58 = vsub.s32 %v5391_v10, %v494_v21  ;;  %v513_v13 = vsel %vm512_vm5, 1, %v4468_v20  ;;  %v4392_v10 = vld [vmem:[%s5991_s3 + $0x160] sm:$0xff] }
 0x169   : > { %v1732_v22 = vsel %vm5505_vm11, %v1702_v2, 0.0  ;;  %v1555_v32 = vadd.f32 %v1540_v45, %v1431_v47  ;;  %v515_v47 = vadd.s32 %v513_v13, %v507_v16  ;;  %v509_v44 = vshrl.u32 %v5510_v18, 16  ;;  %v4384_v48 = vld [vmem:[%s5991_s3 + $0x120] sm:$0xff]  ;;  %2739 = vmatpush.bf16.msra.mxu2 %v4392_v10 }
 0x16a   : > { %v1820_v17 = vsel %vm5327_vm7, %v1811_v29, %v1819_v41  ;;  %v1742_v33 = vpack.c.bf16 %v1732_v22, %v1732_v22  ;;  %v5532_v55 = vld [vmem:[#allocation2 + $0x10] sm:$0xff]  ;;  %v1821_v53 = vrot.slane %v1819_v41, 4  ;;  %vm5543_vm14 = vc.u32 %v514_v37, %v510_v49  ;;  %v1297_v22 = vpop.f32.mrf.mxu1 }
 0x16b   : > { %1883 = vst [vmem:[#allocation2 + $0x18] sm:$0xf] %v1820_v17  ;;  %v1679_v34 = vadd.f32 %v1664_v62, %v1555_v32  ;;  %2168 = vmatmul.bf16.gmra.mxu2 %v5532_v55  ;;  %v2209_v25 = vrot.slane %v5532_v55, 1  ;;  %v1982_v11 = vshll.u32 %v5532_v55, 16  ;;  %vm535_vm2 = vcmp.ne.s32.totalorder %v495_v58, 0  ;;  %2609 = vmatpush.bf16.msrb.mxu1 %v4384_v48 }
 0x16c   : > { %v1823_v19 = vshrl.u32 %v1742_v33, 16  ;;  %v1826_v5 = vshll.u32 %v1742_v33, 16  ;;  %vm545_vm3 = vcmp.lt.s32.totalorder %v495_v58, 0  ;;  %v565_v0 = vadd.s32 10, %v495_v58 }
 0x16d   : > { %v1693_v24 = vadd.f32 %v5177_v57, %v1679_v34  ;;  %v2210_v45 = vsel %vm2205_vm4, %v2207_v51, %v2209_v25  ;;  %vm5561_vm5 = vmand %vm545_vm3, %vm535_vm2  ;;  %v517_v14 = vsel %vm5543_vm14, 1, %v4468_v20  ;;  %v4407_v51 = vld [vmem:[%s5991_s3 + $0x1b8] sm:$0xff]  ;;  %v1980_v41 = vor.u32 %v1978_v7, %v5460_v8 }
 0x16e   : > { %v1825_v31 = vrot.slane %v1823_v19, 6  ;;  %v1828_v54 = vrot.slane %v1826_v5, 7  ;;  %v1419_v23 = vpop.f32.mrf.mxu2  ;;  %2283 = vmatmul.bf16.gmra.mxu3 %v2210_v45  ;;  %v4391_v20 = vld [vmem:[%s5991_s3 + $0x158] sm:$0xff]  ;;  %v511_v8 = vshrl.u32 %v5523_v42, 16  ;;  %v575_v18 = vsel %vm5561_vm5, %v565_v0, %v495_v58  ;;  %v4406_v42 = vld [vmem:[%s5991_s3 + $0x1b0] sm:$0xff] }
 0x16f   : > { %v1543_v62 = vpop.f32.mrf.mxu3  ;;  %v1703_v35 = vmax.f32 %v1693_v24, 0.0  ;;  %v1432_v15 = vadd.f32 %v1419_v23, %v5229_v40  ;;  %v5565_v40 = vrot.slane %v1982_v11, 1  ;;  %2900 = vmatpush.bf16.msra.mxu3 %v4407_v51  ;;  %v519_v21 = vadd.s32 %v517_v14, %v515_v47  ;;  %v4383_v5 = vld [vmem:[%s5991_s3 + $0x118] sm:$0xff]  ;;  %2740 = vmatpush.bf16.msra.mxu2 %v4391_v20  ;;  %v4390_v58 = vld [vmem:[%s5991_s3 + $0x150] sm:$0xff]  ;;  %v1669_v14 = vpop.f32.mrf.mxu0 }
 0x170   : > { %v5559_v50 = vor.u32 %v1828_v54, %v1825_v31  ;;  %v1309_v34 = vadd.f32 %v1297_v22, %v5498_v26  ;;  %vm5605_vm14 = vcmp.lt.s32.totalorder %v575_v18, 8  ;;  %2610 = vmatpush.bf16.msrb.mxu1 %v4383_v5 }
 0x171   : > { %v1733_v28 = vsel %vm5512_vm13, %v1703_v35, 0.0  ;;  %v1556_v29 = vadd.f32 %v1543_v62, %v1432_v15  ;;  %v1985_v33 = vsel %vm5994_vm6, %v1980_v41, %v5565_v40  ;;  %v520_v19 = vadd.s32 %v519_v21, %v509_v44  ;;  %v4382_v15 = vld [vmem:[%s5991_s3 + $0x110] sm:$0xff]  ;;  %v4381_v21 = vld [vmem:[%s5991_s3 + $0x108] sm:$0xff] }
 0x172   : > { %v1830_v32 = vsel %vm5327_vm7, %v1821_v53, %v5559_v50  ;;  %v1743_v49 = vpack.c.bf16 %v1733_v28, %v1733_v28  ;;  %v5587_v7 = vld [vmem:[#allocation2 + $0x14] sm:$0xff]  ;;  %2076 = vmatmul.bf16.gmra.mxu1 %v1985_v33  ;;  %v1831_v62 = vrot.slane %v5559_v50, 4  ;;  %v4405_v50 = vld [vmem:[%s5991_s3 + $0x1a8] sm:$0xff]  ;;  %v1986_v41 = vshrl.u32 %v5532_v55, 16  ;;  %v4388_v33 = vld [vmem:[%s5991_s3 + $0x140] sm:$0xff] }
 0x173   : > { %1884 = vst [vmem:[#allocation2 + $0x1c] sm:$0xf] %v1830_v32  ;;  %v1680_v17 = vadd.f32 %v1667_v46, %v1556_v29  ;;  %v2373_v53 = vrot.slane %v5587_v7, 1  ;;  %2901 = vmatpush.bf16.msra.mxu3 %v4406_v42  ;;  %v521_v23 = vadd.s32 %v520_v19, %v511_v8  ;;  %2741 = vmatpush.bf16.msra.mxu2 %v4390_v58  ;;  %v4415_v46 = vld [vmem:[%s5991_s3 + $0x1f8] sm:$0xff]  ;;  %v4404_v32 = vld [vmem:[%s5991_s3 + $0x1a0] sm:$0xff]  ;;  %v4413_v55 = vld [vmem:[%s5991_s3 + $0x1e8] sm:$0xff] }
 0x174   : > { %v1833_v16 = vshrl.u32 %v1743_v49, 16  ;;  %v1836_v60 = vshll.u32 %v1743_v49, 16  ;;  %3072 = vmatpush.bf16.msra.mxu0 %v4415_v46  ;;  %v4414_v49 = vld [vmem:[%s5991_s3 + $0x1f0] sm:$0xff]  ;;  %2611 = vmatpush.bf16.msrb.mxu1 %v4382_v15  ;;  %v4403_v19 = vld [vmem:[%s5991_s3 + $0x198] sm:$0xff]  ;;  %v2501_v58 = vshrl.u32 %v5473_v59, 16 }
 0x175   : > { %v1694_v37 = vadd.f32 %v5177_v57, %v1680_v17  ;;  %v2374_v56 = vsel %vm2205_vm4, %v2371_v3, %v2373_v53  ;;  %v522_v45 = vshrl.u32 %v521_v23, 3  ;;  %v4389_v3 = vld [vmem:[%s5991_s3 + $0x148] sm:$0xff]  ;;  %v1988_v17 = vor.u32 %v1986_v41, %v5565_v40  ;;  %v4402_v15 = vld [vmem:[%s5991_s3 + $0x190] sm:$0xff] }
 0x176   : > { %v1835_v24 = vrot.slane %v1833_v16, 6  ;;  %v1838_v11 = vrot.slane %v1836_v60, 7  ;;  %v1421_v26 = vpop.f32.mrf.mxu2  ;;  %2447 = vmatmul.bf16.gmra.mxu0 %v2374_v56  ;;  %v2503_v23 = vrot.slane %v2501_v58, 1  ;;  %v4401_v41 = vld [vmem:[%s5991_s3 + $0x188] sm:$0xff] }
 0x177   : > { %v1704_v31 = vmax.f32 %v1694_v37, 0.0  ;;  %v1433_v54 = vadd.f32 %v1421_v26, %v1309_v34  ;;  %v1545_v35 = vpop.f32.mrf.mxu3  ;;  %v523_v28 = vmul.u32 10, %v522_v45  ;;  %2902 = vmatpush.bf16.msra.mxu3 %v4405_v50  ;;  %2742 = vmatpush.bf16.msra.mxu2 %v4389_v3 }
 0x178   : > { %v1839_v10 = vor.u32 %v1838_v11, %v1835_v24  ;;  %3073 = vmatpush.bf16.msra.mxu0 %v4414_v49  ;;  %2612 = vmatpush.bf16.msrb.mxu1 %v4381_v21  ;;  %v2504_v24 = vshll.u32 %v5473_v59, 16  ;;  %v2512_v59 = vshll.u32 %v5487_v30, 16 }
 0x179   : > { %v1734_v0 = vsel %vm5605_vm14, %v1704_v31, 0.0  ;;  %v1557_v61 = vadd.f32 %v1545_v35, %v1433_v54  ;;  %v524_v8 = vsub.s32 %v5429_v1, %v523_v28  ;;  %v2509_v31 = vshrl.u32 %v5487_v30, 16 }
 0x17a   : > { %v1840_v2 = vsel %vm5327_vm7, %v1831_v62, %v1839_v10  ;;  %v1744_v47 = vpack.c.bf16 %v1734_v0, %v1734_v0  ;;  %v5631_v51 = vld [vmem:[#allocation2 + $0x18] sm:$0xff]  ;;  %v1841_v34 = vrot.slane %v1839_v10, 4  ;;  %v2506_v62 = vrot.slane %v2504_v24, 2  ;;  %v4412_v0 = vld [vmem:[%s5991_s3 + $0x1e0] sm:$0xff]  ;;  %v5737_v24 = vld [vmem:[#allocation2 + $0x10] sm:$0xff] }
 0x17b   : > { %1885 = vst [vmem:[#allocation2 + $0x20] sm:$0xf] %v1840_v2  ;;  %v1681_v29 = vadd.f32 %v1669_v14, %v1557_v61  ;;  %2173 = vmatmul.bf16.gmra.mxu2 %v5631_v51  ;;  %v2211_v20 = vrot.slane %v5631_v51, 1  ;;  %v1990_v22 = vshll.u32 %v5631_v51, 16  ;;  %vm536_vm2 = vcmp.ne.s32.totalorder %v524_v8, 0  ;;  %2903 = vmatpush.bf16.msra.mxu3 %v4404_v32 }
 0x17c   : > { %v1843_v44 = vshrl.u32 %v1744_v47, 16  ;;  %v1846_v48 = vshll.u32 %v1744_v47, 16  ;;  %vm546_vm3 = vcmp.lt.s32.totalorder %v524_v8, 0  ;;  %v566_v40 = vadd.s32 10, %v524_v8  ;;  %2743 = vmatpush.bf16.msra.mxu2 %v4388_v33  ;;  %3074 = vmatpush.bf16.msra.mxu0 %v4413_v55 }
 0x17d   : > { %v1695_v18 = vadd.f32 %v5177_v57, %v1681_v29  ;;  %v2212_v57 = vsel %vm2205_vm4, %v2209_v25, %v2211_v20  ;;  %v5657_v1 = vrot.slane %v1990_v22, 1  ;;  %vm556_vm5 = vmand %vm546_vm3, %vm536_vm2  ;;  %v2511_v45 = vrot.slane %v2509_v31, 1  ;;  %v4380_v29 = vld [vmem:[%s5991_s3 + $0x100] sm:$0xff] }
 0x17e   : > { %v1845_v16 = vrot.slane %v1843_v44, 6  ;;  %v1848_v60 = vrot.slane %v1846_v48, 7  ;;  %2288 = vmatmul.bf16.gmra.mxu3 %v2212_v57  ;;  %v576_v25 = vsel %vm556_vm5, %v566_v40, %v524_v8  ;;  %v2514_v61 = vrot.slane %v2512_v59, 2  ;;  %2613 = vmatpush.bf16.msrb.mxu1 %v4380_v29  ;;  %v4400_v40 = vld [vmem:[%s5991_s3 + $0x180] sm:$0xff] }
 0x17f   : > { %v1705_v42 = vmax.f32 %v1695_v18, 0.0  ;;  %v1993_v5 = vsel %vm5994_vm6, %v1988_v17, %v5657_v1  ;;  %vm5671_vm2 = vcmp.lt.s32.totalorder %v576_v25, 8  ;;  %2904 = vmatpush.bf16.msra.mxu3 %v4403_v19  ;;  %vm2499_vm3 = vsmask.f32 6400  ;;  %v1890_v17 = vld [vmem:[#allocation2 + $0x2c] sm:$0x3] }
 0x180   : > { %v1849_v37 = vor.u32 %v1848_v60, %v1845_v16  ;;  %v2507_v2 = vor.u32 %v2506_v62, %v2503_v23  ;;  %v2515_v47 = vor.u32 %v2514_v61, %v2511_v45  ;;  %vm1888_vm5 = vcmask 1041408   ;;  %3075 = vmatpush.bf16.msra.mxu0 %v4412_v0  ;;  %v2650_v23 = vld [vmem:[#allocation2 + $0x4] sm:$0xc]  ;;  %v4422_v18 = vld [vmem:[%s5991_s3 + $0x230] sm:$0xff] }
 0x181   : > { %v1735_v54 = vsel %vm5671_vm2, %v1705_v42, 0.0  ;;  %v2518_v48 = vshrl.u32 %v5587_v7, 16  ;;  %v2521_v8 = vshll.u32 %v5587_v7, 16  ;;  %vm5710_vm6 = vmand %vm1888_vm5, %vm1760_vm12  ;;  %v4410_v42 = vld [vmem:[%s5991_s3 + $0x1d0] sm:$0xff]  ;;  %v1994_v6 = vshrl.u32 %v5631_v51, 16  ;;  %v4409_v51 = vld [vmem:[%s5991_s3 + $0x1c8] sm:$0xff] }
 0x182   : > { %v1850_v11 = vsel %vm5327_vm7, %v1841_v34, %v1849_v37  ;;  %v5675_v56 = vld [vmem:[#allocation2 + $0x1c] sm:$0xff]  ;;  %v1745_v10 = vpack.c.bf16 %v1735_v54, %v1735_v54  ;;  %2081 = vmatmul.bf16.gmra.mxu1 %v1993_v5  ;;  %v5703_v44 = vsel %vm2499_vm3, %v2507_v2, %v2515_v47  ;;  %v1851_v22 = vrot.slane %v1849_v37, 4  ;;  %v3116_v37 = vld [vmem:[#allocation2 + $0x8] sm:$0x8] }
 0x183   : > { %1886 = vst [vmem:[#allocation2 + $0x24] sm:$0xf] %v1850_v11  ;;  %v2375_v35 = vrot.slane %v5675_v56, 1  ;;  %2905 = vmatpush.bf16.msra.mxu3 %v4402_v15  ;;  %v2520_v33 = vrot.slane %v2518_v48, 1  ;;  %v2523_v34 = vrot.slane %v2521_v8, 2  ;;  %v2820_v5 = vunpack.c.h.b16 %v5440_v43 }
 0x184   : > { %v1853_v3 = vshrl.u32 %v1745_v10, 16  ;;  %v1856_v50 = vshll.u32 %v1745_v10, 16  ;;  %v1996_v58 = vor.u32 %v1994_v6, %v5657_v1  ;;  %v2527_v31 = vshrl.u32 %v5675_v56, 16 }
 0x185   : > { %v2376_v46 = vsel %vm2205_vm4, %v2373_v53, %v2375_v35  ;;  %v4411_v53 = vld [vmem:[%s5991_s3 + $0x1d8] sm:$0xff]  ;;  %v2524_v11 = vor.u32 %v2523_v34, %v2520_v33  ;;  %v2530_v54 = vshll.u32 %v5675_v56, 16  ;;  %vm6041_vm12 = vsmask.f32 7424 }
 0x186   : > { %2452 = vmatmul.bf16.gmra.mxu0 %v2376_v46  ;;  %v1855_v14 = vrot.slane %v1853_v3, 6  ;;  %v1858_v28 = vrot.slane %v1856_v50, 7  ;;  %v2529_v59 = vrot.slane %v2527_v31, 1  ;;  %v2669_v0 = vunpack.c.l.b16 %v2650_v23  ;;  %v4423_v46 = vld [vmem:[%s5991_s3 + $0x238] sm:$0xff]  ;;  %vm6042_vm5 = vmmov %vm6041_vm12 }
 0x187   : > { %2906 = vmatpush.bf16.msra.mxu3 %v4401_v41  ;;  %3076 = vmatpush.bf16.msra.mxu0 %v4411_v53  ;;  %v5747_v1 = vsel %vm2499_vm3, %v2515_v47, %v2524_v11  ;;  %v2532_v10 = vrot.slane %v2530_v54, 2  ;;  %v3139_v61 = vrot.slane %v5737_v24, 3  ;;  %v2673_v53 = vrot.slane %v5487_v30, 2 }
 0x188   : > { %v1859_v32 = vor.u32 %v1858_v28, %v1855_v14  ;;  %v2670_v2 = vpack.c.b16 %v2354_v38, %v2669_v0  ;;  %v4408_v14 = vld [vmem:[%s5991_s3 + $0x1c0] sm:$0xff]  ;;  %3202 = vmatpush.bf16.msra.mxu1 %v4423_v46  ;;  %v4421_v46 = vld [vmem:[%s5991_s3 + $0x228] sm:$0xff] }
 0x189   : > { %v2533_v45 = vor.u32 %v2532_v10, %v2529_v59 }
 0x18a   : > { %v5706_v49 = vld [vmem:[#allocation2 + $0x20] sm:$0xff]  ;;  %v1860_v21 = vsel %vm5327_vm7, %v1851_v22, %v1859_v32  ;;  %v1861_v16 = vrot.slane %v1859_v32, 4  ;;  %vm3137_vm7 = vcmask 1044480   ;;  %v2672_v32 = vrot.slane %v2670_v2, 2 }
 0x18b   : > { %2178 = vmatmul.bf16.gmra.mxu2 %v5706_v49  ;;  %v2213_v60 = vrot.slane %v5706_v49, 1  ;;  %v1998_v57 = vshll.u32 %v5706_v49, 16  ;;  %1887 = vst [vmem:[#allocation2 + $0x28] sm:$0xf] %v1860_v21  ;;  %2907 = vmatpush.bf16.msra.mxu3 %v4400_v40  ;;  %v5763_v28 = vsel %vm2499_vm3, %v2524_v11, %v2533_v45  ;;  %v5801_v2 = vld [vmem:[#allocation2 + $0x20] sm:$0xff] }
 0x18c   : > { %v1891_v19 = vsel %vm5710_vm6, %v1861_v16, %v1890_v17  ;;  %3077 = vmatpush.bf16.msra.mxu0 %v4410_v42  ;;  %vm2671_vm6 = vcmask 1045504   ;;  %v5776_v17 = vld [vmem:[#allocation2 + $0x18] sm:$0xff]  ;;  %3203 = vmatpush.bf16.msra.mxu1 %v4422_v18 }
 0x18d   : > { %v2214_v55 = vsel %vm2205_vm4, %v2211_v20, %v2213_v60  ;;  %v5733_v25 = vrot.slane %v1998_v57, 1  ;;  %1892 = vst [vmem:[#allocation2 + $0x2c] sm:$0x3] %v1891_v19  ;;  %v3135_v20 = vunpack.c.l.b16 %v3116_v37  ;;  %v2674_v16 = vsel %vm2671_vm6, %v2672_v32, %v2673_v53 }
 0x18e   : > { %2293 = vmatmul.bf16.gmra.mxu3 %v2214_v55  ;;  %v3141_v19 = vrot.slane %v5776_v17, 3  ;;  %v2002_v55 = vshrl.u32 %v5706_v49, 16  ;;  %v2837_v32 = vrot.slane %v5737_v24, 2 }
 0x18f   : > { %v2001_v62 = vsel %vm6041_vm12, %v1996_v58, %v5733_v25  ;;  %v3136_v15 = vpack.c.b16 %v2820_v5, %v3135_v20 }
 0x190   : > { %3078 = vmatpush.bf16.msra.mxu0 %v4409_v51  ;;  %3204 = vmatpush.bf16.msra.mxu1 %v4421_v46  ;;  %v2841_v46 = vrot.slane %v5801_v2, 2 }
 0x191   : > { %v3138_v29 = vrot.slane %v3136_v15, 3  ;;  %v5795_v15 = vsel %vm3137_vm7, %v3139_v61, %v3141_v19 }
 0x192   : > { %2086 = vmatmul.bf16.gmra.mxu1 %v2001_v62  ;;  %v5752_v3 = vld [vmem:[#allocation2 + $0x24] sm:$0xff]  ;;  %v2004_v62 = vor.u32 %v2002_v55, %v5733_v25  ;;  %v2675_v25 = vrot.slane %v5587_v7, 2  ;;  %v2975_v7 = vshrl.u32 %v5737_v24, 16 }
 0x193   : > { %v1919_v50 = vld [vmem:[#allocation2 + $0x28] sm:$0x1]  ;;  %v2377_v41 = vrot.slane %v5752_v3, 1  ;;  %v5768_v22 = vsel %vm3137_vm7, %v3138_v29, %v3139_v61  ;;  %v2536_v33 = vshrl.u32 %v5752_v3, 16  ;;  %v2539_v21 = vshll.u32 %v5752_v3, 16 }
 0x194   : > { %v1958_v47 = vunpack.c.l.b16 %v1919_v50  ;;  %3079 = vmatpush.bf16.msra.mxu0 %v4408_v14  ;;  %v2324_v8 = vld [vmem:[#allocation2 + $0x2c] sm:$0x1]  ;;  %v2780_v50 = vld [vmem:[#allocation2 + $0x8] sm:$0xc]  ;;  %v2944_v14 = vld [vmem:[#allocation2 + $0x30] sm:$0x7] }
 0x195   : > { %v2378_v38 = vsel %vm2205_vm4, %v2375_v35, %v2377_v41  ;;  %v2478_v30 = vld [vmem:[#allocation2 + $0x2c] sm:$0x3]  ;;  %v2363_v42 = vunpack.c.l.b16 %v2324_v8  ;;  %v2538_v6 = vrot.slane %v2536_v33, 1  ;;  %v2541_v34 = vrot.slane %v2539_v21, 2 }
 0x196   : > { %v1964_v48 = vpack.c.b16 %v1958_v47, %v1958_v47  ;;  %2457 = vmatmul.bf16.gmra.mxu0 %v2378_v38  ;;  %v2497_v40 = vunpack.c.l.b16 %v2478_v30  ;;  %v2819_v61 = vunpack.c.l.b16 %v2780_v50  ;;  %v2676_v38 = vsel %vm2671_vm6, %v2673_v53, %v2675_v25 }
 0x197   : > { %v2542_v58 = vor.u32 %v2541_v34, %v2538_v6  ;;  %v2369_v51 = vpack.c.b16 %v2363_v42, %v2363_v42  ;;  %v2963_v8 = vunpack.c.l.b16 %v2944_v14  ;;  %v2977_v53 = vrot.slane %v2975_v7, 2 }
 0x198   : > { %v2215_v57 = vrot.slane %v1964_v48, 1  ;;  %v2006_v35 = vshll.u32 %v1964_v48, 16  ;;  %v5781_v37 = vpack.c.b16 %v2497_v40, %v2497_v40  ;;  %v2830_v29 = vpack.c.b16 %v2820_v5, %v2819_v61  ;;  %v5819_v5 = vld [vmem:[#allocation2 + $0x28] sm:$0xff] }
 0x199   : > { %v5791_v20 = vsel %vm2499_vm3, %v2533_v45, %v2542_v58  ;;  %v2379_v0 = vrot.slane %v2369_v51, 1  ;;  %v3143_v48 = vrot.slane %v5801_v2, 3  ;;  %v2984_v51 = vshrl.u32 %v5776_v17, 16  ;;  %v4417_v61 = vld [vmem:[%s5991_s3 + $0x208] sm:$0xff] }
 0x19a   : > { %v2216_v11 = vsel %vm2205_vm4, %v2213_v60, %v2215_v57  ;;  %v2008_v31 = vrot.slane %v2006_v35, 1  ;;  %v2545_v54 = vshrl.u32 %v5781_v37, 16  ;;  %v2548_v23 = vshll.u32 %v5781_v37, 16  ;;  %v4420_v35 = vld [vmem:[%s5991_s3 + $0x220] sm:$0xff] }
 0x19b   : > { %2744 = vmatmul.bf16.vlgmr.msra.gmra.mxu2 %v2674_v16  ;;  %v2380_v47 = vsel %vm2205_vm4, %v2377_v41, %v2379_v0  ;;  %v5814_v18 = vsel %vm3137_vm7, %v3141_v19, %v3143_v48  ;;  %v2978_v41 = vshll.u32 %v5737_v24, 16  ;;  %v2836_v30 = vrot.slane %v2830_v29, 2  ;;  %3205 = vmatpush.bf16.msra.mxu1 %v4420_v35 }
 0x19c   : > { %v2547_v59 = vrot.slane %v2545_v54, 1  ;;  %v2550_v10 = vrot.slane %v2548_v23, 2  ;;  %v2009_v49 = vsel %vm6042_vm5, %v2004_v62, %v2008_v31  ;;  %v2967_v33 = vshrl.u32 %v2830_v29, 16  ;;  %v4419_v54 = vld [vmem:[%s5991_s3 + $0x218] sm:$0xff] }
 0x19d   : > { %v2970_v21 = vshll.u32 %v2830_v29, 16  ;;  %v2838_v43 = vsel %vm2671_vm6, %v2836_v30, %v2837_v32  ;;  %v5821_v16 = vpack.c.b16 %v2963_v8, %v2963_v8  ;;  %v2980_v57 = vrot.slane %v2978_v41, 3 }
 0x19e   : > { %2298 = vmatmul.bf16.gmra.mxu3 %v2216_v11  ;;  %v2551_v60 = vor.u32 %v2550_v10, %v2547_v59  ;;  %v2969_v40 = vrot.slane %v2967_v33, 2  ;;  %v3145_v24 = vrot.slane %v5819_v5, 3  ;;  %vm2965_vm4 = vsmask.f32 5376 }
 0x19f   : > { %v2972_v42 = vrot.slane %v2970_v21, 3  ;;  %v3147_v6 = vrot.slane %v5821_v16, 3  ;;  %v2981_v34 = vor.u32 %v2980_v57, %v2977_v53  ;;  %v2677_v11 = vrot.slane %v5675_v56, 2  ;;  %3206 = vmatpush.bf16.msra.mxu1 %v4419_v54  ;;  %v2790_v57 = vld [vmem:[#allocation2 + $0x30] sm:$0x3] }
 0x1a0   : > { %v5804_v45 = vsel %vm2499_vm3, %v2542_v58, %v2551_v60  ;;  %v5830_v19 = vsel %vm3137_vm7, %v3143_v48, %v3145_v24  ;;  %v2839_v23 = vrot.slane %v5776_v17, 2  ;;  %v2987_v62 = vshll.u32 %v5776_v17, 16  ;;  %v4418_v60 = vld [vmem:[%s5991_s3 + $0x210] sm:$0xff] }
 0x1a1   : > { %v5833_v55 = vsel %vm3137_vm7, %v3145_v24, %v3147_v6  ;;  %v2973_v58 = vor.u32 %v2972_v42, %v2969_v40  ;;  %v2986_v56 = vrot.slane %v2984_v51, 2  ;;  %v2679_v0 = vrot.slane %v5752_v3, 2 }
 0x1a2   : > { %2091 = vmatmul.bf16.gmra.mxu1 %v2009_v49  ;;  %v2840_v59 = vsel %vm2671_vm6, %v2837_v32, %v2839_v23  ;;  %v2989_v10 = vrot.slane %v2987_v62, 3  ;;  %v2842_v14 = vsel %vm2671_vm6, %v2839_v23, %v2841_v46  ;;  %v2843_v41 = vrot.slane %v5819_v5, 2 }
 0x1a3   : > { %v2982_v31 = vsel %vm2965_vm4, %v2973_v58, %v2981_v34  ;;  %3207 = vmatpush.bf16.msra.mxu1 %v4418_v60  ;;  %v2680_v17 = vsel %vm2671_vm6, %v2677_v11, %v2679_v0  ;;  %v3002_v30 = vshrl.u32 %v5819_v5, 16  ;;  %v2829_v24 = vunpack.c.l.b16 %v2790_v57 }
 0x1a4   : > { %v2990_v49 = vor.u32 %v2989_v10, %v2986_v56  ;;  %v2844_v21 = vsel %vm2671_vm6, %v2841_v46, %v2843_v41  ;;  %v3014_v56 = vshll.u32 %v5821_v16, 16 }
 0x1a6   : > { %2462 = vmatmul.bf16.gmra.mxu0 %v2380_v47  ;;  %v2991_v50 = vsel %vm2965_vm4, %v2981_v34, %v2990_v49 }
 0x1a7   : > { %3208 = vmatpush.bf16.msra.mxu1 %v4417_v61 }
 0x1ab   : > { %2749 = vmatmul.bf16.gmra.mxu2 %v2676_v38  ;;  %v2681_v38 = vrot.slane %v5781_v37, 2 }
 0x1ad   : > { %v2682_v7 = vsel %vm2671_vm6, %v2679_v0, %v2681_v38  ;;  %v3016_v0 = vrot.slane %v3014_v56, 3 }
 0x1ae   : > { %2908 = vmatmul.bf16.vlgmr.msra.gmra.mxu3 %v2838_v43  ;;  %v3004_v43 = vrot.slane %v3002_v30, 2 }
 0x1b2   : > { %2614 = vmatmul.bf16.vlgmr.msrb.gmra.mxu1 %v5703_v44  ;;  %v2678_v44 = vsel %vm2671_vm6, %v2675_v25, %v2677_v11  ;;  %v2993_v25 = vshrl.u32 %v5801_v2, 16 }
 0x1b4   : > { %v2995_v3 = vrot.slane %v2993_v25, 2 }
 0x1b6   : > { %3080 = vmatmul.bf16.vlgmr.msra.gmra.mxu0 %v2982_v31  ;;  %v2835_v31 = vpack.c.b16 %v2829_v24, %v2829_v24 }
 0x1b8   : > { %v2845_v51 = vrot.slane %v2835_v31, 2 }
 0x1bb   : > { %2754 = vmatmul.bf16.gmra.mxu2 %v2678_v44 }
 0x1be   : > { %2913 = vmatmul.bf16.gmra.mxu3 %v2840_v59  ;;  %v3011_v59 = vshrl.u32 %v5821_v16, 16 }
 0x1c0   : > { %v3013_v60 = vrot.slane %v3011_v59, 2 }
 0x1c2   : > { %2619 = vmatmul.bf16.gmra.mxu1 %v5747_v1  ;;  %v2996_v1 = vshll.u32 %v5801_v2, 16  ;;  %v4416_v2 = vld [vmem:[%s5991_s3 + $0x200] sm:$0xff]  ;;  %v3017_v61 = vor.u32 %v3016_v0, %v3013_v60 }
 0x1c3   : > { %3209 = vmatpush.bf16.msra.mxu1 %v4416_v2 }
 0x1c4   : > { %v2998_v29 = vrot.slane %v2996_v1, 3 }
 0x1c6   : > { %3085 = vmatmul.bf16.gmra.mxu0 %v2991_v50  ;;  %v2999_v48 = vor.u32 %v2998_v29, %v2995_v3 }
 0x1c8   : > { %v3000_v32 = vsel %vm2965_vm4, %v2990_v49, %v2999_v48  ;;  %v2846_v49 = vsel %vm2671_vm6, %v2843_v41, %v2845_v51 }
 0x1cb   : > { %2759 = vmatmul.bf16.gmra.mxu2 %v2680_v17 }
 0x1ce   : > { %v2159_v47 = vpop.f32.mrf.mxu2  ;;  %2918 = vmatmul.bf16.gmra.mxu3 %v2842_v14 }
 0x1d2   : > { %2624 = vmatmul.bf16.gmra.mxu1 %v5763_v28  ;;  %v3005_v28 = vshll.u32 %v5819_v5, 16 }
 0x1d4   : > { %v3007_v53 = vrot.slane %v3005_v28, 3 }
 0x1d6   : > { %v2161_v8 = vpop.f32.mrf.mxu2  ;;  %3090 = vmatmul.bf16.gmra.mxu0 %v3000_v32  ;;  %v3008_v34 = vor.u32 %v3007_v53, %v3004_v43 }
 0x1d8   : > { %v3009_v54 = vsel %vm2965_vm4, %v2999_v48, %v3008_v34  ;;  %v3018_v16 = vsel %vm2965_vm4, %v3008_v34, %v3017_v61 }
 0x1db   : > { %2764 = vmatmul.bf16.gmra.mxu2 %v2682_v7 }
 0x1dd   : > { %v2072_v33 = vpop.f32.mrf.mxu1 }
 0x1de   : > { %v2160_v37 = vadd.f32 %v2159_v47, %v2072_v33  ;;  %2923 = vmatmul.bf16.gmra.mxu3 %v2844_v21  ;;  %v2164_v40 = vpop.f32.mrf.mxu2 }
 0x1e1   : > { %v2279_v35 = vpop.f32.mrf.mxu3 }
 0x1e2   : > { %v2304_v42 = vadd.f32 %v2279_v35, %v2160_v37  ;;  %2629 = vmatmul.bf16.gmra.mxu1 %v5791_v20 }
 0x1e3   : > { %v2443_v6 = vpop.f32.mrf.mxu0 }
 0x1e4   : > { %v5871_v58 = vadd.f32 %v2443_v6, %v2304_v42 }
 0x1e5   : > { %v2074_v5 = vpop.f32.mrf.mxu1 }
 0x1e6   : > { %v2162_v11 = vadd.f32 %v2161_v8, %v2074_v5  ;;  %3095 = vmatmul.bf16.gmra.mxu0 %v3009_v54  ;;  %v2166_v10 = vpop.f32.mrf.mxu2 }
 0x1e9   : > { %v2281_v44 = vpop.f32.mrf.mxu3 }
 0x1ea   : > { %v2305_v23 = vadd.f32 %v2281_v44, %v2162_v11 }
 0x1eb   : > { %v2445_v62 = vpop.f32.mrf.mxu0 }
 0x1ec   : > { %v5876_v20 = vadd.f32 %v2445_v62, %v2305_v23 }
 0x1ee   : > { %2928 = vmatmul.bf16.gmra.mxu3 %v2846_v49  ;;  %v2169_v14 = vpop.f32.mrf.mxu2 }
 0x1ef   : > { %v2077_v50 = vpop.f32.mrf.mxu1 }
 0x1f0   : > { %v2165_v17 = vadd.f32 %v2164_v40, %v2077_v50 }
 0x1f1   : > { %v2284_v46 = vpop.f32.mrf.mxu3 }
 0x1f2   : > { %2634 = vmatmul.bf16.gmra.mxu1 %v5804_v45  ;;  %v2306_v25 = vadd.f32 %v2284_v46, %v2165_v17 }
 0x1f3   : > { %v2448_v1 = vpop.f32.mrf.mxu0 }
 0x1f4   : > { %v2470_v47 = vadd.f32 %v2448_v1, %v2306_v25 }
 0x1f6   : > { %3100 = vmatmul.bf16.gmra.mxu0 %v3018_v16  ;;  %v2171_v2 = vpop.f32.mrf.mxu2 }
 0x1f7   : > { %v2079_v3 = vpop.f32.mrf.mxu1 }
 0x1f8   : > { %v2167_v29 = vadd.f32 %v2166_v10, %v2079_v3 }
 0x1f9   : > { %v2286_v48 = vpop.f32.mrf.mxu3 }
 0x1fa   : > { %v2307_v38 = vadd.f32 %v2286_v48, %v2167_v29 }
 0x1fb   : > { %v2450_v32 = vpop.f32.mrf.mxu0 }
 0x1fc   : > { %v2471_v8 = vadd.f32 %v2450_v32, %v2307_v38 }
 0x1fe   : > { %v2174_v43 = vpop.f32.mrf.mxu2 }
 0x1ff   : > { %v2082_v7 = vpop.f32.mrf.mxu1 }
 0x200   : > { %v2170_v41 = vadd.f32 %v2169_v14, %v2082_v7 }
 0x201   : > { %v2289_v30 = vpop.f32.mrf.mxu3 }
 0x202   : > { %3210 = vmatmul.bf16.vlgmr.msra.gmra.mxu1 %v5768_v22  ;;  %v2308_v45 = vadd.f32 %v2289_v30, %v2170_v41 }
 0x203   : > { %v2453_v28 = vpop.f32.mrf.mxu0 }
 0x204   : > { %v2472_v33 = vadd.f32 %v2453_v28, %v2308_v45 }
 0x206   : > { %v2176_v5 = vpop.f32.mrf.mxu2 }
 0x207   : > { %v2084_v37 = vpop.f32.mrf.mxu1 }
 0x208   : > { %v2172_v21 = vadd.f32 %v2171_v2, %v2084_v37 }
 0x209   : > { %v2291_v53 = vpop.f32.mrf.mxu3 }
 0x20a   : > { %v2309_v57 = vadd.f32 %v2291_v53, %v2172_v21 }
 0x20b   : > { %v2455_v35 = vpop.f32.mrf.mxu0 }
 0x20c   : > { %v2473_v40 = vadd.f32 %v2455_v35, %v2309_v57 }
 0x20e   : > { %v2179_v62 = vpop.f32.mrf.mxu2 }
 0x20f   : > { %v2087_v42 = vpop.f32.mrf.mxu1 }
 0x210   : > { %v2175_v24 = vadd.f32 %v2174_v43, %v2087_v42 }
 0x211   : > { %v2294_v6 = vpop.f32.mrf.mxu3 }
 0x212   : > { %3215 = vmatmul.bf16.gmra.mxu1 %v5795_v15  ;;  %v2310_v34 = vadd.f32 %v2294_v6, %v2175_v24 }
 0x213   : > { %v2458_v11 = vpop.f32.mrf.mxu0 }
 0x214   : > { %v2474_v31 = vadd.f32 %v2458_v11, %v2310_v34 }
 0x216   : > { %v2181_v15 = vpop.f32.mrf.mxu2 }
 0x217   : > { %v2089_v22 = vpop.f32.mrf.mxu1 }
 0x218   : > { %v2177_v54 = vadd.f32 %v2176_v5, %v2089_v22  ;;  %v5926_v22 = vld [vmem:[%s5992_s4] ss:$0 sm:$0xff] }
 0x219   : > { %v2296_v44 = vpop.f32.mrf.mxu3 }
 0x21a   : > { %v2311_v23 = vadd.f32 %v2296_v44, %v2177_v54 }
 0x21b   : > { %v2460_v51 = vpop.f32.mrf.mxu0 }
 0x21c   : > { %v2475_v59 = vadd.f32 %v2460_v51, %v2311_v23  ;;  %v3260_v51 = vld [vmem:[%s4562_s28 + $0xb] sm:$0xff] }
 0x21f   : > { %v2092_v56 = vpop.f32.mrf.mxu1 }
 0x220   : > { %v2180_v10 = vadd.f32 %v2179_v62, %v2092_v56 }
 0x221   : > { %v2299_v49 = vpop.f32.mrf.mxu3 }
 0x222   : > { %3220 = vmatmul.bf16.gmra.mxu1 %v5814_v18  ;;  %v2312_v60 = vadd.f32 %v2299_v49, %v2180_v10 }
 0x223   : > { %v2463_v0 = vpop.f32.mrf.mxu0 }
 0x224   : > { %v2476_v50 = vadd.f32 %v2463_v0, %v2312_v60 }
 0x227   : > { %v2094_v17 = vpop.f32.mrf.mxu1 }
 0x228   : > { %v2182_v46 = vadd.f32 %v2181_v15, %v2094_v17 }
 0x229   : > { %v2301_v25 = vpop.f32.mrf.mxu3 }
 0x22a   : > { %v2313_v1 = vadd.f32 %v2301_v25, %v2182_v46  ;;  %v3261_v25 = vld [vmem:[%s4562_s28 + $0x13] sm:$0xff] }
 0x22b   : > { %v2465_v61 = vpop.f32.mrf.mxu0 }
 0x22c   : > { %v2477_v14 = vadd.f32 %v2465_v61, %v2313_v1 }
 0x22f   : > { %v2615_v16 = vpop.f32.mrf.mxu1 }
 0x230   : > { %v2640_v3 = vadd.f32 %v2615_v16, %v5871_v58 }
 0x231   : > { %v2909_v37 = vpop.f32.mrf.mxu3 }
 0x232   : > { %3225 = vmatmul.bf16.gmra.mxu1 %v5830_v19  ;;  %v2745_v19 = vpop.f32.mrf.mxu2 }
 0x233   : > { %v2770_v35 = vadd.f32 %v2745_v19, %v2640_v3 }
 0x235   : > { %v2934_v34 = vadd.f32 %v2909_v37, %v2770_v35 }
 0x237   : > { %v2617_v29 = vpop.f32.mrf.mxu1 }
 0x238   : > { %v2641_v48 = vadd.f32 %v2617_v29, %v5876_v20  ;;  %v3081_v20 = vpop.f32.mrf.mxu0 }
 0x239   : > { %v3106_v11 = vadd.f32 %v3081_v20, %v2934_v34 }
 0x23f   : > { %v2620_v18 = vpop.f32.mrf.mxu1 }
 0x240   : > { %v2642_v38 = vadd.f32 %v2620_v18, %v2470_v47  ;;  %v4469_v47 = vmov 0.0   ;;  %v3083_v57 = vpop.f32.mrf.mxu0 }
 0x241   : > { %3300 = vst [vmem:[%s5901_s16] sm:$0xff] %v4469_v47 }
 0x242   : > { %3230 = vmatmul.bf16.gmra.mxu1 %v5833_v55  ;;  %3301 = vst [vmem:[%s5901_s16 + $0x8] sm:$0xff] %v4469_v47 }
 0x243   : > { %3302 = vst [vmem:[%s5901_s16 + $0x10] sm:$0xff] %v4469_v47 }
 0x244   : > { %3312 = vst [vmem:[%s5901_s16 + $0x60] sm:$0xff] %v4469_v47 }
 0x245   : > { %3313 = vst [vmem:[%s5901_s16 + $0x68] sm:$0xff] %v4469_v47 }
 0x246   : > { %3303 = vst [vmem:[%s5901_s16 + $0x18] sm:$0xff] %v4469_v47 }
 0x247   : > { %v2622_v32 = vpop.f32.mrf.mxu1  ;;  %3304 = vst [vmem:[%s5901_s16 + $0x20] sm:$0xff] %v4469_v47 }
 0x248   : > { %v5888_v2 = vadd.f32 %v2622_v32, %v2471_v8  ;;  %v2747_v8 = vpop.f32.mrf.mxu2  ;;  %3305 = vst [vmem:[%s5901_s16 + $0x28] sm:$0xff] %v4469_v47  ;;  %v3086_v5 = vpop.f32.mrf.mxu0 }
 0x249   : > { %3306 = vst [vmem:[%s5901_s16 + $0x30] sm:$0xff] %v4469_v47 }
 0x24a   : > { %3307 = vst [vmem:[%s5901_s16 + $0x38] sm:$0xff] %v4469_v47 }
 0x24b   : > { %3308 = vst [vmem:[%s5901_s16 + $0x40] sm:$0xff] %v4469_v47 }
 0x24c   : > { %3309 = vst [vmem:[%s5901_s16 + $0x48] sm:$0xff] %v4469_v47 }
 0x24d   : > { %3310 = vst [vmem:[%s5901_s16 + $0x50] sm:$0xff] %v4469_v47 }
 0x24e   : > { %3311 = vst [vmem:[%s5901_s16 + $0x58] sm:$0xff] %v4469_v47 }
 0x24f   : > { %v2625_v7 = vpop.f32.mrf.mxu1 }
 0x250   : > { %v5890_v41 = vadd.f32 %v2625_v7, %v2472_v33  ;;  %v2911_v33 = vpop.f32.mrf.mxu3 }
 0x257   : > { %v2627_v30 = vpop.f32.mrf.mxu1 }
 0x258   : > { %v5892_v45 = vadd.f32 %v2627_v30, %v2473_v40  ;;  %v2750_v40 = vpop.f32.mrf.mxu2  ;;  %v2914_v6 = vpop.f32.mrf.mxu3  ;;  %v3262_v30 = vld [vmem:[%s4562_s28 + $0x1b] sm:$0xff] }
 0x259   : > { %v2772_v60 = vadd.f32 %v2750_v40, %v2642_v38 }
 0x25b   : > { %v2936_v1 = vadd.f32 %v2914_v6, %v2772_v60 }
 0x25d   : > { %v3108_v29 = vadd.f32 %v3086_v5, %v2936_v1 }
 0x25f   : > { %v2630_v58 = vpop.f32.mrf.mxu1 }
 0x260   : > { %v5894_v28 = vadd.f32 %v2630_v58, %v2474_v31  ;;  %v2771_v31 = vadd.f32 %v2747_v8, %v2641_v48  ;;  %v2752_v23 = vpop.f32.mrf.mxu2  ;;  %v2916_v56 = vpop.f32.mrf.mxu3 }
 0x261   : > { %v2773_v48 = vadd.f32 %v2752_v23, %v5888_v2  ;;  %v3264_v23 = vld [vmem:[%s4562_s28 + $0x2b] sm:$0xff] }
 0x262   : > { %v2935_v62 = vadd.f32 %v2911_v33, %v2771_v31 }
 0x263   : > { %v2937_v58 = vadd.f32 %v2916_v56, %v2773_v48  ;;  %v3266_v48 = vld [vmem:[%s4562_s28 + $0x3b] sm:$0xff] }
 0x264   : > { %v3107_v49 = vadd.f32 %v3083_v57, %v2935_v62  ;;  %v3263_v57 = vld [vmem:[%s4562_s28 + $0x23] sm:$0xff] }
 0x267   : > { %v2632_v21 = vpop.f32.mrf.mxu1 }
 0x268   : > { %v5903_v55 = vadd.f32 %v2632_v21, %v2475_v59  ;;  %v2919_v3 = vpop.f32.mrf.mxu3 }
 0x26f   : > { %v2635_v43 = vpop.f32.mrf.mxu1 }
 0x270   : > { %v5912_v53 = vadd.f32 %v2635_v43, %v2476_v50  ;;  %v3088_v50 = vpop.f32.mrf.mxu0  ;;  %v2921_v8 = vpop.f32.mrf.mxu3 }
 0x271   : > { %v3109_v20 = vadd.f32 %v3088_v50, %v2937_v58 }
 0x277   : > { %v2637_v42 = vpop.f32.mrf.mxu1 }
 0x278   : > { %v5921_v24 = vadd.f32 %v2637_v42, %v2477_v14  ;;  %v2755_v14 = vpop.f32.mrf.mxu2  ;;  %v3091_v7 = vpop.f32.mrf.mxu0 }
 0x279   : > { %v2774_v47 = vadd.f32 %v2755_v14, %v5890_v41 }
 0x27b   : > { %v2938_v35 = vadd.f32 %v2919_v3, %v2774_v47 }
 0x27d   : > { %v3110_v34 = vadd.f32 %v3091_v7, %v2938_v35 }
 0x27f   : > { %v3211_v54 = vpop.f32.mrf.mxu1 }
 0x280   : > { %v3236_v44 = vadd.f32 %v3211_v54, %v3106_v11  ;;  %v2757_v21 = vpop.f32.mrf.mxu2  ;;  %v3093_v42 = vpop.f32.mrf.mxu0 }
 0x281   : > { %v2775_v5 = vadd.f32 %v2757_v21, %v5892_v45 }
 0x282   : > { %v3250_v59 = vadd.f32 %v5926_v22, %v3236_v44  ;;  %v2924_v44 = vpop.f32.mrf.mxu3 }
 0x284   : > { %v3270_v10 = vadd.f32 %v3260_v51, %v3250_v59  ;;  %v2939_v51 = vadd.f32 %v2921_v8, %v2775_v5 }
 0x286   : > { %v3280_v0 = vmax.f32 %v3270_v10, 0.0  ;;  %v3111_v10 = vadd.f32 %v3093_v42, %v2939_v51  ;;  %v3268_v42 = vld [vmem:[%s4562_s28 + $0x4b] sm:$0xff] }
 0x287   : > { %v3213_v15 = vpop.f32.mrf.mxu1 }
 0x288   : > { %v3290_v17 = vsel %vm5150_vm0, %v3280_v0, 0.0  ;;  %v3237_v46 = vadd.f32 %v3213_v15, %v3107_v49  ;;  %v2760_v11 = vpop.f32.mrf.mxu2  ;;  %v3096_v56 = vpop.f32.mrf.mxu0  ;;  %v3265_v15 = vld [vmem:[%s4562_s28 + $0x33] sm:$0xff] }
 0x289   : > { %3314 = vst [vmem:[%s5901_s16 + $0xb] sm:$0xff] %v3290_v17  ;;  %v2776_v45 = vadd.f32 %v2760_v11, %v5894_v28 }
 0x28a   : > { %v3251_v61 = vadd.f32 %v5926_v22, %v3237_v46 }
 0x28b   : > { %v2940_v17 = vadd.f32 %v2924_v44, %v2776_v45  ;;  %v3269_v44 = vld [vmem:[%s4562_s28 + $0x53] sm:$0xff] }
 0x28c   : > { %v3271_v16 = vadd.f32 %v3261_v25, %v3251_v61  ;;  %v2926_v25 = vpop.f32.mrf.mxu3 }
 0x28d   : > { %v3112_v61 = vadd.f32 %v3096_v56, %v2940_v17 }
 0x28e   : > { %v3281_v18 = vmax.f32 %v3271_v16, 0.0 }
 0x28f   : > { %v3216_v38 = vpop.f32.mrf.mxu1 }
 0x290   : > { %v3291_v63 = vsel %vm5234_vm10, %v3281_v18, 0.0  ;;  %v3238_v32 = vadd.f32 %v3216_v38, %v3108_v29  ;;  %v2762_v50 = vpop.f32.mrf.mxu2  ;;  %v3098_v16 = vpop.f32.mrf.mxu0 }
 0x291   : > { %3315 = vst [vmem:[%s5901_s16 + $0x13] sm:$0xff] %v3291_v63  ;;  %v2777_v14 = vadd.f32 %v2762_v50, %v5903_v55 }
 0x292   : > { %v3252_v19 = vadd.f32 %v5926_v22, %v3238_v32 }
 0x293   : > { %v2941_v18 = vadd.f32 %v2926_v25, %v2777_v14 }
 0x294   : > { %v3272_v37 = vadd.f32 %v3262_v30, %v3252_v19  ;;  %v2929_v7 = vpop.f32.mrf.mxu3 }
 0x295   : > { %v3113_v30 = vadd.f32 %v3098_v16, %v2941_v18 }
 0x296   : > { %v3282_v2 = vmax.f32 %v3272_v37, 0.0 }
 0x297   : > { %v3218_v33 = vpop.f32.mrf.mxu1 }
 0x298   : > { %v3292_v39 = vsel %vm5283_vm15, %v3282_v2, 0.0  ;;  %v3239_v43 = vadd.f32 %v3218_v33, %v3109_v20  ;;  %v2765_v63 = vpop.f32.mrf.mxu2  ;;  %v3101_v21 = vpop.f32.mrf.mxu0  ;;  %v3267_v20 = vld [vmem:[%s4562_s28 + $0x43] sm:$0xff] }
 0x299   : > { %3316 = vst [vmem:[%s5901_s16 + $0x1b] sm:$0xff] %v3292_v39  ;;  %v2778_v55 = vadd.f32 %v2765_v63, %v5912_v53 }
 0x29a   : > { %v3253_v40 = vadd.f32 %v5926_v22, %v3239_v43 }
 0x29b   : > { %v2942_v47 = vadd.f32 %v2929_v7, %v2778_v55 }
 0x29c   : > { %v3273_v6 = vadd.f32 %v3263_v57, %v3253_v40  ;;  %v2931_v57 = vpop.f32.mrf.mxu3 }
 0x29d   : > { %v3114_v39 = vadd.f32 %v3101_v21, %v2942_v47 }
 0x29e   : > { %v3283_v41 = vmax.f32 %v3273_v6, 0.0 }
 0x29f   : > { %v3221_v31 = vpop.f32.mrf.mxu1 }
 0x2a0   : > { %v3293_v27 = vsel %vm5331_vm8, %v3283_v41, 0.0  ;;  %v3240_v54 = vadd.f32 %v3221_v31, %v3110_v34  ;;  %v2767_v33 = vpop.f32.mrf.mxu2  ;;  %v3103_v5 = vpop.f32.mrf.mxu0 }
 0x2a1   : > { %3317 = vst [vmem:[%s5901_s16 + $0x23] sm:$0xff] %v3293_v27  ;;  %v2779_v43 = vadd.f32 %v2767_v33, %v5921_v24 }
 0x2a2   : > { %v3254_v62 = vadd.f32 %v5926_v22, %v3240_v54 }
 0x2a3   : > { %v2943_v6 = vadd.f32 %v2931_v57, %v2779_v43 }
 0x2a4   : > { %v3274_v59 = vadd.f32 %v3264_v23, %v3254_v62 }
 0x2a5   : > { %v3115_v11 = vadd.f32 %v3103_v5, %v2943_v6 }
 0x2a6   : > { %v3284_v49 = vmax.f32 %v3274_v59, 0.0 }
 0x2a7   : > { %v3223_v60 = vpop.f32.mrf.mxu1 }
 0x2a8   : > { %v3294_v4 = vsel %vm5377_vm1, %v3284_v49, 0.0  ;;  %v3241_v0 = vadd.f32 %v3223_v60, %v3111_v10 }
 0x2a9   : > { %3318 = vst [vmem:[%s5901_s16 + $0x2b] sm:$0xff] %v3294_v4 }
 0x2aa   : > { %v3255_v46 = vadd.f32 %v5926_v22, %v3241_v0 }
 0x2ac   : > { %v3275_v1 = vadd.f32 %v3265_v15, %v3255_v46 }
 0x2ae   : > { %v3285_v28 = vmax.f32 %v3275_v1, 0.0 }
 0x2af   : > { %v3226_v3 = vpop.f32.mrf.mxu1 }
 0x2b0   : > { %v3295_v52 = vsel %vm5416_vm9, %v3285_v28, 0.0  ;;  %v3242_v29 = vadd.f32 %v3226_v3, %v3112_v61 }
 0x2b1   : > { %3319 = vst [vmem:[%s5901_s16 + $0x33] sm:$0xff] %v3295_v52 }
 0x2b2   : > { %v3256_v38 = vadd.f32 %v5926_v22, %v3242_v29 }
 0x2b4   : > { %v3276_v32 = vadd.f32 %v3266_v48, %v3256_v38 }
 0x2b6   : > { %v3286_v58 = vmax.f32 %v3276_v32, 0.0 }
 0x2b7   : > { %v3228_v19 = vpop.f32.mrf.mxu1 }
 0x2b8   : > { %v3296_v9 = vsel %vm5505_vm11, %v3286_v58, 0.0  ;;  %v3243_v37 = vadd.f32 %v3228_v19, %v3113_v30 }
 0x2b9   : > { %3320 = vst [vmem:[%s5901_s16 + $0x3b] sm:$0xff] %v3296_v9 }
 0x2ba   : > { %v3257_v2 = vadd.f32 %v5926_v22, %v3243_v37 }
 0x2bc   : > { %v3277_v8 = vadd.f32 %v3267_v20, %v3257_v2 }
 0x2be   : > { %v3287_v53 = vmax.f32 %v3277_v8, 0.0 }
 0x2bf   : > { %v3231_v12 = vpop.f32.mrf.mxu1 }
 0x2c0   : > { %v3297_v35 = vsel %vm5512_vm13, %v3287_v53, 0.0  ;;  %v3244_v40 = vadd.f32 %v3231_v12, %v3114_v39 }
 0x2c1   : > { %3321 = vst [vmem:[%s5901_s16 + $0x43] sm:$0xff] %v3297_v35 }
 0x2c2   : > { %v3258_v34 = vadd.f32 %v5926_v22, %v3244_v40 }
 0x2c4   : > { %v3278_v41 = vadd.f32 %v3268_v42, %v3258_v34 }
 0x2c6   : > { %v3288_v31 = vmax.f32 %v3278_v41, 0.0 }
 0x2c7   : > { %v3233_v24 = vpop.f32.mrf.mxu1 }
 0x2c8   : > { %v3298_v27 = vsel %vm5605_vm14, %v3288_v31, 0.0  ;;  %v3245_v54 = vadd.f32 %v3233_v24, %v3115_v11 }
 0x2c9   : > { %3322 = vst [vmem:[%s5901_s16 + $0x4b] sm:$0xff] %v3298_v27 }
 0x2ca   : > { %v3259_v36 = vadd.f32 %v5926_v22, %v3245_v54 }
 0x2cc   : > { %v3279_v23 = vadd.f32 %v3269_v44, %v3259_v36 }
 0x2ce   : > { %v3289_v51 = vmax.f32 %v3279_v23, 0.0 }
 0x2d0   : > { %v3299_v62 = vsel %vm5671_vm2, %v3289_v51, 0.0 }
 0x2d1   : > { %3323 = vst [vmem:[%s5901_s16 + $0x53] sm:$0xff] %v3299_v62 }
 0x2d2 PF: > { %s15_s18 = sadd.s32 1, %s4466_s18  }
 0x2d3   : > { %p12_p4 = scmp.ge.s32.totalorder %s15_s18, 4  }
 0x2d5   :  { %14 = sbr.rel (!%p12_p4) target bundleno = 1 (0x1), region = 86 }

// kernel: encoder_forward.8
= control target key start
LH: loop header
LB: loop body
LE: loop exit
PB: predicated region body
PF: predicated region fallthrough
CT: control target
= control target key end

     0   :  { %s3742_s12 = smov 0   ;;  %s5452_s0 = inlined_call_operand.vmem [shape: bf16[32,2048], index: 0, kind: input, shape index: {}]   ;;  %s5453_s1 = inlined_call_operand.vmem [shape: bf16[2048,256], index: 1, kind: input, shape index: {}]   ;;  %s5454_s2 = inlined_call_operand.vmem [shape: f32[1,256], index: 2, kind: input, shape index: {}]   ;;  %s5455_s3 = inlined_call_operand.vmem [shape: f32[32,256], index: 3, kind: output, shape index: {}]  }
   0x1 LB: > { %s2331_s13 = sadd.s32 4294967295, %s3720_s12   ;;  %p2335_p0 = scmp.ge.s32.totalorder %s3720_s12, 1  ;;  %s3720_s12 = sphi %s3742_s12, %s13_s12  }
   0x2   : > { %p139_p1 = scmp.lt.s32.totalorder %s3720_s12, 3 }
   0x4   : > { %p140_p2 = pnand %p2335_p0, %p139_p1 }
   0x5   : > { %s2336_s24 = sshll.u32 (!%p140_p2), %s2331_s13, 1 }
   0x6   : > { %143 = sbr.rel (%p140_p2) target bundleno = 418 (0x1a2), region = 32  ;;  %p166_p3 = scmp.lt.s32.totalorder (!%p140_p2), %s2336_s24, 3 }
   0xb   : > { %v2464_v0 = vld [vmem:[%s5453_s1 + $0x70] sm:$0xf]  ;;  %v3465_v1 = vld [vmem:[%s5453_s1 + $0x74] sm:$0xf0]  ;;  %v2456_v11 = vld [vmem:[%s5453_s1 + $0x60] sm:$0xf] }
   0xc   : > { %v2528_v2 = vld [vmem:[%s5453_s1 + $0xf0] sm:$0xf]  ;;  %v2465_v3 = vor.u32 %v3465_v1, %v2464_v0  ;;  %v3481_v4 = vld [vmem:[%s5453_s1 + $0xf4] sm:$0xf0]  ;;  %v3463_v13 = vld [vmem:[%s5453_s1 + $0x64] sm:$0xf0] }
   0xd   : > { %v2592_v5 = vld [vmem:[%s5453_s1 + $0x170] sm:$0xf]  ;;  %v3497_v6 = vld [vmem:[%s5453_s1 + $0x174] sm:$0xf0]  ;;  %v2529_v7 = vor.u32 %v3481_v4, %v2528_v2  ;;  %v2520_v14 = vld [vmem:[%s5453_s1 + $0xe0] sm:$0xf]  ;;  %v2457_v16 = vor.u32 %v3463_v13, %v2456_v11 }
   0xe   : > { %v2593_v8 = vor.u32 %v3497_v6, %v2592_v5  ;;  %v2656_v9 = vld [vmem:[%s5453_s1 + $0x1f0] sm:$0xf]  ;;  %v3513_v10 = vld [vmem:[%s5453_s1 + $0x1f4] sm:$0xf0]  ;;  %1817 = vmatpush.bf16.msra.mxu0 %v2465_v3  ;;  %v3479_v15 = vld [vmem:[%s5453_s1 + $0xe4] sm:$0xf0] }
   0xf   : > { %v2657_v12 = vor.u32 %v3513_v10, %v2656_v9  ;;  %1831 = vmatpush.bf16.msra.mxu1 %v2529_v7  ;;  %v2521_v17 = vor.u32 %v3479_v15, %v2520_v14  ;;  %v2584_v18 = vld [vmem:[%s5453_s1 + $0x160] sm:$0xf]  ;;  %v3495_v19 = vld [vmem:[%s5453_s1 + $0x164] sm:$0xf0]  ;;  %v2448_v23 = vld [vmem:[%s5453_s1 + $0x50] sm:$0xf] }
  0x10   : > { %1845 = vmatpush.bf16.msra.mxu2 %v2593_v8  ;;  %v2648_v20 = vld [vmem:[%s5453_s1 + $0x1e0] sm:$0xf]  ;;  %v2585_v21 = vor.u32 %v3495_v19, %v2584_v18  ;;  %v3511_v22 = vld [vmem:[%s5453_s1 + $0x1e4] sm:$0xf0]  ;;  %v3461_v24 = vld [vmem:[%s5453_s1 + $0x54] sm:$0xf0] }
  0x11   : > { %1859 = vmatpush.bf16.msra.mxu3 %v2657_v12  ;;  %v2649_v25 = vor.u32 %v3511_v22, %v2648_v20  ;;  %v2512_v26 = vld [vmem:[%s5453_s1 + $0xd0] sm:$0xf]  ;;  %v3477_v27 = vld [vmem:[%s5453_s1 + $0xd4] sm:$0xf0]  ;;  %v2449_v29 = vor.u32 %v3461_v24, %v2448_v23  ;;  %v2440_v35 = vld [vmem:[%s5453_s1 + $0x40] sm:$0xf] }
  0x12   : > { %v2576_v28 = vld [vmem:[%s5453_s1 + $0x150] sm:$0xf]  ;;  %1818 = vmatpush.bf16.msra.mxu0 %v2457_v16  ;;  %v3493_v30 = vld [vmem:[%s5453_s1 + $0x154] sm:$0xf0]  ;;  %v2513_v33 = vor.u32 %v3477_v27, %v2512_v26  ;;  %v3459_v36 = vld [vmem:[%s5453_s1 + $0x44] sm:$0xf0] }
  0x13   : > { %v2640_v31 = vld [vmem:[%s5453_s1 + $0x1d0] sm:$0xf]  ;;  %v3509_v32 = vld [vmem:[%s5453_s1 + $0x1d4] sm:$0xf0]  ;;  %1832 = vmatpush.bf16.msra.mxu1 %v2521_v17  ;;  %v2577_v34 = vor.u32 %v3493_v30, %v2576_v28  ;;  %v2504_v37 = vld [vmem:[%s5453_s1 + $0xc0] sm:$0xf]  ;;  %v2441_v44 = vor.u32 %v3459_v36, %v2440_v35 }
  0x14   : > { %1846 = vmatpush.bf16.msra.mxu2 %v2585_v21  ;;  %v2641_v38 = vor.u32 %v3509_v32, %v2640_v31  ;;  %v3475_v39 = vld [vmem:[%s5453_s1 + $0xc4] sm:$0xf0]  ;;  %v2568_v40 = vld [vmem:[%s5453_s1 + $0x140] sm:$0xf]  ;;  %v2432_v47 = vld [vmem:[%s5453_s1 + $0x30] sm:$0xf] }
  0x15   : > { %1860 = vmatpush.bf16.msra.mxu3 %v2649_v25  ;;  %v3491_v41 = vld [vmem:[%s5453_s1 + $0x144] sm:$0xf0]  ;;  %v2632_v42 = vld [vmem:[%s5453_s1 + $0x1c0] sm:$0xf]  ;;  %v2505_v45 = vor.u32 %v3475_v39, %v2504_v37  ;;  %v3457_v48 = vld [vmem:[%s5453_s1 + $0x34] sm:$0xf0] }
  0x16   : > { %v3507_v43 = vld [vmem:[%s5453_s1 + $0x1c4] sm:$0xf0]  ;;  %1819 = vmatpush.bf16.msra.mxu0 %v2449_v29  ;;  %v2569_v46 = vor.u32 %v3491_v41, %v2568_v40  ;;  %v2496_v49 = vld [vmem:[%s5453_s1 + $0xb0] sm:$0xf]  ;;  %v3473_v51 = vld [vmem:[%s5453_s1 + $0xb4] sm:$0xf0]  ;;  %v2433_v56 = vor.u32 %v3457_v48, %v2432_v47 }
  0x17   : > { %1833 = vmatpush.bf16.msra.mxu1 %v2513_v33  ;;  %v2633_v50 = vor.u32 %v3507_v43, %v2632_v42  ;;  %v2560_v52 = vld [vmem:[%s5453_s1 + $0x130] sm:$0xf]  ;;  %v3489_v53 = vld [vmem:[%s5453_s1 + $0x134] sm:$0xf0]  ;;  %v2497_v57 = vor.u32 %v3473_v51, %v2496_v49  ;;  %v2424_v59 = vld [vmem:[%s5453_s1 + $0x20] sm:$0xf] }
  0x18   : > { %1847 = vmatpush.bf16.msra.mxu2 %v2577_v34  ;;  %v2624_v54 = vld [vmem:[%s5453_s1 + $0x1b0] sm:$0xf]  ;;  %v3505_v55 = vld [vmem:[%s5453_s1 + $0x1b4] sm:$0xf0]  ;;  %v2561_v58 = vor.u32 %v3489_v53, %v2560_v52  ;;  %v3455_v60 = vld [vmem:[%s5453_s1 + $0x24] sm:$0xf0] }
  0x19   : > { %1861 = vmatpush.bf16.msra.mxu3 %v2641_v38  ;;  %v2488_v61 = vld [vmem:[%s5453_s1 + $0xa0] sm:$0xf]  ;;  %v2625_v62 = vor.u32 %v3505_v55, %v2624_v54  ;;  %v3471_v63 = vld [vmem:[%s5453_s1 + $0xa4] sm:$0xf0]  ;;  %v2425_v4 = vor.u32 %v3455_v60, %v2424_v59  ;;  %v2416_v7 = vld [vmem:[%s5453_s1 + $0x10] sm:$0xf] }
  0x1a   : > { %1820 = vmatpush.bf16.msra.mxu0 %v2441_v44  ;;  %v2552_v0 = vld [vmem:[%s5453_s1 + $0x120] sm:$0xf]  ;;  %v3487_v1 = vld [vmem:[%s5453_s1 + $0x124] sm:$0xf0]  ;;  %v2489_v5 = vor.u32 %v3471_v63, %v2488_v61  ;;  %v3453_v8 = vld [vmem:[%s5453_s1 + $0x14] sm:$0xf0] }
  0x1b   : > { %1834 = vmatpush.bf16.msra.mxu1 %v2505_v45  ;;  %v2616_v2 = vld [vmem:[%s5453_s1 + $0x1a0] sm:$0xf]  ;;  %v3503_v3 = vld [vmem:[%s5453_s1 + $0x1a4] sm:$0xf0]  ;;  %v2553_v6 = vor.u32 %v3487_v1, %v2552_v0  ;;  %v2480_v9 = vld [vmem:[%s5453_s1 + $0x90] sm:$0xf]  ;;  %v2417_v16 = vor.u32 %v3453_v8, %v2416_v7 }
  0x1c   : > { %1848 = vmatpush.bf16.msra.mxu2 %v2569_v46  ;;  %v2617_v10 = vor.u32 %v3503_v3, %v2616_v2  ;;  %v3469_v11 = vld [vmem:[%s5453_s1 + $0x94] sm:$0xf0]  ;;  %v2544_v12 = vld [vmem:[%s5453_s1 + $0x110] sm:$0xf]  ;;  %v2408_v17 = vld [vmem:[%s5453_s1] sm:$0xf] }
  0x1d   : > { %1862 = vmatpush.bf16.msra.mxu3 %v2633_v50  ;;  %v3485_v13 = vld [vmem:[%s5453_s1 + $0x114] sm:$0xf0]  ;;  %v2608_v14 = vld [vmem:[%s5453_s1 + $0x190] sm:$0xf]  ;;  %v3451_v18 = vld [vmem:[%s5453_s1 + $0x4] sm:$0xf0]  ;;  %v2481_v19 = vor.u32 %v3469_v11, %v2480_v9 }
  0x1e   : > { %1821 = vmatpush.bf16.msra.mxu0 %v2433_v56  ;;  %v3501_v15 = vld [vmem:[%s5453_s1 + $0x194] sm:$0xf0]  ;;  %v2545_v20 = vor.u32 %v3485_v13, %v2544_v12  ;;  %v2472_v21 = vld [vmem:[%s5453_s1 + $0x80] sm:$0xf]  ;;  %v3467_v22 = vld [vmem:[%s5453_s1 + $0x84] sm:$0xf0]  ;;  %v2409_v31 = vor.u32 %v3451_v18, %v2408_v17 }
  0x1f   : > { %1835 = vmatpush.bf16.msra.mxu1 %v2497_v57  ;;  %v2536_v23 = vld [vmem:[%s5453_s1 + $0x100] sm:$0xf]  ;;  %v2609_v24 = vor.u32 %v3501_v15, %v2608_v14  ;;  %v3483_v25 = vld [vmem:[%s5453_s1 + $0x104] sm:$0xf0]  ;;  %v2720_v28 = vld [vmem:[%s5453_s1 + $0x270] sm:$0xf]  ;;  %v2473_v35 = vor.u32 %v3467_v22, %v2472_v21 }
  0x20   : > { %1849 = vmatpush.bf16.msra.mxu2 %v2561_v58  ;;  %v2600_v26 = vld [vmem:[%s5453_s1 + $0x180] sm:$0xf]  ;;  %v3499_v27 = vld [vmem:[%s5453_s1 + $0x184] sm:$0xf0]  ;;  %v3529_v29 = vld [vmem:[%s5453_s1 + $0x274] sm:$0xf0]  ;;  %v2537_v36 = vor.u32 %v3483_v25, %v2536_v23 }
  0x21   : > { %1863 = vmatpush.bf16.msra.mxu3 %v2625_v62  ;;  %v2784_v30 = vld [vmem:[%s5453_s1 + $0x2f0] sm:$0xf]  ;;  %v3545_v32 = vld [vmem:[%s5453_s1 + $0x2f4] sm:$0xf0]  ;;  %v2601_v39 = vor.u32 %v3499_v27, %v2600_v26  ;;  %v2721_v40 = vor.u32 %v3529_v29, %v2720_v28  ;;  %v2712_v43 = vld [vmem:[%s5453_s1 + $0x260] sm:$0xf] }
  0x22   : > { %1822 = vmatpush.bf16.msra.mxu0 %v2425_v4  ;;  %v2848_v33 = vld [vmem:[%s5453_s1 + $0x370] sm:$0xf]  ;;  %v3561_v34 = vld [vmem:[%s5453_s1 + $0x374] sm:$0xf0]  ;;  %v2785_v41 = vor.u32 %v3545_v32, %v2784_v30  ;;  %v3527_v44 = vld [vmem:[%s5453_s1 + $0x264] sm:$0xf0] }
  0x23   : > { %1836 = vmatpush.bf16.msra.mxu1 %v2489_v5  ;;  %v2912_v37 = vld [vmem:[%s5453_s1 + $0x3f0] sm:$0xf]  ;;  %v3577_v38 = vld [vmem:[%s5453_s1 + $0x3f4] sm:$0xf0]  ;;  %v2849_v42 = vor.u32 %v3561_v34, %v2848_v33  ;;  %v2776_v45 = vld [vmem:[%s5453_s1 + $0x2e0] sm:$0xf]  ;;  %v2713_v52 = vor.u32 %v3527_v44, %v2712_v43 }
  0x24   : > { %1850 = vmatpush.bf16.msra.mxu2 %v2553_v6  ;;  %v2913_v46 = vor.u32 %v3577_v38, %v2912_v37  ;;  %v3543_v47 = vld [vmem:[%s5453_s1 + $0x2e4] sm:$0xf0]  ;;  %v2840_v48 = vld [vmem:[%s5453_s1 + $0x360] sm:$0xf]  ;;  %v2704_v53 = vld [vmem:[%s5453_s1 + $0x250] sm:$0xf] }
  0x25   : > { %1864 = vmatpush.bf16.msra.mxu3 %v2617_v10  ;;  %v3559_v49 = vld [vmem:[%s5453_s1 + $0x364] sm:$0xf0]  ;;  %v2904_v50 = vld [vmem:[%s5453_s1 + $0x3e0] sm:$0xf]  ;;  %v3525_v54 = vld [vmem:[%s5453_s1 + $0x254] sm:$0xf0]  ;;  %v2777_v55 = vor.u32 %v3543_v47, %v2776_v45 }
  0x26   : > { %1823 = vmatpush.bf16.msra.mxu0 %v2417_v16  ;;  %v3575_v51 = vld [vmem:[%s5453_s1 + $0x3e4] sm:$0xf0]  ;;  %v2841_v56 = vor.u32 %v3559_v49, %v2840_v48  ;;  %v2768_v57 = vld [vmem:[%s5453_s1 + $0x2d0] sm:$0xf]  ;;  %v3541_v58 = vld [vmem:[%s5453_s1 + $0x2d4] sm:$0xf0]  ;;  %v2705_v2 = vor.u32 %v3525_v54, %v2704_v53 }
  0x27   : > { %1837 = vmatpush.bf16.msra.mxu1 %v2481_v19  ;;  %v2832_v59 = vld [vmem:[%s5453_s1 + $0x350] sm:$0xf]  ;;  %v2905_v60 = vor.u32 %v3575_v51, %v2904_v50  ;;  %v3557_v61 = vld [vmem:[%s5453_s1 + $0x354] sm:$0xf0]  ;;  %s5457_s24 = smov (!%p166_p3, %s2336_s24), 3  ;;  %v2769_v6 = vor.u32 %v3541_v58, %v2768_v57 }
  0x28   : > { %1851 = vmatpush.bf16.msra.mxu2 %v2545_v20  ;;  %v2896_v62 = vld [vmem:[%s5453_s1 + $0x3d0] sm:$0xf]  ;;  %v3573_v63 = vld [vmem:[%s5453_s1 + $0x3d4] sm:$0xf0]  ;;  %v2696_v0 = vld [vmem:[%s5453_s1 + $0x240] sm:$0xf]  ;;  %v2833_v7 = vor.u32 %v3557_v61, %v2832_v59 }
  0x29   : > { %1865 = vmatpush.bf16.msra.mxu3 %v2609_v24  ;;  %v3523_v1 = vld [vmem:[%s5453_s1 + $0x244] sm:$0xf0]  ;;  %v2760_v3 = vld [vmem:[%s5453_s1 + $0x2c0] sm:$0xf]  ;;  %s3432_s26 = sshll.u32 %s5457_s24, 6  ;;  %v2897_v11 = vor.u32 %v3573_v63, %v2896_v62  ;;  %s3433_s5 = sshll.u32 %s5457_s24, 4 }
  0x2a   : > { %1824 = vmatpush.bf16.msra.mxu0 %v2409_v31  ;;  %v3539_v4 = vld [vmem:[%s5453_s1 + $0x2c4] sm:$0xf0]  ;;  %v2824_v5 = vld [vmem:[%s5453_s1 + $0x340] sm:$0xf]  ;;  %s4046_s7 = scalar_lea.vmem %s5452_s0, %s3432_s26  ;;  %v2697_v19 = vor.u32 %v3523_v1, %v2696_v0  ;;  %v2688_v26 = vld [vmem:[%s5453_s1 + $0x230] sm:$0xf]  ;;  %s5442_s9 = scalar_lea.vmem %s5455_s3, %s3433_s5 }
  0x2b   : > { %1838 = vmatpush.bf16.msra.mxu1 %v2473_v35  ;;  %v3555_v8 = vld [vmem:[%s5453_s1 + $0x344] sm:$0xf0]  ;;  %v2888_v9 = vld [vmem:[%s5453_s1 + $0x3c0] sm:$0xf]  ;;  %v3434_v17 = vld [vmem:[%s4046_s7 + $0x4] sm:$0xf]  ;;  %v2761_v24 = vor.u32 %v3539_v4, %v2760_v3 }
  0x2c   : > { %1852 = vmatpush.bf16.msra.mxu2 %v2537_v36  ;;  %v3571_v10 = vld [vmem:[%s5453_s1 + $0x3c4] sm:$0xf0]  ;;  %v2344_v12 = vld [vmem:[%s4046_s7] sm:$0xf]  ;;  %v2346_v18 = vld [vmem:[%s4046_s7 + $0x40] sm:$0xf0]  ;;  %v2825_v25 = vor.u32 %v3555_v8, %v2824_v5 }
  0x2d   : > { %1866 = vmatpush.bf16.msra.mxu3 %v2601_v39  ;;  %v3442_v13 = vld [vmem:[%s4046_s7 + $0x3c] sm:$0xf0]  ;;  %v2352_v14 = vld [vmem:[%s4046_s7 + $0x8] sm:$0xf]  ;;  %v4058_v21 = vor.u32 %v3434_v17, %v2346_v18  ;;  %v3435_v22 = vld [vmem:[%s4046_s7 + $0xc] sm:$0xf]  ;;  %v2889_v30 = vor.u32 %v3571_v10, %v2888_v9 }
  0x2e   : > { %1873 = vmatpush.bf16.msrb.mxu0 %v2721_v40  ;;  %v4051_v15 = vor.u32 %v3442_v13, %v2344_v12  ;;  %v3443_v16 = vld [vmem:[%s4046_s7 + $0x44] sm:$0xf0]  ;;  %v2354_v23 = vld [vmem:[%s4046_s7 + $0x48] sm:$0xf0]  ;;  %v3521_v27 = vld [vmem:[%s5453_s1 + $0x234] sm:$0xf0] }
  0x2f   : > { %1887 = vmatpush.bf16.msrb.mxu1 %v2785_v41  ;;  %v4056_v20 = vor.u32 %v3443_v16, %v2352_v14  ;;  %v2752_v28 = vld [vmem:[%s5453_s1 + $0x2b0] sm:$0xf]  ;;  %v4071_v29 = vor.u32 %v3435_v22, %v2354_v23  ;;  %v3537_v31 = vld [vmem:[%s5453_s1 + $0x2b4] sm:$0xf0]  ;;  %v2689_v36 = vor.u32 %v3521_v27, %v2688_v26  ;;  %v2680_v39 = vld [vmem:[%s5453_s1 + $0x220] sm:$0xf] }
  0x30   : > { %1901 = vmatpush.bf16.msrb.mxu2 %v2849_v42  ;;  %1825 = vmatmul.bf16.vlgmr.msra.gmra.mxu0 %v4051_v15  ;;  %v2816_v32 = vld [vmem:[%s5453_s1 + $0x330] sm:$0xf]  ;;  %v3553_v33 = vld [vmem:[%s5453_s1 + $0x334] sm:$0xf0]  ;;  %v2753_v37 = vor.u32 %v3537_v31, %v2752_v28  ;;  %v3519_v40 = vld [vmem:[%s5453_s1 + $0x224] sm:$0xf0] }
  0x31   : > { %1915 = vmatpush.bf16.msrb.mxu3 %v2913_v46  ;;  %1853 = vmatmul.bf16.vlgmr.msra.gmra.mxu2 %v4056_v20  ;;  %v2880_v34 = vld [vmem:[%s5453_s1 + $0x3b0] sm:$0xf]  ;;  %v3569_v35 = vld [vmem:[%s5453_s1 + $0x3b4] sm:$0xf0]  ;;  %v2817_v38 = vor.u32 %v3553_v33, %v2816_v32  ;;  %v2744_v41 = vld [vmem:[%s5453_s1 + $0x2a0] sm:$0xf]  ;;  %v2681_v48 = vor.u32 %v3519_v40, %v2680_v39 }
  0x32   : > { %1874 = vmatpush.bf16.msrb.mxu0 %v2713_v52  ;;  %1839 = vmatmul.bf16.vlgmr.msra.gmra.mxu1 %v4058_v21  ;;  %v2881_v42 = vor.u32 %v3569_v35, %v2880_v34  ;;  %v3535_v43 = vld [vmem:[%s5453_s1 + $0x2a4] sm:$0xf0]  ;;  %v2808_v44 = vld [vmem:[%s5453_s1 + $0x320] sm:$0xf]  ;;  %v2672_v49 = vld [vmem:[%s5453_s1 + $0x210] sm:$0xf] }
  0x33   : > { %1888 = vmatpush.bf16.msrb.mxu1 %v2777_v55  ;;  %1867 = vmatmul.bf16.vlgmr.msra.gmra.mxu3 %v4071_v29  ;;  %v3551_v45 = vld [vmem:[%s5453_s1 + $0x324] sm:$0xf0]  ;;  %v2872_v46 = vld [vmem:[%s5453_s1 + $0x3a0] sm:$0xf]  ;;  %v2745_v50 = vor.u32 %v3535_v43, %v2744_v41  ;;  %v3517_v52 = vld [vmem:[%s5453_s1 + $0x214] sm:$0xf0] }
  0x34   : > { %1902 = vmatpush.bf16.msrb.mxu2 %v2841_v56  ;;  %v3567_v47 = vld [vmem:[%s5453_s1 + $0x3a4] sm:$0xf0]  ;;  %v2809_v51 = vor.u32 %v3551_v45, %v2808_v44  ;;  %v2736_v53 = vld [vmem:[%s5453_s1 + $0x290] sm:$0xf]  ;;  %v3533_v54 = vld [vmem:[%s5453_s1 + $0x294] sm:$0xf0]  ;;  %v2673_v62 = vor.u32 %v3517_v52, %v2672_v49 }
  0x35   : > { %1916 = vmatpush.bf16.msrb.mxu3 %v2905_v60  ;;  %v2873_v55 = vor.u32 %v3567_v47, %v2872_v46  ;;  %v2800_v56 = vld [vmem:[%s5453_s1 + $0x310] sm:$0xf]  ;;  %v3549_v57 = vld [vmem:[%s5453_s1 + $0x314] sm:$0xf0]  ;;  %v2664_v60 = vld [vmem:[%s5453_s1 + $0x200] sm:$0xf]  ;;  %v2737_v3 = vor.u32 %v3533_v54, %v2736_v53 }
  0x36   : > { %1875 = vmatpush.bf16.msrb.mxu0 %v2705_v2  ;;  %v2864_v58 = vld [vmem:[%s5453_s1 + $0x390] sm:$0xf]  ;;  %v3565_v59 = vld [vmem:[%s5453_s1 + $0x394] sm:$0xf0]  ;;  %v3515_v61 = vld [vmem:[%s5453_s1 + $0x204] sm:$0xf0]  ;;  %v2801_v4 = vor.u32 %v3549_v57, %v2800_v56 }
  0x37   : > { %1889 = vmatpush.bf16.msrb.mxu1 %v2769_v6  ;;  %v2728_v63 = vld [vmem:[%s5453_s1 + $0x280] sm:$0xf]  ;;  %v3531_v0 = vld [vmem:[%s5453_s1 + $0x284] sm:$0xf0]  ;;  %v2865_v8 = vor.u32 %v3565_v59, %v2864_v58  ;;  %v3593_v9 = vld [vmem:[%s5453_s1 + $0x474] sm:$0xf0]  ;;  %v2665_v16 = vor.u32 %v3515_v61, %v2664_v60 }
  0x38   : > { %1903 = vmatpush.bf16.msrb.mxu2 %v2833_v7  ;;  %v2792_v1 = vld [vmem:[%s5453_s1 + $0x300] sm:$0xf]  ;;  %v3547_v2 = vld [vmem:[%s5453_s1 + $0x304] sm:$0xf0]  ;;  %v2976_v7 = vld [vmem:[%s5453_s1 + $0x470] sm:$0xf]  ;;  %v2729_v22 = vor.u32 %v3531_v0, %v2728_v63 }
  0x39   : > { %1917 = vmatpush.bf16.msrb.mxu3 %v2897_v11  ;;  %v2856_v5 = vld [vmem:[%s5453_s1 + $0x380] sm:$0xf]  ;;  %v3563_v6 = vld [vmem:[%s5453_s1 + $0x384] sm:$0xf0]  ;;  %v3040_v10 = vld [vmem:[%s5453_s1 + $0x4f0] sm:$0xf]  ;;  %v2793_v23 = vor.u32 %v3547_v2, %v2792_v1  ;;  %v2977_v28 = vor.u32 %v3593_v9, %v2976_v7 }
  0x3a   : > { %1876 = vmatpush.bf16.msrb.mxu0 %v2697_v19  ;;  %v3609_v11 = vld [vmem:[%s5453_s1 + $0x4f4] sm:$0xf0]  ;;  %v3104_v12 = vld [vmem:[%s5453_s1 + $0x570] sm:$0xf]  ;;  %v3436_v26 = vld [vmem:[%s4046_s7 + $0x14] sm:$0xf]  ;;  %v2857_v27 = vor.u32 %v3563_v6, %v2856_v5 }
  0x3b   : > { %1890 = vmatpush.bf16.msrb.mxu1 %v2761_v24  ;;  %v3625_v13 = vld [vmem:[%s5453_s1 + $0x574] sm:$0xf0]  ;;  %v3168_v14 = vld [vmem:[%s5453_s1 + $0x5f0] sm:$0xf]  ;;  %v3437_v31 = vld [vmem:[%s4046_s7 + $0x1c] sm:$0xf]  ;;  %v3041_v33 = vor.u32 %v3609_v11, %v3040_v10 }
  0x3c   : > { %1904 = vmatpush.bf16.msrb.mxu2 %v2825_v25  ;;  %v3641_v17 = vld [vmem:[%s5453_s1 + $0x5f4] sm:$0xf0]  ;;  %v2360_v18 = vld [vmem:[%s4046_s7 + $0x10] sm:$0xf]  ;;  %v2370_v32 = vld [vmem:[%s4046_s7 + $0x58] sm:$0xf0]  ;;  %v3105_v34 = vor.u32 %v3625_v13, %v3104_v12 }
  0x3d   : > { %1918 = vmatpush.bf16.msrb.mxu3 %v2889_v30  ;;  %v3444_v19 = vld [vmem:[%s4046_s7 + $0x4c] sm:$0xf0]  ;;  %v2368_v24 = vld [vmem:[%s4046_s7 + $0x18] sm:$0xf]  ;;  %v2362_v30 = vld [vmem:[%s4046_s7 + $0x50] sm:$0xf0]  ;;  %v4226_v47 = vor.u32 %v3437_v31, %v2370_v32 }
  0x3e   : > { %1877 = vmatpush.bf16.msrb.mxu0 %v2689_v36  ;;  %v3445_v25 = vld [vmem:[%s4046_s7 + $0x54] sm:$0xf0]  ;;  %v2968_v35 = vld [vmem:[%s5453_s1 + $0x460] sm:$0xf]  ;;  %v3591_v36 = vld [vmem:[%s5453_s1 + $0x464] sm:$0xf0]  ;;  %v4205_v39 = vor.u32 %v3444_v19, %v2360_v18  ;;  %v4218_v44 = vor.u32 %v3436_v26, %v2362_v30 }
  0x3f   : > { %1891 = vmatpush.bf16.msrb.mxu1 %v2753_v37  ;;  %v3032_v37 = vld [vmem:[%s5453_s1 + $0x4e0] sm:$0xf]  ;;  %v3607_v40 = vld [vmem:[%s5453_s1 + $0x4e4] sm:$0xf0]  ;;  %v4216_v43 = vor.u32 %v3445_v25, %v2368_v24  ;;  %v3589_v52 = vld [vmem:[%s5453_s1 + $0x454] sm:$0xf0] }
  0x40   : > { %1905 = vmatpush.bf16.msrb.mxu2 %v2817_v38  ;;  %v3169_v38 = vor.u32 %v3641_v17, %v3168_v14  ;;  %v3096_v41 = vld [vmem:[%s5453_s1 + $0x560] sm:$0xf]  ;;  %v3639_v46 = vld [vmem:[%s5453_s1 + $0x5e4] sm:$0xf0]  ;;  %v3033_v49 = vor.u32 %v3607_v40, %v3032_v37  ;;  %v3024_v53 = vld [vmem:[%s5453_s1 + $0x4d0] sm:$0xf] }
  0x41   : > { %1919 = vmatpush.bf16.msrb.mxu3 %v2881_v42  ;;  %v3623_v42 = vld [vmem:[%s5453_s1 + $0x564] sm:$0xf0]  ;;  %v3160_v45 = vld [vmem:[%s5453_s1 + $0x5e0] sm:$0xf]  ;;  %v3088_v56 = vld [vmem:[%s5453_s1 + $0x550] sm:$0xf] }
  0x42   : > { %1878 = vmatpush.bf16.msrb.mxu0 %v2681_v48  ;;  %v2969_v48 = vor.u32 %v3591_v36, %v2968_v35  ;;  %v3161_v54 = vor.u32 %v3639_v46, %v3160_v45  ;;  %v3621_v57 = vld [vmem:[%s5453_s1 + $0x554] sm:$0xf0]  ;;  %v3152_v58 = vld [vmem:[%s5453_s1 + $0x5d0] sm:$0xf]  ;;  %v2952_v63 = vld [vmem:[%s5453_s1 + $0x440] sm:$0xf] }
  0x43   : > { %1892 = vmatpush.bf16.msrb.mxu1 %v2745_v50  ;;  %v3097_v50 = vor.u32 %v3623_v42, %v3096_v41  ;;  %v3637_v59 = vld [vmem:[%s5453_s1 + $0x5d4] sm:$0xf0]  ;;  %v3587_v0 = vld [vmem:[%s5453_s1 + $0x444] sm:$0xf0]  ;;  %v3016_v1 = vld [vmem:[%s5453_s1 + $0x4c0] sm:$0xf] }
  0x44   : > { %1906 = vmatpush.bf16.msrb.mxu2 %v2809_v51  ;;  %v2960_v51 = vld [vmem:[%s5453_s1 + $0x450] sm:$0xf]  ;;  %v3153_v2 = vor.u32 %v3637_v59, %v3152_v58  ;;  %v3619_v5 = vld [vmem:[%s5453_s1 + $0x544] sm:$0xf0]  ;;  %v3144_v6 = vld [vmem:[%s5453_s1 + $0x5c0] sm:$0xf] }
  0x45   : > { %1920 = vmatpush.bf16.msrb.mxu3 %v2873_v55  ;;  %v3605_v55 = vld [vmem:[%s5453_s1 + $0x4d4] sm:$0xf0]  ;;  %v2961_v60 = vor.u32 %v3589_v52, %v2960_v51  ;;  %v3635_v7 = vld [vmem:[%s5453_s1 + $0x5c4] sm:$0xf0]  ;;  %v2944_v11 = vld [vmem:[%s5453_s1 + $0x430] sm:$0xf] }
  0x46   : > { %1879 = vmatpush.bf16.msrb.mxu0 %v2673_v62  ;;  %v3025_v61 = vor.u32 %v3605_v55, %v3024_v53  ;;  %v3089_v62 = vor.u32 %v3621_v57, %v3088_v56  ;;  %v3585_v12 = vld [vmem:[%s5453_s1 + $0x434] sm:$0xf0]  ;;  %v3008_v13 = vld [vmem:[%s5453_s1 + $0x4b0] sm:$0xf]  ;;  %v3145_v14 = vor.u32 %v3635_v7, %v3144_v6  ;;  %v2936_v26 = vld [vmem:[%s5453_s1 + $0x420] sm:$0xf] }
  0x47   : > { %1893 = vmatpush.bf16.msrb.mxu1 %v2737_v3  ;;  %v3603_v3 = vld [vmem:[%s5453_s1 + $0x4c4] sm:$0xf0]  ;;  %v3072_v17 = vld [vmem:[%s5453_s1 + $0x530] sm:$0xf]  ;;  %v3617_v18 = vld [vmem:[%s5453_s1 + $0x534] sm:$0xf0] }
  0x48   : > { %1907 = vmatpush.bf16.msrb.mxu2 %v2801_v4  ;;  %v3080_v4 = vld [vmem:[%s5453_s1 + $0x540] sm:$0xf]  ;;  %v3017_v9 = vor.u32 %v3603_v3, %v3016_v1  ;;  %v3136_v19 = vld [vmem:[%s5453_s1 + $0x5b0] sm:$0xf]  ;;  %v3073_v25 = vor.u32 %v3617_v18, %v3072_v17  ;;  %v3599_v31 = vld [vmem:[%s5453_s1 + $0x4a4] sm:$0xf0] }
  0x49   : > { %1921 = vmatpush.bf16.msrb.mxu3 %v2865_v8  ;;  %v2953_v8 = vor.u32 %v3587_v0, %v2952_v63  ;;  %v3081_v10 = vor.u32 %v3619_v5, %v3080_v4  ;;  %v3064_v32 = vld [vmem:[%s5453_s1 + $0x520] sm:$0xf]  ;;  %v3631_v35 = vld [vmem:[%s5453_s1 + $0x5a4] sm:$0xf0]  ;;  %v2928_v37 = vld [vmem:[%s5453_s1 + $0x410] sm:$0xf] }
  0x4a   : > { %1880 = vmatpush.bf16.msrb.mxu0 %v2665_v16  ;;  %v3601_v16 = vld [vmem:[%s5453_s1 + $0x4b4] sm:$0xf0]  ;;  %v2992_v42 = vld [vmem:[%s5453_s1 + $0x490] sm:$0xf]  ;;  %v2920_v52 = vld [vmem:[%s5453_s1 + $0x400] sm:$0xf] }
  0x4b   : > { %1894 = vmatpush.bf16.msrb.mxu1 %v2729_v22  ;;  %v3633_v22 = vld [vmem:[%s5453_s1 + $0x5b4] sm:$0xf0]  ;;  %v3009_v24 = vor.u32 %v3601_v16, %v3008_v13  ;;  %v3579_v53 = vld [vmem:[%s5453_s1 + $0x404] sm:$0xf0]  ;;  %v2984_v55 = vld [vmem:[%s5453_s1 + $0x480] sm:$0xf] }
  0x4c   : > { %1908 = vmatpush.bf16.msrb.mxu2 %v2793_v23  ;;  %v2945_v23 = vor.u32 %v3585_v12, %v2944_v11  ;;  %v3137_v30 = vor.u32 %v3633_v22, %v3136_v19  ;;  %v3581_v41 = vld [vmem:[%s5453_s1 + $0x414] sm:$0xf0]  ;;  %v3595_v56 = vld [vmem:[%s5453_s1 + $0x484] sm:$0xf0]  ;;  %v3048_v57 = vld [vmem:[%s5453_s1 + $0x500] sm:$0xf]  ;;  %v2921_v7 = vor.u32 %v3579_v53, %v2920_v52 }
  0x4d   : > { %1922 = vmatpush.bf16.msrb.mxu3 %v2857_v27  ;;  %1881 = vmatmul.bf16.vlgmr.msrb.gmra.mxu0 %v4205_v39  ;;  %v3583_v27 = vld [vmem:[%s5453_s1 + $0x424] sm:$0xf0]  ;;  %v3597_v45 = vld [vmem:[%s5453_s1 + $0x494] sm:$0xf0]  ;;  %v3232_v63 = vld [vmem:[%s5453_s1 + $0x670] sm:$0xf]  ;;  %v2985_v11 = vor.u32 %v3595_v56, %v2984_v55 }
  0x4e   : > { %1929 = vmatpush.bf16.msra.mxu0 %v2977_v28  ;;  %1895 = vmatmul.bf16.vlgmr.msrb.gmra.mxu1 %v4218_v44  ;;  %v3000_v28 = vld [vmem:[%s5453_s1 + $0x4a0] sm:$0xf]  ;;  %v2937_v36 = vor.u32 %v3583_v27, %v2936_v26  ;;  %v3629_v51 = vld [vmem:[%s5453_s1 + $0x594] sm:$0xf0]  ;;  %v3611_v58 = vld [vmem:[%s5453_s1 + $0x504] sm:$0xf0]  ;;  %v2993_v59 = vor.u32 %v3597_v45, %v2992_v42 }
  0x4f   : > { %1943 = vmatpush.bf16.msra.mxu1 %v3041_v33  ;;  %1909 = vmatmul.bf16.vlgmr.msrb.gmra.mxu2 %v4216_v43  ;;  %v3615_v33 = vld [vmem:[%s5453_s1 + $0x524] sm:$0xf0]  ;;  %v3657_v1 = vld [vmem:[%s5453_s1 + $0x674] sm:$0xf0]  ;;  %v3360_v4 = vld [vmem:[%s5453_s1 + $0x770] sm:$0xf]  ;;  %v3049_v12 = vor.u32 %v3611_v58, %v3048_v57 }
  0x50   : > { %1957 = vmatpush.bf16.msra.mxu2 %v3105_v34  ;;  %1923 = vmatmul.bf16.vlgmr.msrb.gmra.mxu3 %v4226_v47  ;;  %v3128_v34 = vld [vmem:[%s5453_s1 + $0x5a0] sm:$0xf]  ;;  %v3065_v40 = vor.u32 %v3615_v33, %v3064_v32  ;;  %v3673_v3 = vld [vmem:[%s5453_s1 + $0x6f4] sm:$0xf0]  ;;  %v3424_v6 = vld [vmem:[%s5453_s1 + $0x7f0] sm:$0xf]  ;;  %v3233_v18 = vor.u32 %v3657_v1, %v3232_v63 }
  0x51   : > { %1971 = vmatpush.bf16.msra.mxu3 %v3169_v38  ;;  %v3001_v38 = vor.u32 %v3599_v31, %v3000_v28  ;;  %v3129_v46 = vor.u32 %v3631_v35, %v3128_v34  ;;  %v3689_v5 = vld [vmem:[%s5453_s1 + $0x774] sm:$0xf0]  ;;  %v2384_v13 = vld [vmem:[%s4046_s7 + $0x28] sm:$0xf]  ;;  %v3438_v16 = vld [vmem:[%s4046_s7 + $0x24] sm:$0xf] }
  0x52   : > { %1930 = vmatpush.bf16.msra.mxu0 %v2969_v48  ;;  %v3056_v48 = vld [vmem:[%s5453_s1 + $0x510] sm:$0xf]  ;;  %v2378_v19 = vld [vmem:[%s4046_s7 + $0x60] sm:$0xf0]  ;;  %v3439_v22 = vld [vmem:[%s4046_s7 + $0x2c] sm:$0xf] }
  0x53   : > { %1944 = vmatpush.bf16.msra.mxu1 %v3033_v49  ;;  %v3613_v49 = vld [vmem:[%s5453_s1 + $0x514] sm:$0xf0]  ;;  %v3224_v26 = vld [vmem:[%s5453_s1 + $0x660] sm:$0xf]  ;;  %v3655_v27 = vld [vmem:[%s5453_s1 + $0x664] sm:$0xf0] }
  0x54   : > { %1958 = vmatpush.bf16.msra.mxu2 %v3097_v50  ;;  %v3120_v50 = vld [vmem:[%s5453_s1 + $0x590] sm:$0xf]  ;;  %v3288_v28 = vld [vmem:[%s5453_s1 + $0x6e0] sm:$0xf]  ;;  %v3671_v32 = vld [vmem:[%s5453_s1 + $0x6e4] sm:$0xf0] }
  0x55   : > { %1972 = vmatpush.bf16.msra.mxu3 %v3161_v54  ;;  %v2929_v54 = vor.u32 %v3581_v41, %v2928_v37  ;;  %v3121_v0 = vor.u32 %v3629_v51, %v3120_v50  ;;  %v3352_v33 = vld [vmem:[%s5453_s1 + $0x760] sm:$0xf]  ;;  %v3687_v34 = vld [vmem:[%s5453_s1 + $0x764] sm:$0xf0]  ;;  %v3225_v41 = vor.u32 %v3655_v27, %v3224_v26  ;;  %v3289_v42 = vor.u32 %v3671_v32, %v3288_v28  ;;  %v3669_v51 = vld [vmem:[%s5453_s1 + $0x6d4] sm:$0xf0] }
  0x56   : > { %1931 = vmatpush.bf16.msra.mxu0 %v2961_v60  ;;  %v3057_v60 = vor.u32 %v3613_v49, %v3056_v48  ;;  %v3416_v37 = vld [vmem:[%s5453_s1 + $0x7e0] sm:$0xf]  ;;  %v3353_v45 = vor.u32 %v3687_v34, %v3352_v33  ;;  %v3653_v48 = vld [vmem:[%s5453_s1 + $0x654] sm:$0xf0]  ;;  %v3280_v49 = vld [vmem:[%s5453_s1 + $0x6d0] sm:$0xf] }
  0x57   : > { %1945 = vmatpush.bf16.msra.mxu1 %v3025_v61  ;;  %v3112_v61 = vld [vmem:[%s5453_s1 + $0x580] sm:$0xf]  ;;  %v3344_v52 = vld [vmem:[%s5453_s1 + $0x750] sm:$0xf]  ;;  %v3685_v53 = vld [vmem:[%s5453_s1 + $0x754] sm:$0xf0]  ;;  %v3281_v57 = vor.u32 %v3669_v51, %v3280_v49 }
  0x58   : > { %1959 = vmatpush.bf16.msra.mxu2 %v3089_v62  ;;  %v3627_v62 = vld [vmem:[%s5453_s1 + $0x584] sm:$0xf0]  ;;  %v3701_v55 = vld [vmem:[%s5453_s1 + $0x7d4] sm:$0xf0]  ;;  %v3345_v58 = vor.u32 %v3685_v53, %v3344_v52  ;;  %v3320_v27 = vld [vmem:[%s5453_s1 + $0x720] sm:$0xf] }
  0x59   : > { %1973 = vmatpush.bf16.msra.mxu3 %v3153_v2  ;;  %v3296_v2 = vld [vmem:[%s5453_s1 + $0x6f0] sm:$0xf]  ;;  %v3113_v17 = vor.u32 %v3627_v62, %v3112_v61  ;;  %v3272_v61 = vld [vmem:[%s5453_s1 + $0x6c0] sm:$0xf]  ;;  %v3667_v63 = vld [vmem:[%s5453_s1 + $0x6c4] sm:$0xf0] }
  0x5a   : > { %1932 = vmatpush.bf16.msra.mxu0 %v2953_v8  ;;  %v3705_v8 = vld [vmem:[%s5453_s1 + $0x7f4] sm:$0xf0]  ;;  %v3683_v1 = vld [vmem:[%s5453_s1 + $0x744] sm:$0xf0]  ;;  %v3184_v34 = vld [vmem:[%s5453_s1 + $0x610] sm:$0xf] }
  0x5b   : > { %1946 = vmatpush.bf16.msra.mxu1 %v3017_v9  ;;  %v2376_v9 = vld [vmem:[%s4046_s7 + $0x20] sm:$0xf]  ;;  %v3663_v26 = vld [vmem:[%s5453_s1 + $0x6a4] sm:$0xf0]  ;;  %v3677_v49 = vld [vmem:[%s5453_s1 + $0x714] sm:$0xf0] }
  0x5c   : > { %1960 = vmatpush.bf16.msra.mxu2 %v3081_v10  ;;  %v3446_v10 = vld [vmem:[%s4046_s7 + $0x5c] sm:$0xf0]  ;;  %v3679_v28 = vld [vmem:[%s5453_s1 + $0x724] sm:$0xf0]  ;;  %v3693_v51 = vld [vmem:[%s5453_s1 + $0x794] sm:$0xf0] }
  0x5d   : > { %1974 = vmatpush.bf16.msra.mxu3 %v3145_v14  ;;  %v3447_v14 = vld [vmem:[%s4046_s7 + $0x64] sm:$0xf0]  ;;  %v4417_v31 = vor.u32 %v3446_v10, %v2376_v9  ;;  %v3264_v9 = vld [vmem:[%s5453_s1 + $0x6b0] sm:$0xf]  ;;  %v3176_v52 = vld [vmem:[%s5453_s1 + $0x600] sm:$0xf] }
  0x5e   : > { %1933 = vmatpush.bf16.msra.mxu0 %v2945_v23  ;;  %v2386_v23 = vld [vmem:[%s4046_s7 + $0x68] sm:$0xf0]  ;;  %v4428_v35 = vor.u32 %v3447_v14, %v2384_v13  ;;  %v3681_v13 = vld [vmem:[%s5453_s1 + $0x734] sm:$0xf0]  ;;  %v3392_v14 = vld [vmem:[%s5453_s1 + $0x7b0] sm:$0xf] }
  0x5f   : > { %1947 = vmatpush.bf16.msra.mxu1 %v3009_v24  ;;  %v3297_v24 = vor.u32 %v3673_v3, %v3296_v2  ;;  %v3400_v2 = vld [vmem:[%s5453_s1 + $0x7c0] sm:$0xf]  ;;  %v3699_v3 = vld [vmem:[%s5453_s1 + $0x7c4] sm:$0xf0] }
  0x60   : > { %1961 = vmatpush.bf16.msra.mxu2 %v3073_v25  ;;  %v3361_v25 = vor.u32 %v3689_v5, %v3360_v4  ;;  %v3273_v5 = vor.u32 %v3667_v63, %v3272_v61  ;;  %v3401_v10 = vor.u32 %v3699_v3, %v3400_v2  ;;  %v3695_v32 = vld [vmem:[%s5453_s1 + $0x7a4] sm:$0xf0]  ;;  %v3368_v61 = vld [vmem:[%s5453_s1 + $0x780] sm:$0xf]  ;;  %v3464_v63 = vld [vmem:[%s5453_s1 + $0x74] sm:$0xf] }
  0x61   : > { %1975 = vmatpush.bf16.msra.mxu3 %v3137_v30  ;;  %v3425_v30 = vor.u32 %v3705_v8, %v3424_v6  ;;  %v3649_v8 = vld [vmem:[%s5453_s1 + $0x634] sm:$0xf0]  ;;  %v3643_v53 = vld [vmem:[%s5453_s1 + $0x604] sm:$0xf0]  ;;  %v3480_v2 = vld [vmem:[%s5453_s1 + $0xf4] sm:$0xf] }
  0x62   : > { %1934 = vmatpush.bf16.msra.mxu0 %v2937_v36  ;;  %v4430_v36 = vor.u32 %v3438_v16, %v2378_v19  ;;  %v3697_v16 = vld [vmem:[%s5453_s1 + $0x7b4] sm:$0xf0]  ;;  %v2530_v3 = vld [vmem:[%s5453_s1 + $0xf8] sm:$0xf0] }
  0x63   : > { %1948 = vmatpush.bf16.msra.mxu1 %v3001_v38  ;;  %v3703_v38 = vld [vmem:[%s5453_s1 + $0x7e4] sm:$0xf0] }
  0x64   : > { %1962 = vmatpush.bf16.msra.mxu2 %v3065_v40  ;;  %v4438_v40 = vor.u32 %v3439_v22, %v2386_v23  ;;  %v3417_v50 = vor.u32 %v3703_v38, %v3416_v37  ;;  %v3192_v22 = vld [vmem:[%s5453_s1 + $0x620] sm:$0xf]  ;;  %v3647_v23 = vld [vmem:[%s5453_s1 + $0x624] sm:$0xf0]  ;;  %v3321_v38 = vor.u32 %v3679_v28, %v3320_v27  ;;  %v2458_v27 = vld [vmem:[%s5453_s1 + $0x68] sm:$0xf0] }
  0x65   : > { %1976 = vmatpush.bf16.msra.mxu3 %v3129_v46  ;;  %v3216_v46 = vld [vmem:[%s5453_s1 + $0x650] sm:$0xf]  ;;  %v3193_v33 = vor.u32 %v3647_v23, %v3192_v22  ;;  %v3441_v22 = vld [vmem:[%s4046_s7 + $0x3c] sm:$0xf]  ;;  %v3478_v28 = vld [vmem:[%s5453_s1 + $0xe4] sm:$0xf] }
  0x66   : > { %1935 = vmatpush.bf16.msra.mxu0 %v2929_v54  ;;  %v3408_v54 = vld [vmem:[%s5453_s1 + $0x7d0] sm:$0xf]  ;;  %v3217_v56 = vor.u32 %v3653_v48, %v3216_v46  ;;  %v2402_v23 = vld [vmem:[%s4046_s7 + $0x78] sm:$0xf0] }
  0x67   : > { %1949 = vmatpush.bf16.msra.mxu1 %v2993_v59  ;;  %v3208_v59 = vld [vmem:[%s5453_s1 + $0x640] sm:$0xf]  ;;  %v3409_v62 = vor.u32 %v3701_v55, %v3408_v54  ;;  %v3312_v48 = vld [vmem:[%s5453_s1 + $0x710] sm:$0xf] }
  0x68   : > { %1963 = vmatpush.bf16.msra.mxu2 %v3057_v60  ;;  %v3651_v60 = vld [vmem:[%s5453_s1 + $0x644] sm:$0xf0]  ;;  %v3240_v55 = vld [vmem:[%s5453_s1 + $0x680] sm:$0xf] }
  0x69   : > { %1977 = vmatpush.bf16.msra.mxu3 %v3121_v0  ;;  %v3336_v0 = vld [vmem:[%s5453_s1 + $0x740] sm:$0xf]  ;;  %v3209_v4 = vor.u32 %v3651_v60, %v3208_v59  ;;  %v3313_v60 = vor.u32 %v3677_v49, %v3312_v48 }
  0x6a   : > { %1936 = vmatpush.bf16.msra.mxu0 %v2921_v7  ;;  %v3337_v6 = vor.u32 %v3683_v1, %v3336_v0  ;;  %v3200_v7 = vld [vmem:[%s5453_s1 + $0x630] sm:$0xf]  ;;  %v2466_v1 = vld [vmem:[%s5453_s1 + $0x78] sm:$0xf0] }
  0x6b   : > { %1950 = vmatpush.bf16.msra.mxu1 %v2985_v11  ;;  %v3665_v11 = vld [vmem:[%s5453_s1 + $0x6b4] sm:$0xf0] }
  0x6c   : > { %1964 = vmatpush.bf16.msra.mxu2 %v3049_v12  ;;  %v3328_v12 = vld [vmem:[%s5453_s1 + $0x730] sm:$0xf] }
  0x6d   : > { %1978 = vmatpush.bf16.msra.mxu3 %v3113_v17  ;;  %1937 = vmatmul.bf16.vlgmr.msra.gmra.mxu0 %v4417_v31  ;;  %v3201_v17 = vor.u32 %v3649_v8, %v3200_v7  ;;  %v3329_v19 = vor.u32 %v3681_v13, %v3328_v12  ;;  %v3177_v7 = vor.u32 %v3643_v53, %v3176_v52  ;;  %v2658_v8 = vld [vmem:[%s5453_s1 + $0x1f8] sm:$0xf0]  ;;  %v2400_v13 = vld [vmem:[%s4046_s7 + $0x38] sm:$0xf]  ;;  %v3476_v53 = vld [vmem:[%s5453_s1 + $0xd4] sm:$0xf] }
  0x6e   : > { %1985 = vmatpush.bf16.msrb.mxu0 %v3233_v18  ;;  %1951 = vmatmul.bf16.vlgmr.msra.gmra.mxu1 %v4430_v36  ;;  %v3265_v18 = vor.u32 %v3665_v11, %v3264_v9  ;;  %v2392_v9 = vld [vmem:[%s4046_s7 + $0x30] sm:$0xf]  ;;  %v2450_v52 = vld [vmem:[%s5453_s1 + $0x58] sm:$0xf0] }
  0x6f   : > { %1999 = vmatpush.bf16.msrb.mxu1 %v3297_v24  ;;  %1965 = vmatmul.bf16.vlgmr.msra.gmra.mxu2 %v4428_v35  ;;  %v3256_v24 = vld [vmem:[%s5453_s1 + $0x6a0] sm:$0xf] }
  0x70   : > { %2013 = vmatpush.bf16.msrb.mxu2 %v3361_v25  ;;  %1979 = vmatmul.bf16.vlgmr.msra.gmra.mxu3 %v4438_v40  ;;  %v3393_v25 = vor.u32 %v3697_v16, %v3392_v14  ;;  %v3257_v37 = vor.u32 %v3663_v26, %v3256_v24  ;;  %v3449_v14 = vld [vmem:[%s4046_s7 + $0x74] sm:$0xf0]  ;;  %v3440_v16 = vld [vmem:[%s4046_s7 + $0x34] sm:$0xf]  ;;  %v2533_v24 = vor.u32 %v3480_v2, %v2530_v3  ;;  %v3462_v26 = vld [vmem:[%s5453_s1 + $0x64] sm:$0xf] }
  0x71   : > { %2027 = vmatpush.bf16.msrb.mxu3 %v3425_v30  ;;  %v3384_v30 = vld [vmem:[%s5453_s1 + $0x7a0] sm:$0xf]  ;;  %v2461_v48 = vor.u32 %v3462_v26, %v2458_v27  ;;  %v2506_v3 = vld [vmem:[%s5453_s1 + $0xc8] sm:$0xf0]  ;;  %v3454_v26 = vld [vmem:[%s5453_s1 + $0x24] sm:$0xf] }
  0x72   : > { %1986 = vmatpush.bf16.msrb.mxu0 %v3225_v41  ;;  %v3645_v41 = vld [vmem:[%s5453_s1 + $0x614] sm:$0xf0]  ;;  %v3385_v46 = vor.u32 %v3695_v32, %v3384_v30  ;;  %v2426_v27 = vld [vmem:[%s5453_s1 + $0x28] sm:$0xf0] }
  0x73   : > { %2000 = vmatpush.bf16.msrb.mxu1 %v3289_v42  ;;  %v3248_v42 = vld [vmem:[%s5453_s1 + $0x690] sm:$0xf]  ;;  %v3185_v54 = vor.u32 %v3645_v41, %v3184_v34  ;;  %v3494_v34 = vld [vmem:[%s5453_s1 + $0x164] sm:$0xf] }
  0x74   : > { %2014 = vmatpush.bf16.msrb.mxu2 %v3353_v45  ;;  %v3661_v45 = vld [vmem:[%s5453_s1 + $0x694] sm:$0xf0] }
  0x75   : > { %2028 = vmatpush.bf16.msrb.mxu3 %v3417_v50  ;;  %v3376_v50 = vld [vmem:[%s5453_s1 + $0x790] sm:$0xf]  ;;  %v3249_v59 = vor.u32 %v3661_v45, %v3248_v42  ;;  %v3510_v42 = vld [vmem:[%s5453_s1 + $0x1e4] sm:$0xf]  ;;  %v2650_v45 = vld [vmem:[%s5453_s1 + $0x1e8] sm:$0xf0] }
  0x76   : > { %1987 = vmatpush.bf16.msrb.mxu0 %v3217_v56  ;;  %v3659_v56 = vld [vmem:[%s5453_s1 + $0x684] sm:$0xf0]  ;;  %v3377_v0 = vor.u32 %v3693_v51, %v3376_v50  ;;  %v3460_v51 = vld [vmem:[%s5453_s1 + $0x54] sm:$0xf] }
  0x77   : > { %2001 = vmatpush.bf16.msrb.mxu1 %v3281_v57  ;;  %v3304_v57 = vld [vmem:[%s5453_s1 + $0x700] sm:$0xf]  ;;  %v3241_v11 = vor.u32 %v3659_v56, %v3240_v55  ;;  %v2514_v55 = vld [vmem:[%s5453_s1 + $0xd8] sm:$0xf0]  ;;  %v3492_v56 = vld [vmem:[%s5453_s1 + $0x154] sm:$0xf] }
  0x78   : > { %2015 = vmatpush.bf16.msrb.mxu2 %v3345_v58  ;;  %v3675_v58 = vld [vmem:[%s5453_s1 + $0x704] sm:$0xf0] }
  0x79   : > { %2029 = vmatpush.bf16.msrb.mxu3 %v3409_v62  ;;  %v3691_v62 = vld [vmem:[%s5453_s1 + $0x784] sm:$0xf0]  ;;  %v3305_v12 = vor.u32 %v3675_v58, %v3304_v57  ;;  %v2578_v57 = vld [vmem:[%s5453_s1 + $0x158] sm:$0xf0]  ;;  %v3508_v58 = vld [vmem:[%s5453_s1 + $0x1d4] sm:$0xf] }
  0x7a   : > { %1988 = vmatpush.bf16.msrb.mxu0 %v3209_v4  ;;  %v3496_v4 = vld [vmem:[%s5453_s1 + $0x174] sm:$0xf] }
  0x7b   : > { %2002 = vmatpush.bf16.msrb.mxu1 %v3273_v5  ;;  %v2594_v5 = vld [vmem:[%s5453_s1 + $0x178] sm:$0xf0] }
  0x7c   : > { %2016 = vmatpush.bf16.msrb.mxu2 %v3337_v6  ;;  %v3512_v6 = vld [vmem:[%s5453_s1 + $0x1f4] sm:$0xf] }
  0x7d   : > { %2030 = vmatpush.bf16.msrb.mxu3 %v3401_v10  ;;  %v3448_v10 = vld [vmem:[%s4046_s7 + $0x6c] sm:$0xf0]  ;;  %v2661_v30 = vor.u32 %v3512_v6, %v2658_v8  ;;  %v3506_v6 = vld [vmem:[%s5453_s1 + $0x1c4] sm:$0xf] }
  0x7e   : > { %1989 = vmatpush.bf16.msrb.mxu0 %v3201_v17  ;;  %v3369_v17 = vor.u32 %v3691_v62, %v3368_v61  ;;  %v4629_v32 = vor.u32 %v3448_v10, %v2392_v9  ;;  %v2517_v61 = vor.u32 %v3476_v53, %v2514_v55  ;;  %v2581_v62 = vor.u32 %v3492_v56, %v2578_v57  ;;  %v3468_v53 = vld [vmem:[%s5453_s1 + $0x94] sm:$0xf]  ;;  %v2482_v55 = vld [vmem:[%s5453_s1 + $0x98] sm:$0xf0] }
  0x7f   : > { %2003 = vmatpush.bf16.msrb.mxu1 %v3265_v18  ;;  %v2469_v18 = vor.u32 %v3464_v63, %v2466_v1  ;;  %v3458_v63 = vld [vmem:[%s5453_s1 + $0x44] sm:$0xf]  ;;  %v3484_v56 = vld [vmem:[%s5453_s1 + $0x114] sm:$0xf]  ;;  %v2546_v57 = vld [vmem:[%s5453_s1 + $0x118] sm:$0xf0] }
  0x80   : > { %2017 = vmatpush.bf16.msrb.mxu2 %v3329_v19  ;;  %v2394_v19 = vld [vmem:[%s4046_s7 + $0x70] sm:$0xf0]  ;;  %v3474_v1 = vld [vmem:[%s5453_s1 + $0xc4] sm:$0xf] }
  0x81   : > { %2031 = vmatpush.bf16.msrb.mxu3 %v3393_v25  ;;  %v2597_v25 = vor.u32 %v3496_v4, %v2594_v5  ;;  %v4642_v41 = vor.u32 %v3440_v16, %v2394_v19  ;;  %v3490_v4 = vld [vmem:[%s5453_s1 + $0x144] sm:$0xf]  ;;  %v2570_v5 = vld [vmem:[%s5453_s1 + $0x148] sm:$0xf0]  ;;  %v2509_v9 = vor.u32 %v3474_v1, %v2506_v3  ;;  %v2498_v16 = vld [vmem:[%s5453_s1 + $0xb8] sm:$0xf0] }
  0x82   : > { %1990 = vmatpush.bf16.msrb.mxu0 %v3193_v33  ;;  %v2522_v33 = vld [vmem:[%s5453_s1 + $0xe8] sm:$0xf0]  ;;  %v2573_v10 = vor.u32 %v3490_v4, %v2570_v5  ;;  %v3504_v19 = vld [vmem:[%s5453_s1 + $0x1b4] sm:$0xf]  ;;  %v3466_v1 = vld [vmem:[%s5453_s1 + $0x84] sm:$0xf] }
  0x83   : > { %2004 = vmatpush.bf16.msrb.mxu1 %v3257_v37  ;;  %v2586_v37 = vld [vmem:[%s5453_s1 + $0x168] sm:$0xf0]  ;;  %v2525_v49 = vor.u32 %v3478_v28, %v2522_v33  ;;  %v3470_v28 = vld [vmem:[%s5453_s1 + $0xa4] sm:$0xf] }
  0x84   : > { %2018 = vmatpush.bf16.msrb.mxu2 %v3321_v38  ;;  %v4640_v38 = vor.u32 %v3449_v14, %v2400_v13  ;;  %v2589_v50 = vor.u32 %v3494_v34, %v2586_v37  ;;  %v3472_v13 = vld [vmem:[%s5453_s1 + $0xb4] sm:$0xf]  ;;  %v2490_v33 = vld [vmem:[%s5453_s1 + $0xa8] sm:$0xf0]  ;;  %v3486_v34 = vld [vmem:[%s5453_s1 + $0x124] sm:$0xf] }
  0x85   : > { %2032 = vmatpush.bf16.msrb.mxu3 %v3385_v46  ;;  %v4650_v46 = vor.u32 %v3441_v22, %v2402_v23  ;;  %v2626_v22 = vld [vmem:[%s5453_s1 + $0x1b8] sm:$0xf0]  ;;  %v2554_v37 = vld [vmem:[%s5453_s1 + $0x128] sm:$0xf0]  ;;  %v3482_v3 = vld [vmem:[%s5453_s1 + $0x104] sm:$0xf] }
  0x86   : > { %1991 = vmatpush.bf16.msrb.mxu0 %v3185_v54  ;;  %v2653_v54 = vor.u32 %v3510_v42, %v2650_v45  ;;  %v3502_v42 = vld [vmem:[%s5453_s1 + $0x1a4] sm:$0xf]  ;;  %v2618_v45 = vld [vmem:[%s5453_s1 + $0x1a8] sm:$0xf0] }
  0x87   : > { %2005 = vmatpush.bf16.msrb.mxu1 %v3249_v59  ;;  %v2642_v59 = vld [vmem:[%s5453_s1 + $0x1d8] sm:$0xf0]  ;;  %v2538_v5 = vld [vmem:[%s5453_s1 + $0x108] sm:$0xf0] }
  0x88   : > { %2019 = vmatpush.bf16.msrb.mxu2 %v3313_v60  ;;  %v2453_v60 = vor.u32 %v3460_v51, %v2450_v52  ;;  %v2645_v2 = vor.u32 %v3508_v58, %v2642_v59  ;;  %v3452_v51 = vld [vmem:[%s5453_s1 + $0x14] sm:$0xf]  ;;  %v2418_v52 = vld [vmem:[%s5453_s1 + $0x18] sm:$0xf0] }
  0x89   : > { %2033 = vmatpush.bf16.msrb.mxu3 %v3377_v0  ;;  %v2442_v0 = vld [vmem:[%s5453_s1 + $0x48] sm:$0xf0]  ;;  %v3500_v58 = vld [vmem:[%s5453_s1 + $0x194] sm:$0xf]  ;;  %v2610_v59 = vld [vmem:[%s5453_s1 + $0x198] sm:$0xf0] }
  0x8a   : > { %1992 = vmatpush.bf16.msrb.mxu0 %v3177_v7  ;;  %v2634_v7 = vld [vmem:[%s5453_s1 + $0x1c8] sm:$0xf0]  ;;  %v2445_v8 = vor.u32 %v3458_v63, %v2442_v0  ;;  %v2485_v63 = vor.u32 %v3468_v53, %v2482_v55  ;;  %v2549_v0 = vor.u32 %v3484_v56, %v2546_v57  ;;  %v2613_v4 = vor.u32 %v3500_v58, %v2610_v59  ;;  %v3540_v53 = vld [vmem:[%s5453_s1 + $0x2d4] sm:$0xf]  ;;  %v2770_v55 = vld [vmem:[%s5453_s1 + $0x2d8] sm:$0xf0] }
  0x8b   : > { %2006 = vmatpush.bf16.msrb.mxu1 %v3241_v11  ;;  %v3456_v11 = vld [vmem:[%s5453_s1 + $0x34] sm:$0xf]  ;;  %v2637_v14 = vor.u32 %v3506_v6, %v2634_v7  ;;  %v3498_v6 = vld [vmem:[%s5453_s1 + $0x184] sm:$0xf]  ;;  %v2602_v7 = vld [vmem:[%s5453_s1 + $0x188] sm:$0xf0] }
  0x8c   : > { %2020 = vmatpush.bf16.msrb.mxu2 %v3305_v12  ;;  %v2434_v12 = vld [vmem:[%s5453_s1 + $0x38] sm:$0xf0]  ;;  %v3556_v56 = vld [vmem:[%s5453_s1 + $0x354] sm:$0xf] }
  0x8d   : > { %2034 = vmatpush.bf16.msrb.mxu3 %v3369_v17  ;;  %1993 = vmatmul.bf16.vlgmr.msrb.gmra.mxu0 %v4629_v32  ;;  %v3488_v17 = vld [vmem:[%s5453_s1 + $0x134] sm:$0xf]  ;;  %v2437_v23 = vor.u32 %v3456_v11, %v2434_v12  ;;  %v2786_v12 = vld [vmem:[%s5453_s1 + $0x2f8] sm:$0xf0] }
  0x8e   : > { %2041 = vmatpush.bf16.msra.mxu0 %v2469_v18  ;;  %2007 = vmatmul.bf16.vlgmr.msrb.gmra.mxu1 %v4642_v41  ;;  %v2562_v18 = vld [vmem:[%s5453_s1 + $0x138] sm:$0xf0]  ;;  %v3572_v58 = vld [vmem:[%s5453_s1 + $0x3d4] sm:$0xf] }
  0x8f   : > { %2055 = vmatpush.bf16.msra.mxu1 %v2533_v24  ;;  %2021 = vmatmul.bf16.vlgmr.msrb.gmra.mxu2 %v4640_v38  ;;  %v2501_v24 = vor.u32 %v3472_v13, %v2498_v16  ;;  %v3560_v13 = vld [vmem:[%s5453_s1 + $0x374] sm:$0xf]  ;;  %v2834_v57 = vld [vmem:[%s5453_s1 + $0x358] sm:$0xf0] }
  0x90   : > { %2069 = vmatpush.bf16.msra.mxu2 %v2597_v25  ;;  %2035 = vmatmul.bf16.vlgmr.msrb.gmra.mxu3 %v4650_v46  ;;  %v2565_v25 = vor.u32 %v3488_v17, %v2562_v18  ;;  %v2541_v17 = vor.u32 %v3482_v3, %v2538_v5  ;;  %v3576_v18 = vld [vmem:[%s5453_s1 + $0x3f4] sm:$0xf]  ;;  %v2898_v59 = vld [vmem:[%s5453_s1 + $0x3d8] sm:$0xf0]  ;;  %v2890_v3 = vld [vmem:[%s5453_s1 + $0x3c8] sm:$0xf0] }
  0x91   : > { %2083 = vmatpush.bf16.msra.mxu3 %v2661_v30  ;;  %v2629_v30 = vor.u32 %v3504_v19, %v2626_v22  ;;  %v2914_v19 = vld [vmem:[%s5453_s1 + $0x3f8] sm:$0xf0]  ;;  %v2605_v22 = vor.u32 %v3498_v6, %v2602_v7  ;;  %v3520_v7 = vld [vmem:[%s5453_s1 + $0x234] sm:$0xf] }
  0x92   : > { %2042 = vmatpush.bf16.msra.mxu0 %v2461_v48  ;;  %v2429_v48 = vor.u32 %v3454_v26, %v2426_v27  ;;  %v3526_v26 = vld [vmem:[%s5453_s1 + $0x264] sm:$0xf]  ;;  %v2714_v27 = vld [vmem:[%s5453_s1 + $0x268] sm:$0xf0] }
  0x93   : > { %2056 = vmatpush.bf16.msra.mxu1 %v2525_v49  ;;  %v2493_v49 = vor.u32 %v3470_v28, %v2490_v33  ;;  %v3542_v28 = vld [vmem:[%s5453_s1 + $0x2e4] sm:$0xf]  ;;  %v2778_v33 = vld [vmem:[%s5453_s1 + $0x2e8] sm:$0xf0] }
  0x94   : > { %2070 = vmatpush.bf16.msra.mxu2 %v2589_v50  ;;  %v2557_v50 = vor.u32 %v3486_v34, %v2554_v37  ;;  %v3558_v34 = vld [vmem:[%s5453_s1 + $0x364] sm:$0xf]  ;;  %v2842_v37 = vld [vmem:[%s5453_s1 + $0x368] sm:$0xf0] }
  0x95   : > { %2084 = vmatpush.bf16.msra.mxu3 %v2653_v54  ;;  %v2621_v54 = vor.u32 %v3502_v42, %v2618_v45  ;;  %v3574_v42 = vld [vmem:[%s5453_s1 + $0x3e4] sm:$0xf]  ;;  %v2906_v45 = vld [vmem:[%s5453_s1 + $0x3e8] sm:$0xf0] }
  0x96   : > { %2043 = vmatpush.bf16.msra.mxu0 %v2453_v60  ;;  %v2421_v60 = vor.u32 %v3452_v51, %v2418_v52  ;;  %v3524_v51 = vld [vmem:[%s5453_s1 + $0x254] sm:$0xf]  ;;  %v2706_v52 = vld [vmem:[%s5453_s1 + $0x258] sm:$0xf0] }
  0x97   : > { %2057 = vmatpush.bf16.msra.mxu1 %v2517_v61  ;;  %v3450_v61 = vld [vmem:[%s5453_s1 + $0x4] sm:$0xf] }
  0x98   : > { %2071 = vmatpush.bf16.msra.mxu2 %v2581_v62  ;;  %v2410_v62 = vld [vmem:[%s5453_s1 + $0x8] sm:$0xf0] }
  0x99   : > { %2085 = vmatpush.bf16.msra.mxu3 %v2645_v2  ;;  %v2474_v2 = vld [vmem:[%s5453_s1 + $0x88] sm:$0xf0]  ;;  %v2413_v11 = vor.u32 %v3450_v61, %v2410_v62  ;;  %v2773_v61 = vor.u32 %v3540_v53, %v2770_v55  ;;  %v3522_v62 = vld [vmem:[%s5453_s1 + $0x244] sm:$0xf]  ;;  %v2802_v53 = vld [vmem:[%s5453_s1 + $0x318] sm:$0xf0] }
  0x9a   : > { %2044 = vmatpush.bf16.msra.mxu0 %v2445_v8  ;;  %v3528_v8 = vld [vmem:[%s5453_s1 + $0x274] sm:$0xf]  ;;  %v2477_v16 = vor.u32 %v3466_v1, %v2474_v2  ;;  %v2826_v1 = vld [vmem:[%s5453_s1 + $0x348] sm:$0xf0]  ;;  %v3570_v2 = vld [vmem:[%s5453_s1 + $0x3c4] sm:$0xf] }
  0x9b   : > { %2058 = vmatpush.bf16.msra.mxu1 %v2509_v9  ;;  %v2722_v9 = vld [vmem:[%s5453_s1 + $0x278] sm:$0xf0] }
  0x9c   : > { %2072 = vmatpush.bf16.msra.mxu2 %v2573_v10  ;;  %v3544_v10 = vld [vmem:[%s5453_s1 + $0x2f4] sm:$0xf]  ;;  %v2866_v55 = vld [vmem:[%s5453_s1 + $0x398] sm:$0xf0] }
  0x9d   : > { %2086 = vmatpush.bf16.msra.mxu3 %v2637_v14  ;;  %v2850_v14 = vld [vmem:[%s5453_s1 + $0x378] sm:$0xf0] }
  0x9e   : > { %2045 = vmatpush.bf16.msra.mxu0 %v2437_v23  ;;  %v2725_v23 = vor.u32 %v3528_v8, %v2722_v9  ;;  %v2690_v8 = vld [vmem:[%s5453_s1 + $0x238] sm:$0xf0]  ;;  %v3536_v9 = vld [vmem:[%s5453_s1 + $0x2b4] sm:$0xf] }
  0x9f   : > { %2059 = vmatpush.bf16.msra.mxu1 %v2501_v24  ;;  %v2789_v24 = vor.u32 %v3544_v10, %v2786_v12  ;;  %v2893_v10 = vor.u32 %v3570_v2, %v2890_v3  ;;  %v3552_v12 = vld [vmem:[%s5453_s1 + $0x334] sm:$0xf] }
  0xa0   : > { %2073 = vmatpush.bf16.msra.mxu2 %v2565_v25  ;;  %v2853_v25 = vor.u32 %v3560_v13, %v2850_v14  ;;  %v2818_v13 = vld [vmem:[%s5453_s1 + $0x338] sm:$0xf0]  ;;  %v3568_v14 = vld [vmem:[%s5453_s1 + $0x3b4] sm:$0xf] }
  0xa1   : > { %2087 = vmatpush.bf16.msra.mxu3 %v2629_v30  ;;  %v2917_v30 = vor.u32 %v3576_v18, %v2914_v19  ;;  %v2821_v19 = vor.u32 %v3552_v12, %v2818_v13  ;;  %v3608_v2 = vld [vmem:[%s5453_s1 + $0x4f4] sm:$0xf] }
  0xa2   : > { %2046 = vmatpush.bf16.msra.mxu0 %v2429_v48  ;;  %v2717_v48 = vor.u32 %v3526_v26, %v2714_v27  ;;  %v2746_v26 = vld [vmem:[%s5453_s1 + $0x2a8] sm:$0xf0]  ;;  %v3550_v27 = vld [vmem:[%s5453_s1 + $0x324] sm:$0xf] }
  0xa3   : > { %2060 = vmatpush.bf16.msra.mxu1 %v2493_v49  ;;  %v2781_v49 = vor.u32 %v3542_v28, %v2778_v33  ;;  %v2810_v28 = vld [vmem:[%s5453_s1 + $0x328] sm:$0xf0] }
  0xa4   : > { %2074 = vmatpush.bf16.msra.mxu2 %v2557_v50  ;;  %v2845_v50 = vor.u32 %v3558_v34, %v2842_v37  ;;  %v2874_v33 = vld [vmem:[%s5453_s1 + $0x3a8] sm:$0xf0] }
  0xa5   : > { %2088 = vmatpush.bf16.msra.mxu3 %v2621_v54  ;;  %v2909_v54 = vor.u32 %v3574_v42, %v2906_v45  ;;  %v2813_v42 = vor.u32 %v3550_v27, %v2810_v28  ;;  %v3516_v45 = vld [vmem:[%s5453_s1 + $0x214] sm:$0xf] }
  0xa6   : > { %2047 = vmatpush.bf16.msra.mxu0 %v2421_v60  ;;  %v2709_v60 = vor.u32 %v3524_v51, %v2706_v52  ;;  %v2738_v51 = vld [vmem:[%s5453_s1 + $0x298] sm:$0xf0]  ;;  %v3548_v52 = vld [vmem:[%s5453_s1 + $0x314] sm:$0xf] }
  0xa7   : > { %2061 = vmatpush.bf16.msra.mxu1 %v2485_v63  ;;  %v2698_v63 = vld [vmem:[%s5453_s1 + $0x248] sm:$0xf0] }
  0xa8   : > { %2075 = vmatpush.bf16.msra.mxu2 %v2549_v0  ;;  %v3554_v0 = vld [vmem:[%s5453_s1 + $0x344] sm:$0xf] }
  0xa9   : > { %2089 = vmatpush.bf16.msra.mxu3 %v2613_v4  ;;  %v2701_v4 = vor.u32 %v3522_v62, %v2698_v63  ;;  %v2829_v6 = vor.u32 %v3554_v0, %v2826_v1  ;;  %v3546_v62 = vld [vmem:[%s5453_s1 + $0x304] sm:$0xf]  ;;  %v3592_v0 = vld [vmem:[%s5453_s1 + $0x474] sm:$0xf]  ;;  %v2978_v1 = vld [vmem:[%s5453_s1 + $0x478] sm:$0xf0] }
  0xaa   : > { %2048 = vmatpush.bf16.msra.mxu0 %v2413_v11  ;;  %v2754_v11 = vld [vmem:[%s5453_s1 + $0x2b8] sm:$0xf0]  ;;  %v2981_v12 = vor.u32 %v3592_v0, %v2978_v1  ;;  %v3616_v0 = vld [vmem:[%s5453_s1 + $0x534] sm:$0xf] }
  0xab   : > { %2062 = vmatpush.bf16.msra.mxu1 %v2477_v16  ;;  %v2882_v16 = vld [vmem:[%s5453_s1 + $0x3b8] sm:$0xf0]  ;;  %v2757_v18 = vor.u32 %v3536_v9, %v2754_v11  ;;  %v3640_v9 = vld [vmem:[%s5453_s1 + $0x5f4] sm:$0xf] }
  0xac   : > { %2076 = vmatpush.bf16.msra.mxu2 %v2541_v17  ;;  %v2693_v17 = vor.u32 %v3520_v7, %v2690_v8  ;;  %v3074_v1 = vld [vmem:[%s5453_s1 + $0x538] sm:$0xf0] }
  0xad   : > { %2090 = vmatpush.bf16.msra.mxu3 %v2605_v22  ;;  %2049 = vmatmul.bf16.vlgmr.msra.gmra.mxu0 %v4051_v15  ;;  %v2837_v15 = vor.u32 %v3556_v56, %v2834_v57  ;;  %v3518_v22 = vld [vmem:[%s5453_s1 + $0x224] sm:$0xf] }
  0xae   : > { %2097 = vmatpush.bf16.msrb.mxu0 %v2725_v23  ;;  %2063 = vmatmul.bf16.vlgmr.msra.gmra.mxu1 %v4058_v21  ;;  %v2901_v21 = vor.u32 %v3572_v58, %v2898_v59  ;;  %v2682_v23 = vld [vmem:[%s5453_s1 + $0x228] sm:$0xf0]  ;;  %v3514_v57 = vld [vmem:[%s5453_s1 + $0x204] sm:$0xf] }
  0xaf   : > { %2111 = vmatpush.bf16.msrb.mxu1 %v2789_v24  ;;  %2077 = vmatmul.bf16.vlgmr.msra.gmra.mxu2 %v4056_v20  ;;  %v3538_v20 = vld [vmem:[%s5453_s1 + $0x2c4] sm:$0xf]  ;;  %v2685_v34 = vor.u32 %v3518_v22, %v2682_v23  ;;  %v2666_v58 = vld [vmem:[%s5453_s1 + $0x208] sm:$0xf0] }
  0xb0   : > { %2125 = vmatpush.bf16.msrb.mxu2 %v2853_v25  ;;  %2091 = vmatmul.bf16.vlgmr.msra.gmra.mxu3 %v4071_v29  ;;  %v2762_v29 = vld [vmem:[%s5453_s1 + $0x2c8] sm:$0xf0]  ;;  %v3534_v24 = vld [vmem:[%s5453_s1 + $0x2a4] sm:$0xf]  ;;  %v2885_v25 = vor.u32 %v3568_v14, %v2882_v16  ;;  %v2669_v3 = vor.u32 %v3514_v57, %v2666_v58 }
  0xb1   : > { %2139 = vmatpush.bf16.msrb.mxu3 %v2917_v30  ;;  %v2765_v5 = vor.u32 %v3538_v20, %v2762_v29  ;;  %v3566_v30 = vld [vmem:[%s5453_s1 + $0x3a4] sm:$0xf]  ;;  %v2749_v37 = vor.u32 %v3534_v24, %v2746_v26  ;;  %v2794_v20 = vld [vmem:[%s5453_s1 + $0x308] sm:$0xf0] }
  0xb2   : > { %2098 = vmatpush.bf16.msrb.mxu0 %v2717_v48  ;;  %v2674_v48 = vld [vmem:[%s5453_s1 + $0x218] sm:$0xf0]  ;;  %v2858_v29 = vld [vmem:[%s5453_s1 + $0x388] sm:$0xf0]  ;;  %v2797_v8 = vor.u32 %v3546_v62, %v2794_v20  ;;  %v3590_v16 = vld [vmem:[%s5453_s1 + $0x464] sm:$0xf] }
  0xb3   : > { %2112 = vmatpush.bf16.msrb.mxu1 %v2781_v49  ;;  %v3532_v49 = vld [vmem:[%s5453_s1 + $0x294] sm:$0xf]  ;;  %v2677_v56 = vor.u32 %v3516_v45, %v2674_v48  ;;  %v3034_v22 = vld [vmem:[%s5453_s1 + $0x4e8] sm:$0xf0]  ;;  %v3622_v23 = vld [vmem:[%s5453_s1 + $0x564] sm:$0xf] }
  0xb4   : > { %2126 = vmatpush.bf16.msrb.mxu2 %v2845_v50  ;;  %v2877_v50 = vor.u32 %v3566_v30, %v2874_v33  ;;  %v2741_v59 = vor.u32 %v3532_v49, %v2738_v51  ;;  %v3098_v24 = vld [vmem:[%s5453_s1 + $0x568] sm:$0xf0]  ;;  %v3588_v33 = vld [vmem:[%s5453_s1 + $0x454] sm:$0xf]  ;;  %v3026_v45 = vld [vmem:[%s5453_s1 + $0x4d8] sm:$0xf0] }
  0xb5   : > { %2140 = vmatpush.bf16.msrb.mxu3 %v2909_v54  ;;  %v3564_v54 = vld [vmem:[%s5453_s1 + $0x394] sm:$0xf]  ;;  %v3162_v26 = vld [vmem:[%s5453_s1 + $0x5e8] sm:$0xf0]  ;;  %v3101_v30 = vor.u32 %v3622_v23, %v3098_v24  ;;  %v3090_v49 = vld [vmem:[%s5453_s1 + $0x558] sm:$0xf0] }
  0xb6   : > { %2099 = vmatpush.bf16.msrb.mxu0 %v2709_v60  ;;  %v2805_v60 = vor.u32 %v3548_v52, %v2802_v53  ;;  %v2869_v63 = vor.u32 %v3564_v54, %v2866_v55  ;;  %v3620_v48 = vld [vmem:[%s5453_s1 + $0x554] sm:$0xf]  ;;  %v3602_v54 = vld [vmem:[%s5453_s1 + $0x4c4] sm:$0xf]  ;;  %v3018_v55 = vld [vmem:[%s5453_s1 + $0x4c8] sm:$0xf0] }
  0xb7   : > { %2113 = vmatpush.bf16.msrb.mxu1 %v2773_v61  ;;  %v3530_v61 = vld [vmem:[%s5453_s1 + $0x284] sm:$0xf]  ;;  %v3093_v53 = vor.u32 %v3620_v48, %v3090_v49  ;;  %v3082_v57 = vld [vmem:[%s5453_s1 + $0x548] sm:$0xf0]  ;;  %v3584_v62 = vld [vmem:[%s5453_s1 + $0x434] sm:$0xf] }
  0xb8   : > { %2127 = vmatpush.bf16.msrb.mxu2 %v2837_v15  ;;  %v2730_v15 = vld [vmem:[%s5453_s1 + $0x288] sm:$0xf0]  ;;  %v3634_v58 = vld [vmem:[%s5453_s1 + $0x5c4] sm:$0xf]  ;;  %v3600_v20 = vld [vmem:[%s5453_s1 + $0x4b4] sm:$0xf] }
  0xb9   : > { %2141 = vmatpush.bf16.msrb.mxu3 %v2901_v21  ;;  %v3562_v21 = vld [vmem:[%s5453_s1 + $0x384] sm:$0xf]  ;;  %v2733_v7 = vor.u32 %v3530_v61, %v2730_v15  ;;  %v3021_v61 = vor.u32 %v3602_v54, %v3018_v55  ;;  %v3122_v48 = vld [vmem:[%s5453_s1 + $0x598] sm:$0xf0]  ;;  %v2986_v54 = vld [vmem:[%s5453_s1 + $0x488] sm:$0xf0] }
  0xba   : > { %2100 = vmatpush.bf16.msrb.mxu0 %v2701_v4  ;;  %v3042_v4 = vld [vmem:[%s5453_s1 + $0x4f8] sm:$0xf0]  ;;  %v2861_v11 = vor.u32 %v3562_v21, %v2858_v29 }
  0xbb   : > { %2114 = vmatpush.bf16.msrb.mxu1 %v2765_v5  ;;  %v3624_v5 = vld [vmem:[%s5453_s1 + $0x574] sm:$0xf]  ;;  %v3045_v13 = vor.u32 %v3608_v2, %v3042_v4  ;;  %v3010_v29 = vld [vmem:[%s5453_s1 + $0x4b8] sm:$0xf0]  ;;  %v5114_v2 = vpop.f32.mrf.mxu0 }
  0xbc   : > { %2128 = vmatpush.bf16.msrb.mxu2 %v2829_v6  ;;  %v3106_v6 = vld [vmem:[%s5453_s1 + $0x578] sm:$0xf0] }
  0xbd   : > { %2142 = vmatpush.bf16.msrb.mxu3 %v2893_v10  ;;  %v3170_v10 = vld [vmem:[%s5453_s1 + $0x5f8] sm:$0xf0]  ;;  %v3109_v14 = vor.u32 %v3624_v5, %v3106_v6  ;;  %v5122_v5 = vpop.f32.mrf.mxu1 }
  0xbe   : > { %2101 = vmatpush.bf16.msrb.mxu0 %v2693_v17  ;;  %v2970_v17 = vld [vmem:[%s5453_s1 + $0x468] sm:$0xf0]  ;;  %v3138_v4 = vld [vmem:[%s5453_s1 + $0x5b8] sm:$0xf0] }
  0xbf   : > { %2115 = vmatpush.bf16.msrb.mxu1 %v2757_v18  ;;  %v3606_v18 = vld [vmem:[%s5453_s1 + $0x4e4] sm:$0xf]  ;;  %v2973_v27 = vor.u32 %v3590_v16, %v2970_v17  ;;  %v3066_v16 = vld [vmem:[%s5453_s1 + $0x528] sm:$0xf0] }
  0xc0   : > { %2129 = vmatpush.bf16.msrb.mxu2 %v2821_v19  ;;  %v3173_v19 = vor.u32 %v3640_v9, %v3170_v10  ;;  %v3037_v28 = vor.u32 %v3606_v18, %v3034_v22  ;;  %v3582_v9 = vld [vmem:[%s5453_s1 + $0x424] sm:$0xf]  ;;  %v2938_v10 = vld [vmem:[%s5453_s1 + $0x428] sm:$0xf0] }
  0xc1   : > { %2143 = vmatpush.bf16.msrb.mxu3 %v2885_v25  ;;  %v3638_v25 = vld [vmem:[%s5453_s1 + $0x5e4] sm:$0xf]  ;;  %v3130_v18 = vld [vmem:[%s5453_s1 + $0x5a8] sm:$0xf0]  ;;  %v2941_v22 = vor.u32 %v3582_v9, %v2938_v10 }
  0xc2   : > { %2102 = vmatpush.bf16.msrb.mxu0 %v2685_v34  ;;  %v2962_v34 = vld [vmem:[%s5453_s1 + $0x458] sm:$0xf0]  ;;  %v3630_v17 = vld [vmem:[%s5453_s1 + $0x5a4] sm:$0xf] }
  0xc3   : > { %2116 = vmatpush.bf16.msrb.mxu1 %v2749_v37  ;;  %v3604_v37 = vld [vmem:[%s5453_s1 + $0x4d4] sm:$0xf]  ;;  %v2965_v51 = vor.u32 %v3588_v33, %v2962_v34  ;;  %v2994_v33 = vld [vmem:[%s5453_s1 + $0x498] sm:$0xf0]  ;;  %v3654_v10 = vld [vmem:[%s5453_s1 + $0x664] sm:$0xf] }
  0xc4   : > { %2130 = vmatpush.bf16.msrb.mxu2 %v2813_v42  ;;  %v3165_v42 = vor.u32 %v3638_v25, %v3162_v26  ;;  %v3029_v52 = vor.u32 %v3604_v37, %v3026_v45  ;;  %v3580_v25 = vld [vmem:[%s5453_s1 + $0x414] sm:$0xf]  ;;  %v2930_v26 = vld [vmem:[%s5453_s1 + $0x418] sm:$0xf0] }
  0xc5   : > { %2144 = vmatpush.bf16.msrb.mxu3 %v2877_v50  ;;  %v3154_v50 = vld [vmem:[%s5453_s1 + $0x5d8] sm:$0xf0]  ;;  %v3612_v34 = vld [vmem:[%s5453_s1 + $0x514] sm:$0xf]  ;;  %v5199_v55 = vpop.f32.mrf.mxu1 }
  0xc6   : > { %2103 = vmatpush.bf16.msrb.mxu0 %v2677_v56  ;;  %v3618_v56 = vld [vmem:[%s5453_s1 + $0x544] sm:$0xf]  ;;  %v3058_v37 = vld [vmem:[%s5453_s1 + $0x518] sm:$0xf0]  ;;  %v3628_v45 = vld [vmem:[%s5453_s1 + $0x594] sm:$0xf] }
  0xc7   : > { %2117 = vmatpush.bf16.msrb.mxu1 %v2741_v59  ;;  %v3146_v59 = vld [vmem:[%s5453_s1 + $0x5c8] sm:$0xf0]  ;;  %v3085_v15 = vor.u32 %v3618_v56, %v3082_v57  ;;  %v3125_v56 = vor.u32 %v3628_v45, %v3122_v48  ;;  %v3282_v48 = vld [vmem:[%s5453_s1 + $0x6d8] sm:$0xf0] }
  0xc8   : > { %2131 = vmatpush.bf16.msrb.mxu2 %v2805_v60  ;;  %v3149_v21 = vor.u32 %v3634_v58, %v3146_v59  ;;  %v3050_v57 = vld [vmem:[%s5453_s1 + $0x508] sm:$0xf0]  ;;  %v3626_v58 = vld [vmem:[%s5453_s1 + $0x584] sm:$0xf] }
  0xc9   : > { %2145 = vmatpush.bf16.msrb.mxu3 %v2869_v63  ;;  %v2946_v63 = vld [vmem:[%s5453_s1 + $0x438] sm:$0xf0]  ;;  %v3114_v59 = vld [vmem:[%s5453_s1 + $0x588] sm:$0xf0] }
  0xca   : > { %2104 = vmatpush.bf16.msrb.mxu0 %v2669_v3  ;;  %v3632_v3 = vld [vmem:[%s5453_s1 + $0x5b4] sm:$0xf]  ;;  %v2949_v6 = vor.u32 %v3584_v62, %v2946_v63  ;;  %v3298_v63 = vld [vmem:[%s5453_s1 + $0x6f8] sm:$0xf0] }
  0xcb   : > { %2118 = vmatpush.bf16.msrb.mxu1 %v2733_v7  ;;  %v3013_v7 = vor.u32 %v3600_v20, %v3010_v29  ;;  %v3688_v20 = vld [vmem:[%s5453_s1 + $0x774] sm:$0xf] }
  0xcc   : > { %2132 = vmatpush.bf16.msrb.mxu2 %v2797_v8  ;;  %v3077_v8 = vor.u32 %v3616_v0, %v3074_v1  ;;  %v3704_v1 = vld [vmem:[%s5453_s1 + $0x7f4] sm:$0xf] }
  0xcd   : > { %2146 = vmatpush.bf16.msrb.mxu3 %v2861_v11  ;;  %2105 = vmatmul.bf16.vlgmr.msrb.gmra.mxu0 %v4205_v39  ;;  %v3636_v39 = vld [vmem:[%s5453_s1 + $0x5d4] sm:$0xf]  ;;  %v3598_v11 = vld [vmem:[%s5453_s1 + $0x4a4] sm:$0xf]  ;;  %v5275_v45 = vpop.f32.mrf.mxu1 }
  0xce   : > { %2153 = vmatpush.bf16.msra.mxu0 %v2981_v12  ;;  %2119 = vmatmul.bf16.vlgmr.msrb.gmra.mxu1 %v4218_v44  ;;  %v2954_v44 = vld [vmem:[%s5453_s1 + $0x448] sm:$0xf0]  ;;  %v3141_v12 = vor.u32 %v3632_v3, %v3138_v4  ;;  %v3426_v3 = vld [vmem:[%s5453_s1 + $0x7f8] sm:$0xf0]  ;;  %v3117_v4 = vor.u32 %v3626_v58, %v3114_v59  ;;  %v3698_v59 = vld [vmem:[%s5453_s1 + $0x7c4] sm:$0xf] }
  0xcf   : > { %2167 = vmatpush.bf16.msra.mxu1 %v3045_v13  ;;  %2133 = vmatmul.bf16.vlgmr.msrb.gmra.mxu2 %v4216_v43  ;;  %v3586_v43 = vld [vmem:[%s5453_s1 + $0x444] sm:$0xf]  ;;  %v3002_v13 = vld [vmem:[%s5453_s1 + $0x4a8] sm:$0xf0] }
  0xd0   : > { %2181 = vmatpush.bf16.msra.mxu2 %v3109_v14  ;;  %2147 = vmatmul.bf16.vlgmr.msrb.gmra.mxu3 %v4226_v47  ;;  %v3157_v47 = vor.u32 %v3636_v39, %v3154_v50  ;;  %v2957_v60 = vor.u32 %v3586_v43, %v2954_v44  ;;  %v3614_v14 = vld [vmem:[%s5453_s1 + $0x524] sm:$0xf]  ;;  %v3005_v23 = vor.u32 %v3598_v11, %v3002_v13  ;;  %v3226_v11 = vld [vmem:[%s5453_s1 + $0x668] sm:$0xf0] }
  0xd1   : > { %2195 = vmatpush.bf16.msra.mxu3 %v3173_v19  ;;  %v5151_v19 = vld [vmem:[%s5454_s2] sm:$0x3]  ;;  %v3069_v24 = vor.u32 %v3614_v14, %v3066_v16  ;;  %v2933_v39 = vor.u32 %v3580_v25, %v2930_v26  ;;  %v3578_v50 = vld [vmem:[%s5453_s1 + $0x404] sm:$0xf]  ;;  %v3061_v43 = vor.u32 %v3612_v34, %v3058_v37  ;;  %v3429_v14 = vor.u32 %v3704_v1, %v3426_v3  ;;  %v3218_v34 = vld [vmem:[%s5453_s1 + $0x658] sm:$0xf0] }
  0xd2   : > { %2154 = vmatpush.bf16.msra.mxu0 %v2973_v27  ;;  %v3596_v27 = vld [vmem:[%s5453_s1 + $0x494] sm:$0xf]  ;;  %v453_v49 = vperm.slane %v5151_v19, 0  ;;  %v3594_v44 = vld [vmem:[%s5453_s1 + $0x484] sm:$0xf] }
  0xd3   : > { %2168 = vmatpush.bf16.msra.mxu1 %v3037_v28  ;;  %v5162_v28 = vpop.f32.mrf.mxu2  ;;  %v2989_v29 = vor.u32 %v3594_v44, %v2986_v54  ;;  %v3686_v16 = vld [vmem:[%s5453_s1 + $0x764] sm:$0xf]  ;;  %v3668_v37 = vld [vmem:[%s5453_s1 + $0x6d4] sm:$0xf]  ;;  %v3210_v54 = vld [vmem:[%s5453_s1 + $0x648] sm:$0xf0] }
  0xd4   : > { %2182 = vmatpush.bf16.msra.mxu2 %v3101_v30  ;;  %v3133_v30 = vor.u32 %v3630_v17, %v3130_v18  ;;  %v3354_v17 = vld [vmem:[%s5453_s1 + $0x768] sm:$0xf0]  ;;  %v3285_v44 = vor.u32 %v3668_v37, %v3282_v48  ;;  %v3680_v1 = vld [vmem:[%s5453_s1 + $0x734] sm:$0xf]  ;;  %v3330_v3 = vld [vmem:[%s5453_s1 + $0x738] sm:$0xf0] }
  0xd5   : > { %2196 = vmatpush.bf16.msra.mxu3 %v3165_v42  ;;  %v5173_v42 = vpop.f32.mrf.mxu3  ;;  %v3660_v48 = vld [vmem:[%s5453_s1 + $0x694] sm:$0xf] }
  0xd6   : > { %2155 = vmatpush.bf16.msra.mxu0 %v2965_v51  ;;  %v2922_v51 = vld [vmem:[%s5453_s1 + $0x408] sm:$0xf0] }
  0xd7   : > { %2169 = vmatpush.bf16.msra.mxu1 %v3029_v52  ;;  %v5188_v52 = vpop.f32.mrf.mxu0  ;;  %v2925_v62 = vor.u32 %v3578_v50, %v2922_v51  ;;  %v3346_v50 = vld [vmem:[%s5453_s1 + $0x758] sm:$0xf0] }
  0xd8   : > { %2183 = vmatpush.bf16.msra.mxu2 %v3093_v53  ;;  %v2997_v53 = vor.u32 %v3596_v27, %v2994_v33  ;;  %v3652_v33 = vld [vmem:[%s5453_s1 + $0x654] sm:$0xf]  ;;  %v3410_v51 = vld [vmem:[%s5453_s1 + $0x7d8] sm:$0xf0]  ;;  %v1829_v58 = vadd.f32 %v5188_v52, %v453_v49 }
  0xd9   : > { %2197 = vmatpush.bf16.msra.mxu3 %v3157_v47  ;;  %v3610_v47 = vld [vmem:[%s5453_s1 + $0x504] sm:$0xf]  ;;  %v3648_v52 = vld [vmem:[%s5453_s1 + $0x634] sm:$0xf] }
  0xda   : > { %2156 = vmatpush.bf16.msra.mxu0 %v2957_v60  ;;  %v3656_v60 = vld [vmem:[%s5453_s1 + $0x674] sm:$0xf]  ;;  %v3053_v0 = vor.u32 %v3610_v47, %v3050_v57  ;;  %v3338_v57 = vld [vmem:[%s5453_s1 + $0x748] sm:$0xf0] }
  0xdb   : > { %2170 = vmatpush.bf16.msra.mxu1 %v3021_v61  ;;  %v3234_v61 = vld [vmem:[%s5453_s1 + $0x678] sm:$0xf0]  ;;  %v5246_v13 = vpop.f32.mrf.mxu2 }
  0xdc   : > { %2184 = vmatpush.bf16.msra.mxu2 %v3085_v15  ;;  %v3672_v15 = vld [vmem:[%s5453_s1 + $0x6f4] sm:$0xf] }
  0xdd   : > { %2198 = vmatpush.bf16.msra.mxu3 %v3149_v21  ;;  %v3362_v21 = vld [vmem:[%s5453_s1 + $0x778] sm:$0xf0]  ;;  %v5257_v18 = vpop.f32.mrf.mxu3 }
  0xde   : > { %2157 = vmatpush.bf16.msra.mxu0 %v2949_v6  ;;  %v3237_v6 = vor.u32 %v3656_v60, %v3234_v61  ;;  %v3365_v9 = vor.u32 %v3688_v20, %v3362_v21  ;;  %v3402_v60 = vld [vmem:[%s5453_s1 + $0x7c8] sm:$0xf0]  ;;  %v3202_v21 = vld [vmem:[%s5453_s1 + $0x638] sm:$0xf0] }
  0xdf   : > { %2171 = vmatpush.bf16.msra.mxu1 %v3013_v7  ;;  %v1827_v7 = vadd.f32 %v5114_v2, %v453_v49  ;;  %v3290_v2 = vld [vmem:[%s5453_s1 + $0x6e8] sm:$0xf0]  ;;  %v1882_v26 = vpop.f32.mrf.mxu0 }
  0xe0   : > { %2185 = vmatpush.bf16.msra.mxu2 %v3077_v8  ;;  %v3301_v8 = vor.u32 %v3672_v15, %v3298_v63 }
  0xe1   : > { %2199 = vmatpush.bf16.msra.mxu3 %v3141_v12  ;;  %v3670_v12 = vld [vmem:[%s5453_s1 + $0x6e4] sm:$0xf]  ;;  %v1841_v25 = vadd.f32 %v5122_v5, %v1827_v7  ;;  %v3696_v7 = vld [vmem:[%s5453_s1 + $0x7b4] sm:$0xf] }
  0xe2   : > { %2158 = vmatpush.bf16.msra.mxu0 %v2941_v22  ;;  %v3702_v22 = vld [vmem:[%s5453_s1 + $0x7e4] sm:$0xf]  ;;  %v3293_v27 = vor.u32 %v3670_v12, %v3290_v2  ;;  %v3194_v2 = vld [vmem:[%s5453_s1 + $0x628] sm:$0xf0] }
  0xe3   : > { %2172 = vmatpush.bf16.msra.mxu1 %v3005_v23  ;;  %v3418_v23 = vld [vmem:[%s5453_s1 + $0x7e8] sm:$0xf0]  ;;  %v5324_v61 = vpop.f32.mrf.mxu2 }
  0xe4   : > { %2186 = vmatpush.bf16.msra.mxu2 %v3069_v24  ;;  %v3229_v24 = vor.u32 %v3654_v10, %v3226_v11  ;;  %v3421_v5 = vor.u32 %v3702_v22, %v3418_v23  ;;  %v3205_v10 = vor.u32 %v3648_v52, %v3202_v21  ;;  %v3258_v22 = vld [vmem:[%s5453_s1 + $0x6a8] sm:$0xf0]  ;;  %v3678_v23 = vld [vmem:[%s5453_s1 + $0x724] sm:$0xf] }
  0xe5   : > { %2200 = vmatpush.bf16.msra.mxu3 %v3133_v30  ;;  %v3357_v30 = vor.u32 %v3686_v16, %v3354_v17  ;;  %v5327_v63 = vpop.f32.mrf.mxu3  ;;  %v3662_v16 = vld [vmem:[%s5453_s1 + $0x6a4] sm:$0xf] }
  0xe6   : > { %2159 = vmatpush.bf16.msra.mxu0 %v2933_v39  ;;  %v3684_v39 = vld [vmem:[%s5453_s1 + $0x754] sm:$0xf] }
  0xe7   : > { %2173 = vmatpush.bf16.msra.mxu1 %v2997_v53  ;;  %v3221_v53 = vor.u32 %v3652_v33, %v3218_v34  ;;  %v3261_v34 = vor.u32 %v3662_v16, %v3258_v22 }
  0xe8   : > { %2187 = vmatpush.bf16.msra.mxu2 %v3061_v43  ;;  %v1855_v43 = vadd.f32 %v5162_v28, %v1841_v25  ;;  %v3274_v28 = vld [vmem:[%s5453_s1 + $0x6c8] sm:$0xf0] }
  0xe9   : > { %2201 = vmatpush.bf16.msra.mxu3 %v3125_v56  ;;  %v3682_v56 = vld [vmem:[%s5453_s1 + $0x744] sm:$0xf] }
  0xea   : > { %2160 = vmatpush.bf16.msra.mxu0 %v2925_v62  ;;  %v1869_v62 = vadd.f32 %v5173_v42, %v1855_v43  ;;  %v3341_v49 = vor.u32 %v3682_v56, %v3338_v57  ;;  %v3405_v42 = vor.u32 %v3698_v59, %v3402_v60  ;;  %v3178_v57 = vld [vmem:[%s5453_s1 + $0x608] sm:$0xf0] }
  0xeb   : > { %2174 = vmatpush.bf16.msra.mxu1 %v2989_v29  ;;  %v3664_v29 = vld [vmem:[%s5453_s1 + $0x6b4] sm:$0xf]  ;;  %v3242_v60 = vld [vmem:[%s5453_s1 + $0x688] sm:$0xf0] }
  0xec   : > { %2188 = vmatpush.bf16.msra.mxu2 %v3053_v0  ;;  %v3266_v0 = vld [vmem:[%s5453_s1 + $0x6b8] sm:$0xf0]  ;;  %v1883_v11 = vadd.f32 %v1882_v26, %v1869_v62  ;;  %v3694_v26 = vld [vmem:[%s5453_s1 + $0x7a4] sm:$0xf] }
  0xed   : > { %2202 = vmatpush.bf16.msra.mxu3 %v3117_v4  ;;  %2161 = vmatmul.bf16.vlgmr.msra.gmra.mxu0 %v4417_v31  ;;  %v3700_v31 = vld [vmem:[%s5453_s1 + $0x7d4] sm:$0xf]  ;;  %v1843_v4 = vadd.f32 %v5199_v55, %v1829_v58  ;;  %v3269_v12 = vor.u32 %v3664_v29, %v3266_v0  ;;  %v3646_v55 = vld [vmem:[%s5453_s1 + $0x624] sm:$0xf]  ;;  %v1926_v43 = vpop.f32.mrf.mxu3 }
  0xee   : > { %2209 = vmatpush.bf16.msrb.mxu0 %v3237_v6  ;;  %2175 = vmatmul.bf16.vlgmr.msra.gmra.mxu1 %v4430_v36  ;;  %v3650_v36 = vld [vmem:[%s5453_s1 + $0x644] sm:$0xf]  ;;  %v3413_v47 = vor.u32 %v3700_v31, %v3410_v51  ;;  %v1884_v6 = vpop.f32.mrf.mxu0  ;;  %v1897_v33 = vadd.f32 %v5275_v45, %v1883_v11  ;;  %v3250_v45 = vld [vmem:[%s5453_s1 + $0x698] sm:$0xf0]  ;;  %v3676_v31 = vld [vmem:[%s5453_s1 + $0x714] sm:$0xf] }
  0xef   : > { %2223 = vmatpush.bf16.msrb.mxu1 %v3301_v8  ;;  %2189 = vmatmul.bf16.vlgmr.msra.gmra.mxu2 %v4428_v35  ;;  %v3349_v35 = vor.u32 %v3684_v39, %v3346_v50  ;;  %v3213_v15 = vor.u32 %v3650_v36, %v3210_v54  ;;  %v3394_v8 = vld [vmem:[%s5453_s1 + $0x7b8] sm:$0xf0]  ;;  %v1857_v25 = vadd.f32 %v5246_v13, %v1843_v4  ;;  %v3644_v13 = vld [vmem:[%s5453_s1 + $0x614] sm:$0xf]  ;;  %v1912_v39 = vpop.f32.mrf.mxu2  ;;  %v3658_v58 = vld [vmem:[%s5453_s1 + $0x684] sm:$0xf] }
  0xf0   : > { %2237 = vmatpush.bf16.msrb.mxu2 %v3365_v9  ;;  %2203 = vmatmul.bf16.vlgmr.msra.gmra.mxu3 %v4438_v40  ;;  %v3666_v40 = vld [vmem:[%s5453_s1 + $0x6c4] sm:$0xf]  ;;  %v5354_v9 = vpop.f32.mrf.mxu1  ;;  %v3397_v17 = vor.u32 %v3696_v7, %v3394_v8  ;;  %v3314_v51 = vld [vmem:[%s5453_s1 + $0x718] sm:$0xf0]  ;;  %v3245_v29 = vor.u32 %v3658_v58, %v3242_v60 }
  0xf1   : > { %2251 = vmatpush.bf16.msrb.mxu3 %v3429_v14  ;;  %v3277_v20 = vor.u32 %v3666_v40, %v3274_v28  ;;  %v3333_v14 = vor.u32 %v3680_v1, %v3330_v3  ;;  %v3378_v36 = vld [vmem:[%s5453_s1 + $0x798] sm:$0xf0]  ;;  %v3253_v28 = vor.u32 %v3660_v48, %v3250_v45  ;;  %v3317_v56 = vor.u32 %v3676_v31, %v3314_v51 }
  0xf2   : > { %2210 = vmatpush.bf16.msrb.mxu0 %v3229_v24  ;;  %v3322_v24 = vld [vmem:[%s5453_s1 + $0x728] sm:$0xf0] }
  0xf3   : > { %2224 = vmatpush.bf16.msrb.mxu1 %v3293_v27  ;;  %v3386_v27 = vld [vmem:[%s5453_s1 + $0x7a8] sm:$0xf0]  ;;  %v3325_v37 = vor.u32 %v3678_v23, %v3322_v24 }
  0xf4   : > { %2238 = vmatpush.bf16.msrb.mxu2 %v3357_v30  ;;  %v3197_v30 = vor.u32 %v3646_v55, %v3194_v2  ;;  %v3389_v50 = vor.u32 %v3694_v26, %v3386_v27 }
  0xf5   : > { %2252 = vmatpush.bf16.msrb.mxu3 %v3421_v5  ;;  %v3186_v5 = vld [vmem:[%s5453_s1 + $0x618] sm:$0xf0] }
  0xf6   : > { %2211 = vmatpush.bf16.msrb.mxu0 %v3221_v53  ;;  %v1871_v53 = vadd.f32 %v5257_v18, %v1857_v25  ;;  %v3189_v40 = vor.u32 %v3644_v13, %v3186_v5  ;;  %v3642_v18 = vld [vmem:[%s5453_s1 + $0x604] sm:$0xf] }
  0xf7   : > { %2225 = vmatpush.bf16.msrb.mxu1 %v3285_v44  ;;  %v1938_v44 = vpop.f32.mrf.mxu0  ;;  %v3181_v52 = vor.u32 %v3642_v18, %v3178_v57  ;;  %v1966_v0 = vpop.f32.mrf.mxu2 }
  0xf8   : > { %2239 = vmatpush.bf16.msrb.mxu2 %v3349_v35  ;;  %v3692_v35 = vld [vmem:[%s5453_s1 + $0x794] sm:$0xf]  ;;  %v1952_v54 = vpop.f32.mrf.mxu1  ;;  %v1885_v62 = vadd.f32 %v1884_v6, %v1871_v53  ;;  %v1980_v6 = vpop.f32.mrf.mxu3 }
  0xf9   : > { %2253 = vmatpush.bf16.msrb.mxu3 %v3413_v47  ;;  %v1911_v47 = vadd.f32 %v5324_v61, %v1897_v33  ;;  %v3381_v59 = vor.u32 %v3692_v35, %v3378_v36  ;;  %v3674_v61 = vld [vmem:[%s5453_s1 + $0x704] sm:$0xf] }
  0xfa   : > { %2212 = vmatpush.bf16.msrb.mxu0 %v3213_v15  ;;  %v3306_v15 = vld [vmem:[%s5453_s1 + $0x708] sm:$0xf0]  ;;  %v1899_v3 = vadd.f32 %v5354_v9, %v1885_v62 }
  0xfb   : > { %2226 = vmatpush.bf16.msrb.mxu1 %v3277_v20  ;;  %v3690_v20 = vld [vmem:[%s5453_s1 + $0x784] sm:$0xf]  ;;  %v1925_v21 = vadd.f32 %v5327_v63, %v1911_v47 }
  0xfc   : > { %2240 = vmatpush.bf16.msrb.mxu2 %v3341_v49  ;;  %v3370_v49 = vld [vmem:[%s5453_s1 + $0x788] sm:$0xf0]  ;;  %v1913_v7 = vadd.f32 %v1912_v39, %v1899_v3 }
  0xfd   : > { %2254 = vmatpush.bf16.msrb.mxu3 %v3405_v42  ;;  %v3309_v42 = vor.u32 %v3674_v61, %v3306_v15  ;;  %v3373_v1 = vor.u32 %v3690_v20, %v3370_v49  ;;  %v1939_v4 = vadd.f32 %v1938_v44, %v1925_v21  ;;  %v454_v44 = vperm.slane %v5151_v19, 1 }
  0xfe   : > { %2213 = vmatpush.bf16.msrb.mxu0 %v3205_v10  ;;  %v1927_v63 = vadd.f32 %v1926_v43, %v1913_v7 }
  0xff   : > { %2227 = vmatpush.bf16.msrb.mxu1 %v3269_v12  ;;  %v1940_v8 = vpop.f32.mrf.mxu0  ;;  %v1953_v11 = vadd.f32 %v1952_v54, %v1939_v4 }
 0x100   : > { %2241 = vmatpush.bf16.msrb.mxu2 %v3333_v14  ;;  %v1954_v10 = vpop.f32.mrf.mxu1  ;;  %v1941_v9 = vadd.f32 %v1940_v8, %v1927_v63  ;;  %v1968_v14 = vpop.f32.mrf.mxu2 }
 0x101   : > { %2255 = vmatpush.bf16.msrb.mxu3 %v3397_v17  ;;  %v1967_v12 = vadd.f32 %v1966_v0, %v1953_v11  ;;  %v1982_v2 = vpop.f32.mrf.mxu3 }
 0x102   : > { %2214 = vmatpush.bf16.msrb.mxu0 %v3197_v30  ;;  %v1955_v22 = vadd.f32 %v1954_v10, %v1941_v9 }
 0x103   : > { %2228 = vmatpush.bf16.msrb.mxu1 %v3261_v34  ;;  %v1981_v55 = vadd.f32 %v1980_v6, %v1967_v12 }
 0x104   : > { %2242 = vmatpush.bf16.msrb.mxu2 %v3325_v37  ;;  %v1969_v24 = vadd.f32 %v1968_v14, %v1955_v22 }
 0x105   : > { %2256 = vmatpush.bf16.msrb.mxu3 %v3389_v50 }
 0x106   : > { %2215 = vmatpush.bf16.msrb.mxu0 %v3189_v40  ;;  %v1983_v26 = vadd.f32 %v1982_v2, %v1969_v24 }
 0x107   : > { %2229 = vmatpush.bf16.msrb.mxu1 %v3253_v28 }
 0x108   : > { %2243 = vmatpush.bf16.msrb.mxu2 %v3317_v56 }
 0x109   : > { %2257 = vmatpush.bf16.msrb.mxu3 %v3381_v59 }
 0x10a   : > { %2216 = vmatpush.bf16.msrb.mxu0 %v3181_v52  ;;  %v1994_v16 = vpop.f32.mrf.mxu0 }
 0x10b   : > { %2230 = vmatpush.bf16.msrb.mxu1 %v3245_v29  ;;  %v2008_v17 = vpop.f32.mrf.mxu1  ;;  %v1995_v23 = vadd.f32 %v1994_v16, %v1981_v55 }
 0x10c   : > { %2244 = vmatpush.bf16.msrb.mxu2 %v3309_v42 }
 0x10d   : > { %2258 = vmatpush.bf16.msrb.mxu3 %v3373_v1  ;;  %2217 = vmatmul.bf16.vlgmr.msrb.gmra.mxu0 %v4629_v32  ;;  %v2009_v25 = vadd.f32 %v2008_v17, %v1995_v23 }
 0x10e   : > { %2231 = vmatmul.bf16.vlgmr.msrb.gmra.mxu1 %v4642_v41 }
 0x10f   : > { %2245 = vmatmul.bf16.vlgmr.msrb.gmra.mxu2 %v4640_v38 }
 0x110   : > { %2259 = vmatmul.bf16.vlgmr.msrb.gmra.mxu3 %v4650_v46 }
 0x112   : > { %v2022_v32 = vpop.f32.mrf.mxu2  ;;  %v1996_v27 = vpop.f32.mrf.mxu0 }
 0x113   : > { %v2023_v41 = vadd.f32 %v2022_v32, %v2009_v25  ;;  %v2036_v38 = vpop.f32.mrf.mxu3  ;;  %v1997_v30 = vadd.f32 %v1996_v27, %v1983_v26  ;;  %v2010_v46 = vpop.f32.mrf.mxu1 }
 0x115   : > { %v2037_v33 = vadd.f32 %v2036_v38, %v2023_v41  ;;  %v2011_v37 = vadd.f32 %v2010_v46, %v1997_v30 }
 0x117   : > { %v2265_v34 = vmax.f32 %v2037_v33, 0.0 }
 0x119   : > { %2269 = vst [vmem:[%s5442_s9] sm:$0xff] %v2265_v34 }
 0x11a   : > { %v2024_v13 = vpop.f32.mrf.mxu2 }
 0x11b   : > { %v2025_v5 = vadd.f32 %v2024_v13, %v2011_v37  ;;  %v2038_v48 = vpop.f32.mrf.mxu3 }
 0x11d   : > { %v2039_v39 = vadd.f32 %v2038_v48, %v2025_v5 }
 0x11f   : > { %v2267_v50 = vmax.f32 %v2039_v39, 0.0 }
 0x121   : > { %2271 = vst [vmem:[%s5442_s9 + $0x10] sm:$0xff] %v2267_v50 }
 0x12a   : > { %v2050_v45 = vpop.f32.mrf.mxu0 }
 0x12b   : > { %v2064_v31 = vpop.f32.mrf.mxu1  ;;  %v2051_v36 = vadd.f32 %v2050_v45, %v454_v44 }
 0x12d   : > { %v2065_v47 = vadd.f32 %v2064_v31, %v2051_v36 }
 0x132   : > { %v2078_v51 = vpop.f32.mrf.mxu2  ;;  %v2052_v43 = vpop.f32.mrf.mxu0 }
 0x133   : > { %v2092_v53 = vpop.f32.mrf.mxu3  ;;  %v2066_v35 = vpop.f32.mrf.mxu1  ;;  %v2079_v18 = vadd.f32 %v2078_v51, %v2065_v47  ;;  %v2053_v57 = vadd.f32 %v2052_v43, %v454_v44 }
 0x135   : > { %v2093_v59 = vadd.f32 %v2092_v53, %v2079_v18  ;;  %v2067_v61 = vadd.f32 %v2066_v35, %v2053_v57 }
 0x13a   : > { %v2080_v54 = vpop.f32.mrf.mxu2 }
 0x13b   : > { %v2094_v40 = vpop.f32.mrf.mxu3  ;;  %v2081_v49 = vadd.f32 %v2080_v54, %v2067_v61 }
 0x13d   : > { %v2095_v19 = vadd.f32 %v2094_v40, %v2081_v49 }
 0x14a   : > { %v2106_v28 = vpop.f32.mrf.mxu0 }
 0x14b   : > { %v2120_v56 = vpop.f32.mrf.mxu1  ;;  %v2107_v62 = vadd.f32 %v2106_v28, %v2093_v59 }
 0x14d   : > { %v2121_v52 = vadd.f32 %v2120_v56, %v2107_v62 }
 0x152   : > { %v2134_v58 = vpop.f32.mrf.mxu2  ;;  %v2108_v15 = vpop.f32.mrf.mxu0 }
 0x153   : > { %v2148_v60 = vpop.f32.mrf.mxu3  ;;  %v2122_v20 = vpop.f32.mrf.mxu1  ;;  %v2135_v0 = vadd.f32 %v2134_v58, %v2121_v52  ;;  %v2109_v3 = vadd.f32 %v2108_v15, %v2095_v19 }
 0x155   : > { %v2149_v4 = vadd.f32 %v2148_v60, %v2135_v0  ;;  %v2123_v7 = vadd.f32 %v2122_v20, %v2109_v3 }
 0x15a   : > { %v2136_v21 = vpop.f32.mrf.mxu2 }
 0x15b   : > { %v2150_v29 = vpop.f32.mrf.mxu3  ;;  %v2137_v11 = vadd.f32 %v2136_v21, %v2123_v7 }
 0x15d   : > { %v2151_v14 = vadd.f32 %v2150_v29, %v2137_v11 }
 0x16a   : > { %v2162_v42 = vpop.f32.mrf.mxu0 }
 0x16b   : > { %v2176_v1 = vpop.f32.mrf.mxu1  ;;  %v2163_v8 = vadd.f32 %v2162_v42, %v2149_v4 }
 0x16d   : > { %v2177_v12 = vadd.f32 %v2176_v1, %v2163_v8 }
 0x172   : > { %v2190_v6 = vpop.f32.mrf.mxu2  ;;  %v2164_v63 = vpop.f32.mrf.mxu0 }
 0x173   : > { %v2204_v10 = vpop.f32.mrf.mxu3  ;;  %v2178_v9 = vpop.f32.mrf.mxu1  ;;  %v2191_v55 = vadd.f32 %v2190_v6, %v2177_v12  ;;  %v2165_v2 = vadd.f32 %v2164_v63, %v2151_v14 }
 0x175   : > { %v2205_v17 = vadd.f32 %v2204_v10, %v2191_v55  ;;  %v2179_v24 = vadd.f32 %v2178_v9, %v2165_v2 }
 0x17a   : > { %v2192_v16 = vpop.f32.mrf.mxu2 }
 0x17b   : > { %v2206_v22 = vpop.f32.mrf.mxu3  ;;  %v2193_v26 = vadd.f32 %v2192_v16, %v2179_v24 }
 0x17d   : > { %v2207_v38 = vadd.f32 %v2206_v22, %v2193_v26 }
 0x18a   : > { %v2218_v23 = vpop.f32.mrf.mxu0 }
 0x18b   : > { %v2219_v25 = vadd.f32 %v2218_v23, %v2205_v17  ;;  %v2232_v32 = vpop.f32.mrf.mxu1 }
 0x18d   : > { %v2233_v41 = vadd.f32 %v2232_v32, %v2219_v25 }
 0x192   : > { %v2246_v27 = vpop.f32.mrf.mxu2  ;;  %v2220_v46 = vpop.f32.mrf.mxu0 }
 0x193   : > { %v2247_v30 = vadd.f32 %v2246_v27, %v2233_v41  ;;  %v2260_v33 = vpop.f32.mrf.mxu3  ;;  %v2221_v37 = vadd.f32 %v2220_v46, %v2207_v38  ;;  %v2234_v5 = vpop.f32.mrf.mxu1 }
 0x195   : > { %v2261_v34 = vadd.f32 %v2260_v33, %v2247_v30  ;;  %v2235_v48 = vadd.f32 %v2234_v5, %v2221_v37 }
 0x197   : > { %v2266_v13 = vmax.f32 %v2261_v34, 0.0 }
 0x199   : > { %2270 = vst [vmem:[%s5442_s9 + $0x8] sm:$0xff] %v2266_v13 }
 0x19a   : > { %v2248_v39 = vpop.f32.mrf.mxu2 }
 0x19b   : > { %v2249_v50 = vadd.f32 %v2248_v39, %v2235_v48  ;;  %v2262_v45 = vpop.f32.mrf.mxu3 }
 0x19d   : > { %v2263_v31 = vadd.f32 %v2262_v45, %v2249_v50 }
 0x19f   : > { %v2268_v51 = vmax.f32 %v2263_v31, 0.0 }
 0x1a1   : > { %2272 = vst [vmem:[%s5442_s9 + $0x18] sm:$0xff] %v2268_v51 }
 0x1a2 PF: > { %s13_s12 = sadd.s32 1, %s3720_s12  }
 0x1a3   : > { %p10_p4 = scmp.ge.s32.totalorder %s13_s12, 4  }
 0x1a5   :  { %12 = sbr.rel (!%p10_p4) target bundleno = 1 (0x1), region = 62 }

// kernel: encoder_forward.11
= control target key start
LH: loop header
LB: loop body
LE: loop exit
PB: predicated region body
PF: predicated region fallthrough
CT: control target
= control target key end

     0   :  { %s3169_s12 = smov 0   ;;  %s3880_s0 = inlined_call_operand.vmem [shape: f32[2,48,256], index: 0, kind: input, shape index: {}]   ;;  %s3881_s1 = inlined_call_operand.vmem [shape: bf16[3,3,256,128], index: 1, kind: input, shape index: {}]   ;;  %s3882_s2 = inlined_call_operand.vmem [shape: f32[1,128], index: 2, kind: input, shape index: {}]   ;;  %s3883_s3 = inlined_call_operand.vmem [shape: f32[2,48,128], index: 3, kind: output, shape index: {}]  }
   0x1 LB: > { %s2122_s13 = sadd.s32 4294967295, %s3145_s12   ;;  %p2126_p0 = scmp.ge.s32.totalorder %s3145_s12, 1  ;;  %s3145_s12 = sphi %s3169_s12, %s13_s12  }
   0x2   : > { %p137_p1 = scmp.lt.s32.totalorder %s3145_s12, 3 }
   0x4   : > { %p138_p2 = pnand %p2126_p0, %p137_p1 }
   0x5   : > { %p161_p3 = scmp.lt.s32.totalorder (!%p138_p2), %s2122_s13, 1 }
   0x6   : > { %141 = sbr.rel (%p138_p2) target bundleno = 317 (0x13d), region = 32 }
   0xb   : > { %v2989_v0 = vld [vmem:[%s3881_s1 + $0xb8] sm:$0xff]  ;;  %v2988_v4 = vld [vmem:[%s3881_s1 + $0xb0] sm:$0xff]  ;;  %s3891_s13 = smov (!%p161_p3, %s2122_s13), 1  ;;  %v2987_v8 = vld [vmem:[%s3881_s1 + $0xa8] sm:$0xff]  ;;  %vm363_vm0 = vsmask.f32 7424 }
   0xc   : > { %v2997_v1 = vld [vmem:[%s3881_s1 + $0xf8] sm:$0xff]  ;;  %494 = vmatpush.bf16.msra.mxu0 %v2989_v0  ;;  %v2996_v5 = vld [vmem:[%s3881_s1 + $0xf0] sm:$0xff]  ;;  %s3126_s30 = smul.u32 96, %s3891_s13  ;;  %v2995_v9 = vld [vmem:[%s3881_s1 + $0xe8] sm:$0xff]  ;;  %vm707_vm1 = vcmask 1046528   ;;  %vm898_vm2 = vcmask 1044480  }
   0xd   : > { %v2973_v2 = vld [vmem:[%s3881_s1 + $0x38] sm:$0xff]  ;;  %512 = vmatpush.bf16.msra.mxu1 %v2997_v1  ;;  %v2972_v6 = vld [vmem:[%s3881_s1 + $0x30] sm:$0xff]  ;;  %v2971_v10 = vld [vmem:[%s3881_s1 + $0x28] sm:$0xff]  ;;  %vm1085_vm3 = vsmask.f32 4352  ;;  %vm1482_vm4 = vcmask 1045504  }
   0xe   : > { %v2981_v3 = vld [vmem:[%s3881_s1 + $0x78] sm:$0xff]  ;;  %626 = vmatpush.bf16.msra.mxu2 %v2973_v2  ;;  %v2980_v7 = vld [vmem:[%s3881_s1 + $0x70] sm:$0xff]  ;;  %v2979_v11 = vld [vmem:[%s3881_s1 + $0x68] sm:$0xff]  ;;  %s3219_s16 = scalar_lea.vmem %s3880_s0, %s3126_s30  ;;  %vm1669_vm5 = vsmask.f32 5376 }
   0xf   : > { %644 = vmatpush.bf16.msra.mxu3 %v2981_v3  ;;  %v2986_v12 = vld [vmem:[%s3881_s1 + $0xa0] sm:$0xff]  ;;  %v3234_v16 = vld [vmem:[%s3219_s16 + $0x10] sm:$0xff]  ;;  %v3238_v18 = vld [vmem:[%s3219_s16 + $0x18] sm:$0xff] }
  0x10   : > { %495 = vmatpush.bf16.msra.mxu0 %v2988_v4  ;;  %v2994_v13 = vld [vmem:[%s3881_s1 + $0xe0] sm:$0xff]  ;;  %v323_v19 = vld [vmem:[%s3219_s16 + $0x8] sm:$0xfe]  ;;  %v2985_v20 = vld [vmem:[%s3881_s1 + $0x98] sm:$0xff] }
  0x11   : > { %513 = vmatpush.bf16.msra.mxu1 %v2996_v5  ;;  %v2970_v14 = vld [vmem:[%s3881_s1 + $0x20] sm:$0xff]  ;;  %v2993_v21 = vld [vmem:[%s3881_s1 + $0xd8] sm:$0xff]  ;;  %v324_v24 = vld [vmem:[%s3219_s16 + $0x30] sm:$0x1]  ;;  %v327_v26 = vpack.c.bf16 %v3238_v18, %v323_v19 }
  0x12   : > { %627 = vmatpush.bf16.msra.mxu2 %v2972_v6  ;;  %v2978_v15 = vld [vmem:[%s3881_s1 + $0x60] sm:$0xff]  ;;  %v2969_v22 = vld [vmem:[%s3881_s1 + $0x18] sm:$0xff]  ;;  %v3260_v28 = vld [vmem:[%s3219_s16 + $0x28] sm:$0xff] }
  0x13   : > { %645 = vmatpush.bf16.msra.mxu3 %v2980_v7  ;;  %v322_v17 = vld [vmem:[%s3219_s16] sm:$0xfe]  ;;  %v2977_v27 = vld [vmem:[%s3881_s1 + $0x58] sm:$0xff]  ;;  %v2984_v31 = vld [vmem:[%s3881_s1 + $0x90] sm:$0xff]  ;;  %v379_v35 = vshll.u32 %v327_v26, 16  ;;  %v377_v43 = vshrl.u32 %v327_v26, 16 }
  0x14   : > { %496 = vmatpush.bf16.msra.mxu0 %v2987_v8  ;;  %v3251_v23 = vld [vmem:[%s3219_s16 + $0x20] sm:$0xff]  ;;  %v326_v25 = vpack.c.bf16 %v3234_v16, %v322_v17  ;;  %v325_v29 = vld [vmem:[%s3219_s16 + $0x38] sm:$0x1]  ;;  %v2992_v32 = vld [vmem:[%s3881_s1 + $0xd0] sm:$0xff] }
  0x15   : > { %514 = vmatpush.bf16.msra.mxu1 %v2995_v9  ;;  %v3264_v30 = vpack.c.bf16 %v324_v24, %v3251_v23  ;;  %v3273_v34 = vpack.c.bf16 %v325_v29, %v3260_v28  ;;  %v2968_v36 = vld [vmem:[%s3881_s1 + $0x10] sm:$0xff]  ;;  %v2983_v38 = vld [vmem:[%s3881_s1 + $0x88] sm:$0xff]  ;;  %v381_v44 = vrot.slane %v379_v35, 1  ;;  %v2982_v48 = vld [vmem:[%s3881_s1 + $0x80] sm:$0xff]  ;;  %v289_v24 = vpack.c.bf16 %v3260_v28, %v3260_v28 }
  0x16   : > { %628 = vmatpush.bf16.msra.mxu2 %v2971_v10  ;;  %v367_v33 = vshll.u32 %v326_v25, 16  ;;  %v2976_v37 = vld [vmem:[%s3881_s1 + $0x50] sm:$0xff]  ;;  %v2991_v39 = vld [vmem:[%s3881_s1 + $0xc8] sm:$0xff]  ;;  %v365_v40 = vshrl.u32 %v326_v25, 16  ;;  %v2990_v49 = vld [vmem:[%s3881_s1 + $0xc0] sm:$0xff] }
  0x17   : > { %646 = vmatpush.bf16.msra.mxu3 %v2979_v11  ;;  %v372_v41 = vshll.u32 %v3264_v30, 16  ;;  %v384_v45 = vshll.u32 %v3273_v34, 16  ;;  %v2967_v46 = vld [vmem:[%s3881_s1 + $0x8] sm:$0xff]  ;;  %v382_v52 = vor.u32 %v381_v44, %v377_v43  ;;  %v280_v54 = vld [vmem:[%s3219_s16] sm:$0xff]  ;;  %v3005_v58 = vld [vmem:[%s3881_s1 + $0x138] sm:$0xff] }
  0x18   : > { %497 = vmatpush.bf16.msra.mxu0 %v2986_v12  ;;  %v369_v42 = vrot.slane %v367_v33, 1  ;;  %v2975_v47 = vld [vmem:[%s3881_s1 + $0x48] sm:$0xff]  ;;  %v2966_v55 = vld [vmem:[%s3881_s1] sm:$0xff]  ;;  %v3013_v59 = vld [vmem:[%s3881_s1 + $0x178] sm:$0xff]  ;;  %v286_v60 = vpack.c.bf16 %v3234_v16, %v280_v54  ;;  %v388_v12 = vshrl.u32 %v3264_v30, 16 }
  0x19   : > { %515 = vmatpush.bf16.msra.mxu1 %v2994_v13  ;;  %v374_v51 = vrot.slane %v372_v41, 1  ;;  %v386_v53 = vrot.slane %v384_v45, 1  ;;  %v2974_v56 = vld [vmem:[%s3881_s1 + $0x40] sm:$0xff]  ;;  %v281_v57 = vld [vmem:[%s3219_s16 + $0x8] sm:$0xff]  ;;  %v3021_v0 = vld [vmem:[%s3881_s1 + $0x1b8] sm:$0xff]  ;;  %v391_v13 = vshrl.u32 %v3273_v34, 16 }
  0x1a   : > { %629 = vmatpush.bf16.msra.mxu2 %v2970_v14  ;;  %v370_v50 = vor.u32 %v369_v42, %v365_v40  ;;  %v287_v63 = vpack.c.bf16 %v3238_v18, %v281_v57  ;;  %v3029_v1 = vld [vmem:[%s3881_s1 + $0x1f8] sm:$0xff]  ;;  %v3004_v2 = vld [vmem:[%s3881_s1 + $0x130] sm:$0xff]  ;;  %v3003_v6 = vld [vmem:[%s3881_s1 + $0x128] sm:$0xff] }
  0x1b   : > { %647 = vmatpush.bf16.msra.mxu3 %v2978_v15  ;;  %v387_v62 = vsel %vm363_vm0, %v382_v52, %v386_v53  ;;  %v3012_v3 = vld [vmem:[%s3881_s1 + $0x170] sm:$0xff]  ;;  %v3011_v7 = vld [vmem:[%s3881_s1 + $0x168] sm:$0xff]  ;;  %v3002_v10 = vld [vmem:[%s3881_s1 + $0x120] sm:$0xff] }
  0x1c   : > { %498 = vmatpush.bf16.msra.mxu0 %v2985_v20  ;;  %v375_v61 = vsel %vm363_vm0, %v370_v50, %v374_v51  ;;  %v3020_v4 = vld [vmem:[%s3881_s1 + $0x1b0] sm:$0xff]  ;;  %v3019_v8 = vld [vmem:[%s3881_s1 + $0x1a8] sm:$0xff]  ;;  %v3010_v11 = vld [vmem:[%s3881_s1 + $0x160] sm:$0xff]  ;;  %v390_v20 = vor.u32 %v388_v12, %v374_v51 }
  0x1d   : > { %516 = vmatpush.bf16.msra.mxu1 %v2993_v21  ;;  %v3028_v5 = vld [vmem:[%s3881_s1 + $0x1f0] sm:$0xff]  ;;  %v3027_v9 = vld [vmem:[%s3881_s1 + $0x1e8] sm:$0xff]  ;;  %v3018_v14 = vld [vmem:[%s3881_s1 + $0x1a0] sm:$0xff]  ;;  %v393_v21 = vor.u32 %v391_v13, %v386_v53 }
  0x1e   : > { %630 = vmatpush.bf16.msra.mxu2 %v2969_v22  ;;  %v3026_v15 = vld [vmem:[%s3881_s1 + $0x1e0] sm:$0xff]  ;;  %v3001_v17 = vld [vmem:[%s3881_s1 + $0x118] sm:$0xff]  ;;  %v288_v22 = vpack.c.bf16 %v3251_v23, %v3251_v23  ;;  %v3008_v29 = vld [vmem:[%s3881_s1 + $0x150] sm:$0xff] }
  0x1f   : > { %648 = vmatpush.bf16.msra.mxu3 %v2977_v27  ;;  %v3009_v19 = vld [vmem:[%s3881_s1 + $0x158] sm:$0xff]  ;;  %v3000_v27 = vld [vmem:[%s3881_s1 + $0x110] sm:$0xff]  ;;  %v3007_v33 = vld [vmem:[%s3881_s1 + $0x148] sm:$0xff] }
  0x20   : > { %499 = vmatpush.bf16.msra.mxu0 %v2984_v31  ;;  %v3017_v25 = vld [vmem:[%s3881_s1 + $0x198] sm:$0xff]  ;;  %v3016_v30 = vld [vmem:[%s3881_s1 + $0x190] sm:$0xff]  ;;  %v662_v34 = vld [vmem:[%s3219_s16] sm:$0xfc] }
  0x21   : > { %517 = vmatpush.bf16.msra.mxu1 %v2992_v32  ;;  %v3025_v26 = vld [vmem:[%s3881_s1 + $0x1d8] sm:$0xff]  ;;  %v3024_v31 = vld [vmem:[%s3881_s1 + $0x1d0] sm:$0xff]  ;;  %v2999_v32 = vld [vmem:[%s3881_s1 + $0x108] sm:$0xff]  ;;  %v666_v42 = vpack.c.bf16 %v3234_v16, %v662_v34 }
  0x22   : > { %631 = vmatpush.bf16.msra.mxu2 %v2968_v36  ;;  %v664_v35 = vld [vmem:[%s3219_s16 + $0x30] sm:$0x3]  ;;  %v663_v36 = vld [vmem:[%s3219_s16 + $0x8] sm:$0xfc]  ;;  %v856_v41 = vld [vmem:[%s3219_s16 + $0x38] sm:$0x3f] }
  0x23   : > { %649 = vmatpush.bf16.msra.mxu3 %v2976_v37  ;;  %v665_v37 = vld [vmem:[%s3219_s16 + $0x38] sm:$0x3]  ;;  %v854_v40 = vld [vmem:[%s3219_s16 + $0x8] sm:$0xc0]  ;;  %v668_v43 = vpack.c.bf16 %v664_v35, %v3251_v23  ;;  %v667_v44 = vpack.c.bf16 %v3238_v18, %v663_v36  ;;  %v860_v51 = vpack.c.bf16 %v856_v41, %v3260_v28  ;;  %v2998_v52 = vld [vmem:[%s3881_s1 + $0x100] sm:$0xff] }
  0x24   : > { %500 = vmatpush.bf16.msra.mxu0 %v2983_v38  ;;  %v853_v38 = vld [vmem:[%s3219_s16] sm:$0xc0]  ;;  %v669_v45 = vpack.c.bf16 %v665_v37, %v3260_v28  ;;  %v858_v50 = vpack.c.bf16 %v3238_v18, %v854_v40  ;;  %v3037_v54 = vld [vmem:[%s3881_s1 + $0x238] sm:$0xff]  ;;  %v3035_v12 = vld [vmem:[%s3881_s1 + $0x228] sm:$0xff] }
  0x25   : > { %518 = vmatpush.bf16.msra.mxu1 %v2991_v39  ;;  %v855_v39 = vld [vmem:[%s3219_s16 + $0x30] sm:$0x3f]  ;;  %v3006_v53 = vld [vmem:[%s3881_s1 + $0x140] sm:$0xff]  ;;  %v3429_v57 = vrot.slane %v668_v43, 1  ;;  %v3043_v13 = vld [vmem:[%s3881_s1 + $0x268] sm:$0xff] }
  0x26   : > { %632 = vmatpush.bf16.msra.mxu2 %v2967_v46  ;;  %v857_v46 = vpack.c.bf16 %v3234_v16, %v853_v38  ;;  %v3032_v36 = vld [vmem:[%s3881_s1 + $0x210] sm:$0xff] }
  0x27   : > { %650 = vmatpush.bf16.msra.mxu3 %v2975_v47  ;;  %v3015_v47 = vld [vmem:[%s3881_s1 + $0x188] sm:$0xff]  ;;  %v3040_v37 = vld [vmem:[%s3881_s1 + $0x250] sm:$0xff] }
  0x28   : > { %501 = vmatpush.bf16.msra.mxu0 %v2982_v48  ;;  %v3023_v48 = vld [vmem:[%s3881_s1 + $0x1c8] sm:$0xff]  ;;  %v3048_v38 = vld [vmem:[%s3881_s1 + $0x290] sm:$0xff] }
  0x29   : > { %519 = vmatpush.bf16.msra.mxu1 %v2990_v49  ;;  %v859_v49 = vpack.c.bf16 %v855_v39, %v3251_v23  ;;  %v3056_v39 = vld [vmem:[%s3881_s1 + $0x2d0] sm:$0xff] }
  0x2a   : > { %633 = vmatpush.bf16.msra.mxu2 %v2966_v55  ;;  %v3045_v55 = vld [vmem:[%s3881_s1 + $0x278] sm:$0xff] }
  0x2b   : > { %651 = vmatpush.bf16.msra.mxu3 %v2974_v56  ;;  %502 = vmatmul.bf16.vlgmr.msra.gmra.mxu0 %v375_v61  ;;  %v708_v56 = vrot.slane %v666_v42, 1  ;;  %v3022_v61 = vld [vmem:[%s3881_s1 + $0x1c0] sm:$0xff] }
  0x2c   : > { %814 = vmatpush.bf16.msrb.mxu0 %v3005_v58  ;;  %520 = vmatmul.bf16.vlgmr.msra.gmra.mxu1 %v387_v62  ;;  %v711_v58 = vrot.slane %v667_v44, 1  ;;  %v899_v62 = vrot.slane %v857_v46, 3 }
  0x2d   : > { %832 = vmatpush.bf16.msrb.mxu1 %v3013_v59  ;;  %634 = vmatmul.bf16.vlgmr.msra.gmra.mxu2 %v286_v60  ;;  %v3431_v59 = vrot.slane %v669_v45, 1  ;;  %v3014_v60 = vld [vmem:[%s3881_s1 + $0x180] sm:$0xff] }
  0x2e   : > { %652 = vmatmul.bf16.vlgmr.msra.gmra.mxu3 %v287_v63  ;;  %1005 = vmatpush.bf16.msrb.mxu2 %v3021_v0  ;;  %v3439_v63 = vrot.slane %v859_v49, 3  ;;  %v902_v0 = vrot.slane %v858_v50, 3  ;;  %v3039_v49 = vld [vmem:[%s3881_s1 + $0x248] sm:$0xff] }
  0x2f   : > { %1023 = vmatpush.bf16.msrb.mxu3 %v3029_v1  ;;  %v3441_v1 = vrot.slane %v860_v51, 3  ;;  %v3047_v50 = vld [vmem:[%s3881_s1 + $0x288] sm:$0xff] }
  0x30   : > { %815 = vmatpush.bf16.msrb.mxu0 %v3004_v2  ;;  %v3053_v2 = vld [vmem:[%s3881_s1 + $0x2b8] sm:$0xff]  ;;  %v3055_v51 = vld [vmem:[%s3881_s1 + $0x2c8] sm:$0xff] }
  0x31   : > { %833 = vmatpush.bf16.msrb.mxu1 %v3012_v3  ;;  %v3061_v3 = vld [vmem:[%s3881_s1 + $0x2f8] sm:$0xff] }
  0x32   : > { %1006 = vmatpush.bf16.msrb.mxu2 %v3020_v4  ;;  %v710_v4 = vsel %vm707_vm1, %v708_v56, %v3429_v57 }
  0x33   : > { %1024 = vmatpush.bf16.msrb.mxu3 %v3028_v5  ;;  %v713_v5 = vsel %vm707_vm1, %v711_v58, %v3431_v59 }
  0x34   : > { %816 = vmatpush.bf16.msrb.mxu0 %v3003_v6  ;;  %v901_v6 = vsel %vm898_vm2, %v899_v62, %v3439_v63  ;;  %v3046_v62 = vld [vmem:[%s3881_s1 + $0x280] sm:$0xff] }
  0x35   : > { %834 = vmatpush.bf16.msrb.mxu1 %v3011_v7  ;;  %v904_v7 = vsel %vm898_vm2, %v902_v0, %v3441_v1  ;;  %v3069_v0 = vld [vmem:[%s3881_s1 + $0x338] sm:$0xff] }
  0x36   : > { %1007 = vmatpush.bf16.msrb.mxu2 %v3019_v8  ;;  %v3036_v8 = vld [vmem:[%s3881_s1 + $0x230] sm:$0xff] }
  0x37   : > { %1025 = vmatpush.bf16.msrb.mxu3 %v3027_v9  ;;  %v3044_v9 = vld [vmem:[%s3881_s1 + $0x270] sm:$0xff] }
  0x38   : > { %817 = vmatpush.bf16.msrb.mxu0 %v3002_v10  ;;  %v3052_v10 = vld [vmem:[%s3881_s1 + $0x2b0] sm:$0xff] }
  0x39   : > { %835 = vmatpush.bf16.msrb.mxu1 %v3010_v11  ;;  %v3060_v11 = vld [vmem:[%s3881_s1 + $0x2f0] sm:$0xff] }
  0x3a   : > { %1008 = vmatpush.bf16.msrb.mxu2 %v3018_v14  ;;  %v3051_v14 = vld [vmem:[%s3881_s1 + $0x2a8] sm:$0xff] }
  0x3b   : > { %1026 = vmatpush.bf16.msrb.mxu3 %v3026_v15  ;;  %507 = vmatmul.bf16.gmra.mxu0 %v390_v20  ;;  %v3059_v15 = vld [vmem:[%s3881_s1 + $0x2e8] sm:$0xff]  ;;  %v3050_v20 = vld [vmem:[%s3881_s1 + $0x2a0] sm:$0xff] }
  0x3c   : > { %818 = vmatpush.bf16.msrb.mxu0 %v3001_v17  ;;  %525 = vmatmul.bf16.gmra.mxu1 %v393_v21  ;;  %v3034_v17 = vld [vmem:[%s3881_s1 + $0x220] sm:$0xff] }
  0x3d   : > { %836 = vmatpush.bf16.msrb.mxu1 %v3009_v19  ;;  %639 = vmatmul.bf16.gmra.mxu2 %v288_v22  ;;  %v3042_v19 = vld [vmem:[%s3881_s1 + $0x260] sm:$0xff]  ;;  %v3033_v22 = vld [vmem:[%s3881_s1 + $0x218] sm:$0xff] }
  0x3e   : > { %657 = vmatmul.bf16.gmra.mxu3 %v289_v24  ;;  %1009 = vmatpush.bf16.msrb.mxu2 %v3017_v25  ;;  %v3058_v21 = vld [vmem:[%s3881_s1 + $0x2e0] sm:$0xff]  ;;  %v1046_v25 = vld [vmem:[%s3219_s16 + $0x30] sm:$0x7f] }
  0x3f   : > { %1027 = vmatpush.bf16.msrb.mxu3 %v3025_v26  ;;  %v1044_v24 = vld [vmem:[%s3219_s16] sm:$0x80]  ;;  %v3041_v26 = vld [vmem:[%s3881_s1 + $0x258] sm:$0xff] }
  0x40   : > { %819 = vmatpush.bf16.msrb.mxu0 %v3000_v27  ;;  %v1045_v27 = vld [vmem:[%s3219_s16 + $0x8] sm:$0x80] }
  0x41   : > { %837 = vmatpush.bf16.msrb.mxu1 %v3008_v29  ;;  %v1047_v29 = vld [vmem:[%s3219_s16 + $0x38] sm:$0x7f]  ;;  %v1049_v34 = vpack.c.bf16 %v3238_v18, %v1045_v27 }
  0x42   : > { %1010 = vmatpush.bf16.msrb.mxu2 %v3016_v30  ;;  %v3049_v30 = vld [vmem:[%s3881_s1 + $0x298] sm:$0xff]  ;;  %v1051_v35 = vpack.c.bf16 %v1047_v29, %v3260_v28  ;;  %v1628_v29 = vld [vmem:[%s3219_s16 + $0x10] sm:$0xe0] }
  0x43   : > { %1028 = vmatpush.bf16.msrb.mxu3 %v3024_v31  ;;  %v3057_v31 = vld [vmem:[%s3881_s1 + $0x2d8] sm:$0xff]  ;;  %v1104_v44 = vshrl.u32 %v1049_v34, 16  ;;  %v1107_v45 = vshll.u32 %v1049_v34, 16 }
  0x44   : > { %820 = vmatpush.bf16.msrb.mxu0 %v2999_v32  ;;  %v1048_v32 = vpack.c.bf16 %v3234_v16, %v1044_v24  ;;  %v1112_v46 = vshrl.u32 %v1051_v35, 16  ;;  %v3090_v24 = vld [vmem:[%s3881_s1 + $0x3e0] sm:$0xff]  ;;  %v3065_v27 = vld [vmem:[%s3881_s1 + $0x318] sm:$0xff] }
  0x45   : > { %838 = vmatpush.bf16.msrb.mxu1 %v3007_v33  ;;  %v1050_v33 = vpack.c.bf16 %v1046_v25, %v3251_v23  ;;  %v1106_v56 = vrot.slane %v1104_v44, 3  ;;  %v3612_v25 = vld [vmem:[%s3219_s16 + $0x30] sm:$0xff]  ;;  %v1629_v34 = vld [vmem:[%s3219_s16 + $0x18] sm:$0xe0] }
  0x46   : > { %1011 = vmatpush.bf16.msrb.mxu2 %v3015_v47  ;;  %v1087_v40 = vshrl.u32 %v1048_v32, 16  ;;  %v1090_v41 = vshll.u32 %v1048_v32, 16  ;;  %v1115_v47 = vshll.u32 %v1051_v35, 16  ;;  %v1114_v58 = vrot.slane %v1112_v46, 3  ;;  %v1630_v32 = vld [vmem:[%s3219_s16 + $0x40] sm:$0x1f] }
  0x47   : > { %1029 = vmatpush.bf16.msrb.mxu3 %v3023_v48  ;;  %v1095_v42 = vshrl.u32 %v1050_v33, 16  ;;  %v1098_v43 = vshll.u32 %v1050_v33, 16  ;;  %v3031_v48 = vld [vmem:[%s3881_s1 + $0x208] sm:$0xff]  ;;  %v3089_v33 = vld [vmem:[%s3881_s1 + $0x3d8] sm:$0xff]  ;;  %v3080_v44 = vld [vmem:[%s3881_s1 + $0x390] sm:$0xff] }
  0x48   : > { %821 = vmatpush.bf16.msrb.mxu0 %v2998_v52  ;;  %v1089_v52 = vrot.slane %v1087_v40, 3  ;;  %v1631_v35 = vld [vmem:[%s3219_s16 + $0x48] sm:$0x1f]  ;;  %v3064_v40 = vld [vmem:[%s3881_s1 + $0x310] sm:$0xff] }
  0x49   : > { %839 = vmatpush.bf16.msrb.mxu1 %v3006_v53  ;;  %v1092_v53 = vrot.slane %v1090_v41, 4  ;;  %v3072_v41 = vld [vmem:[%s3881_s1 + $0x350] sm:$0xff]  ;;  %v3063_v46 = vld [vmem:[%s3881_s1 + $0x308] sm:$0xff] }
  0x4a   : > { %1012 = vmatpush.bf16.msrb.mxu2 %v3014_v60  ;;  %v3030_v60 = vld [vmem:[%s3881_s1 + $0x200] sm:$0xff] }
  0x4b   : > { %1030 = vmatpush.bf16.msrb.mxu3 %v3022_v61  ;;  %822 = vmatmul.bf16.vlgmr.msrb.gmra.mxu0 %v710_v4  ;;  %v3038_v61 = vld [vmem:[%s3881_s1 + $0x240] sm:$0xff] }
  0x4c   : > { %1220 = vmatpush.bf16.msra.mxu0 %v3037_v54  ;;  %840 = vmatmul.bf16.vlgmr.msrb.gmra.mxu1 %v713_v5  ;;  %v1097_v54 = vrot.slane %v1095_v42, 3  ;;  %v1633_v42 = vpack.c.bf16 %v3260_v28, %v1629_v34  ;;  %v3099_v34 = vld [vmem:[%s3881_s1 + $0x428] sm:$0xff] }
  0x4d   : > { %1238 = vmatpush.bf16.msra.mxu1 %v3045_v55  ;;  %1013 = vmatmul.bf16.vlgmr.msrb.gmra.mxu2 %v901_v6  ;;  %v1100_v55 = vrot.slane %v1098_v43, 4  ;;  %v3085_v6 = vld [vmem:[%s3881_s1 + $0x3b8] sm:$0xff] }
  0x4e   : > { %1394 = vmatpush.bf16.msra.mxu2 %v3053_v2  ;;  %1031 = vmatmul.bf16.vlgmr.msrb.gmra.mxu3 %v904_v7  ;;  %v1093_v2 = vor.u32 %v1092_v53, %v1089_v52  ;;  %v3093_v7 = vld [vmem:[%s3881_s1 + $0x3f8] sm:$0xff] }
  0x4f   : > { %1412 = vmatpush.bf16.msra.mxu3 %v3061_v3  ;;  %v3559_v3 = vor.u32 %v1100_v55, %v1097_v54  ;;  %v1434_v52 = vld [vmem:[%s3219_s16 + $0x18] sm:$0xf0]  ;;  %v1440_v55 = vld [vmem:[%s3219_s16 + $0x48] sm:$0xf] }
  0x50   : > { %1221 = vmatpush.bf16.msra.mxu0 %v3036_v8  ;;  %v1261_v8 = vpack.c.bf16 %v3251_v23, %v3234_v16  ;;  %v3084_v16 = vld [vmem:[%s3881_s1 + $0x3b0] sm:$0xff] }
  0x51   : > { %1239 = vmatpush.bf16.msra.mxu1 %v3044_v9  ;;  %v1102_v9 = vsel %vm1085_vm3, %v1093_v2, %v3559_v3  ;;  %v1442_v2 = vpack.c.bf16 %v3260_v28, %v1434_v52  ;;  %v3094_v52 = vld [vmem:[%s3881_s1 + $0x400] sm:$0xff] }
  0x52   : > { %1395 = vmatpush.bf16.msra.mxu2 %v3052_v10 }
  0x53   : > { %1413 = vmatpush.bf16.msra.mxu3 %v3060_v11  ;;  %v1262_v11 = vpack.c.bf16 %v3260_v28, %v3238_v18  ;;  %v3067_v18 = vld [vmem:[%s3881_s1 + $0x328] sm:$0xff] }
  0x54   : > { %1222 = vmatpush.bf16.msra.mxu0 %v3035_v12  ;;  %v3068_v12 = vld [vmem:[%s3881_s1 + $0x330] sm:$0xff] }
  0x55   : > { %1240 = vmatpush.bf16.msra.mxu1 %v3043_v13  ;;  %v3076_v13 = vld [vmem:[%s3881_s1 + $0x370] sm:$0xff] }
  0x56   : > { %1396 = vmatpush.bf16.msra.mxu2 %v3051_v14  ;;  %v3092_v14 = vld [vmem:[%s3881_s1 + $0x3f0] sm:$0xff] }
  0x57   : > { %1414 = vmatpush.bf16.msra.mxu3 %v3059_v15  ;;  %v3075_v15 = vld [vmem:[%s3881_s1 + $0x368] sm:$0xff] }
  0x58   : > { %1223 = vmatpush.bf16.msra.mxu0 %v3034_v17  ;;  %v3083_v17 = vld [vmem:[%s3881_s1 + $0x3a8] sm:$0xff] }
  0x59   : > { %1241 = vmatpush.bf16.msra.mxu1 %v3042_v19  ;;  %v3091_v19 = vld [vmem:[%s3881_s1 + $0x3e8] sm:$0xff] }
  0x5a   : > { %1397 = vmatpush.bf16.msra.mxu2 %v3050_v20  ;;  %v3066_v20 = vld [vmem:[%s3881_s1 + $0x320] sm:$0xff] }
  0x5b   : > { %1415 = vmatpush.bf16.msra.mxu3 %v3058_v21  ;;  %827 = vmatmul.bf16.gmra.mxu0 %v3429_v57  ;;  %v1109_v57 = vrot.slane %v1107_v45, 4  ;;  %v3074_v21 = vld [vmem:[%s3881_s1 + $0x360] sm:$0xff]  ;;  %v3088_v45 = vld [vmem:[%s3881_s1 + $0x3d0] sm:$0xff] }
  0x5c   : > { %1224 = vmatpush.bf16.msra.mxu0 %v3033_v22  ;;  %845 = vmatmul.bf16.gmra.mxu1 %v3431_v59  ;;  %v1117_v59 = vrot.slane %v1115_v47, 4  ;;  %v3082_v22 = vld [vmem:[%s3881_s1 + $0x3a0] sm:$0xff]  ;;  %v3071_v47 = vld [vmem:[%s3881_s1 + $0x348] sm:$0xff] }
  0x5d   : > { %1242 = vmatpush.bf16.msra.mxu1 %v3041_v26  ;;  %1018 = vmatmul.bf16.gmra.mxu2 %v3439_v63  ;;  %v3054_v63 = vld [vmem:[%s3881_s1 + $0x2c0] sm:$0xff]  ;;  %v1110_v4 = vor.u32 %v1109_v57, %v1106_v56  ;;  %v3615_v26 = vld [vmem:[%s3219_s16 + $0x38] sm:$0xff]  ;;  %v1688_v56 = vshrl.u32 %v1633_v42, 16  ;;  %v1691_v57 = vshll.u32 %v1633_v42, 16  ;;  %v3095_v42 = vld [vmem:[%s3881_s1 + $0x408] sm:$0xff] }
  0x5e   : > { %1398 = vmatpush.bf16.msra.mxu2 %v3049_v30  ;;  %1036 = vmatmul.bf16.gmra.mxu3 %v3441_v1  ;;  %v3077_v1 = vld [vmem:[%s3881_s1 + $0x378] sm:$0xff]  ;;  %v3561_v5 = vor.u32 %v1117_v59, %v1114_v58  ;;  %v1635_v43 = vpack.c.bf16 %v1631_v35, %v3615_v26  ;;  %v3107_v35 = vld [vmem:[%s3881_s1 + $0x468] sm:$0xff] }
  0x5f   : > { %1416 = vmatpush.bf16.msra.mxu3 %v3057_v31  ;;  %v3073_v30 = vld [vmem:[%s3881_s1 + $0x358] sm:$0xff] }
  0x60   : > { %1225 = vmatpush.bf16.msra.mxu0 %v3032_v36  ;;  %v1119_v10 = vsel %vm1085_vm3, %v1110_v4, %v3561_v5  ;;  %v3081_v31 = vld [vmem:[%s3881_s1 + $0x398] sm:$0xff]  ;;  %v1632_v36 = vpack.c.bf16 %v3251_v23, %v1628_v29  ;;  %v1696_v58 = vshrl.u32 %v1635_v43, 16  ;;  %v1699_v59 = vshll.u32 %v1635_v43, 16  ;;  %v3103_v43 = vld [vmem:[%s3881_s1 + $0x448] sm:$0xff] }
  0x61   : > { %1243 = vmatpush.bf16.msra.mxu1 %v3040_v37  ;;  %v1263_v37 = vpack.c.bf16 %v3612_v25, %v3612_v25 }
  0x62   : > { %1399 = vmatpush.bf16.msra.mxu2 %v3048_v38  ;;  %v1264_v38 = vpack.c.bf16 %v3615_v26, %v3615_v26 }
  0x63   : > { %1417 = vmatpush.bf16.msra.mxu3 %v3056_v39  ;;  %v1634_v39 = vpack.c.bf16 %v1630_v32, %v3612_v25  ;;  %v3100_v32 = vld [vmem:[%s3881_s1 + $0x430] sm:$0xff] }
  0x64   : > { %1226 = vmatpush.bf16.msra.mxu0 %v3031_v48  ;;  %v1433_v48 = vld [vmem:[%s3219_s16 + $0x10] sm:$0xf0] }
  0x65   : > { %1244 = vmatpush.bf16.msra.mxu1 %v3039_v49  ;;  %v1671_v49 = vshrl.u32 %v1632_v36, 16  ;;  %v1679_v53 = vshrl.u32 %v1634_v39, 16  ;;  %v1682_v54 = vshll.u32 %v1634_v39, 16  ;;  %v3105_v39 = vld [vmem:[%s3881_s1 + $0x458] sm:$0xff] }
  0x66   : > { %1400 = vmatpush.bf16.msra.mxu2 %v3047_v50  ;;  %v1674_v50 = vshll.u32 %v1632_v36, 16  ;;  %v3098_v36 = vld [vmem:[%s3881_s1 + $0x420] sm:$0xff] }
  0x67   : > { %1418 = vmatpush.bf16.msra.mxu3 %v3055_v51  ;;  %v1439_v51 = vld [vmem:[%s3219_s16 + $0x40] sm:$0xf]  ;;  %v1681_v4 = vrot.slane %v1679_v53, 2 }
  0x68   : > { %1227 = vmatpush.bf16.msra.mxu0 %v3030_v60  ;;  %v3079_v60 = vld [vmem:[%s3881_s1 + $0x388] sm:$0xff]  ;;  %v3102_v53 = vld [vmem:[%s3881_s1 + $0x440] sm:$0xff] }
  0x69   : > { %1245 = vmatpush.bf16.msra.mxu1 %v3038_v61  ;;  %v3087_v61 = vld [vmem:[%s3881_s1 + $0x3c8] sm:$0xff] }
  0x6a   : > { %1401 = vmatpush.bf16.msra.mxu2 %v3046_v62  ;;  %v1441_v62 = vpack.c.bf16 %v3251_v23, %v1433_v48 }
  0x6b   : > { %1419 = vmatpush.bf16.msra.mxu3 %v3054_v63  ;;  %1228 = vmatmul.bf16.vlgmr.msra.gmra.mxu0 %v1102_v9  ;;  %v1443_v63 = vpack.c.bf16 %v1439_v51, %v3612_v25  ;;  %v1693_v9 = vrot.slane %v1691_v57, 3 }
  0x6c   : > { %1589 = vmatpush.bf16.msrb.mxu0 %v3069_v0  ;;  %1246 = vmatmul.bf16.vlgmr.msra.gmra.mxu1 %v1119_v10  ;;  %v1673_v0 = vrot.slane %v1671_v49, 2  ;;  %v1698_v10 = vrot.slane %v1696_v58, 2 }
  0x6d   : > { %1607 = vmatpush.bf16.msrb.mxu1 %v3077_v1  ;;  %1402 = vmatmul.bf16.vlgmr.msra.gmra.mxu2 %v1261_v8  ;;  %v1676_v1 = vrot.slane %v1674_v50, 3  ;;  %v1690_v8 = vrot.slane %v1688_v56, 2 }
  0x6e   : > { %1804 = vmatpush.bf16.msrb.mxu2 %v3085_v6  ;;  %1420 = vmatmul.bf16.vlgmr.msra.gmra.mxu3 %v1262_v11  ;;  %v3062_v6 = vld [vmem:[%s3881_s1 + $0x300] sm:$0xff]  ;;  %v1701_v11 = vrot.slane %v1699_v59, 3 }
  0x6f   : > { %1822 = vmatpush.bf16.msrb.mxu3 %v3093_v7  ;;  %v3070_v7 = vld [vmem:[%s3881_s1 + $0x340] sm:$0xff] }
  0x70   : > { %1590 = vmatpush.bf16.msrb.mxu0 %v3068_v12  ;;  %v3078_v12 = vld [vmem:[%s3881_s1 + $0x380] sm:$0xff] }
  0x71   : > { %1608 = vmatpush.bf16.msrb.mxu1 %v3076_v13  ;;  %v3086_v13 = vld [vmem:[%s3881_s1 + $0x3c0] sm:$0xff] }
  0x72   : > { %1805 = vmatpush.bf16.msrb.mxu2 %v3084_v16  ;;  %v1483_v16 = vrot.slane %v1441_v62, 2 }
  0x73   : > { %1823 = vmatpush.bf16.msrb.mxu3 %v3092_v14  ;;  %v3101_v14 = vld [vmem:[%s3881_s1 + $0x438] sm:$0xff] }
  0x74   : > { %1591 = vmatpush.bf16.msrb.mxu0 %v3067_v18  ;;  %v3109_v18 = vld [vmem:[%s3881_s1 + $0x478] sm:$0xff] }
  0x75   : > { %1609 = vmatpush.bf16.msrb.mxu1 %v3075_v15  ;;  %v1484_v15 = vrot.slane %v1443_v63, 2 }
  0x76   : > { %1806 = vmatpush.bf16.msrb.mxu2 %v3083_v17  ;;  %v1486_v17 = vrot.slane %v1442_v2, 2 }
  0x77   : > { %1824 = vmatpush.bf16.msrb.mxu3 %v3091_v19 }
  0x78   : > { %1592 = vmatpush.bf16.msrb.mxu0 %v3066_v20  ;;  %v1677_v20 = vor.u32 %v1676_v1, %v1673_v0 }
  0x79   : > { %1610 = vmatpush.bf16.msrb.mxu1 %v3074_v21 }
  0x7a   : > { %1807 = vmatpush.bf16.msrb.mxu2 %v3082_v22  ;;  %v1694_v22 = vor.u32 %v1693_v9, %v1690_v8 }
  0x7b   : > { %1825 = vmatpush.bf16.msrb.mxu3 %v3090_v24  ;;  %1233 = vmatmul.bf16.gmra.mxu0 %v3559_v3  ;;  %v1444_v3 = vpack.c.bf16 %v1440_v55, %v3615_v26  ;;  %v1702_v24 = vor.u32 %v1701_v11, %v1698_v10 }
  0x7c   : > { %1593 = vmatpush.bf16.msrb.mxu0 %v3065_v27  ;;  %1251 = vmatmul.bf16.gmra.mxu1 %v3561_v5  ;;  %v1684_v5 = vrot.slane %v1682_v54, 3  ;;  %v1485_v27 = vsel %vm1482_vm4, %v1483_v16, %v1484_v15 }
  0x7d   : > { %1611 = vmatpush.bf16.msrb.mxu1 %v3073_v30  ;;  %1407 = vmatmul.bf16.gmra.mxu2 %v1263_v37  ;;  %v1487_v19 = vrot.slane %v1444_v3, 2  ;;  %v3106_v37 = vld [vmem:[%s3881_s1 + $0x460] sm:$0xff] }
  0x7e   : > { %1808 = vmatpush.bf16.msrb.mxu2 %v3081_v31  ;;  %1425 = vmatmul.bf16.gmra.mxu3 %v1264_v38  ;;  %v1685_v21 = vor.u32 %v1684_v5, %v1681_v4  ;;  %v1703_v31 = vsel %vm1669_vm5, %v1694_v22, %v1702_v24  ;;  %v3097_v38 = vld [vmem:[%s3881_s1 + $0x418] sm:$0xff] }
  0x7f   : > { %1826 = vmatpush.bf16.msrb.mxu3 %v3089_v33  ;;  %v1488_v29 = vsel %vm1482_vm4, %v1486_v17, %v1487_v19  ;;  %v3108_v33 = vld [vmem:[%s3881_s1 + $0x470] sm:$0xff] }
  0x80   : > { %1594 = vmatpush.bf16.msrb.mxu0 %v3064_v40  ;;  %v1686_v30 = vsel %vm1669_vm5, %v1677_v20, %v1685_v21  ;;  %v3096_v40 = vld [vmem:[%s3881_s1 + $0x410] sm:$0xff] }
  0x81   : > { %1612 = vmatpush.bf16.msrb.mxu1 %v3072_v41  ;;  %v3104_v41 = vld [vmem:[%s3881_s1 + $0x450] sm:$0xff] }
  0x82   : > { %1809 = vmatpush.bf16.msrb.mxu2 %v3080_v44  ;;  %v1843_v44 = vld [vmem:[%s3219_s16 + $0x10] sm:$0xc0] }
  0x83   : > { %1827 = vmatpush.bf16.msrb.mxu3 %v3088_v45  ;;  %v1845_v45 = vld [vmem:[%s3219_s16 + $0x40] sm:$0x3f]  ;;  %v1847_v48 = vpack.c.bf16 %v3251_v23, %v1843_v44 }
  0x84   : > { %1595 = vmatpush.bf16.msrb.mxu0 %v3063_v46  ;;  %v1844_v46 = vld [vmem:[%s3219_s16 + $0x18] sm:$0xc0]  ;;  %v1849_v49 = vpack.c.bf16 %v1845_v45, %v3612_v25 }
  0x85   : > { %1613 = vmatpush.bf16.msrb.mxu1 %v3071_v47  ;;  %v1846_v47 = vld [vmem:[%s3219_s16 + $0x48] sm:$0x3f]  ;;  %v1848_v50 = vpack.c.bf16 %v3260_v28, %v1844_v46  ;;  %v1888_v54 = vrot.slane %v1847_v48, 3  ;;  %s3127_s16 = smul.u32 48, %s3891_s13 }
  0x86   : > { %1810 = vmatpush.bf16.msrb.mxu2 %v3079_v60  ;;  %v1850_v51 = vpack.c.bf16 %v1846_v47, %v3615_v26  ;;  %v1889_v23 = vrot.slane %v1849_v49, 3 }
  0x87   : > { %1828 = vmatpush.bf16.msrb.mxu3 %v3087_v61  ;;  %v1891_v55 = vrot.slane %v1848_v50, 3  ;;  %s3806_s19 = scalar_lea.vmem %s3883_s3, %s3127_s16 }
  0x88   : > { %1596 = vmatpush.bf16.msrb.mxu0 %v3062_v6  ;;  %v1892_v25 = vrot.slane %v1850_v51, 3  ;;  %v1890_v56 = vsel %vm898_vm2, %v1888_v54, %v1889_v23 }
  0x89   : > { %1614 = vmatpush.bf16.msrb.mxu1 %v3070_v7 }
  0x8a   : > { %1811 = vmatpush.bf16.msrb.mxu2 %v3078_v12  ;;  %v1893_v57 = vsel %vm898_vm2, %v1891_v55, %v1892_v25 }
  0x8b   : > { %1829 = vmatpush.bf16.msrb.mxu3 %v3086_v13  ;;  %1597 = vmatmul.bf16.vlgmr.msrb.gmra.mxu0 %v1485_v27 }
  0x8c   : > { %1994 = vmatpush.bf16.msra.mxu0 %v3101_v14  ;;  %1615 = vmatmul.bf16.vlgmr.msrb.gmra.mxu1 %v1488_v29 }
  0x8d   : > { %2012 = vmatpush.bf16.msra.mxu1 %v3109_v18  ;;  %1812 = vmatmul.bf16.vlgmr.msrb.gmra.mxu2 %v1686_v30 }
  0x8e   : > { %3110 = vmatpush.bf16.msra.mxu2 %v3101_v14  ;;  %1830 = vmatmul.bf16.vlgmr.msrb.gmra.mxu3 %v1703_v31 }
  0x8f   : > { %3118 = vmatpush.bf16.msra.mxu3 %v3109_v18 }
  0x90   : > { %1995 = vmatpush.bf16.msra.mxu0 %v3100_v32 }
  0x91   : > { %2013 = vmatpush.bf16.msra.mxu1 %v3108_v33 }
  0x92   : > { %3111 = vmatpush.bf16.msra.mxu2 %v3100_v32 }
  0x93   : > { %3119 = vmatpush.bf16.msra.mxu3 %v3108_v33 }
  0x94   : > { %1996 = vmatpush.bf16.msra.mxu0 %v3099_v34 }
  0x95   : > { %2014 = vmatpush.bf16.msra.mxu1 %v3107_v35 }
  0x96   : > { %3112 = vmatpush.bf16.msra.mxu2 %v3099_v34 }
  0x97   : > { %3120 = vmatpush.bf16.msra.mxu3 %v3107_v35 }
  0x98   : > { %1997 = vmatpush.bf16.msra.mxu0 %v3098_v36 }
  0x99   : > { %2015 = vmatpush.bf16.msra.mxu1 %v3106_v37 }
  0x9a   : > { %3113 = vmatpush.bf16.msra.mxu2 %v3098_v36 }
  0x9b   : > { %3121 = vmatpush.bf16.msra.mxu3 %v3106_v37  ;;  %1602 = vmatmul.bf16.gmra.mxu0 %v1484_v15 }
  0x9c   : > { %1998 = vmatpush.bf16.msra.mxu0 %v3097_v38  ;;  %1620 = vmatmul.bf16.gmra.mxu1 %v1487_v19 }
  0x9d   : > { %2016 = vmatpush.bf16.msra.mxu1 %v3105_v39  ;;  %1817 = vmatmul.bf16.gmra.mxu2 %v1685_v21 }
  0x9e   : > { %3114 = vmatpush.bf16.msra.mxu2 %v3097_v38  ;;  %1835 = vmatmul.bf16.gmra.mxu3 %v1702_v24 }
  0x9f   : > { %3122 = vmatpush.bf16.msra.mxu3 %v3105_v39 }
  0xa0   : > { %1999 = vmatpush.bf16.msra.mxu0 %v3096_v40 }
  0xa1   : > { %2017 = vmatpush.bf16.msra.mxu1 %v3104_v41 }
  0xa2   : > { %3115 = vmatpush.bf16.msra.mxu2 %v3096_v40 }
  0xa3   : > { %3123 = vmatpush.bf16.msra.mxu3 %v3104_v41 }
  0xa4   : > { %2000 = vmatpush.bf16.msra.mxu0 %v3095_v42 }
  0xa5   : > { %2018 = vmatpush.bf16.msra.mxu1 %v3103_v43 }
  0xa6   : > { %3116 = vmatpush.bf16.msra.mxu2 %v3095_v42 }
  0xa7   : > { %3124 = vmatpush.bf16.msra.mxu3 %v3103_v43 }
  0xa8   : > { %2001 = vmatpush.bf16.msra.mxu0 %v3094_v52  ;;  %v503_v28 = vpop.f32.mrf.mxu0 }
  0xa9   : > { %2019 = vmatpush.bf16.msra.mxu1 %v3102_v53  ;;  %v521_v26 = vpop.f32.mrf.mxu1 }
  0xaa   : > { %3117 = vmatpush.bf16.msra.mxu2 %v3094_v52  ;;  %v522_v58 = vadd.f32 %v521_v26, %v503_v28 }
  0xab   : > { %3125 = vmatpush.bf16.msra.mxu3 %v3102_v53  ;;  %2002 = vmatmul.bf16.vlgmr.msra.gmra.mxu0 %v1890_v56 }
  0xac   : > { %2020 = vmatmul.bf16.vlgmr.msra.gmra.mxu1 %v1893_v57 }
  0xad   : > { %2007 = vmatmul.bf16.vlgmr.msra.gmra.mxu2 %v1889_v23  ;;  %v171_v23 = vlaneseq }
  0xae   : > { %2025 = vmatmul.bf16.vlgmr.msra.gmra.mxu3 %v1892_v25 }
  0xaf   : > { %v3763_v55 = vshrl.u32 %v171_v23, 7  ;;  %v3148_v23 = vmov 0.0  }
  0xb0   : > { %v635_v59 = vpop.f32.mrf.mxu2  ;;  %v505_v62 = vpop.f32.mrf.mxu0  ;;  %2058 = vst [vmem:[%s3806_s19] sm:$0xff] %v3148_v23 }
  0xb1   : > { %v653_v60 = vpop.f32.mrf.mxu3  ;;  %v636_v61 = vadd.f32 %v635_v59, %v522_v58  ;;  %v523_v63 = vpop.f32.mrf.mxu1  ;;  %v178_v57 = vand.u32 65535, %v3763_v55  ;;  %v179_v58 = vshrl.u32 %v3763_v55, 16  ;;  %2059 = vst [vmem:[%s3806_s19 + $0x8] sm:$0xff] %v3148_v23 }
  0xb2   : > { %v524_v0 = vadd.f32 %v523_v63, %v505_v62  ;;  %2062 = vst [vmem:[%s3806_s19 + $0x20] sm:$0xff] %v3148_v23 }
  0xb3   : > { %v654_v1 = vadd.f32 %v653_v60, %v636_v61  ;;  %v182_v59 = vmul.u32 43690, %v178_v57  ;;  %v3776_v60 = vadd.s32 16, %v3763_v55  ;;  %v3778_v61 = vmul.u32 43691, %v179_v58  ;;  %2063 = vst [vmem:[%s3806_s19 + $0x28] sm:$0xff] %v3148_v23 }
  0xb4   : > { %2060 = vst [vmem:[%s3806_s19 + $0x10] sm:$0xff] %v3148_v23 }
  0xb5   : > { %2061 = vst [vmem:[%s3806_s19 + $0x18] sm:$0xff] %v3148_v23 }
  0xb8   : > { %v637_v2 = vpop.f32.mrf.mxu2  ;;  %v508_v5 = vpop.f32.mrf.mxu0 }
  0xb9   : > { %v655_v3 = vpop.f32.mrf.mxu3  ;;  %v638_v4 = vadd.f32 %v637_v2, %v524_v0  ;;  %v526_v6 = vpop.f32.mrf.mxu1  ;;  %v181_v0 = vmul.u32 43691, %v178_v57  ;;  %v236_v2 = vand.u32 65535, %v3776_v60 }
  0xba   : > { %v527_v7 = vadd.f32 %v526_v6, %v508_v5 }
  0xbb   : > { %v656_v8 = vadd.f32 %v655_v3, %v638_v4  ;;  %v3786_v3 = vadd.s32 8, %v3763_v55 }
  0xbd   : > { %v207_v6 = vand.u32 65535, %v3786_v3 }
  0xc0   : > { %v640_v9 = vpop.f32.mrf.mxu2  ;;  %v510_v12 = vpop.f32.mrf.mxu0 }
  0xc1   : > { %v658_v10 = vpop.f32.mrf.mxu3  ;;  %v641_v11 = vadd.f32 %v640_v9, %v527_v7  ;;  %v528_v13 = vpop.f32.mrf.mxu1  ;;  %v187_v7 = vshll.u32 %v3778_v61, 16  ;;  %v3791_v9 = vmul.u32 43690, %v236_v2  ;;  %v3794_v12 = vmul.u32 43690, %v207_v6 }
  0xc2   : > { %v184_v13 = vmul.u32 43690, %v179_v58  ;;  %v188_v58 = vshrl.u32 %v3778_v61, 16 }
  0xc3   : > { %v659_v16 = vadd.f32 %v658_v10, %v641_v11  ;;  %v208_v11 = vshrl.u32 %v3786_v3, 16  ;;  %v215_v61 = vshrl.u32 %v3794_v12, 16 }
  0xc8   : > { %v642_v14 = vpop.f32.mrf.mxu2  ;;  %v823_v15 = vpop.f32.mrf.mxu0 }
  0xc9   : > { %v660_v18 = vpop.f32.mrf.mxu3  ;;  %v841_v17 = vpop.f32.mrf.mxu1 }
  0xca   : > { %v842_v19 = vadd.f32 %v841_v17, %v823_v15  ;;  %v239_v18 = vmul.u32 43691, %v236_v2  ;;  %v243_v17 = vshll.u32 %v3791_v9, 16 }
  0xcc   : > { %v850_v20 = vadd.f32 %v842_v19, %v654_v1  ;;  %v185_v1 = vshll.u32 %v182_v59, 16  ;;  %vm247_vm8 = vc.u32 %v239_v18, %v243_v17 }
  0xce   : > { %vm189_vm6 = vc.u32 %v181_v0, %v185_v1  ;;  %v191_v10 = vadd.s32 %v185_v1, %v181_v0 }
  0xd0   : > { %v1014_v21 = vpop.f32.mrf.mxu2  ;;  %v825_v27 = vpop.f32.mrf.mxu0  ;;  %vm193_vm7 = vc.u32 %v191_v10, %v187_v7 }
  0xd1   : > { %v1032_v22 = vpop.f32.mrf.mxu3  ;;  %v843_v29 = vpop.f32.mrf.mxu1 }
  0xd2   : > { %v1033_v24 = vadd.f32 %v1032_v22, %v1014_v21  ;;  %v844_v30 = vadd.f32 %v843_v29, %v825_v27  ;;  %v210_v21 = vmul.u32 43691, %v207_v6  ;;  %v212_v22 = vmul.u32 43691, %v208_v11 }
  0xd4   : > { %v3745_v31 = vadd.f32 %v1033_v24, %v850_v20  ;;  %v851_v32 = vadd.f32 %v844_v30, %v656_v8  ;;  %v237_v8 = vshrl.u32 %v3776_v60, 16  ;;  %v214_v24 = vshll.u32 %v3794_v12, 16 }
  0xd6   : > { %v241_v15 = vmul.u32 43691, %v237_v8  ;;  %vm218_vm9 = vc.u32 %v210_v21, %v214_v24 }
  0xd8   : > { %v1016_v33 = vpop.f32.mrf.mxu2  ;;  %v828_v36 = vpop.f32.mrf.mxu0 }
  0xd9   : > { %v1034_v34 = vpop.f32.mrf.mxu3  ;;  %v846_v37 = vpop.f32.mrf.mxu1 }
  0xda   : > { %v1035_v35 = vadd.f32 %v1034_v34, %v1016_v33  ;;  %v847_v38 = vadd.f32 %v846_v37, %v828_v36  ;;  %v245_v33 = vshll.u32 %v241_v15, 16  ;;  %v249_v34 = vadd.s32 %v243_v17, %v239_v18 }
  0xdb   : > { %v220_v36 = vadd.s32 %v214_v24, %v210_v21  ;;  %v242_v37 = vmul.u32 43690, %v237_v8  ;;  %v217_v17 = vshrl.u32 %v212_v22, 16 }
  0xdc   : > { %v3747_v39 = vadd.f32 %v1035_v35, %v851_v32  ;;  %v852_v40 = vadd.f32 %v847_v38, %v659_v16  ;;  %v3147_v16 = vmov 0   ;;  %v216_v35 = vshll.u32 %v212_v22, 16 }
  0xdd   : > { %v190_v14 = vsel %vm189_vm6, 1, %v3147_v16  ;;  %v194_v32 = vsel %vm193_vm7, 1, %v3147_v16  ;;  %v186_v38 = vshrl.u32 %v182_v59, 16  ;;  %vm251_vm10 = vc.u32 %v249_v34, %v245_v33 }
  0xde   : > { %v192_v30 = vadd.s32 %v190_v14, %v184_v13  ;;  %vm222_vm11 = vc.u32 %v220_v36, %v216_v35  ;;  %v252_v0 = vsel %vm251_vm10, 1, %v3147_v16  ;;  %v246_v14 = vshrl.u32 %v241_v15, 16 }
  0xdf   : > { %v223_v2 = vsel %vm222_vm11, 1, %v3147_v16 }
  0xe0   : > { %v1019_v41 = vpop.f32.mrf.mxu2  ;;  %v830_v44 = vpop.f32.mrf.mxu0 }
  0xe1   : > { %v1037_v42 = vpop.f32.mrf.mxu3  ;;  %v848_v45 = vpop.f32.mrf.mxu1 }
  0xe2   : > { %v1038_v43 = vadd.f32 %v1037_v42, %v1019_v41  ;;  %v248_v41 = vsel %vm247_vm8, 1, %v3147_v16  ;;  %v213_v42 = vmul.u32 43690, %v208_v11 }
  0xe3   : > { %v250_v57 = vadd.s32 %v248_v41, %v242_v37 }
  0xe4   : > { %v3749_v46 = vadd.f32 %v1038_v43, %v852_v40  ;;  %v196_v40 = vadd.s32 %v194_v32, %v192_v30  ;;  %v219_v43 = vsel %vm218_vm9, 1, %v3147_v16 }
  0xe5   : > { %v221_v1 = vadd.s32 %v219_v43, %v213_v42 }
  0xe6   : > { %v197_v59 = vadd.s32 %v196_v40, %v186_v38 }
  0xe7   : > { %v225_v7 = vadd.s32 %v223_v2, %v221_v1 }
  0xe8   : > { %v1021_v47 = vpop.f32.mrf.mxu2  ;;  %v3751_v49 = vpop.f32.mrf.mxu0  ;;  %v198_v6 = vadd.s32 %v197_v59, %v188_v58 }
  0xe9   : > { %v1039_v48 = vpop.f32.mrf.mxu3  ;;  %v3753_v50 = vpop.f32.mrf.mxu1 }
  0xea   : > { %v199_v16 = vshrl.u32 %v198_v6, 2 }
  0xec   : > { %v200_v21 = vmul.u32 6, %v199_v16 }
  0xee   : > { %v201_v15 = vsub.s32 %v3763_v55, %v200_v21 }
  0xf0   : > { %v3755_v51 = vpop.f32.mrf.mxu2  ;;  %v3759_v53 = vpop.f32.mrf.mxu0  ;;  %vm262_vm12 = vcmp.ne.s32.totalorder %v201_v15, 0  ;;  %vm265_vm13 = vcmp.lt.s32.totalorder %v201_v15, 0  ;;  %v271_v43 = vadd.s32 6, %v201_v15 }
  0xf1   : > { %v3757_v52 = vpop.f32.mrf.mxu3  ;;  %v3761_v54 = vpop.f32.mrf.mxu1  ;;  %vm3843_vm14 = vmand %vm265_vm13, %vm262_vm12 }
  0xf2   : > { %v1422_v12 = vadd.f32 %v3757_v52, %v3755_v51 }
  0xf8   : > { %v3765_v25 = vpop.f32.mrf.mxu2  ;;  %v3769_v26 = vpop.f32.mrf.mxu0 }
  0xf9   : > { %v3767_v28 = vpop.f32.mrf.mxu3  ;;  %v3771_v56 = vpop.f32.mrf.mxu1 }
  0xfa   : > { %v1253_v52 = vadd.f32 %v3771_v56, %v3769_v26  ;;  %v1424_v55 = vadd.f32 %v3767_v28, %v3765_v25  ;;  %v3138_v25 = vld [vmem:[%s3882_s2] ss:$0 sm:$0xff] }
 0x100   : > { %v3780_v62 = vpop.f32.mrf.mxu2  ;;  %v1236_v4 = vpop.f32.mrf.mxu0 }
 0x101   : > { %v3782_v63 = vpop.f32.mrf.mxu3  ;;  %v1254_v5 = vpop.f32.mrf.mxu1  ;;  %v244_v4 = vshrl.u32 %v3791_v9, 16  ;;  %v1248_v9 = vadd.f32 %v3753_v50, %v3751_v49  ;;  %v1250_v49 = vadd.f32 %v3761_v54, %v3759_v53 }
 0x102   : > { %v254_v5 = vadd.s32 %v252_v0, %v250_v57 }
 0x103   : > { %v1256_v22 = vadd.f32 %v1248_v9, %v3745_v31  ;;  %v1257_v26 = vadd.f32 %v1250_v49, %v3747_v39 }
 0x104   : > { %v255_v18 = vadd.s32 %v254_v5, %v244_v4 }
 0x105   : > { %v1430_v38 = vadd.f32 %v1422_v12, %v1256_v22  ;;  %v1431_v57 = vadd.f32 %v1424_v55, %v1257_v26 }
 0x108   : > { %v1410_v19 = vpop.f32.mrf.mxu2  ;;  %v3798_v27 = vpop.f32.mrf.mxu0 }
 0x109   : > { %v1428_v20 = vpop.f32.mrf.mxu3  ;;  %v3800_v29 = vpop.f32.mrf.mxu1  ;;  %v226_v19 = vadd.s32 %v225_v7, %v215_v61 }
 0x10a   : > { %v256_v20 = vadd.s32 %v255_v18, %v246_v14  ;;  %v1617_v37 = vadd.f32 %v3800_v29, %v3798_v27  ;;  %v1427_v27 = vadd.f32 %v3782_v63, %v3780_v62  ;;  %v1258_v62 = vadd.f32 %v1253_v52, %v3749_v46 }
 0x10b   : > { %v227_v24 = vadd.s32 %v226_v19, %v217_v17 }
 0x10c   : > { %v257_v35 = vshrl.u32 %v256_v20, 2  ;;  %v1625_v41 = vadd.f32 %v1617_v37, %v1430_v38  ;;  %v1432_v39 = vadd.f32 %v1427_v27, %v1258_v62 }
 0x10d   : > { %v228_v36 = vshrl.u32 %v227_v24, 2 }
 0x10e   : > { %v258_v50 = vmul.u32 6, %v257_v35 }
 0x10f   : > { %v229_v51 = vmul.u32 6, %v228_v36 }
 0x110   : > { %v1813_v44 = vpop.f32.mrf.mxu2  ;;  %v3808_v47 = vpop.f32.mrf.mxu0 }
 0x111   : > { %v1831_v45 = vpop.f32.mrf.mxu3  ;;  %v3810_v48 = vpop.f32.mrf.mxu1  ;;  %v230_v28 = vsub.s32 %v3786_v3, %v229_v51 }
 0x112   : > { %v1832_v40 = vadd.f32 %v1831_v45, %v1813_v44  ;;  %v259_v44 = vsub.s32 %v3776_v60, %v258_v50  ;;  %v1619_v58 = vadd.f32 %v3810_v48, %v3808_v47  ;;  %v274_v60 = vsel %vm3843_vm14, %v271_v43, %v201_v15 }
 0x113   : > { %vm263_vm1 = vcmp.ne.s32.totalorder %v230_v28, 0  ;;  %vm266_vm2 = vcmp.lt.s32.totalorder %v230_v28, 0  ;;  %vm3858_vm3 = vcmp.lt.s32.totalorder %v274_v60, 4  ;;  %v272_v61 = vadd.s32 6, %v230_v28 }
 0x114   : > { %v1840_v56 = vadd.f32 %v1832_v40, %v1625_v41  ;;  %vm264_vm15 = vcmp.ne.s32.totalorder %v259_v44, 0  ;;  %vm267_vm0 = vcmp.lt.s32.totalorder %v259_v44, 0  ;;  %v273_v4 = vadd.s32 6, %v259_v44  ;;  %vm269_vm6 = vmand %vm266_vm2, %vm263_vm1 }
 0x115   : > { %v1626_v47 = vadd.f32 %v1619_v58, %v1431_v57  ;;  %vm3862_vm5 = vmand %vm267_vm0, %vm264_vm15  ;;  %v275_v20 = vsel %vm269_vm6, %v272_v61, %v230_v28 }
 0x116   : > { %v276_v17 = vsel %vm3862_vm5, %v273_v4, %v259_v44  ;;  %vm278_vm9 = vcmp.lt.s32.totalorder %v275_v20, 4 }
 0x117   : > { %vm279_vm7 = vcmp.lt.s32.totalorder %v276_v17, 4 }
 0x118   : > { %v1815_v8 = vpop.f32.mrf.mxu2  ;;  %v1603_v11 = vpop.f32.mrf.mxu0 }
 0x119   : > { %v1833_v10 = vpop.f32.mrf.mxu3  ;;  %v1621_v13 = vpop.f32.mrf.mxu1 }
 0x11a   : > { %v1622_v63 = vadd.f32 %v1621_v13, %v1603_v11  ;;  %v1834_v1 = vadd.f32 %v1833_v10, %v1815_v8 }
 0x11c   : > { %v1627_v3 = vadd.f32 %v1622_v63, %v1432_v39  ;;  %v1841_v14 = vadd.f32 %v1834_v1, %v1626_v47 }
 0x120   : > { %v1818_v30 = vpop.f32.mrf.mxu2  ;;  %v1605_v33 = vpop.f32.mrf.mxu0 }
 0x121   : > { %v1836_v32 = vpop.f32.mrf.mxu3  ;;  %v1623_v34 = vpop.f32.mrf.mxu1 }
 0x122   : > { %v1837_v0 = vadd.f32 %v1836_v32, %v1818_v30 }
 0x124   : > { %v1842_v7 = vadd.f32 %v1837_v0, %v1627_v3 }
 0x128   : > { %v1820_v31 = vpop.f32.mrf.mxu2  ;;  %v2003_v29 = vpop.f32.mrf.mxu0 }
 0x129   : > { %v1838_v42 = vpop.f32.mrf.mxu3  ;;  %v2021_v54 = vpop.f32.mrf.mxu1 }
 0x12a   : > { %v2022_v45 = vadd.f32 %v2021_v54, %v2003_v29 }
 0x12c   : > { %v2030_v59 = vadd.f32 %v2022_v45, %v1840_v56 }
 0x12e   : > { %v2037_v2 = vadd.f32 %v3138_v25, %v2030_v59 }
 0x130   : > { %vm2040_vm4 = vcmp.gt.f32.partialorder %v2037_v2, 0.0  ;;  %v2008_v48 = vpop.f32.mrf.mxu2  ;;  %v2005_v11 = vpop.f32.mrf.mxu0 }
 0x131   : > { %v2026_v6 = vpop.f32.mrf.mxu3  ;;  %v2961_v8 = vsel %vm2040_vm4, 1.0, %v3148_v23  ;;  %v2023_v13 = vpop.f32.mrf.mxu1 }
 0x132   : > { %v2027_v10 = vadd.f32 %v2026_v6, %v2008_v48  ;;  %v2055_v18 = vsel %vm3858_vm3, %v2961_v8, 0.0  ;;  %v2024_v16 = vadd.f32 %v2023_v13, %v2005_v11 }
 0x133   : > { %2064 = vst [vmem:[%s3806_s19 + $0x7] sm:$0xff] %v2055_v18 }
 0x134   : > { %v2032_v19 = vadd.f32 %v2027_v10, %v1842_v7  ;;  %v2031_v21 = vadd.f32 %v2024_v16, %v1841_v14 }
 0x136   : > { %v2039_v24 = vadd.f32 %v3138_v25, %v2032_v19  ;;  %v2038_v9 = vadd.f32 %v3138_v25, %v2031_v21 }
 0x138   : > { %vm2042_vm8 = vcmp.gt.f32.partialorder %v2039_v24, 0.0  ;;  %vm2041_vm10 = vcmp.gt.f32.partialorder %v2038_v9, 0.0  ;;  %v2010_v32 = vpop.f32.mrf.mxu2 }
 0x139   : > { %v2963_v30 = vsel %vm2042_vm8, 1.0, %v3148_v23  ;;  %v2028_v12 = vpop.f32.mrf.mxu3  ;;  %v2962_v34 = vsel %vm2041_vm10, 1.0, %v3148_v23 }
 0x13a   : > { %v2057_v33 = vsel %vm279_vm7, %v2963_v30, 0.0  ;;  %v2056_v35 = vsel %vm278_vm9, %v2962_v34, 0.0 }
 0x13b   : > { %2066 = vst [vmem:[%s3806_s19 + $0x17] sm:$0xff] %v2057_v33 }
 0x13c   : > { %2065 = vst [vmem:[%s3806_s19 + $0xf] sm:$0xff] %v2056_v35 }
 0x13d PF: > { %s13_s12 = sadd.s32 1, %s3145_s12  }
 0x13e   : > { %p10_p4 = scmp.ge.s32.totalorder %s13_s12, 4  }
 0x140   :  { %12 = sbr.rel (!%p10_p4) target bundleno = 1 (0x1), region = 70 }

// kernel: encoder_forward.9
= control target key start
LH: loop header
LB: loop body
LE: loop exit
PB: predicated region body
PF: predicated region fallthrough
CT: control target
= control target key end

     0   :  { %s5598_s18 = smov 0   ;;  %s7443_s0 = inlined_call_operand.vmem [shape: f32[2,48,256], index: 0, kind: input, shape index: {}]   ;;  %s7444_s1 = inlined_call_operand.vmem [shape: bf16[3,3,256,128], index: 1, kind: input, shape index: {}]   ;;  %s7445_s2 = inlined_call_operand.vmem [shape: f32[1,128], index: 2, kind: input, shape index: {}]   ;;  %s7446_s3 = inlined_call_operand.vmem [shape: bf16[3,3,128,256], index: 3, kind: input, shape index: {}]   ;;  %s7447_s4 = inlined_call_operand.vmem [shape: f32[1,256], index: 4, kind: input, shape index: {}]   ;;  %s7448_s5 = inlined_call_operand.vmem [shape: f32[2,48,256], index: 5, kind: output, shape index: {}]  }
   0x1 LB: > { %s3704_s19 = sadd.s32 4294967295, %s5564_s18   ;;  %p3708_p0 = scmp.ge.s32.totalorder %s5564_s18, 1  ;;  %s5564_s18 = sphi %s5598_s18, %s15_s18  }
   0x2   : > { %p187_p1 = scmp.lt.s32.totalorder %s5564_s18, 3 }
   0x4   : > { %p188_p2 = pnand %p3708_p0, %p187_p1 }
   0x5   : > { %p215_p3 = scmp.lt.s32.totalorder (!%p188_p2), %s3704_s19, 1 }
   0x6   : > { %191 = sbr.rel (%p188_p2) target bundleno = 642 (0x282), region = 40 }
   0xb   : > { %v5272_v0 = vld [vmem:[%s7444_s1 + $0xb8] sm:$0xff]  ;;  %v5271_v4 = vld [vmem:[%s7444_s1 + $0xb0] sm:$0xff]  ;;  %s7468_s19 = smov (!%p215_p3, %s3704_s19), 1  ;;  %v5270_v8 = vld [vmem:[%s7444_s1 + $0xa8] sm:$0xff]  ;;  %vm418_vm0 = vsmask.f32 7424 }
   0xc   : > { %v5280_v1 = vld [vmem:[%s7444_s1 + $0xf8] sm:$0xff]  ;;  %549 = vmatpush.bf16.msra.mxu0 %v5272_v0  ;;  %v5279_v5 = vld [vmem:[%s7444_s1 + $0xf0] sm:$0xff]  ;;  %s5546_s11 = smul.u32 96, %s7468_s19  ;;  %v5278_v9 = vld [vmem:[%s7444_s1 + $0xe8] sm:$0xff]  ;;  %vm762_vm1 = vcmask 1046528   ;;  %vm953_vm2 = vcmask 1044480  }
   0xd   : > { %v5256_v2 = vld [vmem:[%s7444_s1 + $0x38] sm:$0xff]  ;;  %567 = vmatpush.bf16.msra.mxu1 %v5280_v1  ;;  %v5255_v6 = vld [vmem:[%s7444_s1 + $0x30] sm:$0xff]  ;;  %v5254_v10 = vld [vmem:[%s7444_s1 + $0x28] sm:$0xff]  ;;  %vm1140_vm3 = vsmask.f32 4352  ;;  %vm1537_vm4 = vcmask 1045504  }
   0xe   : > { %v5264_v3 = vld [vmem:[%s7444_s1 + $0x78] sm:$0xff]  ;;  %681 = vmatpush.bf16.msra.mxu2 %v5256_v2  ;;  %v5263_v7 = vld [vmem:[%s7444_s1 + $0x70] sm:$0xff]  ;;  %v5262_v11 = vld [vmem:[%s7444_s1 + $0x68] sm:$0xff]  ;;  %s5650_s24 = scalar_lea.vmem %s7443_s0, %s5546_s11  ;;  %vm1724_vm5 = vsmask.f32 5376  ;;  %s7378_s29 = scalar_lea.vmem %s7448_s5, %s5546_s11 }
   0xf   : > { %699 = vmatpush.bf16.msra.mxu3 %v5264_v3  ;;  %v5269_v12 = vld [vmem:[%s7444_s1 + $0xa0] sm:$0xff]  ;;  %v5665_v16 = vld [vmem:[%s5650_s24 + $0x10] sm:$0xff]  ;;  %v5669_v18 = vld [vmem:[%s5650_s24 + $0x18] sm:$0xff] }
  0x10   : > { %550 = vmatpush.bf16.msra.mxu0 %v5271_v4  ;;  %v5277_v13 = vld [vmem:[%s7444_s1 + $0xe0] sm:$0xff]  ;;  %v378_v19 = vld [vmem:[%s5650_s24 + $0x8] sm:$0xfe]  ;;  %v5268_v20 = vld [vmem:[%s7444_s1 + $0x98] sm:$0xff] }
  0x11   : > { %568 = vmatpush.bf16.msra.mxu1 %v5279_v5  ;;  %v5253_v14 = vld [vmem:[%s7444_s1 + $0x20] sm:$0xff]  ;;  %v5276_v21 = vld [vmem:[%s7444_s1 + $0xd8] sm:$0xff]  ;;  %v379_v24 = vld [vmem:[%s5650_s24 + $0x30] sm:$0x1]  ;;  %v382_v26 = vpack.c.bf16 %v5669_v18, %v378_v19 }
  0x12   : > { %682 = vmatpush.bf16.msra.mxu2 %v5255_v6  ;;  %v5261_v15 = vld [vmem:[%s7444_s1 + $0x60] sm:$0xff]  ;;  %v5252_v22 = vld [vmem:[%s7444_s1 + $0x18] sm:$0xff]  ;;  %v5691_v28 = vld [vmem:[%s5650_s24 + $0x28] sm:$0xff] }
  0x13   : > { %700 = vmatpush.bf16.msra.mxu3 %v5263_v7  ;;  %v377_v17 = vld [vmem:[%s5650_s24] sm:$0xfe]  ;;  %v5260_v27 = vld [vmem:[%s7444_s1 + $0x58] sm:$0xff]  ;;  %v5267_v31 = vld [vmem:[%s7444_s1 + $0x90] sm:$0xff]  ;;  %v434_v35 = vshll.u32 %v382_v26, 16  ;;  %v432_v43 = vshrl.u32 %v382_v26, 16 }
  0x14   : > { %551 = vmatpush.bf16.msra.mxu0 %v5270_v8  ;;  %v5682_v23 = vld [vmem:[%s5650_s24 + $0x20] sm:$0xff]  ;;  %v381_v25 = vpack.c.bf16 %v5665_v16, %v377_v17  ;;  %v380_v29 = vld [vmem:[%s5650_s24 + $0x38] sm:$0x1]  ;;  %v5275_v32 = vld [vmem:[%s7444_s1 + $0xd0] sm:$0xff] }
  0x15   : > { %569 = vmatpush.bf16.msra.mxu1 %v5278_v9  ;;  %v5695_v30 = vpack.c.bf16 %v379_v24, %v5682_v23  ;;  %v5704_v34 = vpack.c.bf16 %v380_v29, %v5691_v28  ;;  %v5251_v36 = vld [vmem:[%s7444_s1 + $0x10] sm:$0xff]  ;;  %v5266_v38 = vld [vmem:[%s7444_s1 + $0x88] sm:$0xff]  ;;  %v436_v44 = vrot.slane %v434_v35, 1  ;;  %v5265_v48 = vld [vmem:[%s7444_s1 + $0x80] sm:$0xff]  ;;  %v344_v24 = vpack.c.bf16 %v5691_v28, %v5691_v28 }
  0x16   : > { %683 = vmatpush.bf16.msra.mxu2 %v5254_v10  ;;  %v422_v33 = vshll.u32 %v381_v25, 16  ;;  %v5259_v37 = vld [vmem:[%s7444_s1 + $0x50] sm:$0xff]  ;;  %v5274_v39 = vld [vmem:[%s7444_s1 + $0xc8] sm:$0xff]  ;;  %v420_v40 = vshrl.u32 %v381_v25, 16  ;;  %v5273_v49 = vld [vmem:[%s7444_s1 + $0xc0] sm:$0xff] }
  0x17   : > { %701 = vmatpush.bf16.msra.mxu3 %v5262_v11  ;;  %v427_v41 = vshll.u32 %v5695_v30, 16  ;;  %v439_v45 = vshll.u32 %v5704_v34, 16  ;;  %v5250_v46 = vld [vmem:[%s7444_s1 + $0x8] sm:$0xff]  ;;  %v437_v52 = vor.u32 %v436_v44, %v432_v43  ;;  %v335_v54 = vld [vmem:[%s5650_s24] sm:$0xff]  ;;  %v5288_v58 = vld [vmem:[%s7444_s1 + $0x138] sm:$0xff] }
  0x18   : > { %552 = vmatpush.bf16.msra.mxu0 %v5269_v12  ;;  %v424_v42 = vrot.slane %v422_v33, 1  ;;  %v5258_v47 = vld [vmem:[%s7444_s1 + $0x48] sm:$0xff]  ;;  %v5249_v55 = vld [vmem:[%s7444_s1] sm:$0xff]  ;;  %v5296_v59 = vld [vmem:[%s7444_s1 + $0x178] sm:$0xff]  ;;  %v341_v60 = vpack.c.bf16 %v5665_v16, %v335_v54  ;;  %v443_v12 = vshrl.u32 %v5695_v30, 16 }
  0x19   : > { %570 = vmatpush.bf16.msra.mxu1 %v5277_v13  ;;  %v429_v51 = vrot.slane %v427_v41, 1  ;;  %v441_v53 = vrot.slane %v439_v45, 1  ;;  %v5257_v56 = vld [vmem:[%s7444_s1 + $0x40] sm:$0xff]  ;;  %v336_v57 = vld [vmem:[%s5650_s24 + $0x8] sm:$0xff]  ;;  %v5304_v0 = vld [vmem:[%s7444_s1 + $0x1b8] sm:$0xff]  ;;  %v446_v13 = vshrl.u32 %v5704_v34, 16 }
  0x1a   : > { %684 = vmatpush.bf16.msra.mxu2 %v5253_v14  ;;  %v425_v50 = vor.u32 %v424_v42, %v420_v40  ;;  %v342_v63 = vpack.c.bf16 %v5669_v18, %v336_v57  ;;  %v5312_v1 = vld [vmem:[%s7444_s1 + $0x1f8] sm:$0xff]  ;;  %v5287_v2 = vld [vmem:[%s7444_s1 + $0x130] sm:$0xff]  ;;  %v5286_v6 = vld [vmem:[%s7444_s1 + $0x128] sm:$0xff] }
  0x1b   : > { %702 = vmatpush.bf16.msra.mxu3 %v5261_v15  ;;  %v442_v62 = vsel %vm418_vm0, %v437_v52, %v441_v53  ;;  %v5295_v3 = vld [vmem:[%s7444_s1 + $0x170] sm:$0xff]  ;;  %v5294_v7 = vld [vmem:[%s7444_s1 + $0x168] sm:$0xff]  ;;  %v5285_v10 = vld [vmem:[%s7444_s1 + $0x120] sm:$0xff] }
  0x1c   : > { %553 = vmatpush.bf16.msra.mxu0 %v5268_v20  ;;  %v430_v61 = vsel %vm418_vm0, %v425_v50, %v429_v51  ;;  %v5303_v4 = vld [vmem:[%s7444_s1 + $0x1b0] sm:$0xff]  ;;  %v5302_v8 = vld [vmem:[%s7444_s1 + $0x1a8] sm:$0xff]  ;;  %v5293_v11 = vld [vmem:[%s7444_s1 + $0x160] sm:$0xff]  ;;  %v445_v20 = vor.u32 %v443_v12, %v429_v51 }
  0x1d   : > { %571 = vmatpush.bf16.msra.mxu1 %v5276_v21  ;;  %v5311_v5 = vld [vmem:[%s7444_s1 + $0x1f0] sm:$0xff]  ;;  %v5310_v9 = vld [vmem:[%s7444_s1 + $0x1e8] sm:$0xff]  ;;  %v5301_v14 = vld [vmem:[%s7444_s1 + $0x1a0] sm:$0xff]  ;;  %v448_v21 = vor.u32 %v446_v13, %v441_v53 }
  0x1e   : > { %685 = vmatpush.bf16.msra.mxu2 %v5252_v22  ;;  %v5309_v15 = vld [vmem:[%s7444_s1 + $0x1e0] sm:$0xff]  ;;  %v5284_v17 = vld [vmem:[%s7444_s1 + $0x118] sm:$0xff]  ;;  %v343_v22 = vpack.c.bf16 %v5682_v23, %v5682_v23  ;;  %v5291_v29 = vld [vmem:[%s7444_s1 + $0x150] sm:$0xff] }
  0x1f   : > { %703 = vmatpush.bf16.msra.mxu3 %v5260_v27  ;;  %v5292_v19 = vld [vmem:[%s7444_s1 + $0x158] sm:$0xff]  ;;  %v5283_v27 = vld [vmem:[%s7444_s1 + $0x110] sm:$0xff]  ;;  %v5290_v33 = vld [vmem:[%s7444_s1 + $0x148] sm:$0xff] }
  0x20   : > { %554 = vmatpush.bf16.msra.mxu0 %v5267_v31  ;;  %v5300_v25 = vld [vmem:[%s7444_s1 + $0x198] sm:$0xff]  ;;  %v5299_v30 = vld [vmem:[%s7444_s1 + $0x190] sm:$0xff]  ;;  %v717_v34 = vld [vmem:[%s5650_s24] sm:$0xfc] }
  0x21   : > { %572 = vmatpush.bf16.msra.mxu1 %v5275_v32  ;;  %v5308_v26 = vld [vmem:[%s7444_s1 + $0x1d8] sm:$0xff]  ;;  %v5307_v31 = vld [vmem:[%s7444_s1 + $0x1d0] sm:$0xff]  ;;  %v5282_v32 = vld [vmem:[%s7444_s1 + $0x108] sm:$0xff]  ;;  %v721_v42 = vpack.c.bf16 %v5665_v16, %v717_v34 }
  0x22   : > { %686 = vmatpush.bf16.msra.mxu2 %v5251_v36  ;;  %v719_v35 = vld [vmem:[%s5650_s24 + $0x30] sm:$0x3]  ;;  %v718_v36 = vld [vmem:[%s5650_s24 + $0x8] sm:$0xfc]  ;;  %v911_v41 = vld [vmem:[%s5650_s24 + $0x38] sm:$0x3f] }
  0x23   : > { %704 = vmatpush.bf16.msra.mxu3 %v5259_v37  ;;  %v720_v37 = vld [vmem:[%s5650_s24 + $0x38] sm:$0x3]  ;;  %v909_v40 = vld [vmem:[%s5650_s24 + $0x8] sm:$0xc0]  ;;  %v723_v43 = vpack.c.bf16 %v719_v35, %v5682_v23  ;;  %v722_v44 = vpack.c.bf16 %v5669_v18, %v718_v36  ;;  %v915_v51 = vpack.c.bf16 %v911_v41, %v5691_v28  ;;  %v5281_v52 = vld [vmem:[%s7444_s1 + $0x100] sm:$0xff] }
  0x24   : > { %555 = vmatpush.bf16.msra.mxu0 %v5266_v38  ;;  %v908_v38 = vld [vmem:[%s5650_s24] sm:$0xc0]  ;;  %v724_v45 = vpack.c.bf16 %v720_v37, %v5691_v28  ;;  %v913_v50 = vpack.c.bf16 %v5669_v18, %v909_v40  ;;  %v5320_v54 = vld [vmem:[%s7444_s1 + $0x238] sm:$0xff]  ;;  %v5318_v12 = vld [vmem:[%s7444_s1 + $0x228] sm:$0xff] }
  0x25   : > { %573 = vmatpush.bf16.msra.mxu1 %v5274_v39  ;;  %v910_v39 = vld [vmem:[%s5650_s24 + $0x30] sm:$0x3f]  ;;  %v5289_v53 = vld [vmem:[%s7444_s1 + $0x140] sm:$0xff]  ;;  %v5862_v57 = vrot.slane %v723_v43, 1  ;;  %v5326_v13 = vld [vmem:[%s7444_s1 + $0x268] sm:$0xff] }
  0x26   : > { %687 = vmatpush.bf16.msra.mxu2 %v5250_v46  ;;  %v912_v46 = vpack.c.bf16 %v5665_v16, %v908_v38  ;;  %v5315_v36 = vld [vmem:[%s7444_s1 + $0x210] sm:$0xff] }
  0x27   : > { %705 = vmatpush.bf16.msra.mxu3 %v5258_v47  ;;  %v5298_v47 = vld [vmem:[%s7444_s1 + $0x188] sm:$0xff]  ;;  %v5323_v37 = vld [vmem:[%s7444_s1 + $0x250] sm:$0xff] }
  0x28   : > { %556 = vmatpush.bf16.msra.mxu0 %v5265_v48  ;;  %v5306_v48 = vld [vmem:[%s7444_s1 + $0x1c8] sm:$0xff]  ;;  %v5331_v38 = vld [vmem:[%s7444_s1 + $0x290] sm:$0xff] }
  0x29   : > { %574 = vmatpush.bf16.msra.mxu1 %v5273_v49  ;;  %v914_v49 = vpack.c.bf16 %v910_v39, %v5682_v23  ;;  %v5339_v39 = vld [vmem:[%s7444_s1 + $0x2d0] sm:$0xff] }
  0x2a   : > { %688 = vmatpush.bf16.msra.mxu2 %v5249_v55  ;;  %v5328_v55 = vld [vmem:[%s7444_s1 + $0x278] sm:$0xff] }
  0x2b   : > { %706 = vmatpush.bf16.msra.mxu3 %v5257_v56  ;;  %557 = vmatmul.bf16.vlgmr.msra.gmra.mxu0 %v430_v61  ;;  %v763_v56 = vrot.slane %v721_v42, 1  ;;  %v5305_v61 = vld [vmem:[%s7444_s1 + $0x1c0] sm:$0xff] }
  0x2c   : > { %869 = vmatpush.bf16.msrb.mxu0 %v5288_v58  ;;  %575 = vmatmul.bf16.vlgmr.msra.gmra.mxu1 %v442_v62  ;;  %v766_v58 = vrot.slane %v722_v44, 1  ;;  %v954_v62 = vrot.slane %v912_v46, 3 }
  0x2d   : > { %887 = vmatpush.bf16.msrb.mxu1 %v5296_v59  ;;  %689 = vmatmul.bf16.vlgmr.msra.gmra.mxu2 %v341_v60  ;;  %v5864_v59 = vrot.slane %v724_v45, 1  ;;  %v5297_v60 = vld [vmem:[%s7444_s1 + $0x180] sm:$0xff] }
  0x2e   : > { %707 = vmatmul.bf16.vlgmr.msra.gmra.mxu3 %v342_v63  ;;  %1060 = vmatpush.bf16.msrb.mxu2 %v5304_v0  ;;  %v5872_v63 = vrot.slane %v914_v49, 3  ;;  %v957_v0 = vrot.slane %v913_v50, 3  ;;  %v5322_v49 = vld [vmem:[%s7444_s1 + $0x248] sm:$0xff] }
  0x2f   : > { %1078 = vmatpush.bf16.msrb.mxu3 %v5312_v1  ;;  %v5874_v1 = vrot.slane %v915_v51, 3  ;;  %v5330_v50 = vld [vmem:[%s7444_s1 + $0x288] sm:$0xff] }
  0x30   : > { %870 = vmatpush.bf16.msrb.mxu0 %v5287_v2  ;;  %v5336_v2 = vld [vmem:[%s7444_s1 + $0x2b8] sm:$0xff]  ;;  %v5338_v51 = vld [vmem:[%s7444_s1 + $0x2c8] sm:$0xff] }
  0x31   : > { %888 = vmatpush.bf16.msrb.mxu1 %v5295_v3  ;;  %v5344_v3 = vld [vmem:[%s7444_s1 + $0x2f8] sm:$0xff] }
  0x32   : > { %1061 = vmatpush.bf16.msrb.mxu2 %v5303_v4  ;;  %v765_v4 = vsel %vm762_vm1, %v763_v56, %v5862_v57 }
  0x33   : > { %1079 = vmatpush.bf16.msrb.mxu3 %v5311_v5  ;;  %v768_v5 = vsel %vm762_vm1, %v766_v58, %v5864_v59 }
  0x34   : > { %871 = vmatpush.bf16.msrb.mxu0 %v5286_v6  ;;  %v956_v6 = vsel %vm953_vm2, %v954_v62, %v5872_v63  ;;  %v5329_v62 = vld [vmem:[%s7444_s1 + $0x280] sm:$0xff] }
  0x35   : > { %889 = vmatpush.bf16.msrb.mxu1 %v5294_v7  ;;  %v959_v7 = vsel %vm953_vm2, %v957_v0, %v5874_v1  ;;  %v5352_v0 = vld [vmem:[%s7444_s1 + $0x338] sm:$0xff] }
  0x36   : > { %1062 = vmatpush.bf16.msrb.mxu2 %v5302_v8  ;;  %v5319_v8 = vld [vmem:[%s7444_s1 + $0x230] sm:$0xff] }
  0x37   : > { %1080 = vmatpush.bf16.msrb.mxu3 %v5310_v9  ;;  %v5327_v9 = vld [vmem:[%s7444_s1 + $0x270] sm:$0xff] }
  0x38   : > { %872 = vmatpush.bf16.msrb.mxu0 %v5285_v10  ;;  %v5335_v10 = vld [vmem:[%s7444_s1 + $0x2b0] sm:$0xff] }
  0x39   : > { %890 = vmatpush.bf16.msrb.mxu1 %v5293_v11  ;;  %v5343_v11 = vld [vmem:[%s7444_s1 + $0x2f0] sm:$0xff] }
  0x3a   : > { %1063 = vmatpush.bf16.msrb.mxu2 %v5301_v14  ;;  %v5334_v14 = vld [vmem:[%s7444_s1 + $0x2a8] sm:$0xff] }
  0x3b   : > { %1081 = vmatpush.bf16.msrb.mxu3 %v5309_v15  ;;  %562 = vmatmul.bf16.gmra.mxu0 %v445_v20  ;;  %v5342_v15 = vld [vmem:[%s7444_s1 + $0x2e8] sm:$0xff]  ;;  %v5333_v20 = vld [vmem:[%s7444_s1 + $0x2a0] sm:$0xff] }
  0x3c   : > { %873 = vmatpush.bf16.msrb.mxu0 %v5284_v17  ;;  %580 = vmatmul.bf16.gmra.mxu1 %v448_v21  ;;  %v5317_v17 = vld [vmem:[%s7444_s1 + $0x220] sm:$0xff] }
  0x3d   : > { %891 = vmatpush.bf16.msrb.mxu1 %v5292_v19  ;;  %694 = vmatmul.bf16.gmra.mxu2 %v343_v22  ;;  %v5325_v19 = vld [vmem:[%s7444_s1 + $0x260] sm:$0xff]  ;;  %v5316_v22 = vld [vmem:[%s7444_s1 + $0x218] sm:$0xff] }
  0x3e   : > { %712 = vmatmul.bf16.gmra.mxu3 %v344_v24  ;;  %1064 = vmatpush.bf16.msrb.mxu2 %v5300_v25  ;;  %v5341_v21 = vld [vmem:[%s7444_s1 + $0x2e0] sm:$0xff]  ;;  %v1101_v25 = vld [vmem:[%s5650_s24 + $0x30] sm:$0x7f] }
  0x3f   : > { %1082 = vmatpush.bf16.msrb.mxu3 %v5308_v26  ;;  %v1099_v24 = vld [vmem:[%s5650_s24] sm:$0x80]  ;;  %v5324_v26 = vld [vmem:[%s7444_s1 + $0x258] sm:$0xff] }
  0x40   : > { %874 = vmatpush.bf16.msrb.mxu0 %v5283_v27  ;;  %v1100_v27 = vld [vmem:[%s5650_s24 + $0x8] sm:$0x80] }
  0x41   : > { %892 = vmatpush.bf16.msrb.mxu1 %v5291_v29  ;;  %v1102_v29 = vld [vmem:[%s5650_s24 + $0x38] sm:$0x7f]  ;;  %v1104_v34 = vpack.c.bf16 %v5669_v18, %v1100_v27 }
  0x42   : > { %1065 = vmatpush.bf16.msrb.mxu2 %v5299_v30  ;;  %v5332_v30 = vld [vmem:[%s7444_s1 + $0x298] sm:$0xff]  ;;  %v1106_v35 = vpack.c.bf16 %v1102_v29, %v5691_v28  ;;  %v1683_v29 = vld [vmem:[%s5650_s24 + $0x10] sm:$0xe0] }
  0x43   : > { %1083 = vmatpush.bf16.msrb.mxu3 %v5307_v31  ;;  %v5340_v31 = vld [vmem:[%s7444_s1 + $0x2d8] sm:$0xff]  ;;  %v1159_v44 = vshrl.u32 %v1104_v34, 16  ;;  %v1162_v45 = vshll.u32 %v1104_v34, 16 }
  0x44   : > { %875 = vmatpush.bf16.msrb.mxu0 %v5282_v32  ;;  %v1103_v32 = vpack.c.bf16 %v5665_v16, %v1099_v24  ;;  %v1167_v46 = vshrl.u32 %v1106_v35, 16  ;;  %v5373_v24 = vld [vmem:[%s7444_s1 + $0x3e0] sm:$0xff]  ;;  %v5348_v27 = vld [vmem:[%s7444_s1 + $0x318] sm:$0xff] }
  0x45   : > { %893 = vmatpush.bf16.msrb.mxu1 %v5290_v33  ;;  %v1105_v33 = vpack.c.bf16 %v1101_v25, %v5682_v23  ;;  %v1161_v56 = vrot.slane %v1159_v44, 3  ;;  %v6047_v25 = vld [vmem:[%s5650_s24 + $0x30] sm:$0xff]  ;;  %v1684_v34 = vld [vmem:[%s5650_s24 + $0x18] sm:$0xe0] }
  0x46   : > { %1066 = vmatpush.bf16.msrb.mxu2 %v5298_v47  ;;  %v1142_v40 = vshrl.u32 %v1103_v32, 16  ;;  %v1145_v41 = vshll.u32 %v1103_v32, 16  ;;  %v1170_v47 = vshll.u32 %v1106_v35, 16  ;;  %v1169_v58 = vrot.slane %v1167_v46, 3  ;;  %v1685_v32 = vld [vmem:[%s5650_s24 + $0x40] sm:$0x1f] }
  0x47   : > { %1084 = vmatpush.bf16.msrb.mxu3 %v5306_v48  ;;  %v1150_v42 = vshrl.u32 %v1105_v33, 16  ;;  %v1153_v43 = vshll.u32 %v1105_v33, 16  ;;  %v5314_v48 = vld [vmem:[%s7444_s1 + $0x208] sm:$0xff]  ;;  %v5372_v33 = vld [vmem:[%s7444_s1 + $0x3d8] sm:$0xff]  ;;  %v5363_v44 = vld [vmem:[%s7444_s1 + $0x390] sm:$0xff] }
  0x48   : > { %876 = vmatpush.bf16.msrb.mxu0 %v5281_v52  ;;  %v1144_v52 = vrot.slane %v1142_v40, 3  ;;  %v1686_v35 = vld [vmem:[%s5650_s24 + $0x48] sm:$0x1f]  ;;  %v5347_v40 = vld [vmem:[%s7444_s1 + $0x310] sm:$0xff] }
  0x49   : > { %894 = vmatpush.bf16.msrb.mxu1 %v5289_v53  ;;  %v1147_v53 = vrot.slane %v1145_v41, 4  ;;  %v5355_v41 = vld [vmem:[%s7444_s1 + $0x350] sm:$0xff]  ;;  %v5346_v46 = vld [vmem:[%s7444_s1 + $0x308] sm:$0xff] }
  0x4a   : > { %1067 = vmatpush.bf16.msrb.mxu2 %v5297_v60  ;;  %v5313_v60 = vld [vmem:[%s7444_s1 + $0x200] sm:$0xff] }
  0x4b   : > { %1085 = vmatpush.bf16.msrb.mxu3 %v5305_v61  ;;  %877 = vmatmul.bf16.vlgmr.msrb.gmra.mxu0 %v765_v4  ;;  %v5321_v61 = vld [vmem:[%s7444_s1 + $0x240] sm:$0xff] }
  0x4c   : > { %1275 = vmatpush.bf16.msra.mxu0 %v5320_v54  ;;  %895 = vmatmul.bf16.vlgmr.msrb.gmra.mxu1 %v768_v5  ;;  %v1152_v54 = vrot.slane %v1150_v42, 3  ;;  %v1688_v42 = vpack.c.bf16 %v5691_v28, %v1684_v34  ;;  %v5382_v34 = vld [vmem:[%s7444_s1 + $0x428] sm:$0xff] }
  0x4d   : > { %1293 = vmatpush.bf16.msra.mxu1 %v5328_v55  ;;  %1068 = vmatmul.bf16.vlgmr.msrb.gmra.mxu2 %v956_v6  ;;  %v1155_v55 = vrot.slane %v1153_v43, 4  ;;  %v5368_v6 = vld [vmem:[%s7444_s1 + $0x3b8] sm:$0xff] }
  0x4e   : > { %1449 = vmatpush.bf16.msra.mxu2 %v5336_v2  ;;  %1086 = vmatmul.bf16.vlgmr.msrb.gmra.mxu3 %v959_v7  ;;  %v1148_v2 = vor.u32 %v1147_v53, %v1144_v52  ;;  %v5376_v7 = vld [vmem:[%s7444_s1 + $0x3f8] sm:$0xff] }
  0x4f   : > { %1467 = vmatpush.bf16.msra.mxu3 %v5344_v3  ;;  %v5992_v3 = vor.u32 %v1155_v55, %v1152_v54  ;;  %v1489_v52 = vld [vmem:[%s5650_s24 + $0x18] sm:$0xf0]  ;;  %v1495_v55 = vld [vmem:[%s5650_s24 + $0x48] sm:$0xf] }
  0x50   : > { %1276 = vmatpush.bf16.msra.mxu0 %v5319_v8  ;;  %v1316_v8 = vpack.c.bf16 %v5682_v23, %v5665_v16  ;;  %v5359_v16 = vld [vmem:[%s7444_s1 + $0x370] sm:$0xff] }
  0x51   : > { %1294 = vmatpush.bf16.msra.mxu1 %v5327_v9  ;;  %v1157_v9 = vsel %vm1140_vm3, %v1148_v2, %v5992_v3  ;;  %v1497_v2 = vpack.c.bf16 %v5691_v28, %v1489_v52  ;;  %v5377_v52 = vld [vmem:[%s7444_s1 + $0x400] sm:$0xff] }
  0x52   : > { %1450 = vmatpush.bf16.msra.mxu2 %v5335_v10 }
  0x53   : > { %1468 = vmatpush.bf16.msra.mxu3 %v5343_v11  ;;  %v1317_v11 = vpack.c.bf16 %v5691_v28, %v5669_v18  ;;  %v5350_v18 = vld [vmem:[%s7444_s1 + $0x328] sm:$0xff] }
  0x54   : > { %1277 = vmatpush.bf16.msra.mxu0 %v5318_v12  ;;  %v5351_v12 = vld [vmem:[%s7444_s1 + $0x330] sm:$0xff] }
  0x55   : > { %1295 = vmatpush.bf16.msra.mxu1 %v5326_v13  ;;  %v5367_v13 = vld [vmem:[%s7444_s1 + $0x3b0] sm:$0xff] }
  0x56   : > { %1451 = vmatpush.bf16.msra.mxu2 %v5334_v14  ;;  %v5375_v14 = vld [vmem:[%s7444_s1 + $0x3f0] sm:$0xff] }
  0x57   : > { %1469 = vmatpush.bf16.msra.mxu3 %v5342_v15  ;;  %v5358_v15 = vld [vmem:[%s7444_s1 + $0x368] sm:$0xff] }
  0x58   : > { %1278 = vmatpush.bf16.msra.mxu0 %v5317_v17  ;;  %v5366_v17 = vld [vmem:[%s7444_s1 + $0x3a8] sm:$0xff] }
  0x59   : > { %1296 = vmatpush.bf16.msra.mxu1 %v5325_v19  ;;  %v5374_v19 = vld [vmem:[%s7444_s1 + $0x3e8] sm:$0xff] }
  0x5a   : > { %1452 = vmatpush.bf16.msra.mxu2 %v5333_v20  ;;  %v5349_v20 = vld [vmem:[%s7444_s1 + $0x320] sm:$0xff] }
  0x5b   : > { %1470 = vmatpush.bf16.msra.mxu3 %v5341_v21  ;;  %882 = vmatmul.bf16.gmra.mxu0 %v5862_v57  ;;  %v1164_v57 = vrot.slane %v1162_v45, 4  ;;  %v5357_v21 = vld [vmem:[%s7444_s1 + $0x360] sm:$0xff]  ;;  %v5371_v45 = vld [vmem:[%s7444_s1 + $0x3d0] sm:$0xff] }
  0x5c   : > { %1279 = vmatpush.bf16.msra.mxu0 %v5316_v22  ;;  %900 = vmatmul.bf16.gmra.mxu1 %v5864_v59  ;;  %v1172_v59 = vrot.slane %v1170_v47, 4  ;;  %v5365_v22 = vld [vmem:[%s7444_s1 + $0x3a0] sm:$0xff]  ;;  %v5354_v47 = vld [vmem:[%s7444_s1 + $0x348] sm:$0xff] }
  0x5d   : > { %1297 = vmatpush.bf16.msra.mxu1 %v5324_v26  ;;  %1073 = vmatmul.bf16.gmra.mxu2 %v5872_v63  ;;  %v5337_v63 = vld [vmem:[%s7444_s1 + $0x2c0] sm:$0xff]  ;;  %v1165_v4 = vor.u32 %v1164_v57, %v1161_v56  ;;  %v6050_v26 = vld [vmem:[%s5650_s24 + $0x38] sm:$0xff]  ;;  %v1743_v56 = vshrl.u32 %v1688_v42, 16  ;;  %v1746_v57 = vshll.u32 %v1688_v42, 16  ;;  %v5378_v42 = vld [vmem:[%s7444_s1 + $0x408] sm:$0xff] }
  0x5e   : > { %1453 = vmatpush.bf16.msra.mxu2 %v5332_v30  ;;  %1091 = vmatmul.bf16.gmra.mxu3 %v5874_v1  ;;  %v5360_v1 = vld [vmem:[%s7444_s1 + $0x378] sm:$0xff]  ;;  %v5994_v5 = vor.u32 %v1172_v59, %v1169_v58  ;;  %v1690_v43 = vpack.c.bf16 %v1686_v35, %v6050_v26  ;;  %v5390_v35 = vld [vmem:[%s7444_s1 + $0x468] sm:$0xff] }
  0x5f   : > { %1471 = vmatpush.bf16.msra.mxu3 %v5340_v31  ;;  %v5356_v30 = vld [vmem:[%s7444_s1 + $0x358] sm:$0xff] }
  0x60   : > { %1280 = vmatpush.bf16.msra.mxu0 %v5315_v36  ;;  %v1174_v10 = vsel %vm1140_vm3, %v1165_v4, %v5994_v5  ;;  %v5364_v31 = vld [vmem:[%s7444_s1 + $0x398] sm:$0xff]  ;;  %v1687_v36 = vpack.c.bf16 %v5682_v23, %v1683_v29  ;;  %v1751_v58 = vshrl.u32 %v1690_v43, 16  ;;  %v1754_v59 = vshll.u32 %v1690_v43, 16  ;;  %v5386_v43 = vld [vmem:[%s7444_s1 + $0x448] sm:$0xff] }
  0x61   : > { %1298 = vmatpush.bf16.msra.mxu1 %v5323_v37  ;;  %v1318_v37 = vpack.c.bf16 %v6047_v25, %v6047_v25 }
  0x62   : > { %1454 = vmatpush.bf16.msra.mxu2 %v5331_v38  ;;  %v1319_v38 = vpack.c.bf16 %v6050_v26, %v6050_v26 }
  0x63   : > { %1472 = vmatpush.bf16.msra.mxu3 %v5339_v39  ;;  %v1689_v39 = vpack.c.bf16 %v1685_v32, %v6047_v25  ;;  %v5383_v32 = vld [vmem:[%s7444_s1 + $0x430] sm:$0xff] }
  0x64   : > { %1281 = vmatpush.bf16.msra.mxu0 %v5314_v48  ;;  %v1488_v48 = vld [vmem:[%s5650_s24 + $0x10] sm:$0xf0] }
  0x65   : > { %1299 = vmatpush.bf16.msra.mxu1 %v5322_v49  ;;  %v1726_v49 = vshrl.u32 %v1687_v36, 16  ;;  %v1734_v53 = vshrl.u32 %v1689_v39, 16  ;;  %v1737_v54 = vshll.u32 %v1689_v39, 16  ;;  %v5388_v39 = vld [vmem:[%s7444_s1 + $0x458] sm:$0xff] }
  0x66   : > { %1455 = vmatpush.bf16.msra.mxu2 %v5330_v50  ;;  %v1729_v50 = vshll.u32 %v1687_v36, 16  ;;  %v5381_v36 = vld [vmem:[%s7444_s1 + $0x420] sm:$0xff] }
  0x67   : > { %1473 = vmatpush.bf16.msra.mxu3 %v5338_v51  ;;  %v1494_v51 = vld [vmem:[%s5650_s24 + $0x40] sm:$0xf]  ;;  %v1736_v4 = vrot.slane %v1734_v53, 2 }
  0x68   : > { %1282 = vmatpush.bf16.msra.mxu0 %v5313_v60  ;;  %v5362_v60 = vld [vmem:[%s7444_s1 + $0x388] sm:$0xff]  ;;  %v5385_v53 = vld [vmem:[%s7444_s1 + $0x440] sm:$0xff] }
  0x69   : > { %1300 = vmatpush.bf16.msra.mxu1 %v5321_v61  ;;  %v5370_v61 = vld [vmem:[%s7444_s1 + $0x3c8] sm:$0xff] }
  0x6a   : > { %1456 = vmatpush.bf16.msra.mxu2 %v5329_v62  ;;  %v1496_v62 = vpack.c.bf16 %v5682_v23, %v1488_v48 }
  0x6b   : > { %1474 = vmatpush.bf16.msra.mxu3 %v5337_v63  ;;  %1283 = vmatmul.bf16.vlgmr.msra.gmra.mxu0 %v1157_v9  ;;  %v1498_v63 = vpack.c.bf16 %v1494_v51, %v6047_v25  ;;  %v1748_v9 = vrot.slane %v1746_v57, 3 }
  0x6c   : > { %1644 = vmatpush.bf16.msrb.mxu0 %v5352_v0  ;;  %1301 = vmatmul.bf16.vlgmr.msra.gmra.mxu1 %v1174_v10  ;;  %v1728_v0 = vrot.slane %v1726_v49, 2  ;;  %v1753_v10 = vrot.slane %v1751_v58, 2 }
  0x6d   : > { %1662 = vmatpush.bf16.msrb.mxu1 %v5360_v1  ;;  %1457 = vmatmul.bf16.vlgmr.msra.gmra.mxu2 %v1316_v8  ;;  %v1731_v1 = vrot.slane %v1729_v50, 3  ;;  %v1745_v8 = vrot.slane %v1743_v56, 2 }
  0x6e   : > { %1859 = vmatpush.bf16.msrb.mxu2 %v5368_v6  ;;  %1475 = vmatmul.bf16.vlgmr.msra.gmra.mxu3 %v1317_v11  ;;  %v5345_v6 = vld [vmem:[%s7444_s1 + $0x300] sm:$0xff]  ;;  %v1756_v11 = vrot.slane %v1754_v59, 3 }
  0x6f   : > { %1877 = vmatpush.bf16.msrb.mxu3 %v5376_v7  ;;  %v5353_v7 = vld [vmem:[%s7444_s1 + $0x340] sm:$0xff] }
  0x70   : > { %1645 = vmatpush.bf16.msrb.mxu0 %v5351_v12  ;;  %v5361_v12 = vld [vmem:[%s7444_s1 + $0x380] sm:$0xff] }
  0x71   : > { %1663 = vmatpush.bf16.msrb.mxu1 %v5359_v16  ;;  %v5369_v16 = vld [vmem:[%s7444_s1 + $0x3c0] sm:$0xff] }
  0x72   : > { %1860 = vmatpush.bf16.msrb.mxu2 %v5367_v13  ;;  %v1538_v13 = vrot.slane %v1496_v62, 2 }
  0x73   : > { %1878 = vmatpush.bf16.msrb.mxu3 %v5375_v14  ;;  %v5384_v14 = vld [vmem:[%s7444_s1 + $0x438] sm:$0xff] }
  0x74   : > { %1646 = vmatpush.bf16.msrb.mxu0 %v5350_v18  ;;  %v5392_v18 = vld [vmem:[%s7444_s1 + $0x478] sm:$0xff] }
  0x75   : > { %1664 = vmatpush.bf16.msrb.mxu1 %v5358_v15  ;;  %v1539_v15 = vrot.slane %v1498_v63, 2 }
  0x76   : > { %1861 = vmatpush.bf16.msrb.mxu2 %v5366_v17  ;;  %v1541_v17 = vrot.slane %v1497_v2, 2 }
  0x77   : > { %1879 = vmatpush.bf16.msrb.mxu3 %v5374_v19 }
  0x78   : > { %1647 = vmatpush.bf16.msrb.mxu0 %v5349_v20  ;;  %v1732_v20 = vor.u32 %v1731_v1, %v1728_v0 }
  0x79   : > { %1665 = vmatpush.bf16.msrb.mxu1 %v5357_v21 }
  0x7a   : > { %1862 = vmatpush.bf16.msrb.mxu2 %v5365_v22  ;;  %v1749_v22 = vor.u32 %v1748_v9, %v1745_v8 }
  0x7b   : > { %1880 = vmatpush.bf16.msrb.mxu3 %v5373_v24  ;;  %1288 = vmatmul.bf16.gmra.mxu0 %v5992_v3  ;;  %v1499_v3 = vpack.c.bf16 %v1495_v55, %v6050_v26  ;;  %v1757_v24 = vor.u32 %v1756_v11, %v1753_v10 }
  0x7c   : > { %1648 = vmatpush.bf16.msrb.mxu0 %v5348_v27  ;;  %1306 = vmatmul.bf16.gmra.mxu1 %v5994_v5  ;;  %v1739_v5 = vrot.slane %v1737_v54, 3  ;;  %v1540_v27 = vsel %vm1537_vm4, %v1538_v13, %v1539_v15 }
  0x7d   : > { %1666 = vmatpush.bf16.msrb.mxu1 %v5356_v30  ;;  %1462 = vmatmul.bf16.gmra.mxu2 %v1318_v37  ;;  %v1542_v19 = vrot.slane %v1499_v3, 2  ;;  %v5389_v37 = vld [vmem:[%s7444_s1 + $0x460] sm:$0xff] }
  0x7e   : > { %1863 = vmatpush.bf16.msrb.mxu2 %v5364_v31  ;;  %1480 = vmatmul.bf16.gmra.mxu3 %v1319_v38  ;;  %v1740_v21 = vor.u32 %v1739_v5, %v1736_v4  ;;  %v1758_v31 = vsel %vm1724_vm5, %v1749_v22, %v1757_v24  ;;  %v5380_v38 = vld [vmem:[%s7444_s1 + $0x418] sm:$0xff] }
  0x7f   : > { %1881 = vmatpush.bf16.msrb.mxu3 %v5372_v33  ;;  %v1543_v29 = vsel %vm1537_vm4, %v1541_v17, %v1542_v19  ;;  %v5391_v33 = vld [vmem:[%s7444_s1 + $0x470] sm:$0xff] }
  0x80   : > { %1649 = vmatpush.bf16.msrb.mxu0 %v5347_v40  ;;  %v1741_v30 = vsel %vm1724_vm5, %v1732_v20, %v1740_v21  ;;  %v5379_v40 = vld [vmem:[%s7444_s1 + $0x410] sm:$0xff] }
  0x81   : > { %1667 = vmatpush.bf16.msrb.mxu1 %v5355_v41  ;;  %v5387_v41 = vld [vmem:[%s7444_s1 + $0x450] sm:$0xff] }
  0x82   : > { %1864 = vmatpush.bf16.msrb.mxu2 %v5363_v44  ;;  %v1898_v44 = vld [vmem:[%s5650_s24 + $0x10] sm:$0xc0] }
  0x83   : > { %1882 = vmatpush.bf16.msrb.mxu3 %v5371_v45  ;;  %v1900_v45 = vld [vmem:[%s5650_s24 + $0x40] sm:$0x3f]  ;;  %v1902_v48 = vpack.c.bf16 %v5682_v23, %v1898_v44 }
  0x84   : > { %1650 = vmatpush.bf16.msrb.mxu0 %v5346_v46  ;;  %v1899_v46 = vld [vmem:[%s5650_s24 + $0x18] sm:$0xc0]  ;;  %v1904_v49 = vpack.c.bf16 %v1900_v45, %v6047_v25 }
  0x85   : > { %1668 = vmatpush.bf16.msrb.mxu1 %v5354_v47  ;;  %v1901_v47 = vld [vmem:[%s5650_s24 + $0x48] sm:$0x3f]  ;;  %v1903_v50 = vpack.c.bf16 %v5691_v28, %v1899_v46  ;;  %v1943_v54 = vrot.slane %v1902_v48, 3  ;;  %v226_v48 = vlaneseq }
  0x86   : > { %1865 = vmatpush.bf16.msrb.mxu2 %v5362_v60  ;;  %v1905_v51 = vpack.c.bf16 %v1901_v47, %v6050_v26  ;;  %v1944_v55 = vrot.slane %v1904_v49, 3 }
  0x87   : > { %1883 = vmatpush.bf16.msrb.mxu3 %v5370_v61  ;;  %v1946_v56 = vrot.slane %v1903_v50, 3  ;;  %v6216_v49 = vshrl.u32 %v226_v48, 7 }
  0x88   : > { %1651 = vmatpush.bf16.msrb.mxu0 %v5345_v6  ;;  %v1947_v23 = vrot.slane %v1905_v51, 3  ;;  %v1945_v26 = vsel %vm953_vm2, %v1943_v54, %v1944_v55 }
  0x89   : > { %1669 = vmatpush.bf16.msrb.mxu1 %v5353_v7  ;;  %v233_v54 = vand.u32 65535, %v6216_v49 }
  0x8a   : > { %1866 = vmatpush.bf16.msrb.mxu2 %v5361_v12  ;;  %v1948_v57 = vsel %vm953_vm2, %v1946_v56, %v1947_v23 }
  0x8b   : > { %1884 = vmatpush.bf16.msrb.mxu3 %v5369_v16  ;;  %1652 = vmatmul.bf16.vlgmr.msrb.gmra.mxu0 %v1540_v27  ;;  %v237_v56 = vmul.u32 43690, %v233_v54 }
  0x8c   : > { %2049 = vmatpush.bf16.msra.mxu0 %v5384_v14  ;;  %1670 = vmatmul.bf16.vlgmr.msrb.gmra.mxu1 %v1543_v29 }
  0x8d   : > { %2067 = vmatpush.bf16.msra.mxu1 %v5392_v18  ;;  %1867 = vmatmul.bf16.vlgmr.msrb.gmra.mxu2 %v1741_v30 }
  0x8e   : > { %1885 = vmatmul.bf16.vlgmr.msrb.gmra.mxu3 %v1758_v31 }
  0x90   : > { %2050 = vmatpush.bf16.msra.mxu0 %v5383_v32 }
  0x91   : > { %2068 = vmatpush.bf16.msra.mxu1 %v5391_v33 }
  0x94   : > { %2051 = vmatpush.bf16.msra.mxu0 %v5382_v34 }
  0x95   : > { %2069 = vmatpush.bf16.msra.mxu1 %v5390_v35 }
  0x98   : > { %2052 = vmatpush.bf16.msra.mxu0 %v5381_v36 }
  0x99   : > { %2070 = vmatpush.bf16.msra.mxu1 %v5389_v37 }
  0x9b   : > { %1657 = vmatmul.bf16.gmra.mxu0 %v1539_v15 }
  0x9c   : > { %2053 = vmatpush.bf16.msra.mxu0 %v5380_v38  ;;  %1675 = vmatmul.bf16.gmra.mxu1 %v1542_v19 }
  0x9d   : > { %2071 = vmatpush.bf16.msra.mxu1 %v5388_v39  ;;  %1872 = vmatmul.bf16.gmra.mxu2 %v1740_v21 }
  0x9e   : > { %1890 = vmatmul.bf16.gmra.mxu3 %v1757_v24 }
  0xa0   : > { %2054 = vmatpush.bf16.msra.mxu0 %v5379_v40 }
  0xa1   : > { %2072 = vmatpush.bf16.msra.mxu1 %v5387_v41 }
  0xa4   : > { %2055 = vmatpush.bf16.msra.mxu0 %v5378_v42 }
  0xa5   : > { %2073 = vmatpush.bf16.msra.mxu1 %v5386_v43 }
  0xa8   : > { %2056 = vmatpush.bf16.msra.mxu0 %v5377_v52  ;;  %v558_v25 = vpop.f32.mrf.mxu0 }
  0xa9   : > { %2074 = vmatpush.bf16.msra.mxu1 %v5385_v53  ;;  %v576_v28 = vpop.f32.mrf.mxu1 }
  0xaa   : > { %v577_v58 = vadd.f32 %v576_v28, %v558_v25  ;;  %v240_v28 = vshll.u32 %v237_v56, 16 }
  0xab   : > { %2057 = vmatmul.bf16.vlgmr.msra.gmra.mxu0 %v1945_v26 }
  0xac   : > { %2075 = vmatmul.bf16.vlgmr.msra.gmra.mxu1 %v1948_v57 }
  0xb0   : > { %v690_v59 = vpop.f32.mrf.mxu2  ;;  %v6184_v62 = vpop.f32.mrf.mxu0 }
  0xb1   : > { %v708_v60 = vpop.f32.mrf.mxu3  ;;  %v691_v61 = vadd.f32 %v690_v59, %v577_v58  ;;  %v6186_v63 = vpop.f32.mrf.mxu1 }
  0xb3   : > { %v709_v0 = vadd.f32 %v708_v60, %v691_v61  ;;  %v5566_v60 = vmov 0  }
  0xb4   : > { %2110 = vst [vmem:[#allocation2] sm:$0xf] %v5566_v60 }
  0xb5   : > { %2111 = vst [vmem:[#allocation2 + $0x4] sm:$0xf] %v5566_v60 }
  0xb6   : > { %2112 = vst [vmem:[#allocation2 + $0x8] sm:$0xf] %v5566_v60 }
  0xb7   : > { %2113 = vst [vmem:[#allocation2 + $0xc] sm:$0xf] %v5566_v60 }
  0xb8   : > { %v6188_v1 = vpop.f32.mrf.mxu2  ;;  %v563_v3 = vpop.f32.mrf.mxu0  ;;  %2114 = vst [vmem:[#allocation2 + $0x10] sm:$0xf] %v5566_v60 }
  0xb9   : > { %v6190_v2 = vpop.f32.mrf.mxu3  ;;  %v581_v4 = vpop.f32.mrf.mxu1 }
  0xba   : > { %v582_v5 = vadd.f32 %v581_v4, %v563_v3  ;;  %v6235_v3 = vadd.s32 8, %v6216_v49 }
  0xbb   : > { %2062 = vmatmul.bf16.gmra.mxu0 %v1944_v55  ;;  %v234_v55 = vshrl.u32 %v6216_v49, 16 }
  0xbc   : > { %2080 = vmatmul.bf16.gmra.mxu1 %v1947_v23  ;;  %v236_v23 = vmul.u32 43691, %v233_v54 }
  0xbd   : > { %v238_v25 = vmul.u32 43691, %v234_v55  ;;  %v239_v26 = vmul.u32 43690, %v234_v55 }
  0xbe   : > { %vm244_vm6 = vc.u32 %v236_v23, %v240_v28 }
  0xbf   : > { %v242_v57 = vshll.u32 %v238_v25, 16  ;;  %v245_v61 = vsel %vm244_vm6, 1, %v5566_v60 }
  0xc0   : > { %v695_v6 = vpop.f32.mrf.mxu2  ;;  %v565_v9 = vpop.f32.mrf.mxu0 }
  0xc1   : > { %v713_v7 = vpop.f32.mrf.mxu3  ;;  %v696_v8 = vadd.f32 %v695_v6, %v582_v5  ;;  %v583_v10 = vpop.f32.mrf.mxu1  ;;  %v247_v6 = vadd.s32 %v245_v61, %v239_v26  ;;  %v5405_v26 = vld [vmem:[%s7446_s3 + $0x64] sm:$0xf]  ;;  %v4675_v61 = vld [vmem:[%s7446_s3 + $0x68] sm:$0xf0] }
  0xc2   : > { %v263_v10 = vshrl.u32 %v6235_v3, 16 }
  0xc3   : > { %v714_v11 = vadd.f32 %v713_v7, %v696_v8  ;;  %v262_v7 = vand.u32 65535, %v6235_v3  ;;  %v241_v8 = vshrl.u32 %v237_v56, 16 }
  0xc8   : > { %v697_v12 = vpop.f32.mrf.mxu2  ;;  %v878_v13 = vpop.f32.mrf.mxu0 }
  0xc9   : > { %v715_v16 = vpop.f32.mrf.mxu3  ;;  %v896_v14 = vpop.f32.mrf.mxu1  ;;  %v266_v12 = vmul.u32 43690, %v262_v7 }
  0xca   : > { %v897_v18 = vadd.f32 %v896_v14, %v878_v13  ;;  %v265_v16 = vmul.u32 43691, %v262_v7  ;;  %v6244_v13 = vmul.u32 43691, %v263_v10 }
  0xcb   : > { %v269_v14 = vshll.u32 %v266_v12, 16 }
  0xcc   : > { %v905_v15 = vadd.f32 %v897_v18, %v709_v0  ;;  %v246_v0 = vadd.s32 %v240_v28, %v236_v23  ;;  %v243_v18 = vshrl.u32 %v238_v25, 16  ;;  %v4673_v25 = vld [vmem:[%s7446_s3 + $0x60] sm:$0xf]  ;;  %v5406_v28 = vld [vmem:[%s7446_s3 + $0x64] sm:$0xf0] }
  0xcd   : > { %vm273_vm8 = vc.u32 %v265_v16, %v269_v14 }
  0xce   : > { %vm248_vm7 = vc.u32 %v246_v0, %v242_v57  ;;  %v4674_v57 = vor.u32 %v5406_v28, %v4673_v25 }
  0xcf   : > { %v249_v9 = vsel %vm248_vm7, 1, %v5566_v60 }
  0xd0   : > { %v1069_v17 = vpop.f32.mrf.mxu2  ;;  %v6192_v21 = vpop.f32.mrf.mxu0 }
  0xd1   : > { %v1087_v19 = vpop.f32.mrf.mxu3  ;;  %v6194_v22 = vpop.f32.mrf.mxu1 }
  0xd2   : > { %v1088_v20 = vadd.f32 %v1087_v19, %v1069_v17  ;;  %v271_v17 = vshll.u32 %v6244_v13, 16 }
  0xd4   : > { %v6196_v24 = vadd.f32 %v1088_v20, %v905_v15 }
  0xd8   : > { %v6198_v27 = vpop.f32.mrf.mxu2  ;;  %v883_v30 = vpop.f32.mrf.mxu0 }
  0xd9   : > { %v6200_v29 = vpop.f32.mrf.mxu3  ;;  %v901_v31 = vpop.f32.mrf.mxu1 }
  0xda   : > { %v902_v32 = vadd.f32 %v901_v31, %v883_v30  ;;  %v268_v30 = vmul.u32 43690, %v263_v10  ;;  %v275_v31 = vadd.s32 %v269_v14, %v265_v16 }
  0xdc   : > { %v907_v33 = vadd.f32 %v902_v32, %v714_v11  ;;  %v251_v11 = vadd.s32 %v249_v9, %v247_v6  ;;  %v6248_v32 = vadd.s32 16, %v6216_v49  ;;  %vm277_vm9 = vc.u32 %v275_v31, %v271_v17  ;;  %v5404_v17 = vld [vmem:[%s7446_s3 + $0x54] sm:$0xf0] }
  0xdd   : > { %v278_v56 = vsel %vm277_vm9, 1, %v5566_v60  ;;  %v270_v9 = vshrl.u32 %v266_v12, 16  ;;  %v5403_v12 = vld [vmem:[%s7446_s3 + $0x54] sm:$0xf]  ;;  %vm2152_vm9 = vcmask 1043459  }
  0xde   : > { %v252_v15 = vadd.s32 %v251_v11, %v241_v8  ;;  %v291_v23 = vand.u32 65535, %v6248_v32  ;;  %v292_v0 = vshrl.u32 %v6248_v32, 16 }
  0xe0   : > { %v1074_v34 = vpop.f32.mrf.mxu2  ;;  %v885_v37 = vpop.f32.mrf.mxu0  ;;  %v253_v48 = vadd.s32 %v252_v15, %v243_v18  ;;  %v295_v6 = vmul.u32 43690, %v291_v23  ;;  %v294_v11 = vmul.u32 43691, %v291_v23  ;;  %v296_v16 = vmul.u32 43691, %v292_v0  ;;  %v4665_v15 = vld [vmem:[%s7446_s3 + $0x50] sm:$0xf] }
  0xe1   : > { %v1092_v35 = vpop.f32.mrf.mxu3  ;;  %v903_v38 = vpop.f32.mrf.mxu1  ;;  %v5407_v37 = vld [vmem:[%s7446_s3 + $0x74] sm:$0xf] }
  0xe2   : > { %v1093_v36 = vadd.f32 %v1092_v35, %v1074_v34  ;;  %v4681_v35 = vld [vmem:[%s7446_s3 + $0x70] sm:$0xf]  ;;  %v300_v31 = vshll.u32 %v296_v16, 16 }
  0xe4   : > { %v6202_v39 = vadd.f32 %v1093_v36, %v907_v33  ;;  %v5408_v36 = vld [vmem:[%s7446_s3 + $0x74] sm:$0xf0] }
  0xe5   : > { %v4682_v38 = vor.u32 %v5408_v36, %v4681_v35 }
  0xe7   : > { %2428 = vmatpush.bf16.msrb.mxu0 %v4682_v38  ;;  %v272_v38 = vshrl.u32 %v6244_v13, 16  ;;  %v4659_v13 = vld [vmem:[%s7446_s3 + $0x48] sm:$0xf0] }
  0xe8   : > { %v1076_v40 = vpop.f32.mrf.mxu2  ;;  %v6204_v42 = vpop.f32.mrf.mxu0 }
  0xe9   : > { %v1094_v41 = vpop.f32.mrf.mxu3  ;;  %v6206_v43 = vpop.f32.mrf.mxu1  ;;  %v4683_v40 = vld [vmem:[%s7446_s3 + $0x78] sm:$0xf0] }
  0xea   : > { %v274_v41 = vsel %vm273_vm8, 1, %v5566_v60  ;;  %v4686_v54 = vor.u32 %v5407_v37, %v4683_v40  ;;  %v297_v37 = vmul.u32 43690, %v292_v0  ;;  %vm2153_vm8 = vsmask.f32 7950 }
  0xeb   : > { %v276_v55 = vadd.s32 %v274_v41, %v268_v30  ;;  %2429 = vmatpush.bf16.msrb.mxu0 %v4674_v57  ;;  %v4667_v30 = vld [vmem:[%s7446_s3 + $0x58] sm:$0xf0] }
  0xec   : > { %2446 = vmatpush.bf16.msrb.mxu1 %v4686_v54  ;;  %v4670_v36 = vor.u32 %v5403_v12, %v4667_v30  ;;  %v5402_v54 = vld [vmem:[%s7446_s3 + $0x44] sm:$0xf0]  ;;  %v4651_v12 = vld [vmem:[%s7446_s3 + $0x38] sm:$0xf0] }
  0xed   : > { %v280_v10 = vadd.s32 %v278_v56, %v276_v55  ;;  %v5401_v56 = vld [vmem:[%s7446_s3 + $0x44] sm:$0xf] }
  0xee   : > { %v4662_v28 = vor.u32 %v5401_v56, %v4659_v13  ;;  %v1303_v56 = vadd.f32 %v6206_v43, %v6204_v42 }
  0xef   : > { %v281_v40 = vadd.s32 %v280_v10, %v270_v9 }
  0xf0   : > { %v6208_v44 = vpop.f32.mrf.mxu2  ;;  %v6212_v46 = vpop.f32.mrf.mxu0 }
  0xf1   : > { %v6210_v45 = vpop.f32.mrf.mxu3  ;;  %v6214_v47 = vpop.f32.mrf.mxu1 }
  0xf8   : > { %v6218_v50 = vpop.f32.mrf.mxu2  ;;  %v6222_v52 = vpop.f32.mrf.mxu0 }
  0xf9   : > { %v6220_v51 = vpop.f32.mrf.mxu3  ;;  %v6224_v53 = vpop.f32.mrf.mxu1 }
 0x100   : > { %v6228_v58 = vpop.f32.mrf.mxu2  ;;  %v1291_v4 = vpop.f32.mrf.mxu0 }
 0x101   : > { %v6230_v59 = vpop.f32.mrf.mxu3  ;;  %v1309_v5 = vpop.f32.mrf.mxu1  ;;  %v254_v4 = vshrl.u32 %v253_v48, 2  ;;  %v4657_v48 = vld [vmem:[%s7446_s3 + $0x40] sm:$0xf] }
 0x102   : > { %v4678_v5 = vor.u32 %v5405_v26, %v4675_v61  ;;  %v4658_v55 = vor.u32 %v5402_v54, %v4657_v48  ;;  %v4619_v54 = vld [vmem:[%s7446_s3 + $0xf8] sm:$0xf0] }
 0x103   : > { %v255_v35 = vmul.u32 6, %v254_v4  ;;  %v282_v4 = vadd.s32 %v281_v40, %v272_v38  ;;  %v5423_v38 = vld [vmem:[%s7446_s3 + $0xf4] sm:$0xf] }
 0x104   : > { %2447 = vmatpush.bf16.msrb.mxu1 %v4678_v5  ;;  %v299_v5 = vshrl.u32 %v295_v6, 16 }
 0x105   : > { %v6317_v25 = vsub.s32 %v6216_v49, %v255_v35  ;;  %v4649_v49 = vld [vmem:[%s7446_s3 + $0x30] sm:$0xf]  ;;  %v5397_v35 = vld [vmem:[%s7446_s3 + $0x24] sm:$0xf] }
 0x107   : > { %vm317_vm12 = vcmp.ne.s32.totalorder %v6317_v25, 0  ;;  %vm320_vm13 = vcmp.lt.s32.totalorder %v6317_v25, 0  ;;  %v326_v43 = vadd.s32 6, %v6317_v25 }
 0x108   : > { %v1465_v19 = vpop.f32.mrf.mxu2  ;;  %v6250_v33 = vpop.f32.mrf.mxu0  ;;  %2448 = vmatpush.bf16.msrb.mxu1 %v4670_v36  ;;  %vm6384_vm14 = vmand %vm320_vm13, %vm317_vm12 }
 0x109   : > { %v1483_v20 = vpop.f32.mrf.mxu3  ;;  %v6252_v34 = vpop.f32.mrf.mxu1  ;;  %v298_v19 = vshll.u32 %v295_v6, 16  ;;  %v5399_v6 = vld [vmem:[%s7446_s3 + $0x34] sm:$0xf]  ;;  %vm6594_vm13 = vmand %vm2152_vm9, %vm2153_vm8  ;;  %vm2117_vm8 = vsmask.f32 7440 }
 0x10a   : > { %v4666_v20 = vor.u32 %v5404_v17, %v4665_v15  ;;  %v579_v17 = vadd.f32 %v6186_v63, %v6184_v62  ;;  %v4641_v62 = vld [vmem:[%s7446_s3 + $0x20] sm:$0xf]  ;;  %v5398_v63 = vld [vmem:[%s7446_s3 + $0x24] sm:$0xf0] }
 0x10b   : > { %vm302_vm10 = vc.u32 %v294_v11, %v298_v19  ;;  %v304_v41 = vadd.s32 %v298_v19, %v294_v11  ;;  %v301_v11 = vshrl.u32 %v296_v16, 16  ;;  %v283_v16 = vshrl.u32 %v282_v4, 2 }
 0x10c   : > { %2430 = vmatpush.bf16.msrb.mxu0 %v4666_v20  ;;  %v303_v23 = vsel %vm302_vm10, 1, %v5566_v60  ;;  %2449 = vmatpush.bf16.msrb.mxu1 %v4662_v28  ;;  %v693_v30 = vadd.f32 %v6188_v1, %v579_v17  ;;  %v5424_v1 = vld [vmem:[%s7446_s3 + $0xf4] sm:$0xf0]  ;;  %v4642_v40 = vor.u32 %v5398_v63, %v4641_v62  ;;  %v5395_v17 = vld [vmem:[%s7446_s3 + $0x14] sm:$0xf]  ;;  %v329_v62 = vsel %vm6384_vm14, %v326_v43, %v6317_v25 }
 0x10d   : > { %vm306_vm11 = vc.u32 %v304_v41, %v300_v31  ;;  %v305_v26 = vadd.s32 %v303_v23, %v297_v37  ;;  %v4654_v31 = vor.u32 %v5399_v6, %v4651_v12  ;;  %v4617_v37 = vld [vmem:[%s7446_s3 + $0xf0] sm:$0xf]  ;;  %v899_v41 = vadd.f32 %v6194_v22, %v6192_v21  ;;  %v4593_v43 = vld [vmem:[%s7446_s3 + $0xc0] sm:$0xf] }
 0x10e   : > { %v307_v57 = vsel %vm306_vm11, 1, %v5566_v60  ;;  %v5400_v60 = vld [vmem:[%s7446_s3 + $0x34] sm:$0xf0]  ;;  %v4618_v48 = vor.u32 %v5424_v1, %v4617_v37  ;;  %v711_v22 = vadd.f32 %v6190_v2, %v693_v30  ;;  %v4633_v2 = vld [vmem:[%s7446_s3 + $0x10] sm:$0xf]  ;;  %v1672_v12 = vadd.f32 %v6252_v34, %v6250_v33 }
 0x10f   : > { %v309_v15 = vadd.s32 %v307_v57, %v305_v26  ;;  %v4650_v20 = vor.u32 %v5400_v60, %v4649_v49  ;;  %v4622_v26 = vor.u32 %v5423_v38, %v4619_v54  ;;  %v1090_v57 = vadd.f32 %v6200_v29, %v6198_v27  ;;  %v5396_v27 = vld [vmem:[%s7446_s3 + $0x14] sm:$0xf0]  ;;  %v5422_v49 = vld [vmem:[%s7446_s3 + $0xe4] sm:$0xf0]  ;;  %v5393_v37 = vld [vmem:[%s7446_s3 + $0x4] sm:$0xf] }
 0x110   : > { %v6282_v7 = vpop.f32.mrf.mxu2  ;;  %v6286_v14 = vpop.f32.mrf.mxu0  ;;  %2431 = vmatpush.bf16.msrb.mxu0 %v4658_v55  ;;  %2450 = vmatpush.bf16.msrb.mxu1 %v4654_v31  ;;  %v4643_v55 = vld [vmem:[%s7446_s3 + $0x28] sm:$0xf0]  ;;  %v1477_v29 = vadd.f32 %v6210_v45, %v6208_v44  ;;  %v4634_v60 = vor.u32 %v5396_v27, %v4633_v2  ;;  %v906_v6 = vadd.f32 %v899_v41, %v711_v22  ;;  %v5421_v45 = vld [vmem:[%s7446_s3 + $0xe4] sm:$0xf]  ;;  %v5394_v33 = vld [vmem:[%s7446_s3 + $0x4] sm:$0xf0] }
 0x111   : > { %v6284_v8 = vpop.f32.mrf.mxu3  ;;  %v6288_v18 = vpop.f32.mrf.mxu1  ;;  %v310_v19 = vadd.s32 %v309_v15, %v299_v5  ;;  %v4646_v21 = vor.u32 %v5397_v35, %v4643_v55  ;;  %2309 = vmatpush.bf16.msra.mxu2 %v4618_v48  ;;  %2327 = vmatpush.bf16.msra.mxu3 %v4622_v26  ;;  %v4609_v15 = vld [vmem:[%s7446_s3 + $0xe0] sm:$0xf]  ;;  %v1479_v38 = vadd.f32 %v6220_v51, %v6218_v50  ;;  %vm6448_vm15 = vcmp.lt.s32.totalorder %v329_v62, 4  ;;  %v5417_v2 = vld [vmem:[%s7446_s3 + $0xc4] sm:$0xf] }
 0x112   : > { %v4610_v44 = vor.u32 %v5422_v49, %v4609_v15  ;;  %v6455_v48 = vld [vmem:[%s7445_s2] ss:$0 sm:$0xff] }
 0x113   : > { %v311_v36 = vadd.s32 %v310_v19, %v301_v11  ;;  %v284_v11 = vmul.u32 6, %v283_v16  ;;  %v1305_v16 = vadd.f32 %v6214_v47, %v6212_v46  ;;  %v4611_v19 = vld [vmem:[%s7446_s3 + $0xe8] sm:$0xf0]  ;;  %v4635_v46 = vld [vmem:[%s7446_s3 + $0x18] sm:$0xf0]  ;;  %v1097_v47 = vadd.f32 %v1090_v57, %v906_v6 }
 0x114   : > { %2432 = vmatpush.bf16.msrb.mxu0 %v4650_v20  ;;  %2451 = vmatpush.bf16.msrb.mxu1 %v4646_v21  ;;  %v1311_v20 = vadd.f32 %v1303_v56, %v6196_v24  ;;  %v4614_v31 = vor.u32 %v5421_v45, %v4611_v19  ;;  %v4638_v35 = vor.u32 %v5395_v17, %v4635_v46  ;;  %v4625_v24 = vld [vmem:[%s7446_s3] sm:$0xf]  ;;  %v4603_v56 = vld [vmem:[%s7446_s3 + $0xd8] sm:$0xf0]  ;;  %v5455_v17 = vld [vmem:[%s7446_s3 + $0x1f4] sm:$0xf] }
 0x115   : > { %v312_v28 = vshrl.u32 %v311_v36, 2  ;;  %v6424_v63 = vsub.s32 %v6235_v3, %v284_v11  ;;  %2310 = vmatpush.bf16.msra.mxu2 %v4610_v44  ;;  %v1887_v36 = vadd.f32 %v6284_v8, %v6282_v7  ;;  %v4601_v3 = vld [vmem:[%s7446_s3 + $0xd0] sm:$0xf]  ;;  %v4626_v25 = vor.u32 %v5394_v33, %v4625_v24  ;;  %v5420_v7 = vld [vmem:[%s7446_s3 + $0xd4] sm:$0xf0] }
 0x116   : > { %v1485_v34 = vadd.f32 %v1477_v29, %v1311_v20  ;;  %2328 = vmatpush.bf16.msra.mxu3 %v4614_v31  ;;  %v1312_v1 = vadd.f32 %v1305_v16, %v1097_v47  ;;  %v5419_v8 = vld [vmem:[%s7446_s3 + $0xd4] sm:$0xf]  ;;  %v4602_v55 = vor.u32 %v5420_v7, %v4601_v3  ;;  %v5418_v11 = vld [vmem:[%s7446_s3 + $0xc4] sm:$0xf0]  ;;  %v1674_v29 = vadd.f32 %v6288_v18, %v6286_v14  ;;  %v4843_v16 = vld [vmem:[%s7446_s3 + $0x1f8] sm:$0xf0] }
 0x117   : > { %v313_v30 = vmul.u32 6, %v312_v28  ;;  %v4627_v28 = vld [vmem:[%s7446_s3 + $0x8] sm:$0xf0]  ;;  %vm318_vm6 = vcmp.ne.s32.totalorder %v6424_v63, 0  ;;  %vm321_vm7 = vcmp.lt.s32.totalorder %v6424_v63, 0  ;;  %v4606_v22 = vor.u32 %v5419_v8, %v4603_v56 }
 0x118   : > { %v6320_v61 = vpop.f32.mrf.mxu2  ;;  %v6324_v9 = vpop.f32.mrf.mxu0  ;;  %2433 = vmatpush.bf16.msrb.mxu0 %v4642_v40  ;;  %2452 = vmatpush.bf16.msrb.mxu1 %v4638_v35  ;;  %v1680_v40 = vadd.f32 %v1672_v12, %v1485_v34  ;;  %v4630_v57 = vor.u32 %v5393_v37, %v4627_v28  ;;  %v6486_v15 = vadd.s32 6, %v6424_v63  ;;  %v4594_v49 = vor.u32 %v5418_v11, %v4593_v43  ;;  %vm6498_vm10 = vmand %vm321_vm7, %vm318_vm6  ;;  %v4833_v12 = vld [vmem:[%s7446_s3 + $0x1e0] sm:$0xf]  ;;  %v5453_v31 = vld [vmem:[%s7446_s3 + $0x1e4] sm:$0xf] }
 0x119   : > { %v6322_v0 = vpop.f32.mrf.mxu3  ;;  %v6326_v10 = vpop.f32.mrf.mxu1  ;;  %v6458_v54 = vsub.s32 %v6248_v32, %v313_v30  ;;  %v4841_v32 = vld [vmem:[%s7446_s3 + $0x1f0] sm:$0xf]  ;;  %2311 = vmatpush.bf16.msra.mxu2 %v4602_v55  ;;  %v1486_v44 = vadd.f32 %v1479_v38, %v1312_v1  ;;  %v1308_v45 = vadd.f32 %v6224_v53, %v6222_v52  ;;  %v4846_v20 = vor.u32 %v5455_v17, %v4843_v16  ;;  %v5454_v30 = vld [vmem:[%s7446_s3 + $0x1e4] sm:$0xf0]  ;;  %v5416_v53 = vld [vmem:[%s7446_s3 + $0xb4] sm:$0xf0] }
 0x11a   : > { %2329 = vmatpush.bf16.msra.mxu3 %v4606_v22  ;;  %v1889_v19 = vadd.f32 %v6322_v0, %v6320_v61  ;;  %v4585_v52 = vld [vmem:[%s7446_s3 + $0xb0] sm:$0xf]  ;;  %v5415_v61 = vld [vmem:[%s7446_s3 + $0xb4] sm:$0xf]  ;;  %v4834_v0 = vor.u32 %v5454_v30, %v4833_v12  ;;  %v4587_v35 = vld [vmem:[%s7446_s3 + $0xb8] sm:$0xf0]  ;;  %v1482_v7 = vadd.f32 %v6230_v59, %v6228_v58  ;;  %v1677_v43 = vadd.f32 %v6326_v10, %v6324_v9 }
 0x11b   : > { %vm319_vm11 = vcmp.ne.s32.totalorder %v6458_v54, 0  ;;  %vm322_vm12 = vcmp.lt.s32.totalorder %v6458_v54, 0  ;;  %v1681_v47 = vadd.f32 %v1674_v29, %v1486_v44  ;;  %v4586_v62 = vor.u32 %v5416_v53, %v4585_v52  ;;  %v4835_v24 = vld [vmem:[%s7446_s3 + $0x1e8] sm:$0xf0]  ;;  %v4577_v33 = vld [vmem:[%s7446_s3 + $0xa0] sm:$0xf] }
 0x11c   : > { %2434 = vmatpush.bf16.msrb.mxu0 %v4634_v60  ;;  %2453 = vmatpush.bf16.msrb.mxu1 %v4630_v57  ;;  %v4595_v60 = vld [vmem:[%s7446_s3 + $0xc8] sm:$0xf0]  ;;  %v4590_v3 = vor.u32 %v5415_v61, %v4587_v35  ;;  %v5414_v37 = vld [vmem:[%s7446_s3 + $0xa4] sm:$0xf0]  ;;  %v5413_v1 = vld [vmem:[%s7446_s3 + $0xa4] sm:$0xf]  ;;  %v1313_v38 = vadd.f32 %v1308_v45, %v6202_v39 }
 0x11d   : > { %v4598_v18 = vor.u32 %v5417_v2, %v4595_v60  ;;  %2312 = vmatpush.bf16.msra.mxu2 %v4594_v49  ;;  %v1896_v8 = vadd.f32 %v1889_v19, %v1681_v47  ;;  %v4579_v55 = vld [vmem:[%s7446_s3 + $0xa8] sm:$0xf0]  ;;  %v4825_v56 = vld [vmem:[%s7446_s3 + $0x1d0] sm:$0xf]  ;;  %v5452_v39 = vld [vmem:[%s7446_s3 + $0x1d4] sm:$0xf0]  ;;  %v4578_v28 = vor.u32 %v5414_v37, %v4577_v33 }
 0x11e   : > { %v4582_v57 = vor.u32 %v5413_v1, %v4579_v55  ;;  %v4571_v2 = vld [vmem:[%s7446_s3 + $0x98] sm:$0xf0]  ;;  %v5450_v29 = vld [vmem:[%s7446_s3 + $0x1c4] sm:$0xf0]  ;;  %v5449_v17 = vld [vmem:[%s7446_s3 + $0x1c4] sm:$0xf] }
 0x11f   : > { %2330 = vmatpush.bf16.msra.mxu3 %v4598_v18  ;;  %v2155_v18 = vld [vmem:[#allocation2] sm:$0x8]  ;;  %vm6615_vm6 = vmand %vm322_vm12, %vm319_vm11  ;;  %vm2116_vm7 = vsmask.f32 3328  ;;  %v4809_v47 = vld [vmem:[%s7446_s3 + $0x1b0] sm:$0xf] }
 0x120   : > { %v6373_v13 = vpop.f32.mrf.mxu2  ;;  %v1660_v4 = vpop.f32.mrf.mxu0  ;;  %2435 = vmatpush.bf16.msrb.mxu0 %v4626_v25  ;;  %2740 = vmatpush.bf16.msra.mxu1 %v4846_v20  ;;  %v4838_v25 = vor.u32 %v5453_v31, %v4835_v24  ;;  %v5447_v35 = vld [vmem:[%s7446_s3 + $0x1b4] sm:$0xf]  ;;  %v5409_v37 = vld [vmem:[%s7446_s3 + $0x84] sm:$0xf]  ;;  %v4793_v45 = vld [vmem:[%s7446_s3 + $0x190] sm:$0xf] }
 0x121   : > { %v6375_v23 = vpop.f32.mrf.mxu3  ;;  %v1678_v5 = vpop.f32.mrf.mxu1  ;;  %v5456_v4 = vld [vmem:[%s7446_s3 + $0x1f4] sm:$0xf0]  ;;  %2313 = vmatpush.bf16.msra.mxu2 %v4586_v62  ;;  %vm2160_vm11 = vcmask 1043456  }
 0x122   : > { %v1895_v5 = vadd.f32 %v1887_v36, %v1680_v40  ;;  %v4842_v27 = vor.u32 %v5456_v4, %v4841_v32  ;;  %v6540_v36 = vadd.s32 6, %v6458_v54  ;;  %v4569_v4 = vld [vmem:[%s7446_s3 + $0x90] sm:$0xf]  ;;  %v1892_v14 = vadd.f32 %v6375_v23, %v6373_v13  ;;  %v5448_v62 = vld [vmem:[%s7446_s3 + $0x1b4] sm:$0xf0]  ;;  %vm6744_vm12 = vmand %vm2160_vm11, %vm2116_vm7 }
 0x123   : > { %2331 = vmatpush.bf16.msra.mxu3 %v4590_v3 }
 0x124   : > { %2722 = vmatpush.bf16.msra.mxu0 %v4842_v27  ;;  %2741 = vmatpush.bf16.msra.mxu1 %v4838_v25  ;;  %v4817_v27 = vld [vmem:[%s7446_s3 + $0x1c0] sm:$0xf]  ;;  %v331_v61 = vsel %vm6615_vm6, %v6540_v36, %v6458_v54  ;;  %v4810_v36 = vor.u32 %v5448_v62, %v4809_v47  ;;  %v5410_v25 = vld [vmem:[%s7446_s3 + $0x84] sm:$0xf0]  ;;  %v5435_v47 = vld [vmem:[%s7446_s3 + $0x154] sm:$0xf] }
 0x125   : > { %v4818_v10 = vor.u32 %v5450_v29, %v4817_v27  ;;  %2314 = vmatpush.bf16.msra.mxu2 %v4578_v28  ;;  %v4561_v54 = vld [vmem:[%s7446_s3 + $0x80] sm:$0xf]  ;;  %vm6645_vm9 = vcmp.lt.s32.totalorder %v331_v61, 4  ;;  %v5446_v28 = vld [vmem:[%s7446_s3 + $0x1a4] sm:$0xf0] }
 0x126   : > { %v4753_v27 = vld [vmem:[%s7446_s3 + $0x160] sm:$0xf]  ;;  %v4747_v62 = vld [vmem:[%s7446_s3 + $0x158] sm:$0xf0] }
 0x127   : > { %2332 = vmatpush.bf16.msra.mxu3 %v4582_v57 }
 0x128   : > { %v1875_v50 = vpop.f32.mrf.mxu2  ;;  %v2058_v26 = vpop.f32.mrf.mxu0  ;;  %2723 = vmatpush.bf16.msra.mxu0 %v4834_v0 }
 0x129   : > { %v1893_v51 = vpop.f32.mrf.mxu3  ;;  %v2076_v21 = vpop.f32.mrf.mxu1  ;;  %v330_v50 = vsel %vm6498_vm10, %v6486_v15, %v6424_v63  ;;  %v4826_v63 = vor.u32 %v5452_v39, %v4825_v56  ;;  %v1487_v15 = vadd.f32 %v1482_v7, %v1313_v38  ;;  %vm6657_vm10 = vmor %vm2116_vm7, %vm2117_vm8 }
 0x12a   : > { %v2077_v42 = vadd.f32 %v2076_v21, %v2058_v26  ;;  %v5451_v26 = vld [vmem:[%s7446_s3 + $0x1d4] sm:$0xf]  ;;  %v4827_v21 = vld [vmem:[%s7446_s3 + $0x1d8] sm:$0xf0]  ;;  %vm6606_vm14 = vcmp.lt.s32.totalorder %v330_v50, 4 }
 0x12b   : > { %v4830_v32 = vor.u32 %v5451_v26, %v4827_v21  ;;  %v1682_v30 = vadd.f32 %v1677_v43, %v1487_v15  ;;  %v4811_v50 = vld [vmem:[%s7446_s3 + $0x1b8] sm:$0xf0]  ;;  %v4761_v26 = vld [vmem:[%s7446_s3 + $0x170] sm:$0xf]  ;;  %v5440_v21 = vld [vmem:[%s7446_s3 + $0x174] sm:$0xf0] }
 0x12c   : > { %v2085_v6 = vadd.f32 %v2077_v42, %v1895_v5  ;;  %v5412_v5 = vld [vmem:[%s7446_s3 + $0x94] sm:$0xf0]  ;;  %v5411_v42 = vld [vmem:[%s7446_s3 + $0x94] sm:$0xf]  ;;  %2724 = vmatpush.bf16.msra.mxu0 %v4826_v63 }
 0x12d   : > { %v4570_v19 = vor.u32 %v5412_v5, %v4569_v4  ;;  %2742 = vmatpush.bf16.msra.mxu1 %v4830_v32  ;;  %v4574_v13 = vor.u32 %v5411_v42, %v4571_v2  ;;  %v1897_v24 = vadd.f32 %v1892_v14, %v1682_v30  ;;  %v4762_v5 = vor.u32 %v5440_v21, %v4761_v26  ;;  %v5445_v42 = vld [vmem:[%s7446_s3 + $0x1a4] sm:$0xf]  ;;  %v4803_v2 = vld [vmem:[%s7446_s3 + $0x1a8] sm:$0xf0]  ;;  %v4795_v30 = vld [vmem:[%s7446_s3 + $0x198] sm:$0xf0] }
 0x12e   : > { %v2092_v46 = vadd.f32 %v6455_v48, %v2085_v6  ;;  %v4819_v6 = vld [vmem:[%s7446_s3 + $0x1c8] sm:$0xf0]  ;;  %v4806_v9 = vor.u32 %v5445_v42, %v4803_v2  ;;  %v5488_v21 = vld [vmem:[%s7446_s3 + $0x2f4] sm:$0xf0]  ;;  %v4731_v2 = vld [vmem:[%s7446_s3 + $0x138] sm:$0xf0] }
 0x12f   : > { %v4822_v23 = vor.u32 %v5449_v17, %v4819_v6  ;;  %2315 = vmatpush.bf16.msra.mxu2 %v4570_v19  ;;  %2333 = vmatpush.bf16.msra.mxu3 %v4574_v13  ;;  %v5437_v17 = vld [vmem:[%s7446_s3 + $0x164] sm:$0xf]  ;;  %v4755_v6 = vld [vmem:[%s7446_s3 + $0x168] sm:$0xf0]  ;;  %v5443_v13 = vld [vmem:[%s7446_s3 + $0x194] sm:$0xf] }
 0x130   : > { %v2095_v34 = vmax.f32 %v2092_v46, 0.0  ;;  %v2060_v40 = vpop.f32.mrf.mxu0  ;;  %2725 = vmatpush.bf16.msra.mxu0 %v4818_v10  ;;  %v5438_v10 = vld [vmem:[%s7446_s3 + $0x164] sm:$0xf0]  ;;  %v4798_v61 = vor.u32 %v5443_v13, %v4795_v30  ;;  %v5432_v42 = vld [vmem:[%s7446_s3 + $0x134] sm:$0xf0] }
 0x131   : > { %v2078_v51 = vpop.f32.mrf.mxu1  ;;  %2743 = vmatpush.bf16.msra.mxu1 %v4822_v23  ;;  %v5483_v30 = vld [vmem:[%s7446_s3 + $0x2d4] sm:$0xf] }
 0x132   : > { %v2104_v58 = vsel %vm6448_vm15, %v2095_v34, 0.0  ;;  %v2079_v59 = vadd.f32 %v2078_v51, %v2060_v40  ;;  %v4563_v40 = vld [vmem:[%s7446_s3 + $0x88] sm:$0xf0]  ;;  %v4737_v51 = vld [vmem:[%s7446_s3 + $0x140] sm:$0xf] }
 0x133   : > { %v2107_v22 = vpack.c.bf16 %v2104_v58, %v2104_v58  ;;  %v4566_v39 = vor.u32 %v5409_v37, %v4563_v40  ;;  %v4814_v58 = vor.u32 %v5447_v35, %v4811_v50  ;;  %v4785_v35 = vld [vmem:[%s7446_s3 + $0x180] sm:$0xf]  ;;  %v2162_v50 = vld [vmem:[#allocation2 + $0xc] sm:$0xf] }
 0x134   : > { %v2086_v11 = vadd.f32 %v2079_v59, %v1896_v8  ;;  %v4562_v8 = vor.u32 %v5410_v25, %v4561_v54  ;;  %2726 = vmatpush.bf16.msra.mxu0 %v4810_v36  ;;  %v4801_v59 = vld [vmem:[%s7446_s3 + $0x1a0] sm:$0xf]  ;;  %v4750_v36 = vor.u32 %v5435_v47, %v4747_v62  ;;  %v4787_v25 = vld [vmem:[%s7446_s3 + $0x188] sm:$0xf0] }
 0x135   : > { %v2120_v49 = vshll.u32 %v2107_v22, 16  ;;  %v2123_v60 = vshrl.u32 %v2107_v22, 16  ;;  %v5439_v22 = vld [vmem:[%s7446_s3 + $0x174] sm:$0xf]  ;;  %v4802_v57 = vor.u32 %v5446_v28, %v4801_v59  ;;  %2334 = vmatpush.bf16.msra.mxu3 %v4566_v39  ;;  %2744 = vmatpush.bf16.msra.mxu1 %v4814_v58  ;;  %v5433_v39 = vld [vmem:[%s7446_s3 + $0x144] sm:$0xf] }
 0x136   : > { %v2093_v44 = vadd.f32 %v6455_v48, %v2086_v11  ;;  %2316 = vmatpush.bf16.msra.mxu2 %v4562_v8  ;;  %v4739_v59 = vld [vmem:[%s7446_s3 + $0x148] sm:$0xf0]  ;;  %v5001_v28 = vld [vmem:[%s7446_s3 + $0x2f0] sm:$0xf] }
 0x137   : > { %v2122_v20 = vrot.slane %v2120_v49, 5  ;;  %v2125_v12 = vrot.slane %v2123_v60, 4  ;;  %v4742_v26 = vor.u32 %v5433_v39, %v4739_v59  ;;  %v4705_v39 = vld [vmem:[%s7446_s3 + $0x100] sm:$0xf]  ;;  %v5425_v59 = vld [vmem:[%s7446_s3 + $0x104] sm:$0xf] }
 0x138   : > { %v2096_v31 = vmax.f32 %v2093_v44, 0.0  ;;  %v2063_v53 = vpop.f32.mrf.mxu0  ;;  %2727 = vmatpush.bf16.msra.mxu0 %v4802_v57  ;;  %v4758_v44 = vor.u32 %v5437_v17, %v4755_v6  ;;  %v5003_v57 = vld [vmem:[%s7446_s3 + $0x2f8] sm:$0xf0]  ;;  %v4721_v6 = vld [vmem:[%s7446_s3 + $0x120] sm:$0xf] }
 0x139   : > { %v2126_v46 = vor.u32 %v2125_v12, %v2122_v20  ;;  %v2156_v52 = vsel %vm6594_vm13, %v2122_v20, %v2155_v18  ;;  %v2081_v0 = vpop.f32.mrf.mxu1  ;;  %v4754_v18 = vor.u32 %v5438_v10, %v4753_v27  ;;  %2745 = vmatpush.bf16.msra.mxu1 %v4806_v9  ;;  %v5444_v12 = vld [vmem:[%s7446_s3 + $0x194] sm:$0xf0]  ;;  %v4993_v27 = vld [vmem:[%s7446_s3 + $0x2e0] sm:$0xf]  ;;  %v5485_v9 = vld [vmem:[%s7446_s3 + $0x2e4] sm:$0xf] }
 0x13a   : > { %2157 = vst [vmem:[#allocation2] sm:$0x8] %v2156_v52  ;;  %v2105_v33 = vsel %vm6606_vm14, %v2096_v31, 0.0  ;;  %v2082_v34 = vadd.f32 %v2081_v0, %v2063_v53  ;;  %2570 = vmatpush.bf16.msrb.mxu2 %v4762_v5  ;;  %v4794_v23 = vor.u32 %v5444_v12, %v4793_v45  ;;  %v4745_v31 = vld [vmem:[%s7446_s3 + $0x150] sm:$0xf] }
 0x13b   : > { %v2108_v3 = vpack.c.bf16 %v2105_v33, %v2105_v33  ;;  %v2127_v1 = vrot.slane %v2126_v46, 4  ;;  %v5436_v46 = vld [vmem:[%s7446_s3 + $0x154] sm:$0xf0]  ;;  %v5441_v33 = vld [vmem:[%s7446_s3 + $0x184] sm:$0xf] }
 0x13c   : > { %v2087_v7 = vadd.f32 %v2082_v34, %v1897_v24  ;;  %v4746_v0 = vor.u32 %v5436_v46, %v4745_v31  ;;  %2728 = vmatpush.bf16.msra.mxu0 %v4794_v23  ;;  %v5442_v24 = vld [vmem:[%s7446_s3 + $0x184] sm:$0xf0]  ;;  %v4790_v37 = vor.u32 %v5441_v33, %v4787_v25  ;;  %v4995_v10 = vld [vmem:[%s7446_s3 + $0x2e8] sm:$0xf0]  ;;  %v4987_v31 = vld [vmem:[%s7446_s3 + $0x2d8] sm:$0xf0] }
 0x13d   : > { %v2129_v55 = vshll.u32 %v2108_v3, 16  ;;  %v2133_v56 = vshrl.u32 %v2108_v3, 16  ;;  %2746 = vmatpush.bf16.msra.mxu1 %v4798_v61  ;;  %v4786_v3 = vor.u32 %v5442_v24, %v4785_v35  ;;  %v4998_v17 = vor.u32 %v5485_v9, %v4995_v10  ;;  %v4723_v45 = vld [vmem:[%s7446_s3 + $0x128] sm:$0xf0]  ;;  %v4713_v46 = vld [vmem:[%s7446_s3 + $0x110] sm:$0xf] }
 0x13e   : > { %v2094_v63 = vadd.f32 %v6455_v48, %v2087_v7  ;;  %v4763_v48 = vld [vmem:[%s7446_s3 + $0x178] sm:$0xf0]  ;;  %2571 = vmatpush.bf16.msrb.mxu2 %v4754_v18  ;;  %v5429_v18 = vld [vmem:[%s7446_s3 + $0x124] sm:$0xf]  ;;  %v4990_v61 = vor.u32 %v5483_v30, %v4987_v31  ;;  %v5427_v35 = vld [vmem:[%s7446_s3 + $0x114] sm:$0xf] }
 0x13f   : > { %v2131_v32 = vrot.slane %v2129_v55, 5  ;;  %v2135_v4 = vrot.slane %v2133_v56, 4  ;;  %v4766_v11 = vor.u32 %v5439_v22, %v4763_v48  ;;  %v5434_v56 = vld [vmem:[%s7446_s3 + $0x144] sm:$0xf0]  ;;  %v5487_v22 = vld [vmem:[%s7446_s3 + $0x2f4] sm:$0xf]  ;;  %v4726_v13 = vor.u32 %v5429_v18, %v4723_v45 }
 0x140   : > { %v2097_v43 = vmax.f32 %v2094_v63, 0.0  ;;  %v2065_v49 = vpop.f32.mrf.mxu0  ;;  %2729 = vmatpush.bf16.msra.mxu0 %v4786_v3  ;;  %v4738_v58 = vor.u32 %v5434_v56, %v4737_v51  ;;  %v5006_v5 = vor.u32 %v5487_v22, %v5003_v57  ;;  %v4729_v48 = vld [vmem:[%s7446_s3 + $0x130] sm:$0xf]  ;;  %v4715_v24 = vld [vmem:[%s7446_s3 + $0x118] sm:$0xf0] }
 0x141   : > { %v2132_v29 = vsel %vm6657_vm10, %v2127_v1, %v2131_v32  ;;  %v2136_v15 = vor.u32 %v2135_v4, %v2131_v32  ;;  %v2083_v60 = vpop.f32.mrf.mxu1  ;;  %2588 = vmatpush.bf16.msrb.mxu3 %v4766_v11  ;;  %2747 = vmatpush.bf16.msra.mxu1 %v4790_v37  ;;  %v5002_v4 = vor.u32 %v5488_v21, %v5001_v28  ;;  %v4977_v33 = vld [vmem:[%s7446_s3 + $0x2c0] sm:$0xf]  ;;  %v5481_v3 = vld [vmem:[%s7446_s3 + $0x2c4] sm:$0xf]  ;;  %v4979_v25 = vld [vmem:[%s7446_s3 + $0x2c8] sm:$0xf0] }
 0x142   : > { %2158 = vst [vmem:[#allocation2 + $0x4] sm:$0xf] %v2132_v29  ;;  %v2106_v14 = vsel %vm6645_vm9, %v2097_v43, 0.0  ;;  %2572 = vmatpush.bf16.msrb.mxu2 %v4746_v0  ;;  %v5431_v43 = vld [vmem:[%s7446_s3 + $0x134] sm:$0xf]  ;;  %v4730_v11 = vor.u32 %v5432_v42, %v4729_v48 }
 0x143   : > { %v2137_v19 = vrot.slane %v2136_v15, 4  ;;  %v2109_v20 = vpack.c.bf16 %v2106_v14, %v2106_v14  ;;  %v5486_v29 = vld [vmem:[%s7446_s3 + $0x2e4] sm:$0xf0]  ;;  %v4734_v49 = vor.u32 %v5431_v43, %v4731_v2  ;;  %v5428_v0 = vld [vmem:[%s7446_s3 + $0x114] sm:$0xf0] }
 0x144   : > { %v4994_v60 = vor.u32 %v5486_v29, %v4993_v27  ;;  %v5430_v14 = vld [vmem:[%s7446_s3 + $0x124] sm:$0xf0]  ;;  %v4707_v28 = vld [vmem:[%s7446_s3 + $0x108] sm:$0xf0]  ;;  %v4969_v57 = vld [vmem:[%s7446_s3 + $0x2b0] sm:$0xf] }
 0x145   : > { %v2139_v52 = vshll.u32 %v2109_v20, 16  ;;  %v2143_v53 = vshrl.u32 %v2109_v20, 16  ;;  %2589 = vmatpush.bf16.msrb.mxu3 %v4758_v44  ;;  %v4722_v44 = vor.u32 %v5430_v14, %v4721_v6  ;;  %v5484_v20 = vld [vmem:[%s7446_s3 + $0x2d4] sm:$0xf0]  ;;  %v4710_v22 = vor.u32 %v5425_v59, %v4707_v28  ;;  %v4971_v48 = vld [vmem:[%s7446_s3 + $0x2b8] sm:$0xf0] }
 0x146   : > { %2573 = vmatpush.bf16.msrb.mxu2 %v4738_v58  ;;  %v5426_v58 = vld [vmem:[%s7446_s3 + $0x104] sm:$0xf0]  ;;  %v2612_v43 = vld [vmem:[#allocation2] sm:$0x8]  ;;  %v4921_v29 = vld [vmem:[%s7446_s3 + $0x270] sm:$0xf] }
 0x147   : > { %v2141_v34 = vrot.slane %v2139_v52, 5  ;;  %v2145_v54 = vrot.slane %v2143_v53, 4  ;;  %v4706_v21 = vor.u32 %v5426_v58, %v4705_v39  ;;  %v4961_v9 = vld [vmem:[%s7446_s3 + $0x2a0] sm:$0xf]  ;;  %v5478_v10 = vld [vmem:[%s7446_s3 + $0x2a4] sm:$0xf0] }
 0x148   : > { %v4962_v14 = vor.u32 %v5478_v10, %v4961_v9  ;;  %v5477_v18 = vld [vmem:[%s7446_s3 + $0x2a4] sm:$0xf]  ;;  %v4913_v45 = vld [vmem:[%s7446_s3 + $0x260] sm:$0xf]  ;;  %v5466_v58 = vld [vmem:[%s7446_s3 + $0x244] sm:$0xf0] }
 0x149   : > { %v2142_v1 = vsel %vm6657_vm10, %v2137_v19, %v2141_v34  ;;  %v2146_v7 = vor.u32 %v2145_v54, %v2141_v34  ;;  %v6740_v8 = vld [vmem:[#allocation2] sm:$0xff]   ;;  %2590 = vmatpush.bf16.msrb.mxu3 %v4750_v36  ;;  %v4985_v19 = vld [vmem:[%s7446_s3 + $0x2d0] sm:$0xf]  ;;  %v4714_v34 = vor.u32 %v5428_v0, %v4713_v46  ;;  %v4718_v54 = vor.u32 %v5427_v35, %v4715_v24  ;;  %v5482_v36 = vld [vmem:[%s7446_s3 + $0x2c4] sm:$0xf0] }
 0x14a   : > { %2159 = vst [vmem:[#allocation2 + $0x8] sm:$0xf] %v2142_v1  ;;  %2436 = vmatmul.bf16.vlgmr.msrb.gmra.mxu0 %v6740_v8  ;;  %2454 = vmatmul.bf16.vlgmr.msrb.gmra.mxu1 %v6740_v8  ;;  %v2215_v32 = vshll.u32 %v6740_v8, 16  ;;  %v4986_v23 = vor.u32 %v5484_v20, %v4985_v19  ;;  %v4978_v40 = vor.u32 %v5482_v36, %v4977_v33  ;;  %v2213_v51 = vshrl.u32 %v6740_v8, 16  ;;  %v5470_v20 = vld [vmem:[%s7446_s3 + $0x264] sm:$0xf0] }
 0x14b   : > { %v2147_v55 = vrot.slane %v2146_v7, 4  ;;  %3027 = vmatpush.bf16.msrb.mxu0 %v5002_v4  ;;  %3045 = vmatpush.bf16.msrb.mxu1 %v5006_v5  ;;  %v5479_v5 = vld [vmem:[%s7446_s3 + $0x2b4] sm:$0xf]  ;;  %v6890_v27 = vunpack.c.h.b16 %v6740_v8  ;;  %v4923_v8 = vld [vmem:[%s7446_s3 + $0x278] sm:$0xf0]  ;;  %v4914_v31 = vor.u32 %v5470_v20, %v4913_v45 }
 0x14c   : > { %2574 = vmatpush.bf16.msrb.mxu2 %v4730_v11  ;;  %v2217_v7 = vrot.slane %v2215_v32, 1  ;;  %v5480_v32 = vld [vmem:[%s7446_s3 + $0x2b4] sm:$0xf0]  ;;  %v4974_v2 = vor.u32 %v5479_v5, %v4971_v48  ;;  %v4955_v0 = vld [vmem:[%s7446_s3 + $0x298] sm:$0xf0] }
 0x14d   : > { %v2163_v63 = vsel %vm6744_vm12, %v2147_v55, %v2162_v50  ;;  %2591 = vmatpush.bf16.msrb.mxu3 %v4742_v26  ;;  %v4982_v50 = vor.u32 %v5481_v3, %v4979_v25  ;;  %v4970_v4 = vor.u32 %v5480_v32, %v4969_v57  ;;  %v5467_v33 = vld [vmem:[%s7446_s3 + $0x254] sm:$0xf]  ;;  %v5474_v36 = vld [vmem:[%s7446_s3 + $0x284] sm:$0xf0]  ;;  %v5473_v3 = vld [vmem:[%s7446_s3 + $0x284] sm:$0xf] }
 0x14e   : > { %2164 = vst [vmem:[#allocation2 + $0xc] sm:$0xf] %v2163_v63  ;;  %v2218_v63 = vor.u32 %v2217_v7, %v2213_v51  ;;  %v4947_v25 = vld [vmem:[%s7446_s3 + $0x288] sm:$0xf0]  ;;  %v4897_v39 = vld [vmem:[%s7446_s3 + $0x240] sm:$0xf] }
 0x14f   : > { %3028 = vmatpush.bf16.msrb.mxu0 %v4994_v60  ;;  %3046 = vmatpush.bf16.msrb.mxu1 %v4998_v17  ;;  %v2633_v17 = vunpack.c.l.b16 %v2612_v43  ;;  %v5465_v59 = vld [vmem:[%s7446_s3 + $0x244] sm:$0xf]  ;;  %v4899_v28 = vld [vmem:[%s7446_s3 + $0x248] sm:$0xf0]  ;;  %v5163_v5 = vld [vmem:[%s7446_s3 + $0x3f8] sm:$0xf0] }
 0x150   : > { %2575 = vmatpush.bf16.msrb.mxu2 %v4722_v44  ;;  %v4963_v44 = vld [vmem:[%s7446_s3 + $0x2a8] sm:$0xf0]  ;;  %v4902_v57 = vor.u32 %v5465_v59, %v4899_v28  ;;  %v4889_v43 = vld [vmem:[%s7446_s3 + $0x230] sm:$0xf]  ;;  %v5461_v45 = vld [vmem:[%s7446_s3 + $0x224] sm:$0xf] }
 0x151   : > { %v2167_v15 = vld [vmem:[#allocation2 + $0x8] sm:$0xf]  ;;  %2592 = vmatpush.bf16.msrb.mxu3 %v4734_v49  ;;  %v5471_v49 = vld [vmem:[%s7446_s3 + $0x274] sm:$0xf]  ;;  %v4966_v19 = vor.u32 %v5477_v18, %v4963_v44  ;;  %v6929_v30 = vpack.c.b16 %v6890_v27, %v2633_v17  ;;  %v5517_v17 = vld [vmem:[%s7446_s3 + $0x3e4] sm:$0xf] }
 0x152   : > { %v6819_v12 = vunpack.c.l.b16 %v2167_v15  ;;  %v5472_v15 = vld [vmem:[%s7446_s3 + $0x274] sm:$0xf0]  ;;  %v4926_v6 = vor.u32 %v5471_v49, %v4923_v8  ;;  %v5153_v49 = vld [vmem:[%s7446_s3 + $0x3e0] sm:$0xf]  ;;  %v5462_v44 = vld [vmem:[%s7446_s3 + $0x224] sm:$0xf0] }
 0x153   : > { %3029 = vmatpush.bf16.msrb.mxu0 %v4986_v23  ;;  %3047 = vmatpush.bf16.msrb.mxu1 %v4990_v61  ;;  %v4922_v60 = vor.u32 %v5472_v15, %v4921_v29  ;;  %v4915_v23 = vld [vmem:[%s7446_s3 + $0x268] sm:$0xf0]  ;;  %v5475_v61 = vld [vmem:[%s7446_s3 + $0x294] sm:$0xf]  ;;  %v4891_v15 = vld [vmem:[%s7446_s3 + $0x238] sm:$0xf0] }
 0x154   : > { %v2345_v37 = vpack.c.b16 %v6819_v12, %v6819_v12  ;;  %2576 = vmatpush.bf16.msrb.mxu2 %v4714_v34  ;;  %v4958_v24 = vor.u32 %v5475_v61, %v4955_v0  ;;  %v4907_v34 = vld [vmem:[%s7446_s3 + $0x258] sm:$0xf0]  ;;  %v5463_v29 = vld [vmem:[%s7446_s3 + $0x234] sm:$0xf]  ;;  %v2464_v8 = vld [vmem:[#allocation2] sm:$0xe] }
 0x155   : > { %v2184_v52 = vld [vmem:[#allocation2 + $0xc] sm:$0x1]  ;;  %2593 = vmatpush.bf16.msrb.mxu3 %v4726_v13  ;;  %v5469_v13 = vld [vmem:[%s7446_s3 + $0x264] sm:$0xf]  ;;  %v4894_v9 = vor.u32 %v5463_v29, %v4891_v15  ;;  %v5145_v20 = vld [vmem:[%s7446_s3 + $0x3d0] sm:$0xf] }
 0x156   : > { %v2613_v53 = vld [vmem:[#allocation2 + $0xc] sm:$0x7]  ;;  %v2209_v47 = vunpack.c.l.b16 %v2184_v52  ;;  %v4918_v46 = vor.u32 %v5469_v13, %v4915_v23  ;;  %v4953_v52 = vld [vmem:[%s7446_s3 + $0x290] sm:$0xf]  ;;  %v5516_v13 = vld [vmem:[%s7446_s3 + $0x3d4] sm:$0xf0] }
 0x157   : > { %v2634_v62 = vunpack.c.l.b16 %v2613_v53  ;;  %3030 = vmatpush.bf16.msrb.mxu0 %v4978_v40  ;;  %3048 = vmatpush.bf16.msrb.mxu1 %v4982_v50  ;;  %v5476_v53 = vld [vmem:[%s7446_s3 + $0x294] sm:$0xf0]  ;;  %v4910_v40 = vor.u32 %v5467_v33, %v4907_v34  ;;  %v5515_v23 = vld [vmem:[%s7446_s3 + $0x3d4] sm:$0xf]  ;;  %v4873_v61 = vld [vmem:[%s7446_s3 + $0x210] sm:$0xf]  ;;  %v2483_v33 = vunpack.c.l.b16 %v2464_v8 }
 0x158   : > { %v6854_v1 = vpack.c.b16 %v2209_v47, %v6819_v12  ;;  %2577 = vmatpush.bf16.msrb.mxu2 %v4706_v21  ;;  %v4905_v47 = vld [vmem:[%s7446_s3 + $0x250] sm:$0xf]  ;;  %v4954_v35 = vor.u32 %v5476_v53, %v4953_v52  ;;  %v5520_v21 = vld [vmem:[%s7446_s3 + $0x3f4] sm:$0xf0]  ;;  %v5146_v52 = vor.u32 %v5516_v13, %v5145_v20  ;;  %v5147_v53 = vld [vmem:[%s7446_s3 + $0x3d8] sm:$0xf0] }
 0x159   : > { %v2636_v56 = vpack.c.b16 %v2634_v62, %v6819_v12  ;;  %2594 = vmatpush.bf16.msrb.mxu3 %v4718_v54  ;;  %v5468_v62 = vld [vmem:[%s7446_s3 + $0x254] sm:$0xf0]  ;;  %v4945_v54 = vld [vmem:[%s7446_s3 + $0x280] sm:$0xf]  ;;  %v5514_v34 = vld [vmem:[%s7446_s3 + $0x3c4] sm:$0xf0] }
 0x15a   : > { %2441 = vmatmul.bf16.gmra.mxu0 %v2345_v37  ;;  %2459 = vmatmul.bf16.gmra.mxu1 %v2345_v37  ;;  %v2220_v55 = vshll.u32 %v6854_v1, 16  ;;  %v2637_v37 = vrot.slane %v6929_v30, 3  ;;  %v4906_v7 = vor.u32 %v5468_v62, %v4905_v47  ;;  %v2224_v51 = vshrl.u32 %v6854_v1, 16  ;;  %v5460_v0 = vld [vmem:[%s7446_s3 + $0x214] sm:$0xf0] }
 0x15b   : > { %v6887_v11 = vrot.slane %v2636_v56, 3  ;;  %3031 = vmatpush.bf16.msrb.mxu0 %v4970_v4  ;;  %3049 = vmatpush.bf16.msrb.mxu1 %v4974_v2  ;;  %v4950_v56 = vor.u32 %v5473_v3, %v4947_v25  ;;  %v5519_v4 = vld [vmem:[%s7446_s3 + $0x3f4] sm:$0xf]  ;;  %v5464_v2 = vld [vmem:[%s7446_s3 + $0x234] sm:$0xf0]  ;;  %v5150_v47 = vor.u32 %v5515_v23, %v5147_v53  ;;  %v2484_v25 = vpack.c.b16 %v6890_v27, %v2483_v33 }
 0x15c   : > { %v6871_v26 = vrot.slane %v2220_v55, 1  ;;  %v4946_v55 = vor.u32 %v5474_v36, %v4945_v54  ;;  %v5459_v62 = vld [vmem:[%s7446_s3 + $0x214] sm:$0xf]  ;;  %v5513_v54 = vld [vmem:[%s7446_s3 + $0x3c4] sm:$0xf] }
 0x15d   : > { %2595 = vmatpush.bf16.msrb.mxu3 %v4710_v22  ;;  %v2639_v50 = vsel %vm953_vm2, %v2637_v37, %v6887_v11  ;;  %v4898_v22 = vor.u32 %v5466_v58, %v4897_v39  ;;  %v5139_v36 = vld [vmem:[%s7446_s3 + $0x3c8] sm:$0xf0]  ;;  %v4874_v37 = vor.u32 %v5460_v0, %v4873_v61  ;;  %v5512_v39 = vld [vmem:[%s7446_s3 + $0x3b4] sm:$0xf0]  ;;  %v2485_v58 = vrot.slane %v2484_v25, 1 }
 0x15e   : > { %v2223_v42 = vsel %vm418_vm0, %v2218_v63, %v6871_v26  ;;  %v5161_v63 = vld [vmem:[%s7446_s3 + $0x3f0] sm:$0xf]  ;;  %v2226_v48 = vor.u32 %v2224_v51, %v6871_v26  ;;  %v4890_v26 = vor.u32 %v5464_v2, %v4889_v43  ;;  %v4865_v51 = vld [vmem:[%s7446_s3 + $0x200] sm:$0xf]  ;;  %v5083_v43 = vld [vmem:[%s7446_s3 + $0x378] sm:$0xf0] }
 0x15f   : > { %2317 = vmatmul.bf16.vlgmr.msra.gmra.mxu2 %v2223_v42  ;;  %2335 = vmatmul.bf16.vlgmr.msra.gmra.mxu3 %v2223_v42  ;;  %v5162_v32 = vor.u32 %v5520_v21, %v5161_v63  ;;  %v5166_v42 = vor.u32 %v5519_v4, %v5163_v5  ;;  %v5511_v63 = vld [vmem:[%s7446_s3 + $0x3b4] sm:$0xf]  ;;  %v5131_v21 = vld [vmem:[%s7446_s3 + $0x3b8] sm:$0xf0]  ;;  %v5081_v4 = vld [vmem:[%s7446_s3 + $0x370] sm:$0xf] }
 0x160   : > { %2884 = vmatpush.bf16.msra.mxu2 %v4922_v60  ;;  %3032 = vmatpush.bf16.msrb.mxu0 %v4962_v14  ;;  %v5518_v60 = vld [vmem:[%s7446_s3 + $0x3e4] sm:$0xf0]  ;;  %v4881_v14 = vld [vmem:[%s7446_s3 + $0x220] sm:$0xf]  ;;  %v5504_v5 = vld [vmem:[%s7446_s3 + $0x374] sm:$0xf0] }
 0x161   : > { %2902 = vmatpush.bf16.msra.mxu3 %v4926_v6  ;;  %3050 = vmatpush.bf16.msrb.mxu1 %v4966_v19  ;;  %v5154_v10 = vor.u32 %v5518_v60, %v5153_v49  ;;  %v5155_v6 = vld [vmem:[%s7446_s3 + $0x3e8] sm:$0xf0]  ;;  %v5121_v2 = vld [vmem:[%s7446_s3 + $0x3a0] sm:$0xf]  ;;  %v5510_v29 = vld [vmem:[%s7446_s3 + $0x3a4] sm:$0xf0] }
 0x162   : > { %v5158_v18 = vor.u32 %v5517_v17, %v5155_v6  ;;  %v4883_v19 = vld [vmem:[%s7446_s3 + $0x228] sm:$0xf0]  ;;  %v5122_v15 = vor.u32 %v5510_v29, %v5121_v2  ;;  %v5509_v49 = vld [vmem:[%s7446_s3 + $0x3a4] sm:$0xf]  ;;  %v5073_v8 = vld [vmem:[%s7446_s3 + $0x360] sm:$0xf] }
 0x163   : > { %v5123_v60 = vld [vmem:[%s7446_s3 + $0x3a8] sm:$0xf0]  ;;  %v5501_v17 = vld [vmem:[%s7446_s3 + $0x364] sm:$0xf]  ;;  %v5115_v20 = vld [vmem:[%s7446_s3 + $0x398] sm:$0xf0] }
 0x164   : > { %2885 = vmatpush.bf16.msra.mxu2 %v4914_v31  ;;  %3033 = vmatpush.bf16.msrb.mxu0 %v4954_v35  ;;  %v4882_v31 = vor.u32 %v5462_v44, %v4881_v14  ;;  %v4875_v35 = vld [vmem:[%s7446_s3 + $0x218] sm:$0xf0]  ;;  %v5075_v6 = vld [vmem:[%s7446_s3 + $0x368] sm:$0xf0]  ;;  %v5113_v44 = vld [vmem:[%s7446_s3 + $0x390] sm:$0xf] }
 0x165   : > { %2903 = vmatpush.bf16.msra.mxu3 %v4918_v46  ;;  %3051 = vmatpush.bf16.msrb.mxu1 %v4958_v24  ;;  %v4886_v46 = vor.u32 %v5461_v45, %v4883_v19  ;;  %v5137_v24 = vld [vmem:[%s7446_s3 + $0x3c0] sm:$0xf]  ;;  %v5508_v45 = vld [vmem:[%s7446_s3 + $0x394] sm:$0xf0]  ;;  %v5507_v19 = vld [vmem:[%s7446_s3 + $0x394] sm:$0xf] }
 0x166   : > { %v5138_v3 = vor.u32 %v5514_v34, %v5137_v24  ;;  %v5065_v13 = vld [vmem:[%s7446_s3 + $0x350] sm:$0xf]  ;;  %v5500_v23 = vld [vmem:[%s7446_s3 + $0x354] sm:$0xf0]  ;;  %v5067_v53 = vld [vmem:[%s7446_s3 + $0x358] sm:$0xf0]  ;;  %v2943_v34 = vpack.c.b16 %v6819_v12, %v6890_v27 }
 0x167   : > { %v5105_v61 = vld [vmem:[%s7446_s3 + $0x380] sm:$0xf]  ;;  %v5506_v0 = vld [vmem:[%s7446_s3 + $0x384] sm:$0xf0]  ;;  %v5066_v24 = vor.u32 %v5500_v23, %v5065_v13  ;;  %v5059_v27 = vld [vmem:[%s7446_s3 + $0x348] sm:$0xf0] }
 0x168   : > { %2886 = vmatpush.bf16.msra.mxu2 %v4906_v7  ;;  %3034 = vmatpush.bf16.msrb.mxu0 %v4946_v55  ;;  %v4878_v7 = vor.u32 %v5459_v62, %v4875_v35  ;;  %v5458_v55 = vld [vmem:[%s7446_s3 + $0x204] sm:$0xf0]  ;;  %v5107_v62 = vld [vmem:[%s7446_s3 + $0x388] sm:$0xf0]  ;;  %v5057_v25 = vld [vmem:[%s7446_s3 + $0x340] sm:$0xf] }
 0x169   : > { %2904 = vmatpush.bf16.msra.mxu3 %v4910_v40  ;;  %3052 = vmatpush.bf16.msrb.mxu1 %v4950_v56  ;;  %v7070_v40 = vrot.slane %v6854_v1, 1  ;;  %v5457_v56 = vld [vmem:[%s7446_s3 + $0x204] sm:$0xf]  ;;  %v4867_v1 = vld [vmem:[%s7446_s3 + $0x208] sm:$0xf0]  ;;  %v4866_v59 = vor.u32 %v5458_v55, %v4865_v51  ;;  %vm3565_vm0 = vcmask 1040384  }
 0x16a   : > { %2730 = vmatmul.bf16.vlgmr.msra.gmra.mxu0 %v2639_v50  ;;  %2748 = vmatmul.bf16.vlgmr.msra.gmra.mxu1 %v2639_v50  ;;  %v5142_v50 = vor.u32 %v5513_v54, %v5139_v36  ;;  %v4870_v28 = vor.u32 %v5457_v56, %v4867_v1  ;;  %v2764_v35 = vld [vmem:[#allocation2 + $0xc] sm:$0xf]  ;;  %v5106_v54 = vor.u32 %v5506_v0, %v5105_v61  ;;  %v5049_v1 = vld [vmem:[%s7446_s3 + $0x330] sm:$0xf] }
 0x16b   : > { %v7187_v56 = vld [vmem:[#allocation2 + $0x8] sm:$0xff]  }
 0x16c   : > { %3347 = vmatpush.bf16.msra.mxu0 %v5162_v32  ;;  %2887 = vmatpush.bf16.msra.mxu2 %v4898_v22  ;;  %v2487_v32 = vsel %vm762_vm1, %v2485_v58, %v7070_v40  ;;  %v3069_v58 = vld [vmem:[#allocation2 + $0x4] sm:$0xc] }
 0x16d   : > { %2905 = vmatpush.bf16.msra.mxu3 %v4902_v57  ;;  %3365 = vmatpush.bf16.msra.mxu1 %v5166_v42  ;;  %v5134_v57 = vor.u32 %v5511_v63, %v5131_v21  ;;  %v5082_v42 = vor.u32 %v5504_v5, %v5081_v4  ;;  %v5494_v21 = vld [vmem:[%s7446_s3 + $0x324] sm:$0xf0]  ;;  %v3227_v5 = vld [vmem:[#allocation2 + $0x10] sm:$0x7] }
 0x16f   : > { %2322 = vmatmul.bf16.gmra.mxu2 %v2226_v48  ;;  %2340 = vmatmul.bf16.gmra.mxu3 %v2226_v48  ;;  %v5503_v48 = vld [vmem:[%s7446_s3 + $0x374] sm:$0xf] }
 0x170   : > { %3348 = vmatpush.bf16.msra.mxu0 %v5154_v10  ;;  %2888 = vmatpush.bf16.msra.mxu2 %v4890_v26  ;;  %v5086_v26 = vor.u32 %v5503_v48, %v5083_v43  ;;  %v5502_v10 = vld [vmem:[%s7446_s3 + $0x364] sm:$0xf0]  ;;  %v3094_v48 = vunpack.c.l.b16 %v3069_v58  ;;  %v2789_v43 = vshll.u32 %v6929_v30, 16 }
 0x171   : > { %2906 = vmatpush.bf16.msra.mxu3 %v4894_v9  ;;  %3366 = vmatpush.bf16.msra.mxu1 %v5158_v18  ;;  %v5126_v9 = vor.u32 %v5509_v49, %v5123_v60  ;;  %v5074_v14 = vor.u32 %v5502_v10, %v5073_v8  ;;  %v5078_v18 = vor.u32 %v5501_v17, %v5075_v6  ;;  %v3246_v60 = vunpack.c.l.b16 %v3227_v5  ;;  %v5492_v8 = vld [vmem:[%s7446_s3 + $0x314] sm:$0xf0] }
 0x174   : > { %3349 = vmatpush.bf16.msra.mxu0 %v5146_v52  ;;  %2889 = vmatpush.bf16.msra.mxu2 %v4882_v31  ;;  %v5114_v31 = vor.u32 %v5508_v45, %v5113_v44  ;;  %v5499_v52 = vld [vmem:[%s7446_s3 + $0x354] sm:$0xf] }
 0x175   : > { %2907 = vmatpush.bf16.msra.mxu3 %v4886_v46  ;;  %3367 = vmatpush.bf16.msra.mxu1 %v5150_v47  ;;  %v5118_v46 = vor.u32 %v5507_v19, %v5115_v20  ;;  %v5505_v47 = vld [vmem:[%s7446_s3 + $0x384] sm:$0xf]  ;;  %v5070_v33 = vor.u32 %v5499_v52, %v5067_v53  ;;  %v5027_v53 = vld [vmem:[%s7446_s3 + $0x308] sm:$0xf0] }
 0x176   : > { %v5110_v36 = vor.u32 %v5505_v47, %v5107_v62  ;;  %v5489_v52 = vld [vmem:[%s7446_s3 + $0x304] sm:$0xf] }
 0x177   : > { %v5030_v47 = vor.u32 %v5489_v52, %v5027_v53  ;;  %v5523_v52 = vld [vmem:[%s7446_s3 + $0x414] sm:$0xf] }
 0x178   : > { %3350 = vmatpush.bf16.msra.mxu0 %v5138_v3  ;;  %2890 = vmatpush.bf16.msra.mxu2 %v4874_v37  ;;  %v2783_v3 = vunpack.c.l.b16 %v2764_v35  ;;  %v5498_v37 = vld [vmem:[%s7446_s3 + $0x344] sm:$0xf0] }
 0x179   : > { %2908 = vmatpush.bf16.msra.mxu3 %v4878_v7  ;;  %3368 = vmatpush.bf16.msra.mxu1 %v5142_v50  ;;  %v5497_v7 = vld [vmem:[%s7446_s3 + $0x344] sm:$0xf]  ;;  %v5058_v50 = vor.u32 %v5498_v37, %v5057_v25  ;;  %v5243_v37 = vld [vmem:[%s7446_s3 + $0x478] sm:$0xf0] }
 0x17a   : > { %2735 = vmatmul.bf16.gmra.mxu0 %v6887_v11  ;;  %2753 = vmatmul.bf16.gmra.mxu1 %v6887_v11  ;;  %v5129_v11 = vld [vmem:[%s7446_s3 + $0x3b0] sm:$0xf]  ;;  %v5062_v51 = vor.u32 %v5497_v7, %v5059_v27  ;;  %v2784_v55 = vpack.c.b16 %v2783_v3, %v6819_v12  ;;  %v2944_v6 = vpack.c.b16 %v2783_v3, %v2783_v3  ;;  %v5535_v3 = vld [vmem:[%s7446_s3 + $0x474] sm:$0xf]  ;;  %v5233_v7 = vld [vmem:[%s7446_s3 + $0x460] sm:$0xf] }
 0x17b   : > { %v5130_v22 = vor.u32 %v5512_v39, %v5129_v11  ;;  %v5496_v11 = vld [vmem:[%s7446_s3 + $0x334] sm:$0xf0]  ;;  %v5495_v39 = vld [vmem:[%s7446_s3 + $0x334] sm:$0xf]  ;;  %v5534_v27 = vld [vmem:[%s7446_s3 + $0x464] sm:$0xf0] }
 0x17c   : > { %2891 = vmatpush.bf16.msra.mxu2 %v4866_v59  ;;  %v5050_v12 = vor.u32 %v5496_v11, %v5049_v1  ;;  %v5041_v59 = vld [vmem:[%s7446_s3 + $0x320] sm:$0xf]  ;;  %v2797_v4 = vshll.u32 %v2784_v55, 16  ;;  %v5533_v1 = vld [vmem:[%s7446_s3 + $0x464] sm:$0xf] }
 0x17d   : > { %2909 = vmatpush.bf16.msra.mxu3 %v4870_v28  ;;  %3351 = vmatpush.bf16.msra.mxu0 %v5130_v22  ;;  %v5543_v28 = vunpack.c.l.b16 %v7187_v56  ;;  %v5493_v22 = vld [vmem:[%s7446_s3 + $0x324] sm:$0xf]  ;;  %v5042_v2 = vor.u32 %v5494_v21, %v5041_v59  ;;  %v5235_v11 = vld [vmem:[%s7446_s3 + $0x468] sm:$0xf0]  ;;  %v5225_v59 = vld [vmem:[%s7446_s3 + $0x450] sm:$0xf] }
 0x17e   : > { %3369 = vmatpush.bf16.msra.mxu1 %v5134_v57  ;;  %v5043_v57 = vld [vmem:[%s7446_s3 + $0x328] sm:$0xf0]  ;;  %v2799_v17 = vrot.slane %v2797_v4, 4  ;;  %v5238_v58 = vor.u32 %v5533_v1, %v5235_v11  ;;  %v5531_v21 = vld [vmem:[%s7446_s3 + $0x454] sm:$0xf] }
 0x17f   : > { %2578 = vmatmul.bf16.vlgmr.msrb.gmra.mxu2 %v2487_v32  ;;  %2596 = vmatmul.bf16.vlgmr.msrb.gmra.mxu3 %v2487_v32  ;;  %v2794_v32 = vshrl.u32 %v2784_v55, 16  ;;  %v5046_v29 = vor.u32 %v5493_v22, %v5043_v57  ;;  %v7224_v49 = vpack.c.b16 %v5543_v28, %v3094_v48  ;;  %v5246_v55 = vor.u32 %v5535_v3, %v5243_v37  ;;  %v5227_v57 = vld [vmem:[%s7446_s3 + $0x458] sm:$0xf0]  ;;  %v5530_v48 = vld [vmem:[%s7446_s3 + $0x444] sm:$0xf0] }
 0x180   : > { %3185 = vmatpush.bf16.msrb.mxu2 %v5082_v42  ;;  %v2786_v42 = vshrl.u32 %v6929_v30, 16  ;;  %v5491_v30 = vld [vmem:[%s7446_s3 + $0x314] sm:$0xf]  ;;  %v5230_v5 = vor.u32 %v5531_v21, %v5227_v57 }
 0x181   : > { %3203 = vmatpush.bf16.msrb.mxu3 %v5086_v26  ;;  %3352 = vmatpush.bf16.msra.mxu0 %v5122_v15  ;;  %v5033_v26 = vld [vmem:[%s7446_s3 + $0x310] sm:$0xf]  ;;  %v5544_v15 = vunpack.c.h.b16 %v7187_v56  ;;  %v2796_v10 = vrot.slane %v2794_v32, 3  ;;  %v3249_v20 = vshrl.u32 %v7224_v49, 16  ;;  %v3252_v13 = vshll.u32 %v7224_v49, 16 }
 0x182   : > { %3370 = vmatpush.bf16.msra.mxu1 %v5126_v9  ;;  %v5035_v9 = vld [vmem:[%s7446_s3 + $0x318] sm:$0xf0]  ;;  %v5034_v44 = vor.u32 %v5492_v8, %v5033_v26  ;;  %v5217_v32 = vld [vmem:[%s7446_s3 + $0x440] sm:$0xf]  ;;  %v3072_v26 = vld [vmem:[#allocation2 + $0x10] sm:$0x3] }
 0x183   : > { %v5038_v45 = vor.u32 %v5491_v30, %v5035_v9  ;;  %v7237_v19 = vpack.c.b16 %v3246_v60, %v5544_v15  ;;  %v2800_v23 = vor.u32 %v2799_v17, %v2796_v10  ;;  %v5209_v60 = vld [vmem:[%s7446_s3 + $0x430] sm:$0xf]  ;;  %v5528_v8 = vld [vmem:[%s7446_s3 + $0x434] sm:$0xf0]  ;;  %v5527_v30 = vld [vmem:[%s7446_s3 + $0x434] sm:$0xf] }
 0x184   : > { %3186 = vmatpush.bf16.msrb.mxu2 %v5074_v14  ;;  %v2788_v14 = vrot.slane %v2786_v42, 3  ;;  %v5529_v42 = vld [vmem:[%s7446_s3 + $0x444] sm:$0xf]  ;;  %v5210_v9 = vor.u32 %v5528_v8, %v5209_v60  ;;  %v5211_v10 = vld [vmem:[%s7446_s3 + $0x438] sm:$0xf0] }
 0x185   : > { %3204 = vmatpush.bf16.msrb.mxu3 %v5078_v18  ;;  %3353 = vmatpush.bf16.msra.mxu0 %v5114_v31  ;;  %v2791_v18 = vrot.slane %v2789_v43, 4  ;;  %v5025_v31 = vld [vmem:[%s7446_s3 + $0x300] sm:$0xf]  ;;  %v3257_v62 = vshrl.u32 %v7237_v19, 16  ;;  %v3260_v35 = vshll.u32 %v7237_v19, 16  ;;  %v3411_v11 = vrot.slane %v7237_v19, 3 }
 0x186   : > { %3371 = vmatpush.bf16.msra.mxu1 %v5118_v46  ;;  %v5490_v46 = vld [vmem:[%s7446_s3 + $0x304] sm:$0xf0]  ;;  %v5219_v43 = vld [vmem:[%s7446_s3 + $0x448] sm:$0xf0]  ;;  %v5201_v17 = vld [vmem:[%s7446_s3 + $0x420] sm:$0xf] }
 0x187   : > { %v2792_v61 = vor.u32 %v2791_v18, %v2788_v14  ;;  %v5026_v0 = vor.u32 %v5490_v46, %v5025_v31  ;;  %v5526_v14 = vld [vmem:[%s7446_s3 + $0x424] sm:$0xf0]  ;;  %v5525_v18 = vld [vmem:[%s7446_s3 + $0x424] sm:$0xf]  ;;  %v5193_v31 = vld [vmem:[%s7446_s3 + $0x410] sm:$0xf] }
 0x188   : > { %3187 = vmatpush.bf16.msrb.mxu2 %v5066_v24  ;;  %v5524_v46 = vld [vmem:[%s7446_s3 + $0x414] sm:$0xf0] }
 0x189   : > { %3205 = vmatpush.bf16.msrb.mxu3 %v5070_v33  ;;  %3354 = vmatpush.bf16.msra.mxu0 %v5106_v54  ;;  %v2801_v24 = vsel %vm1140_vm3, %v2792_v61, %v2800_v23  ;;  %v3251_v33 = vrot.slane %v3249_v20, 2  ;;  %v5241_v54 = vld [vmem:[%s7446_s3 + $0x470] sm:$0xf]  ;;  %v5202_v20 = vor.u32 %v5526_v14, %v5201_v17  ;;  %v5194_v53 = vor.u32 %v5524_v46, %v5193_v31  ;;  %v5195_v61 = vld [vmem:[%s7446_s3 + $0x418] sm:$0xf0] }
 0x18a   : > { %3035 = vmatmul.bf16.vlgmr.msrb.gmra.mxu0 %v2943_v34  ;;  %3053 = vmatmul.bf16.vlgmr.msrb.gmra.mxu1 %v2943_v34  ;;  %v3254_v34 = vrot.slane %v3252_v13, 3 }
 0x18b   : > { %3372 = vmatpush.bf16.msra.mxu1 %v5110_v36  ;;  %v5536_v36 = vld [vmem:[%s7446_s3 + $0x474] sm:$0xf0] }
 0x18c   : > { %3188 = vmatpush.bf16.msrb.mxu2 %v5058_v50  ;;  %v5242_v25 = vor.u32 %v5536_v36, %v5241_v54  ;;  %v3259_v50 = vrot.slane %v3257_v62, 2  ;;  %v5521_v62 = vld [vmem:[%s7446_s3 + $0x404] sm:$0xf] }
 0x18d   : > { %3206 = vmatpush.bf16.msrb.mxu3 %v5062_v51  ;;  %v3262_v51 = vrot.slane %v3260_v35, 3  ;;  %v5187_v35 = vld [vmem:[%s7446_s3 + $0x408] sm:$0xf0] }
 0x18e   : > { %v5190_v54 = vor.u32 %v5521_v62, %v5187_v35 }
 0x18f   : > { %2583 = vmatmul.bf16.gmra.mxu2 %v7070_v40  ;;  %2601 = vmatmul.bf16.gmra.mxu3 %v7070_v40  ;;  %v5051_v40 = vld [vmem:[%s7446_s3 + $0x338] sm:$0xf0] }
 0x190   : > { %v5054_v63 = vor.u32 %v5495_v39, %v5051_v40  ;;  %3189 = vmatpush.bf16.msrb.mxu2 %v5050_v12  ;;  %v5234_v39 = vor.u32 %v5534_v27, %v5233_v7  ;;  %v3255_v12 = vor.u32 %v3254_v34, %v3251_v33  ;;  %v3263_v40 = vor.u32 %v3262_v51, %v3259_v50  ;;  %v3389_v27 = vld [vmem:[#allocation2 + $0x4] sm:$0x8] }
 0x191   : > { %v3408_v50 = vunpack.c.l.b16 %v3389_v27 }
 0x192   : > { %3207 = vmatpush.bf16.msrb.mxu3 %v5054_v63  ;;  %v5532_v63 = vld [vmem:[%s7446_s3 + $0x454] sm:$0xf0]  ;;  %v3264_v4 = vsel %vm1724_vm5, %v3255_v12, %v3263_v40 }
 0x193   : > { %v5226_v22 = vor.u32 %v5532_v63, %v5225_v59 }
 0x194   : > { %3190 = vmatpush.bf16.msrb.mxu2 %v5042_v2  ;;  %v5218_v2 = vor.u32 %v5530_v48, %v5217_v32 }
 0x196   : > { %3208 = vmatpush.bf16.msrb.mxu3 %v5046_v29  ;;  %v5222_v29 = vor.u32 %v5529_v42, %v5219_v43 }
 0x198   : > { %3191 = vmatpush.bf16.msrb.mxu2 %v5034_v44  ;;  %v5203_v44 = vld [vmem:[%s7446_s3 + $0x428] sm:$0xf0] }
 0x199   : > { %v5206_v13 = vor.u32 %v5525_v18, %v5203_v44 }
 0x19a   : > { %3040 = vmatmul.bf16.gmra.mxu0 %v2944_v6  ;;  %3058 = vmatmul.bf16.gmra.mxu1 %v2944_v6  ;;  %v5214_v6 = vor.u32 %v5527_v30, %v5211_v10 }
 0x19b   : > { %3209 = vmatpush.bf16.msrb.mxu3 %v5038_v45  ;;  %v3097_v45 = vunpack.c.l.b16 %v3072_v26 }
 0x19c   : > { %3192 = vmatpush.bf16.msrb.mxu2 %v5026_v0  ;;  %v5198_v0 = vor.u32 %v5523_v52, %v5195_v61 }
 0x19f   : > { %2892 = vmatmul.bf16.vlgmr.msra.gmra.mxu2 %v2801_v24  ;;  %2910 = vmatmul.bf16.vlgmr.msra.gmra.mxu3 %v2801_v24  ;;  %v3100_v24 = vrot.slane %v7224_v49, 2  ;;  %v3409_v49 = vpack.c.b16 %v5543_v28, %v3408_v50 }
 0x1a0   : > { %3210 = vmatpush.bf16.msrb.mxu3 %v5030_v47  ;;  %3495 = vmatpush.bf16.msra.mxu2 %v5242_v25  ;;  %v5522_v47 = vld [vmem:[%s7446_s3 + $0x404] sm:$0xf0] }
 0x1a1   : > { %v3410_v1 = vrot.slane %v3409_v49, 3 }
 0x1a4   : > { %3513 = vmatpush.bf16.msra.mxu3 %v5246_v55  ;;  %3496 = vmatpush.bf16.msra.mxu2 %v5234_v39  ;;  %v3412_v39 = vsel %vm953_vm2, %v3410_v1, %v3411_v11 }
 0x1a8   : > { %3514 = vmatpush.bf16.msra.mxu3 %v5238_v58  ;;  %3497 = vmatpush.bf16.msra.mxu2 %v5226_v22 }
 0x1aa   : > { %3355 = vmatmul.bf16.vlgmr.msra.gmra.mxu0 %v3264_v4  ;;  %3373 = vmatmul.bf16.vlgmr.msra.gmra.mxu1 %v3264_v4 }
 0x1ac   : > { %3515 = vmatpush.bf16.msra.mxu3 %v5230_v5  ;;  %3498 = vmatpush.bf16.msra.mxu2 %v5218_v2 }
 0x1af   : > { %2897 = vmatmul.bf16.gmra.mxu2 %v2800_v23  ;;  %2915 = vmatmul.bf16.gmra.mxu3 %v2800_v23  ;;  %v3099_v23 = vpack.c.b16 %v3097_v45, %v5544_v15  ;;  %v5185_v15 = vld [vmem:[%s7446_s3 + $0x400] sm:$0xf] }
 0x1b0   : > { %3516 = vmatpush.bf16.msra.mxu3 %v5222_v29  ;;  %3499 = vmatpush.bf16.msra.mxu2 %v5210_v9  ;;  %v5186_v34 = vor.u32 %v5522_v47, %v5185_v15 }
 0x1b1   : > { %v3101_v33 = vrot.slane %v3099_v23, 2 }
 0x1b3   : > { %v3102_v36 = vsel %vm1537_vm4, %v3100_v24, %v3101_v33 }
 0x1b4   : > { %3517 = vmatpush.bf16.msra.mxu3 %v5214_v6  ;;  %3500 = vmatpush.bf16.msra.mxu2 %v5202_v20 }
 0x1b8   : > { %3518 = vmatpush.bf16.msra.mxu3 %v5206_v13  ;;  %3501 = vmatpush.bf16.msra.mxu2 %v5194_v53 }
 0x1ba   : > { %3360 = vmatmul.bf16.gmra.mxu0 %v3263_v40  ;;  %3378 = vmatmul.bf16.gmra.mxu1 %v3263_v40 }
 0x1bc   : > { %3519 = vmatpush.bf16.msra.mxu3 %v5198_v0  ;;  %3502 = vmatpush.bf16.msra.mxu2 %v5186_v34 }
 0x1bf   : > { %3193 = vmatmul.bf16.vlgmr.msrb.gmra.mxu2 %v3102_v36  ;;  %3211 = vmatmul.bf16.vlgmr.msrb.gmra.mxu3 %v3102_v36 }
 0x1c0   : > { %3520 = vmatpush.bf16.msra.mxu3 %v5190_v54 }
 0x1c7   : > { %v2437_v3 = vpop.f32.mrf.mxu0  ;;  %v2455_v25 = vpop.f32.mrf.mxu1 }
 0x1cf   : > { %v2439_v37 = vpop.f32.mrf.mxu0  ;;  %v2457_v7 = vpop.f32.mrf.mxu1  ;;  %3198 = vmatmul.bf16.gmra.mxu2 %v3101_v33  ;;  %3216 = vmatmul.bf16.gmra.mxu3 %v3101_v33 }
 0x1d7   : > { %v2442_v51 = vpop.f32.mrf.mxu0  ;;  %v2460_v55 = vpop.f32.mrf.mxu1 }
 0x1df   : > { %v2444_v58 = vpop.f32.mrf.mxu0  ;;  %v2462_v12 = vpop.f32.mrf.mxu1  ;;  %3503 = vmatmul.bf16.vlgmr.msra.gmra.mxu2 %v3412_v39  ;;  %3521 = vmatmul.bf16.vlgmr.msra.gmra.mxu3 %v3412_v39 }
 0x1e2   : > { %v2318_v40 = vpop.f32.mrf.mxu2  ;;  %v2336_v59 = vpop.f32.mrf.mxu3 }
 0x1e3   : > { %v2438_v63 = vadd.f32 %v2437_v3, %v2318_v40  ;;  %v2456_v21 = vadd.f32 %v2455_v25, %v2336_v59 }
 0x1e7   : > { %v2731_v22 = vpop.f32.mrf.mxu0  ;;  %v2749_v57 = vpop.f32.mrf.mxu1 }
 0x1ea   : > { %v2320_v32 = vpop.f32.mrf.mxu2  ;;  %v2338_v56 = vpop.f32.mrf.mxu3 }
 0x1eb   : > { %v2440_v28 = vadd.f32 %v2439_v37, %v2320_v32  ;;  %v2458_v4 = vadd.f32 %v2457_v7, %v2338_v56 }
 0x1ef   : > { %v2733_v5 = vpop.f32.mrf.mxu0  ;;  %v2751_v48 = vpop.f32.mrf.mxu1  ;;  %3508 = vmatmul.bf16.gmra.mxu2 %v3411_v11  ;;  %3526 = vmatmul.bf16.gmra.mxu3 %v3411_v11 }
 0x1f2   : > { %v2323_v19 = vpop.f32.mrf.mxu2  ;;  %v2341_v42 = vpop.f32.mrf.mxu3 }
 0x1f3   : > { %v2443_v43 = vadd.f32 %v2442_v51, %v2323_v19  ;;  %v2461_v2 = vadd.f32 %v2460_v55, %v2341_v42 }
 0x1f7   : > { %v2736_v29 = vpop.f32.mrf.mxu0  ;;  %v2754_v26 = vpop.f32.mrf.mxu1 }
 0x1fa   : > { %v2325_v60 = vpop.f32.mrf.mxu2  ;;  %v2343_v8 = vpop.f32.mrf.mxu3 }
 0x1ff   : > { %v2738_v30 = vpop.f32.mrf.mxu0  ;;  %v2756_v9 = vpop.f32.mrf.mxu1 }
 0x200   : > { %v5567_v9 = vmov 0.0  }
 0x201   : > { %3604 = vst [vmem:[%s7378_s29] sm:$0xff] %v5567_v9 }
 0x202   : > { %v2579_v10 = vpop.f32.mrf.mxu2  ;;  %v2597_v17 = vpop.f32.mrf.mxu3  ;;  %3612 = vst [vmem:[%s7378_s29 + $0x40] sm:$0xff] %v5567_v9 }
 0x203   : > { %v2606_v6 = vadd.f32 %v2579_v10, %v2438_v63  ;;  %v2607_v14 = vadd.f32 %v2597_v17, %v2456_v21  ;;  %3613 = vst [vmem:[%s7378_s29 + $0x48] sm:$0xff] %v5567_v9 }
 0x204   : > { %3614 = vst [vmem:[%s7378_s29 + $0x50] sm:$0xff] %v5567_v9 }
 0x205   : > { %v2758_v18 = vadd.f32 %v2731_v22, %v2606_v6  ;;  %v2759_v44 = vadd.f32 %v2749_v57, %v2607_v14  ;;  %3615 = vst [vmem:[%s7378_s29 + $0x58] sm:$0xff] %v5567_v9 }
 0x206   : > { %3605 = vst [vmem:[%s7378_s29 + $0x8] sm:$0xff] %v5567_v9 }
 0x207   : > { %v3036_v45 = vpop.f32.mrf.mxu0  ;;  %v3054_v20 = vpop.f32.mrf.mxu1  ;;  %3610 = vst [vmem:[%s7378_s29 + $0x30] sm:$0xff] %v5567_v9 }
 0x208   : > { %3611 = vst [vmem:[%s7378_s29 + $0x38] sm:$0xff] %v5567_v9 }
 0x20a   : > { %v2581_v13 = vpop.f32.mrf.mxu2  ;;  %v2599_v23 = vpop.f32.mrf.mxu3 }
 0x20b   : > { %v2608_v31 = vadd.f32 %v2581_v13, %v2440_v28  ;;  %v2609_v46 = vadd.f32 %v2599_v23, %v2458_v4  ;;  %v3551_v13 = vld [vmem:[%s5650_s24 + $0x10] sm:$0xff]  ;;  %v3550_v23 = vld [vmem:[%s5650_s24 + $0x8] sm:$0x80] }
 0x20d   : > { %v2760_v52 = vadd.f32 %v2733_v5, %v2608_v31  ;;  %v2761_v53 = vadd.f32 %v2751_v48, %v2609_v46  ;;  %v3552_v31 = vld [vmem:[%s5650_s24 + $0x18] sm:$0xff] }
 0x20f   : > { %v3038_v61 = vpop.f32.mrf.mxu0  ;;  %v3056_v15 = vpop.f32.mrf.mxu1 }
 0x212   : > { %v2584_v0 = vpop.f32.mrf.mxu2  ;;  %v2602_v47 = vpop.f32.mrf.mxu3 }
 0x213   : > { %v2610_v62 = vadd.f32 %v2584_v0, %v2443_v43  ;;  %v2611_v35 = vadd.f32 %v2602_v47, %v2461_v2 }
 0x215   : > { %v2762_v24 = vadd.f32 %v2736_v29, %v2610_v62  ;;  %v2763_v33 = vadd.f32 %v2754_v26, %v2611_v35 }
 0x217   : > { %v3041_v34 = vpop.f32.mrf.mxu0  ;;  %v3059_v54 = vpop.f32.mrf.mxu1 }
 0x21a   : > { %v2586_v36 = vpop.f32.mrf.mxu2  ;;  %v2604_v3 = vpop.f32.mrf.mxu3 }
 0x21f   : > { %v3043_v25 = vpop.f32.mrf.mxu0  ;;  %v3061_v37 = vpop.f32.mrf.mxu1 }
 0x222   : > { %v2893_v7 = vpop.f32.mrf.mxu2  ;;  %v2911_v27 = vpop.f32.mrf.mxu3 }
 0x223   : > { %v2920_v50 = vadd.f32 %v2893_v7, %v2758_v18  ;;  %v2921_v49 = vadd.f32 %v2911_v27, %v2759_v44  ;;  %v3537_v18 = vld [vmem:[%s7447_s4] sm:$0x3]  ;;  %v3549_v44 = vld [vmem:[%s5650_s24] sm:$0x80] }
 0x224   : > { %v7395_v46 = vperm.slane %v3537_v18, 0  ;;  %v3540_v62 = vperm.slane %v3537_v18, 1  ;;  %v3553_v27 = vld [vmem:[%s5650_s24 + $0x20] sm:$0xff] }
 0x225   : > { %v3063_v51 = vadd.f32 %v3036_v45, %v2920_v50  ;;  %v3064_v55 = vadd.f32 %v3054_v20, %v2921_v49  ;;  %v3554_v50 = vld [vmem:[%s5650_s24 + $0x28] sm:$0xff] }
 0x227   : > { %v3356_v1 = vpop.f32.mrf.mxu0  ;;  %v3374_v11 = vpop.f32.mrf.mxu1 }
 0x22a   : > { %v2895_v39 = vpop.f32.mrf.mxu2  ;;  %v2913_v58 = vpop.f32.mrf.mxu3 }
 0x22b   : > { %v2922_v12 = vadd.f32 %v2895_v39, %v2760_v52  ;;  %v2923_v40 = vadd.f32 %v2913_v58, %v2761_v53  ;;  %v3566_v52 = vrot.slane %v3549_v44, 7  ;;  %v3567_v53 = vrot.slane %v3551_v13, 7 }
 0x22d   : > { %v3065_v59 = vadd.f32 %v3038_v61, %v2922_v12  ;;  %v3066_v63 = vadd.f32 %v3056_v15, %v2923_v40  ;;  %v3569_v61 = vrot.slane %v3550_v23, 7  ;;  %v3570_v15 = vrot.slane %v3552_v31, 7 }
 0x22f   : > { %v7361_v21 = vpop.f32.mrf.mxu0  ;;  %v7363_v22 = vpop.f32.mrf.mxu1  ;;  %v3571_v36 = vsel %vm3565_vm0, %v3569_v61, %v3570_v15 }
 0x232   : > { %v2898_v57 = vpop.f32.mrf.mxu2  ;;  %v2916_v32 = vpop.f32.mrf.mxu3 }
 0x233   : > { %v2924_v56 = vadd.f32 %v2898_v57, %v2762_v24  ;;  %v2925_v28 = vadd.f32 %v2916_v32, %v2763_v33 }
 0x235   : > { %v7365_v4 = vadd.f32 %v3041_v34, %v2924_v56  ;;  %v7367_v5 = vadd.f32 %v3059_v54, %v2925_v28  ;;  %v3568_v54 = vsel %vm3565_vm0, %v3566_v52, %v3567_v53 }
 0x237   : > { %v7369_v48 = vpop.f32.mrf.mxu0  ;;  %v7371_v19 = vpop.f32.mrf.mxu1 }
 0x23a   : > { %v2900_v42 = vpop.f32.mrf.mxu2  ;;  %v2918_v43 = vpop.f32.mrf.mxu3 }
 0x23f   : > { %v3363_v2 = vpop.f32.mrf.mxu0  ;;  %v3381_v29 = vpop.f32.mrf.mxu1 }
 0x242   : > { %v3194_v26 = vpop.f32.mrf.mxu2  ;;  %v3212_v60 = vpop.f32.mrf.mxu3 }
 0x243   : > { %v3221_v45 = vadd.f32 %v3194_v26, %v3063_v51  ;;  %v3222_v20 = vadd.f32 %v3212_v60, %v3064_v55  ;;  %v3572_v55 = vrot.slane %v3553_v27, 7  ;;  %v3555_v60 = vld [vmem:[%s5650_s24 + $0x30] sm:$0x7f] }
 0x244   : > { %v3576_v9 = vrot.slane %v3555_v60, 7 }
 0x245   : > { %v3383_v0 = vadd.f32 %v3356_v1, %v3221_v45  ;;  %v3384_v47 = vadd.f32 %v3374_v11, %v3222_v20  ;;  %v3574_v1 = vrot.slane %v3554_v50, 7 }
 0x246   : > { %v3577_v52 = vsel %vm3565_vm0, %v3572_v55, %v3576_v9 }
 0x247   : > { %v3575_v43 = vsel %vm3565_vm0, %v3570_v15, %v3574_v1 }
 0x24a   : > { %v3196_v8 = vpop.f32.mrf.mxu2  ;;  %v3214_v30 = vpop.f32.mrf.mxu3 }
 0x24b   : > { %v3223_v3 = vadd.f32 %v3196_v8, %v3065_v59  ;;  %v3224_v25 = vadd.f32 %v3214_v30, %v3066_v63  ;;  %v3556_v8 = vld [vmem:[%s5650_s24 + $0x38] sm:$0x7f] }
 0x24d   : > { %v3385_v58 = vadd.f32 %v7361_v21, %v3223_v3  ;;  %v3386_v12 = vadd.f32 %v7363_v22, %v3224_v25  ;;  %v3573_v21 = vsel %vm3565_vm0, %v3567_v53, %v3572_v55 }
 0x252   : > { %v3199_v10 = vpop.f32.mrf.mxu2  ;;  %v3217_v17 = vpop.f32.mrf.mxu3 }
 0x253   : > { %v3225_v22 = vadd.f32 %v3199_v10, %v7365_v4  ;;  %v3226_v2 = vadd.f32 %v3217_v17, %v7367_v5 }
 0x255   : > { %v3387_v44 = vadd.f32 %v7369_v48, %v3225_v22  ;;  %v3388_v4 = vadd.f32 %v7371_v19, %v3226_v2 }
 0x25a   : > { %v3201_v6 = vpop.f32.mrf.mxu2  ;;  %v3219_v14 = vpop.f32.mrf.mxu3 }
 0x25b   : > { %v3578_v6 = vrot.slane %v3556_v8, 7 }
 0x25d   : > { %v3579_v48 = vsel %vm3565_vm0, %v3574_v1, %v3578_v6 }
 0x262   : > { %v3504_v35 = vpop.f32.mrf.mxu2  ;;  %v3522_v24 = vpop.f32.mrf.mxu3 }
 0x263   : > { %v3531_v33 = vadd.f32 %v3504_v35, %v3383_v0  ;;  %v3532_v34 = vadd.f32 %v3522_v24, %v3384_v47 }
 0x265   : > { %v3543_v37 = vadd.f32 %v7395_v46, %v3531_v33  ;;  %v3544_v7 = vadd.f32 %v3540_v62, %v3532_v34 }
 0x267   : > { %v3586_v49 = vadd.f32 %v3568_v54, %v3543_v37  ;;  %v3587_v51 = vadd.f32 %v3571_v36, %v3544_v7 }
 0x269   : > { %v3592_v11 = vmax.f32 %v3586_v49, 0.0  ;;  %v3593_v39 = vmax.f32 %v3587_v51, 0.0 }
 0x26a   : > { %v3506_v40 = vpop.f32.mrf.mxu2  ;;  %v3524_v59 = vpop.f32.mrf.mxu3 }
 0x26b   : > { %v3598_v63 = vsel %vm6448_vm15, %v3592_v11, 0.0  ;;  %v3599_v57 = vsel %vm6448_vm15, %v3593_v39, 0.0  ;;  %v3533_v32 = vadd.f32 %v3506_v40, %v3385_v58  ;;  %v3534_v56 = vadd.f32 %v3524_v59, %v3386_v12 }
 0x26c   : > { %v3623_v28 = vrot.slane %v3598_v63, 1  ;;  %v3624_v42 = vrot.slane %v3599_v57, 1 }
 0x26d   : > { %v3545_v29 = vadd.f32 %v7395_v46, %v3533_v32  ;;  %v3546_v26 = vadd.f32 %v3540_v62, %v3534_v56 }
 0x26e   : > { %3641 = vst [vmem:[%s7378_s29] sm:$0x80] %v3623_v28 }
 0x26f   : > { %3642 = vst [vmem:[%s7378_s29 + $0x8] sm:$0x80] %v3624_v42  ;;  %v3588_v41 = vadd.f32 %v3573_v21, %v3545_v29  ;;  %v3589_v30 = vadd.f32 %v3575_v43, %v3546_v26 }
 0x271   : > { %v3594_v14 = vmax.f32 %v3588_v41, 0.0  ;;  %v3595_v18 = vmax.f32 %v3589_v30, 0.0 }
 0x272   : > { %v3509_v10 = vpop.f32.mrf.mxu2  ;;  %v3527_v5 = vpop.f32.mrf.mxu3 }
 0x273   : > { %v3600_v17 = vsel %vm6606_vm14, %v3594_v14, 0.0  ;;  %v3601_v45 = vsel %vm6606_vm14, %v3595_v18, 0.0  ;;  %v3535_v20 = vadd.f32 %v3509_v10, %v3387_v44  ;;  %v3536_v13 = vadd.f32 %v3527_v5, %v3388_v4 }
 0x274   : > { %v3625_v23 = vrot.slane %v3600_v17, 1  ;;  %v3627_v31 = vrot.slane %v3601_v45, 1 }
 0x275   : > { %v3547_v53 = vadd.f32 %v7395_v46, %v3535_v20  ;;  %v3548_v19 = vadd.f32 %v3540_v62, %v3536_v13 }
 0x276   : > { %v3626_v61 = vsel %vm762_vm1, %v3623_v28, %v3625_v23  ;;  %v3628_v15 = vsel %vm762_vm1, %v3624_v42, %v3627_v31 }
 0x277   : > { %3643 = vst [vmem:[%s7378_s29 + $0x10] sm:$0xff] %v3626_v61  ;;  %v3590_v16 = vadd.f32 %v3577_v52, %v3547_v53  ;;  %v3591_v0 = vadd.f32 %v3579_v48, %v3548_v19 }
 0x278   : > { %3644 = vst [vmem:[%s7378_s29 + $0x18] sm:$0xff] %v3628_v15 }
 0x279   : > { %v3596_v47 = vmax.f32 %v3590_v16, 0.0  ;;  %v3597_v35 = vmax.f32 %v3591_v0, 0.0 }
 0x27a   : > { %v3511_v24 = vpop.f32.mrf.mxu2  ;;  %v3529_v33 = vpop.f32.mrf.mxu3 }
 0x27b   : > { %v3602_v46 = vsel %vm6645_vm9, %v3596_v47, 0.0  ;;  %v3603_v62 = vsel %vm6645_vm9, %v3597_v35, 0.0 }
 0x27c   : > { %v3629_v34 = vrot.slane %v3602_v46, 1  ;;  %v3631_v54 = vrot.slane %v3603_v62, 1 }
 0x27e   : > { %v3630_v36 = vsel %vm762_vm1, %v3625_v23, %v3629_v34  ;;  %3647 = vst [vmem:[%s7378_s29 + $0x30] sm:$0x7f] %v3629_v34  ;;  %v3632_v3 = vsel %vm762_vm1, %v3627_v31, %v3631_v54 }
 0x27f   : > { %3645 = vst [vmem:[%s7378_s29 + $0x20] sm:$0xff] %v3630_v36 }
 0x280   : > { %3646 = vst [vmem:[%s7378_s29 + $0x28] sm:$0xff] %v3632_v3 }
 0x281   : > { %3648 = vst [vmem:[%s7378_s29 + $0x38] sm:$0x7f] %v3631_v54 }
 0x282 PF: > { %s15_s18 = sadd.s32 1, %s5564_s18  }
 0x283   : > { %p12_p4 = scmp.ge.s32.totalorder %s15_s18, 4  }
 0x285   :  { %14 = sbr.rel (!%p12_p4) target bundleno = 1 (0x1), region = 86 }

</bundles_post_ra>
